<compile_context>
chip_gen: v5e
topology: v5e:2x2
jax: 0.10.0
libtpu: 0.0.40
codegen_flags: <defaults>
</compile_context>

<pallas_src>
import functools

import jax
import jax.numpy as jnp
from jax.experimental import pallas as pl
from jax.experimental.pallas import tpu as pltpu

BN_EPS = 1e-5


def _vmem_specs(n):
    return [pl.BlockSpec(memory_space=pltpu.MemorySpace.VMEM) for _ in range(n)]


# --------------------------------------------------------------------------------------
# The single fused kernel: CNN x3 -> FC -> BiLSTM (+max pool over time) -> heads.
# --------------------------------------------------------------------------------------
def fused_forward_kernel(B, T, pools, use_features,
                         # inputs
                         xwin_ref, feat_ref,
                         w1_ref, b1_ref, wr1_ref, br1_ref,
                         wc2_ref, b2_ref, wr2_ref, br2_ref,
                         wc3_ref, b3_ref, wr3_ref, br3_ref,
                         wfc_ref, bfc_ref,
                         wih_ref, bih_ref, whhf_ref, whhb_ref,
                         wft_ref, bft_ref,
                         whpf_ref, whpb_ref, whpx_ref, bhead_ref,
                         # outputs
                         tox_ref, cat_ref,
                         # scratch
                         seq_ref, pad2_ref, pad3_ref):
    p1, p2, p3 = pools
    H = whhf_ref.shape[0]                       # 64
    G = 4 * H

    # ---- CNN layer 1: glue-side im2col -> ONE MXU matmul, batch folded into M ----------
    BL1 = xwin_ref.shape[0]                     # B * L1
    Cl1 = w1_ref.shape[1]
    y = jnp.dot(xwin_ref[...], w1_ref[...],
                preferred_element_type=jnp.float32) + b1_ref[...]
    y = jnp.maximum(y, 0.0)                     # conv + folded BN + ReLU
    # MaxPool1d(p, p).  L1 % p1 == 0, so pool groups never straddle batch boundaries.
    y = y.reshape(BL1 // p1, p1, Cl1).max(axis=1)
    z1 = jnp.dot(y, wr1_ref[...], preferred_element_type=jnp.float32) + br1_ref[...]
    z1 = jnp.maximum(z1, 0.0)                   # (B*L2, Cs), rows grouped per batch
    L2 = (BL1 // p1) // B

    # ---- CNN layers 2 & 3: tiny, per-batch (B static & small), per-tap matmuls ---------
    def conv_block(xp, wconv_ref, bconv, wred_ref, bred, pool):
        K, _, Cl = wconv_ref.shape
        Lp = xp.shape[0]
        L = Lp - K + 1
        acc = jnp.zeros((L, Cl), jnp.float32)
        for k in range(K):                      # static unroll; each tap is a full matmul
            acc = acc + jnp.dot(xp[k:k + L, :], wconv_ref[k],
                                preferred_element_type=jnp.float32)
        yk = jnp.maximum(acc + bconv, 0.0)      # conv + folded BN + ReLU
        yk = yk.reshape(L // pool, pool, Cl).max(axis=1)
        zk = jnp.dot(yk, wred_ref[...], preferred_element_type=jnp.float32) + bred
        return jnp.maximum(zk, 0.0)

    b2 = b2_ref[...]
    br2 = br2_ref[...]
    b3 = b3_ref[...]
    br3 = br3_ref[...]
    K2 = wc2_ref.shape[0]
    K3 = wc3_ref.shape[0]
    # Zero the padded-input scratch once; data rows are overwritten per batch, pad rows
    # stay zero (symmetric 'same' padding).
    pad2_ref[...] = jnp.zeros_like(pad2_ref)
    pad3_ref[...] = jnp.zeros_like(pad3_ref)

    for b in range(B):
        pad2_ref[K2 // 2:K2 // 2 + L2, :] = z1[b * L2:(b + 1) * L2, :]
        z2 = conv_block(pad2_ref[...], wc2_ref, b2, wr2_ref, br2, p2)   # (L3, Cs)
        L3 = z2.shape[0]
        pad3_ref[K3 // 2:K3 // 2 + L3, :] = z2
        z3 = conv_block(pad3_ref[...], wc3_ref, b3, wr3_ref, br3, p3)   # (T, Cs)
        for t in range(T):                      # stitch time-major rows: row = t*B + b
            seq_ref[t * B + b:t * B + b + 1, :] = z3[t:t + 1, :]

    # ---- FC(+folded BN)+ReLU fused with the hoisted bidirectional LSTM input projection
    xs = seq_ref[...]                                          # (T*B, Cs) time-major
    xf = jnp.dot(xs, wfc_ref[...], preferred_element_type=jnp.float32) + bfc_ref[...]
    xf = jnp.maximum(xf, 0.0)
    # TODO(synk): dropout sites (CNN/FC/LSTM) are identity in eval; MC-dropout would add
    #             pltpu.prng_seed + pltpu.prng_random_bits masks here.
    gx = jnp.dot(xf, wih_ref[...], preferred_element_type=jnp.float32) + bih_ref[...]
    # gx: (T*B, 8H); columns [0:4H] forward gates, [4H:8H] backward gates (i, f, g, o).

    # ---- Interleaved bidirectional LSTM recurrence + global max pool over time ---------
    whh_f = whhf_ref[...]
    whh_b = whhb_ref[...]

    def cell(g, c):
        i_g = jax.nn.sigmoid(g[:, 0:H])
        f_g = jax.nn.sigmoid(g[:, H:2 * H])
        g_g = jnp.tanh(g[:, 2 * H:3 * H])
        o_g = jax.nn.sigmoid(g[:, 3 * H:4 * H])
        c = f_g * c + i_g * g_g
        return o_g * jnp.tanh(c), c

    h_f = jnp.zeros((B, H), jnp.float32)
    c_f = jnp.zeros((B, H), jnp.float32)
    m_f = jnp.full((B, H), -jnp.inf, jnp.float32)
    h_b = jnp.zeros((B, H), jnp.float32)
    c_b = jnp.zeros((B, H), jnp.float32)
    m_b = jnp.full((B, H), -jnp.inf, jnp.float32)
    for s in range(T):                          # static unroll; fwd & bwd interleaved
        tf_, tb_ = s, T - 1 - s
        g_f = gx[tf_ * B:(tf_ + 1) * B, 0:G] + jnp.dot(
            h_f, whh_f, preferred_element_type=jnp.float32)
        g_b = gx[tb_ * B:(tb_ + 1) * B, G:2 * G] + jnp.dot(
            h_b, whh_b, preferred_element_type=jnp.float32)
        h_f, c_f = cell(g_f, c_f)
        m_f = jnp.maximum(m_f, h_f)
        h_b, c_b = cell(g_b, c_b)
        m_b = jnp.maximum(m_b, h_b)

    # ---- Feature branch + both heads as one fused matmul (split contraction) -----------
    if use_features:
        fv = jnp.dot(feat_ref[...], wft_ref[...],
                     preferred_element_type=jnp.float32) + bft_ref[...]
        fv = jnp.maximum(fv, 0.0)
    else:
        fv = jnp.zeros((B, wft_ref.shape[1]), jnp.float32)   # torch zero-pads this slot
    out = (jnp.dot(m_f, whpf_ref[...], preferred_element_type=jnp.float32)
           + jnp.dot(m_b, whpb_ref[...], preferred_element_type=jnp.float32)
           + jnp.dot(fv, whpx_ref[...], preferred_element_type=jnp.float32)
           + bhead_ref[...])                                  # (B, 3 + 4)
    n_tox = tox_ref.shape[1]
    tox_ref[...] = out[:, :n_tox]
    cat_ref[...] = out[:, n_tox:]


# --------------------------------------------------------------------------------------
# Parameters (deterministic, shapes follow the PyTorch __init__; weight_norm is identity).
# --------------------------------------------------------------------------------------
def init_params(key, n_chars=40, char_emb_dim=50, lstm_hidden=64):
    keys = iter(jax.random.split(key, 40))

    def nrm(shape, scale):
        return (scale * jax.random.normal(next(keys), shape)).astype(jnp.float32)

    bn_s = lambda c: jnp.full((1, c), 1.0 / (1.0 + BN_EPS) ** 0.5, jnp.float32)
    bn_t = lambda c: jnp.zeros((1, c), jnp.float32)

    emb = 0.1 * jax.random.normal(next(keys), (n_chars, char_emb_dim))
    emb = emb.at[0].set(0.0)                                 # padding_idx=0
    params = {'embedding': emb.astype(jnp.float32)}

    cnn_cfgs = [(char_emb_dim, 256, 64, 7, 3),
                (64, 256, 64, 7, 3),
                (64, 256, 64, 3, 3)]
    cnn = []
    for cin, cl, cs, k, pool in cnn_cfgs:
        cnn.append(dict(
            wconv=nrm((k, cin, cl), (2.0 / (cl * k)) ** 0.5),
            bconv=jnp.zeros((1, cl), jnp.float32),
            s1=bn_s(cl), t1=bn_t(cl),
            wred=nrm((cl, cs), (2.0 / cs) ** 0.5),
            bred=jnp.zeros((1, cs), jnp.float32),
            s2=bn_s(cs), t2=bn_t(cs),
            pool=pool,
        ))
    params['cnn'] = cnn

    params['fc'] = dict(
        w=nrm((64, 256), (2.0 / (64 + 256)) ** 0.5),
        b=jnp.zeros((1, 256), jnp.float32),
        s=bn_s(256), t=bn_t(256),
    )

    H = lstm_hidden

    def lstm_dir():
        return dict(
            wih=nrm((256, 4 * H), 0.05),
            whh=nrm((H, 4 * H), 0.05),
            b=jnp.zeros((1, 4 * H), jnp.float32),            # b_ih + b_hh (both 0)
        )

    params['lstm'] = dict(fwd=lstm_dir(), bwd=lstm_dir())

    combined_dim = 2 * H + 32
    params['head'] = dict(
        wf=nrm((3, 32), (2.0 / 35) ** 0.5),
        bf=jnp.zeros((1, 32), jnp.float32),
        sf=bn_s(32), tf=bn_t(32),
        wt=nrm((combined_dim, 3), 0.01),
        bt=jnp.full((1, 3), -0.2, jnp.float32),
        wc=nrm((combined_dim, 4), 0.01),
        bc=jnp.full((1, 4), -0.3, jnp.float32),
    )
    return params


def fold_params(params):
    """Fold eval-mode BatchNorm into the preceding linear/conv weights and pre-build the
    fused/concatenated weights the kernel expects (done once, outside the kernel)."""
    def fold(w, b, s, t):
        return w * s, b * s + t

    c1, c2, c3 = params['cnn']
    H = params['lstm']['fwd']['whh'].shape[0]

    w1, b1 = fold(c1['wconv'], c1['bconv'], c1['s1'], c1['t1'])
    K1, Cin1, Cl1 = w1.shape
    wr1, br1 = fold(c1['wred'], c1['bred'], c1['s2'], c1['t2'])
    wc2, b2 = fold(c2['wconv'], c2['bconv'], c2['s1'], c2['t1'])
    wr2, br2 = fold(c2['wred'], c2['bred'], c2['s2'], c2['t2'])
    wc3, b3 = fold(c3['wconv'], c3['bconv'], c3['s1'], c3['t1'])
    wr3, br3 = fold(c3['wred'], c3['bred'], c3['s2'], c3['t2'])

    wfc, bfc = fold(params['fc']['w'], params['fc']['b'],
                    params['fc']['s'], params['fc']['t'])

    lf, lb = params['lstm']['fwd'], params['lstm']['bwd']
    wih = jnp.concatenate([lf['wih'], lb['wih']], axis=1)    # (256, 8H)
    bih = jnp.concatenate([lf['b'], lb['b']], axis=1)        # (1, 8H)

    hd = params['head']
    wft, bft = fold(hd['wf'], hd['bf'], hd['sf'], hd['tf'])
    whead = jnp.concatenate([hd['wt'], hd['wc']], axis=1)    # (2H+32, 7)
    bhead = jnp.concatenate([hd['bt'], hd['bc']], axis=1)    # (1, 7)

    return dict(
        embedding=params['embedding'],
        # layer-1 conv weight flattened to match the glue-side im2col column order.
        w1=w1.reshape(K1 * Cin1, Cl1), b1=b1, wr1=wr1, br1=br1,
        wc2=wc2, b2=b2, wr2=wr2, br2=br2,
        wc3=wc3, b3=b3, wr3=wr3, br3=br3,
        wfc=wfc, bfc=bfc,
        wih=wih, bih=bih, whh_f=lf['whh'], whh_b=lb['whh'],
        wft=wft, bft=bft,
        whp_f=whead[:H], whp_b=whead[H:2 * H], whp_x=whead[2 * H:], bhead=bhead,
    )


# --------------------------------------------------------------------------------------
# Full forward pass: embedding gather + layer-1 im2col in XLA glue, everything else in
# the single fused Pallas kernel.
# --------------------------------------------------------------------------------------
@functools.partial(jax.jit, static_argnames=("pools",))
def forward(fp, char_ids, toxicity_features=None, pools=(3, 3, 3)):
    B, L1 = char_ids.shape
    emb = fp['embedding']
    Cin = emb.shape[1]
    x = jnp.take(emb, char_ids, axis=0)                      # (B, L1, Cin) channels-last

    K1 = fp['w1'].shape[0] // Cin
    pad = K1 // 2
    xp = jnp.pad(x, ((0, 0), (pad, pad), (0, 0)))
    # Glue-side im2col for layer 1: K shifted windows stacked on the channel axis, so the
    # in-kernel conv is one MXU matmul with batch folded into the M dimension.
    xwin = jnp.concatenate([xp[:, k:k + L1, :] for k in range(K1)], axis=2)
    xwin = xwin.reshape(B * L1, K1 * Cin).astype(jnp.float32)

    p1, p2, p3 = pools
    assert L1 % p1 == 0 and (L1 // p1) % p2 == 0 and (L1 // (p1 * p2)) % p3 == 0
    L2 = L1 // p1
    L3 = L2 // p2
    T = L3 // p3
    K2 = fp['wc2'].shape[0]
    K3 = fp['wc3'].shape[0]
    Cs = fp['wr1'].shape[1]

    use_features = toxicity_features is not None
    feats = (toxicity_features.astype(jnp.float32) if use_features
             else jnp.zeros((B, fp['wft'].shape[0]), jnp.float32))

    kernel = functools.partial(fused_forward_kernel, B, T, pools, use_features)
    return pl.pallas_call(
        kernel,
        out_shape=(jax.ShapeDtypeStruct((B, 3), jnp.float32),
                   jax.ShapeDtypeStruct((B, 4), jnp.float32)),
        in_specs=_vmem_specs(26),
        out_specs=(pl.BlockSpec(memory_space=pltpu.MemorySpace.VMEM),
                   pl.BlockSpec(memory_space=pltpu.MemorySpace.VMEM)),
        scratch_shapes=[
            pltpu.VMEM((T * B, Cs), jnp.float32),        # CNN out, time-major rows t*B+b
            pltpu.VMEM((L2 + K2 - 1, Cs), jnp.float32),  # zero-padded layer-2 input
            pltpu.VMEM((L3 + K3 - 1, Cs), jnp.float32),  # zero-padded layer-3 input
        ],
    )(xwin, feats,
      fp['w1'], fp['b1'], fp['wr1'], fp['br1'],
      fp['wc2'], fp['b2'], fp['wr2'], fp['br2'],
      fp['wc3'], fp['b3'], fp['wr3'], fp['br3'],
      fp['wfc'], fp['bfc'],
      fp['wih'], fp['bih'], fp['whh_f'], fp['whh_b'],
      fp['wft'], fp['bft'],
      fp['whp_f'], fp['whp_b'], fp['whp_x'], fp['bhead'])


if __name__ == "__main__":
    key = jax.random.PRNGKey(0)
    k_param, k_ids, k_feat = jax.random.split(key, 3)

    n_chars = 40
    B, L = 2, 54          # 54 -> 18 -> 6 -> 2 after the three pool-3 CNN layers
    params = init_params(k_param, n_chars=n_chars)
    fparams = fold_params(params)

    char_ids = jax.random.randint(k_ids, (B, L), 0, n_chars, dtype=jnp.int32)
    tox_feats = jax.random.normal(k_feat, (B, 3), dtype=jnp.float32)

    tox_out, cat_out = forward(fparams, char_ids, tox_feats)
    jax.block_until_ready((tox_out, cat_out))

    assert tox_out.shape == (B, 3) and cat_out.shape == (B, 4)
    assert bool(jnp.all(jnp.isfinite(tox_out))) and bool(jnp.all(jnp.isfinite(cat_out)))
    print("KERNEL_OK")
</pallas_src>

<mosaic_0001>
module attributes {stable_mosaic.version = 11 : i64} {
  func.func @fused_forward_kernel(%arg0: memref<108x350xf32, #tpu.memory_space<vmem>>, %arg1: memref<2x3xf32, #tpu.memory_space<vmem>>, %arg2: memref<350x256xf32, #tpu.memory_space<vmem>>, %arg3: memref<1x256xf32, #tpu.memory_space<vmem>>, %arg4: memref<256x64xf32, #tpu.memory_space<vmem>>, %arg5: memref<1x64xf32, #tpu.memory_space<vmem>>, %arg6: memref<7x64x256xf32, #tpu.memory_space<vmem>>, %arg7: memref<1x256xf32, #tpu.memory_space<vmem>>, %arg8: memref<256x64xf32, #tpu.memory_space<vmem>>, %arg9: memref<1x64xf32, #tpu.memory_space<vmem>>, %arg10: memref<3x64x256xf32, #tpu.memory_space<vmem>>, %arg11: memref<1x256xf32, #tpu.memory_space<vmem>>, %arg12: memref<256x64xf32, #tpu.memory_space<vmem>>, %arg13: memref<1x64xf32, #tpu.memory_space<vmem>>, %arg14: memref<64x256xf32, #tpu.memory_space<vmem>>, %arg15: memref<1x256xf32, #tpu.memory_space<vmem>>, %arg16: memref<256x512xf32, #tpu.memory_space<vmem>>, %arg17: memref<1x512xf32, #tpu.memory_space<vmem>>, %arg18: memref<64x256xf32, #tpu.memory_space<vmem>>, %arg19: memref<64x256xf32, #tpu.memory_space<vmem>>, %arg20: memref<3x32xf32, #tpu.memory_space<vmem>>, %arg21: memref<1x32xf32, #tpu.memory_space<vmem>>, %arg22: memref<64x7xf32, #tpu.memory_space<vmem>>, %arg23: memref<64x7xf32, #tpu.memory_space<vmem>>, %arg24: memref<32x7xf32, #tpu.memory_space<vmem>>, %arg25: memref<1x7xf32, #tpu.memory_space<vmem>>, %arg26: memref<2x3xf32, #tpu.memory_space<vmem>>, %arg27: memref<2x4xf32, #tpu.memory_space<vmem>>, %arg28: memref<4x64xf32, #tpu.memory_space<vmem>>, %arg29: memref<24x64xf32, #tpu.memory_space<vmem>>, %arg30: memref<8x64xf32, #tpu.memory_space<vmem>>) attributes {dimension_semantics = [], scalar_prefetch = 0 : i64, scratch_operands = 3 : i64, tpu.core_type = #tpu.core_type<tc>} {
    %c0 = arith.constant 0 : index
    %c0_0 = arith.constant 0 : index
    %0 = vector.load %arg0[%c0, %c0_0] : memref<108x350xf32, #tpu.memory_space<vmem>>, vector<108x350xf32>
    %c0_1 = arith.constant 0 : index
    %c0_2 = arith.constant 0 : index
    %1 = vector.load %arg2[%c0_1, %c0_2] : memref<350x256xf32, #tpu.memory_space<vmem>>, vector<350x256xf32>
    %cst = arith.constant dense<0.000000e+00> : vector<108x256xf32>
    %2 = tpu.matmul %0, %1, %cst {dimension_numbers = #tpu.dot_dimension_numbers<[1], [0], [0], [1], [0, 0, 1, 1], [], []>} : vector<108x350xf32>, vector<350x256xf32>, vector<108x256xf32> -> vector<108x256xf32>
    %c0_3 = arith.constant 0 : index
    %c0_4 = arith.constant 0 : index
    %3 = vector.load %arg3[%c0_3, %c0_4] : memref<1x256xf32, #tpu.memory_space<vmem>>, vector<1x256xf32>
    %4 = vector.broadcast %3 : vector<1x256xf32> to vector<108x256xf32>
    %5 = arith.addf %2, %4 : vector<108x256xf32>
    %cst_5 = arith.constant 0.000000e+00 : f32
    %6 = vector.broadcast %cst_5 : f32 to vector<108x256xf32>
    %7 = arith.maximumf %5, %6 : vector<108x256xf32>
    %8 = vector.shape_cast %7 : vector<108x256xf32> to vector<36x3x256xf32>
    %cst_6 = arith.constant dense<0xFF800000> : vector<36x256xf32>
    %9 = vector.multi_reduction <maximumf>, %8, %cst_6 [1] : vector<36x3x256xf32> to vector<36x256xf32>
    %c0_7 = arith.constant 0 : index
    %c0_8 = arith.constant 0 : index
    %10 = vector.load %arg4[%c0_7, %c0_8] : memref<256x64xf32, #tpu.memory_space<vmem>>, vector<256x64xf32>
    %cst_9 = arith.constant dense<0.000000e+00> : vector<36x64xf32>
    %11 = tpu.matmul %9, %10, %cst_9 {dimension_numbers = #tpu.dot_dimension_numbers<[1], [0], [0], [1], [0, 0, 1, 1], [], []>} : vector<36x256xf32>, vector<256x64xf32>, vector<36x64xf32> -> vector<36x64xf32>
    %c0_10 = arith.constant 0 : index
    %c0_11 = arith.constant 0 : index
    %12 = vector.load %arg5[%c0_10, %c0_11] : memref<1x64xf32, #tpu.memory_space<vmem>>, vector<1x64xf32>
    %13 = vector.broadcast %12 : vector<1x64xf32> to vector<36x64xf32>
    %14 = arith.addf %11, %13 : vector<36x64xf32>
    %cst_12 = arith.constant 0.000000e+00 : f32
    %15 = vector.broadcast %cst_12 : f32 to vector<36x64xf32>
    %16 = arith.maximumf %14, %15 : vector<36x64xf32>
    %c0_13 = arith.constant 0 : index
    %c0_14 = arith.constant 0 : index
    %17 = vector.load %arg7[%c0_13, %c0_14] : memref<1x256xf32, #tpu.memory_space<vmem>>, vector<1x256xf32>
    %c0_15 = arith.constant 0 : index
    %c0_16 = arith.constant 0 : index
    %18 = vector.load %arg9[%c0_15, %c0_16] : memref<1x64xf32, #tpu.memory_space<vmem>>, vector<1x64xf32>
    %c0_17 = arith.constant 0 : index
    %c0_18 = arith.constant 0 : index
    %19 = vector.load %arg11[%c0_17, %c0_18] : memref<1x256xf32, #tpu.memory_space<vmem>>, vector<1x256xf32>
    %c0_19 = arith.constant 0 : index
    %c0_20 = arith.constant 0 : index
    %20 = vector.load %arg13[%c0_19, %c0_20] : memref<1x64xf32, #tpu.memory_space<vmem>>, vector<1x64xf32>
    %cst_21 = arith.constant 0.000000e+00 : f32
    %21 = vector.broadcast %cst_21 : f32 to vector<24x64xf32>
    %c0_22 = arith.constant 0 : index
    %c0_23 = arith.constant 0 : index
    %22 = vector.load %arg29[%c0_22, %c0_23] : memref<24x64xf32, #tpu.memory_space<vmem>>, vector<24x64xf32>
    tpu.vector_store %arg29[%c0_22, %c0_23], %21 {strides = array<i32>} : memref<24x64xf32, #tpu.memory_space<vmem>>, vector<24x64xf32>,
    %cst_24 = arith.constant 0.000000e+00 : f32
    %23 = vector.broadcast %cst_24 : f32 to vector<8x64xf32>
    %c0_25 = arith.constant 0 : index
    %c0_26 = arith.constant 0 : index
    %24 = vector.load %arg30[%c0_25, %c0_26] : memref<8x64xf32, #tpu.memory_space<vmem>>, vector<8x64xf32>
    tpu.vector_store %arg30[%c0_25, %c0_26], %23 {strides = array<i32>} : memref<8x64xf32, #tpu.memory_space<vmem>>, vector<8x64xf32>,
    %25 = vector.extract_strided_slice %16 {offsets = [0, 0], sizes = [18, 64], strides = [1, 1]} : vector<36x64xf32> to vector<18x64xf32>
    %c3 = arith.constant 3 : index
    %c0_27 = arith.constant 0 : index
    %26 = vector.load %arg29[%c3, %c0_27] : memref<24x64xf32, #tpu.memory_space<vmem>>, vector<18x64xf32>
    tpu.vector_store %arg29[%c3, %c0_27], %25 {strides = array<i32>} : memref<24x64xf32, #tpu.memory_space<vmem>>, vector<18x64xf32>,
    %c0_28 = arith.constant 0 : index
    %c0_29 = arith.constant 0 : index
    %27 = vector.load %arg29[%c0_28, %c0_29] : memref<24x64xf32, #tpu.memory_space<vmem>>, vector<24x64xf32>
    %cst_30 = arith.constant 0.000000e+00 : f32
    %28 = vector.broadcast %cst_30 : f32 to vector<18x256xf32>
    %29 = vector.extract_strided_slice %27 {offsets = [0, 0], sizes = [18, 64], strides = [1, 1]} : vector<24x64xf32> to vector<18x64xf32>
    %c0_31 = arith.constant 0 : index
    %c0_32 = arith.constant 0 : index
    %c0_33 = arith.constant 0 : index
    %30 = vector.load %arg6[%c0_31, %c0_32, %c0_33] : memref<7x64x256xf32, #tpu.memory_space<vmem>>, vector<1x64x256xf32>
    %31 = vector.shape_cast %30 : vector<1x64x256xf32> to vector<64x256xf32>
    %cst_34 = arith.constant dense<0.000000e+00> : vector<18x256xf32>
    %32 = tpu.matmul %29, %31, %cst_34 {dimension_numbers = #tpu.dot_dimension_numbers<[1], [0], [0], [1], [0, 0, 1, 1], [], []>} : vector<18x64xf32>, vector<64x256xf32>, vector<18x256xf32> -> vector<18x256xf32>
    %33 = arith.addf %28, %32 : vector<18x256xf32>
    %34 = vector.extract_strided_slice %27 {offsets = [1, 0], sizes = [18, 64], strides = [1, 1]} : vector<24x64xf32> to vector<18x64xf32>
    %c1 = arith.constant 1 : index
    %c0_35 = arith.constant 0 : index
    %c0_36 = arith.constant 0 : index
    %35 = vector.load %arg6[%c1, %c0_35, %c0_36] : memref<7x64x256xf32, #tpu.memory_space<vmem>>, vector<1x64x256xf32>
    %36 = vector.shape_cast %35 : vector<1x64x256xf32> to vector<64x256xf32>
    %cst_37 = arith.constant dense<0.000000e+00> : vector<18x256xf32>
    %37 = tpu.matmul %34, %36, %cst_37 {dimension_numbers = #tpu.dot_dimension_numbers<[1], [0], [0], [1], [0, 0, 1, 1], [], []>} : vector<18x64xf32>, vector<64x256xf32>, vector<18x256xf32> -> vector<18x256xf32>
    %38 = arith.addf %33, %37 : vector<18x256xf32>
    %39 = vector.extract_strided_slice %27 {offsets = [2, 0], sizes = [18, 64], strides = [1, 1]} : vector<24x64xf32> to vector<18x64xf32>
    %c2 = arith.constant 2 : index
    %c0_38 = arith.constant 0 : index
    %c0_39 = arith.constant 0 : index
    %40 = vector.load %arg6[%c2, %c0_38, %c0_39] : memref<7x64x256xf32, #tpu.memory_space<vmem>>, vector<1x64x256xf32>
    %41 = vector.shape_cast %40 : vector<1x64x256xf32> to vector<64x256xf32>
    %cst_40 = arith.constant dense<0.000000e+00> : vector<18x256xf32>
    %42 = tpu.matmul %39, %41, %cst_40 {dimension_numbers = #tpu.dot_dimension_numbers<[1], [0], [0], [1], [0, 0, 1, 1], [], []>} : vector<18x64xf32>, vector<64x256xf32>, vector<18x256xf32> -> vector<18x256xf32>
    %43 = arith.addf %38, %42 : vector<18x256xf32>
    %44 = vector.extract_strided_slice %27 {offsets = [3, 0], sizes = [18, 64], strides = [1, 1]} : vector<24x64xf32> to vector<18x64xf32>
    %c3_41 = arith.constant 3 : index
    %c0_42 = arith.constant 0 : index
    %c0_43 = arith.constant 0 : index
    %45 = vector.load %arg6[%c3_41, %c0_42, %c0_43] : memref<7x64x256xf32, #tpu.memory_space<vmem>>, vector<1x64x256xf32>
    %46 = vector.shape_cast %45 : vector<1x64x256xf32> to vector<64x256xf32>
    %cst_44 = arith.constant dense<0.000000e+00> : vector<18x256xf32>
    %47 = tpu.matmul %44, %46, %cst_44 {dimension_numbers = #tpu.dot_dimension_numbers<[1], [0], [0], [1], [0, 0, 1, 1], [], []>} : vector<18x64xf32>, vector<64x256xf32>, vector<18x256xf32> -> vector<18x256xf32>
    %48 = arith.addf %43, %47 : vector<18x256xf32>
    %49 = vector.extract_strided_slice %27 {offsets = [4, 0], sizes = [18, 64], strides = [1, 1]} : vector<24x64xf32> to vector<18x64xf32>
    %c4 = arith.constant 4 : index
    %c0_45 = arith.constant 0 : index
    %c0_46 = arith.constant 0 : index
    %50 = vector.load %arg6[%c4, %c0_45, %c0_46] : memref<7x64x256xf32, #tpu.memory_space<vmem>>, vector<1x64x256xf32>
    %51 = vector.shape_cast %50 : vector<1x64x256xf32> to vector<64x256xf32>
    %cst_47 = arith.constant dense<0.000000e+00> : vector<18x256xf32>
    %52 = tpu.matmul %49, %51, %cst_47 {dimension_numbers = #tpu.dot_dimension_numbers<[1], [0], [0], [1], [0, 0, 1, 1], [], []>} : vector<18x64xf32>, vector<64x256xf32>, vector<18x256xf32> -> vector<18x256xf32>
    %53 = arith.addf %48, %52 : vector<18x256xf32>
    %54 = vector.extract_strided_slice %27 {offsets = [5, 0], sizes = [18, 64], strides = [1, 1]} : vector<24x64xf32> to vector<18x64xf32>
    %c5 = arith.constant 5 : index
    %c0_48 = arith.constant 0 : index
    %c0_49 = arith.constant 0 : index
    %55 = vector.load %arg6[%c5, %c0_48, %c0_49] : memref<7x64x256xf32, #tpu.memory_space<vmem>>, vector<1x64x256xf32>
    %56 = vector.shape_cast %55 : vector<1x64x256xf32> to vector<64x256xf32>
    %cst_50 = arith.constant dense<0.000000e+00> : vector<18x256xf32>
    %57 = tpu.matmul %54, %56, %cst_50 {dimension_numbers = #tpu.dot_dimension_numbers<[1], [0], [0], [1], [0, 0, 1, 1], [], []>} : vector<18x64xf32>, vector<64x256xf32>, vector<18x256xf32> -> vector<18x256xf32>
    %58 = arith.addf %53, %57 : vector<18x256xf32>
    %59 = vector.extract_strided_slice %27 {offsets = [6, 0], sizes = [18, 64], strides = [1, 1]} : vector<24x64xf32> to vector<18x64xf32>
    %c6 = arith.constant 6 : index
    %c0_51 = arith.constant 0 : index
    %c0_52 = arith.constant 0 : index
    %60 = vector.load %arg6[%c6, %c0_51, %c0_52] : memref<7x64x256xf32, #tpu.memory_space<vmem>>, vector<1x64x256xf32>
    %61 = vector.shape_cast %60 : vector<1x64x256xf32> to vector<64x256xf32>
    %cst_53 = arith.constant dense<0.000000e+00> : vector<18x256xf32>
    %62 = tpu.matmul %59, %61, %cst_53 {dimension_numbers = #tpu.dot_dimension_numbers<[1], [0], [0], [1], [0, 0, 1, 1], [], []>} : vector<18x64xf32>, vector<64x256xf32>, vector<18x256xf32> -> vector<18x256xf32>
    %63 = arith.addf %58, %62 : vector<18x256xf32>
    %64 = vector.broadcast %17 : vector<1x256xf32> to vector<18x256xf32>
    %65 = arith.addf %63, %64 : vector<18x256xf32>
    %cst_54 = arith.constant 0.000000e+00 : f32
    %66 = vector.broadcast %cst_54 : f32 to vector<18x256xf32>
    %67 = arith.maximumf %65, %66 : vector<18x256xf32>
    %68 = vector.shape_cast %67 : vector<18x256xf32> to vector<6x3x256xf32>
    %cst_55 = arith.constant dense<0xFF800000> : vector<6x256xf32>
    %69 = vector.multi_reduction <maximumf>, %68, %cst_55 [1] : vector<6x3x256xf32> to vector<6x256xf32>
    %c0_56 = arith.constant 0 : index
    %c0_57 = arith.constant 0 : index
    %70 = vector.load %arg8[%c0_56, %c0_57] : memref<256x64xf32, #tpu.memory_space<vmem>>, vector<256x64xf32>
    %cst_58 = arith.constant dense<0.000000e+00> : vector<6x64xf32>
    %71 = tpu.matmul %69, %70, %cst_58 {dimension_numbers = #tpu.dot_dimension_numbers<[1], [0], [0], [1], [0, 0, 1, 1], [], []>} : vector<6x256xf32>, vector<256x64xf32>, vector<6x64xf32> -> vector<6x64xf32>
    %72 = vector.broadcast %18 : vector<1x64xf32> to vector<6x64xf32>
    %73 = arith.addf %71, %72 : vector<6x64xf32>
    %cst_59 = arith.constant 0.000000e+00 : f32
    %74 = vector.broadcast %cst_59 : f32 to vector<6x64xf32>
    %75 = arith.maximumf %73, %74 : vector<6x64xf32>
    %c1_60 = arith.constant 1 : index
    %c0_61 = arith.constant 0 : index
    %76 = vector.load %arg30[%c1_60, %c0_61] : memref<8x64xf32, #tpu.memory_space<vmem>>, vector<6x64xf32>
    tpu.vector_store %arg30[%c1_60, %c0_61], %75 {strides = array<i32>} : memref<8x64xf32, #tpu.memory_space<vmem>>, vector<6x64xf32>,
    %c0_62 = arith.constant 0 : index
    %c0_63 = arith.constant 0 : index
    %77 = vector.load %arg30[%c0_62, %c0_63] : memref<8x64xf32, #tpu.memory_space<vmem>>, vector<8x64xf32>
    %cst_64 = arith.constant 0.000000e+00 : f32
    %78 = vector.broadcast %cst_64 : f32 to vector<6x256xf32>
    %79 = vector.extract_strided_slice %77 {offsets = [0, 0], sizes = [6, 64], strides = [1, 1]} : vector<8x64xf32> to vector<6x64xf32>
    %c0_65 = arith.constant 0 : index
    %c0_66 = arith.constant 0 : index
    %c0_67 = arith.constant 0 : index
    %80 = vector.load %arg10[%c0_65, %c0_66, %c0_67] : memref<3x64x256xf32, #tpu.memory_space<vmem>>, vector<1x64x256xf32>
    %81 = vector.shape_cast %80 : vector<1x64x256xf32> to vector<64x256xf32>
    %cst_68 = arith.constant dense<0.000000e+00> : vector<6x256xf32>
    %82 = tpu.matmul %79, %81, %cst_68 {dimension_numbers = #tpu.dot_dimension_numbers<[1], [0], [0], [1], [0, 0, 1, 1], [], []>} : vector<6x64xf32>, vector<64x256xf32>, vector<6x256xf32> -> vector<6x256xf32>
    %83 = arith.addf %78, %82 : vector<6x256xf32>
    %84 = vector.extract_strided_slice %77 {offsets = [1, 0], sizes = [6, 64], strides = [1, 1]} : vector<8x64xf32> to vector<6x64xf32>
    %c1_69 = arith.constant 1 : index
    %c0_70 = arith.constant 0 : index
    %c0_71 = arith.constant 0 : index
    %85 = vector.load %arg10[%c1_69, %c0_70, %c0_71] : memref<3x64x256xf32, #tpu.memory_space<vmem>>, vector<1x64x256xf32>
    %86 = vector.shape_cast %85 : vector<1x64x256xf32> to vector<64x256xf32>
    %cst_72 = arith.constant dense<0.000000e+00> : vector<6x256xf32>
    %87 = tpu.matmul %84, %86, %cst_72 {dimension_numbers = #tpu.dot_dimension_numbers<[1], [0], [0], [1], [0, 0, 1, 1], [], []>} : vector<6x64xf32>, vector<64x256xf32>, vector<6x256xf32> -> vector<6x256xf32>
    %88 = arith.addf %83, %87 : vector<6x256xf32>
    %89 = vector.extract_strided_slice %77 {offsets = [2, 0], sizes = [6, 64], strides = [1, 1]} : vector<8x64xf32> to vector<6x64xf32>
    %c2_73 = arith.constant 2 : index
    %c0_74 = arith.constant 0 : index
    %c0_75 = arith.constant 0 : index
    %90 = vector.load %arg10[%c2_73, %c0_74, %c0_75] : memref<3x64x256xf32, #tpu.memory_space<vmem>>, vector<1x64x256xf32>
    %91 = vector.shape_cast %90 : vector<1x64x256xf32> to vector<64x256xf32>
    %cst_76 = arith.constant dense<0.000000e+00> : vector<6x256xf32>
    %92 = tpu.matmul %89, %91, %cst_76 {dimension_numbers = #tpu.dot_dimension_numbers<[1], [0], [0], [1], [0, 0, 1, 1], [], []>} : vector<6x64xf32>, vector<64x256xf32>, vector<6x256xf32> -> vector<6x256xf32>
    %93 = arith.addf %88, %92 : vector<6x256xf32>
    %94 = vector.broadcast %19 : vector<1x256xf32> to vector<6x256xf32>
    %95 = arith.addf %93, %94 : vector<6x256xf32>
    %cst_77 = arith.constant 0.000000e+00 : f32
    %96 = vector.broadcast %cst_77 : f32 to vector<6x256xf32>
    %97 = arith.maximumf %95, %96 : vector<6x256xf32>
    %98 = vector.shape_cast %97 : vector<6x256xf32> to vector<2x3x256xf32>
    %cst_78 = arith.constant dense<0xFF800000> : vector<2x256xf32>
    %99 = vector.multi_reduction <maximumf>, %98, %cst_78 [1] : vector<2x3x256xf32> to vector<2x256xf32>
    %c0_79 = arith.constant 0 : index
    %c0_80 = arith.constant 0 : index
    %100 = vector.load %arg12[%c0_79, %c0_80] : memref<256x64xf32, #tpu.memory_space<vmem>>, vector<256x64xf32>
    %cst_81 = arith.constant dense<0.000000e+00> : vector<2x64xf32>
    %101 = tpu.matmul %99, %100, %cst_81 {dimension_numbers = #tpu.dot_dimension_numbers<[1], [0], [0], [1], [0, 0, 1, 1], [], []>} : vector<2x256xf32>, vector<256x64xf32>, vector<2x64xf32> -> vector<2x64xf32>
    %102 = vector.broadcast %20 : vector<1x64xf32> to vector<2x64xf32>
    %103 = arith.addf %101, %102 : vector<2x64xf32>
    %cst_82 = arith.constant 0.000000e+00 : f32
    %104 = vector.broadcast %cst_82 : f32 to vector<2x64xf32>
    %105 = arith.maximumf %103, %104 : vector<2x64xf32>
    %106 = vector.extract_strided_slice %105 {offsets = [0, 0], sizes = [1, 64], strides = [1, 1]} : vector<2x64xf32> to vector<1x64xf32>
    %c0_83 = arith.constant 0 : index
    %c0_84 = arith.constant 0 : index
    %107 = vector.load %arg28[%c0_83, %c0_84] : memref<4x64xf32, #tpu.memory_space<vmem>>, vector<1x64xf32>
    tpu.vector_store %arg28[%c0_83, %c0_84], %106 {strides = array<i32>} : memref<4x64xf32, #tpu.memory_space<vmem>>, vector<1x64xf32>,
    %108 = vector.extract_strided_slice %105 {offsets = [1, 0], sizes = [1, 64], strides = [1, 1]} : vector<2x64xf32> to vector<1x64xf32>
    %c2_85 = arith.constant 2 : index
    %c0_86 = arith.constant 0 : index
    %109 = vector.load %arg28[%c2_85, %c0_86] : memref<4x64xf32, #tpu.memory_space<vmem>>, vector<1x64xf32>
    tpu.vector_store %arg28[%c2_85, %c0_86], %108 {strides = array<i32>} : memref<4x64xf32, #tpu.memory_space<vmem>>, vector<1x64xf32>,
    %110 = vector.extract_strided_slice %16 {offsets = [18, 0], sizes = [18, 64], strides = [1, 1]} : vector<36x64xf32> to vector<18x64xf32>
    %c3_87 = arith.constant 3 : index
    %c0_88 = arith.constant 0 : index
    %111 = vector.load %arg29[%c3_87, %c0_88] : memref<24x64xf32, #tpu.memory_space<vmem>>, vector<18x64xf32>
    tpu.vector_store %arg29[%c3_87, %c0_88], %110 {strides = array<i32>} : memref<24x64xf32, #tpu.memory_space<vmem>>, vector<18x64xf32>,
    %c0_89 = arith.constant 0 : index
    %c0_90 = arith.constant 0 : index
    %112 = vector.load %arg29[%c0_89, %c0_90] : memref<24x64xf32, #tpu.memory_space<vmem>>, vector<24x64xf32>
    %cst_91 = arith.constant 0.000000e+00 : f32
    %113 = vector.broadcast %cst_91 : f32 to vector<18x256xf32>
    %114 = vector.extract_strided_slice %112 {offsets = [0, 0], sizes = [18, 64], strides = [1, 1]} : vector<24x64xf32> to vector<18x64xf32>
    %c0_92 = arith.constant 0 : index
    %c0_93 = arith.constant 0 : index
    %c0_94 = arith.constant 0 : index
    %115 = vector.load %arg6[%c0_92, %c0_93, %c0_94] : memref<7x64x256xf32, #tpu.memory_space<vmem>>, vector<1x64x256xf32>
    %116 = vector.shape_cast %115 : vector<1x64x256xf32> to vector<64x256xf32>
    %cst_95 = arith.constant dense<0.000000e+00> : vector<18x256xf32>
    %117 = tpu.matmul %114, %116, %cst_95 {dimension_numbers = #tpu.dot_dimension_numbers<[1], [0], [0], [1], [0, 0, 1, 1], [], []>} : vector<18x64xf32>, vector<64x256xf32>, vector<18x256xf32> -> vector<18x256xf32>
    %118 = arith.addf %113, %117 : vector<18x256xf32>
    %119 = vector.extract_strided_slice %112 {offsets = [1, 0], sizes = [18, 64], strides = [1, 1]} : vector<24x64xf32> to vector<18x64xf32>
    %c1_96 = arith.constant 1 : index
    %c0_97 = arith.constant 0 : index
    %c0_98 = arith.constant 0 : index
    %120 = vector.load %arg6[%c1_96, %c0_97, %c0_98] : memref<7x64x256xf32, #tpu.memory_space<vmem>>, vector<1x64x256xf32>
    %121 = vector.shape_cast %120 : vector<1x64x256xf32> to vector<64x256xf32>
    %cst_99 = arith.constant dense<0.000000e+00> : vector<18x256xf32>
    %122 = tpu.matmul %119, %121, %cst_99 {dimension_numbers = #tpu.dot_dimension_numbers<[1], [0], [0], [1], [0, 0, 1, 1], [], []>} : vector<18x64xf32>, vector<64x256xf32>, vector<18x256xf32> -> vector<18x256xf32>
    %123 = arith.addf %118, %122 : vector<18x256xf32>
    %124 = vector.extract_strided_slice %112 {offsets = [2, 0], sizes = [18, 64], strides = [1, 1]} : vector<24x64xf32> to vector<18x64xf32>
    %c2_100 = arith.constant 2 : index
    %c0_101 = arith.constant 0 : index
    %c0_102 = arith.constant 0 : index
    %125 = vector.load %arg6[%c2_100, %c0_101, %c0_102] : memref<7x64x256xf32, #tpu.memory_space<vmem>>, vector<1x64x256xf32>
    %126 = vector.shape_cast %125 : vector<1x64x256xf32> to vector<64x256xf32>
    %cst_103 = arith.constant dense<0.000000e+00> : vector<18x256xf32>
    %127 = tpu.matmul %124, %126, %cst_103 {dimension_numbers = #tpu.dot_dimension_numbers<[1], [0], [0], [1], [0, 0, 1, 1], [], []>} : vector<18x64xf32>, vector<64x256xf32>, vector<18x256xf32> -> vector<18x256xf32>
    %128 = arith.addf %123, %127 : vector<18x256xf32>
    %129 = vector.extract_strided_slice %112 {offsets = [3, 0], sizes = [18, 64], strides = [1, 1]} : vector<24x64xf32> to vector<18x64xf32>
    %c3_104 = arith.constant 3 : index
    %c0_105 = arith.constant 0 : index
    %c0_106 = arith.constant 0 : index
    %130 = vector.load %arg6[%c3_104, %c0_105, %c0_106] : memref<7x64x256xf32, #tpu.memory_space<vmem>>, vector<1x64x256xf32>
    %131 = vector.shape_cast %130 : vector<1x64x256xf32> to vector<64x256xf32>
    %cst_107 = arith.constant dense<0.000000e+00> : vector<18x256xf32>
    %132 = tpu.matmul %129, %131, %cst_107 {dimension_numbers = #tpu.dot_dimension_numbers<[1], [0], [0], [1], [0, 0, 1, 1], [], []>} : vector<18x64xf32>, vector<64x256xf32>, vector<18x256xf32> -> vector<18x256xf32>
    %133 = arith.addf %128, %132 : vector<18x256xf32>
    %134 = vector.extract_strided_slice %112 {offsets = [4, 0], sizes = [18, 64], strides = [1, 1]} : vector<24x64xf32> to vector<18x64xf32>
    %c4_108 = arith.constant 4 : index
    %c0_109 = arith.constant 0 : index
    %c0_110 = arith.constant 0 : index
    %135 = vector.load %arg6[%c4_108, %c0_109, %c0_110] : memref<7x64x256xf32, #tpu.memory_space<vmem>>, vector<1x64x256xf32>
    %136 = vector.shape_cast %135 : vector<1x64x256xf32> to vector<64x256xf32>
    %cst_111 = arith.constant dense<0.000000e+00> : vector<18x256xf32>
    %137 = tpu.matmul %134, %136, %cst_111 {dimension_numbers = #tpu.dot_dimension_numbers<[1], [0], [0], [1], [0, 0, 1, 1], [], []>} : vector<18x64xf32>, vector<64x256xf32>, vector<18x256xf32> -> vector<18x256xf32>
    %138 = arith.addf %133, %137 : vector<18x256xf32>
    %139 = vector.extract_strided_slice %112 {offsets = [5, 0], sizes = [18, 64], strides = [1, 1]} : vector<24x64xf32> to vector<18x64xf32>
    %c5_112 = arith.constant 5 : index
    %c0_113 = arith.constant 0 : index
    %c0_114 = arith.constant 0 : index
    %140 = vector.load %arg6[%c5_112, %c0_113, %c0_114] : memref<7x64x256xf32, #tpu.memory_space<vmem>>, vector<1x64x256xf32>
    %141 = vector.shape_cast %140 : vector<1x64x256xf32> to vector<64x256xf32>
    %cst_115 = arith.constant dense<0.000000e+00> : vector<18x256xf32>
    %142 = tpu.matmul %139, %141, %cst_115 {dimension_numbers = #tpu.dot_dimension_numbers<[1], [0], [0], [1], [0, 0, 1, 1], [], []>} : vector<18x64xf32>, vector<64x256xf32>, vector<18x256xf32> -> vector<18x256xf32>
    %143 = arith.addf %138, %142 : vector<18x256xf32>
    %144 = vector.extract_strided_slice %112 {offsets = [6, 0], sizes = [18, 64], strides = [1, 1]} : vector<24x64xf32> to vector<18x64xf32>
    %c6_116 = arith.constant 6 : index
    %c0_117 = arith.constant 0 : index
    %c0_118 = arith.constant 0 : index
    %145 = vector.load %arg6[%c6_116, %c0_117, %c0_118] : memref<7x64x256xf32, #tpu.memory_space<vmem>>, vector<1x64x256xf32>
    %146 = vector.shape_cast %145 : vector<1x64x256xf32> to vector<64x256xf32>
    %cst_119 = arith.constant dense<0.000000e+00> : vector<18x256xf32>
    %147 = tpu.matmul %144, %146, %cst_119 {dimension_numbers = #tpu.dot_dimension_numbers<[1], [0], [0], [1], [0, 0, 1, 1], [], []>} : vector<18x64xf32>, vector<64x256xf32>, vector<18x256xf32> -> vector<18x256xf32>
    %148 = arith.addf %143, %147 : vector<18x256xf32>
    %149 = vector.broadcast %17 : vector<1x256xf32> to vector<18x256xf32>
    %150 = arith.addf %148, %149 : vector<18x256xf32>
    %cst_120 = arith.constant 0.000000e+00 : f32
    %151 = vector.broadcast %cst_120 : f32 to vector<18x256xf32>
    %152 = arith.maximumf %150, %151 : vector<18x256xf32>
    %153 = vector.shape_cast %152 : vector<18x256xf32> to vector<6x3x256xf32>
    %cst_121 = arith.constant dense<0xFF800000> : vector<6x256xf32>
    %154 = vector.multi_reduction <maximumf>, %153, %cst_121 [1] : vector<6x3x256xf32> to vector<6x256xf32>
    %c0_122 = arith.constant 0 : index
    %c0_123 = arith.constant 0 : index
    %155 = vector.load %arg8[%c0_122, %c0_123] : memref<256x64xf32, #tpu.memory_space<vmem>>, vector<256x64xf32>
    %cst_124 = arith.constant dense<0.000000e+00> : vector<6x64xf32>
    %156 = tpu.matmul %154, %155, %cst_124 {dimension_numbers = #tpu.dot_dimension_numbers<[1], [0], [0], [1], [0, 0, 1, 1], [], []>} : vector<6x256xf32>, vector<256x64xf32>, vector<6x64xf32> -> vector<6x64xf32>
    %157 = vector.broadcast %18 : vector<1x64xf32> to vector<6x64xf32>
    %158 = arith.addf %156, %157 : vector<6x64xf32>
    %cst_125 = arith.constant 0.000000e+00 : f32
    %159 = vector.broadcast %cst_125 : f32 to vector<6x64xf32>
    %160 = arith.maximumf %158, %159 : vector<6x64xf32>
    %c1_126 = arith.constant 1 : index
    %c0_127 = arith.constant 0 : index
    %161 = vector.load %arg30[%c1_126, %c0_127] : memref<8x64xf32, #tpu.memory_space<vmem>>, vector<6x64xf32>
    tpu.vector_store %arg30[%c1_126, %c0_127], %160 {strides = array<i32>} : memref<8x64xf32, #tpu.memory_space<vmem>>, vector<6x64xf32>,
    %c0_128 = arith.constant 0 : index
    %c0_129 = arith.constant 0 : index
    %162 = vector.load %arg30[%c0_128, %c0_129] : memref<8x64xf32, #tpu.memory_space<vmem>>, vector<8x64xf32>
    %cst_130 = arith.constant 0.000000e+00 : f32
    %163 = vector.broadcast %cst_130 : f32 to vector<6x256xf32>
    %164 = vector.extract_strided_slice %162 {offsets = [0, 0], sizes = [6, 64], strides = [1, 1]} : vector<8x64xf32> to vector<6x64xf32>
    %c0_131 = arith.constant 0 : index
    %c0_132 = arith.constant 0 : index
    %c0_133 = arith.constant 0 : index
    %165 = vector.load %arg10[%c0_131, %c0_132, %c0_133] : memref<3x64x256xf32, #tpu.memory_space<vmem>>, vector<1x64x256xf32>
    %166 = vector.shape_cast %165 : vector<1x64x256xf32> to vector<64x256xf32>
    %cst_134 = arith.constant dense<0.000000e+00> : vector<6x256xf32>
    %167 = tpu.matmul %164, %166, %cst_134 {dimension_numbers = #tpu.dot_dimension_numbers<[1], [0], [0], [1], [0, 0, 1, 1], [], []>} : vector<6x64xf32>, vector<64x256xf32>, vector<6x256xf32> -> vector<6x256xf32>
    %168 = arith.addf %163, %167 : vector<6x256xf32>
    %169 = vector.extract_strided_slice %162 {offsets = [1, 0], sizes = [6, 64], strides = [1, 1]} : vector<8x64xf32> to vector<6x64xf32>
    %c1_135 = arith.constant 1 : index
    %c0_136 = arith.constant 0 : index
    %c0_137 = arith.constant 0 : index
    %170 = vector.load %arg10[%c1_135, %c0_136, %c0_137] : memref<3x64x256xf32, #tpu.memory_space<vmem>>, vector<1x64x256xf32>
    %171 = vector.shape_cast %170 : vector<1x64x256xf32> to vector<64x256xf32>
    %cst_138 = arith.constant dense<0.000000e+00> : vector<6x256xf32>
    %172 = tpu.matmul %169, %171, %cst_138 {dimension_numbers = #tpu.dot_dimension_numbers<[1], [0], [0], [1], [0, 0, 1, 1], [], []>} : vector<6x64xf32>, vector<64x256xf32>, vector<6x256xf32> -> vector<6x256xf32>
    %173 = arith.addf %168, %172 : vector<6x256xf32>
    %174 = vector.extract_strided_slice %162 {offsets = [2, 0], sizes = [6, 64], strides = [1, 1]} : vector<8x64xf32> to vector<6x64xf32>
    %c2_139 = arith.constant 2 : index
    %c0_140 = arith.constant 0 : index
    %c0_141 = arith.constant 0 : index
    %175 = vector.load %arg10[%c2_139, %c0_140, %c0_141] : memref<3x64x256xf32, #tpu.memory_space<vmem>>, vector<1x64x256xf32>
    %176 = vector.shape_cast %175 : vector<1x64x256xf32> to vector<64x256xf32>
    %cst_142 = arith.constant dense<0.000000e+00> : vector<6x256xf32>
    %177 = tpu.matmul %174, %176, %cst_142 {dimension_numbers = #tpu.dot_dimension_numbers<[1], [0], [0], [1], [0, 0, 1, 1], [], []>} : vector<6x64xf32>, vector<64x256xf32>, vector<6x256xf32> -> vector<6x256xf32>
    %178 = arith.addf %173, %177 : vector<6x256xf32>
    %179 = vector.broadcast %19 : vector<1x256xf32> to vector<6x256xf32>
    %180 = arith.addf %178, %179 : vector<6x256xf32>
    %cst_143 = arith.constant 0.000000e+00 : f32
    %181 = vector.broadcast %cst_143 : f32 to vector<6x256xf32>
    %182 = arith.maximumf %180, %181 : vector<6x256xf32>
    %183 = vector.shape_cast %182 : vector<6x256xf32> to vector<2x3x256xf32>
    %cst_144 = arith.constant dense<0xFF800000> : vector<2x256xf32>
    %184 = vector.multi_reduction <maximumf>, %183, %cst_144 [1] : vector<2x3x256xf32> to vector<2x256xf32>
    %c0_145 = arith.constant 0 : index
    %c0_146 = arith.constant 0 : index
    %185 = vector.load %arg12[%c0_145, %c0_146] : memref<256x64xf32, #tpu.memory_space<vmem>>, vector<256x64xf32>
    %cst_147 = arith.constant dense<0.000000e+00> : vector<2x64xf32>
    %186 = tpu.matmul %184, %185, %cst_147 {dimension_numbers = #tpu.dot_dimension_numbers<[1], [0], [0], [1], [0, 0, 1, 1], [], []>} : vector<2x256xf32>, vector<256x64xf32>, vector<2x64xf32> -> vector<2x64xf32>
    %187 = vector.broadcast %20 : vector<1x64xf32> to vector<2x64xf32>
    %188 = arith.addf %186, %187 : vector<2x64xf32>
    %cst_148 = arith.constant 0.000000e+00 : f32
    %189 = vector.broadcast %cst_148 : f32 to vector<2x64xf32>
    %190 = arith.maximumf %188, %189 : vector<2x64xf32>
    %191 = vector.extract_strided_slice %190 {offsets = [0, 0], sizes = [1, 64], strides = [1, 1]} : vector<2x64xf32> to vector<1x64xf32>
    %c1_149 = arith.constant 1 : index
    %c0_150 = arith.constant 0 : index
    %192 = vector.load %arg28[%c1_149, %c0_150] : memref<4x64xf32, #tpu.memory_space<vmem>>, vector<1x64xf32>
    tpu.vector_store %arg28[%c1_149, %c0_150], %191 {strides = array<i32>} : memref<4x64xf32, #tpu.memory_space<vmem>>, vector<1x64xf32>,
    %193 = vector.extract_strided_slice %190 {offsets = [1, 0], sizes = [1, 64], strides = [1, 1]} : vector<2x64xf32> to vector<1x64xf32>
    %c3_151 = arith.constant 3 : index
    %c0_152 = arith.constant 0 : index
    %194 = vector.load %arg28[%c3_151, %c0_152] : memref<4x64xf32, #tpu.memory_space<vmem>>, vector<1x64xf32>
    tpu.vector_store %arg28[%c3_151, %c0_152], %193 {strides = array<i32>} : memref<4x64xf32, #tpu.memory_space<vmem>>, vector<1x64xf32>,
    %c0_153 = arith.constant 0 : index
    %c0_154 = arith.constant 0 : index
    %195 = vector.load %arg28[%c0_153, %c0_154] : memref<4x64xf32, #tpu.memory_space<vmem>>, vector<4x64xf32>
    %c0_155 = arith.constant 0 : index
    %c0_156 = arith.constant 0 : index
    %196 = vector.load %arg14[%c0_155, %c0_156] : memref<64x256xf32, #tpu.memory_space<vmem>>, vector<64x256xf32>
    %cst_157 = arith.constant dense<0.000000e+00> : vector<4x256xf32>
    %197 = tpu.matmul %195, %196, %cst_157 {dimension_numbers = #tpu.dot_dimension_numbers<[1], [0], [0], [1], [0, 0, 1, 1], [], []>} : vector<4x64xf32>, vector<64x256xf32>, vector<4x256xf32> -> vector<4x256xf32>
    %c0_158 = arith.constant 0 : index
    %c0_159 = arith.constant 0 : index
    %198 = vector.load %arg15[%c0_158, %c0_159] : memref<1x256xf32, #tpu.memory_space<vmem>>, vector<1x256xf32>
    %199 = vector.broadcast %198 : vector<1x256xf32> to vector<4x256xf32>
    %200 = arith.addf %197, %199 : vector<4x256xf32>
    %cst_160 = arith.constant 0.000000e+00 : f32
    %201 = vector.broadcast %cst_160 : f32 to vector<4x256xf32>
    %202 = arith.maximumf %200, %201 : vector<4x256xf32>
    %c0_161 = arith.constant 0 : index
    %c0_162 = arith.constant 0 : index
    %203 = vector.load %arg16[%c0_161, %c0_162] : memref<256x512xf32, #tpu.memory_space<vmem>>, vector<256x512xf32>
    %cst_163 = arith.constant dense<0.000000e+00> : vector<4x512xf32>
    %204 = tpu.matmul %202, %203, %cst_163 {dimension_numbers = #tpu.dot_dimension_numbers<[1], [0], [0], [1], [0, 0, 1, 1], [], []>} : vector<4x256xf32>, vector<256x512xf32>, vector<4x512xf32> -> vector<4x512xf32>
    %c0_164 = arith.constant 0 : index
    %c0_165 = arith.constant 0 : index
    %205 = vector.load %arg17[%c0_164, %c0_165] : memref<1x512xf32, #tpu.memory_space<vmem>>, vector<1x512xf32>
    %206 = vector.broadcast %205 : vector<1x512xf32> to vector<4x512xf32>
    %207 = arith.addf %204, %206 : vector<4x512xf32>
    %c0_166 = arith.constant 0 : index
    %c0_167 = arith.constant 0 : index
    %208 = vector.load %arg18[%c0_166, %c0_167] : memref<64x256xf32, #tpu.memory_space<vmem>>, vector<64x256xf32>
    %c0_168 = arith.constant 0 : index
    %c0_169 = arith.constant 0 : index
    %209 = vector.load %arg19[%c0_168, %c0_169] : memref<64x256xf32, #tpu.memory_space<vmem>>, vector<64x256xf32>
    %cst_170 = arith.constant 0.000000e+00 : f32
    %210 = vector.broadcast %cst_170 : f32 to vector<2x64xf32>
    %cst_171 = arith.constant 0.000000e+00 : f32
    %211 = vector.broadcast %cst_171 : f32 to vector<2x64xf32>
    %cst_172 = arith.constant 0xFF800000 : f32
    %212 = vector.broadcast %cst_172 : f32 to vector<2x64xf32>
    %cst_173 = arith.constant 0.000000e+00 : f32
    %213 = vector.broadcast %cst_173 : f32 to vector<2x64xf32>
    %cst_174 = arith.constant 0.000000e+00 : f32
    %214 = vector.broadcast %cst_174 : f32 to vector<2x64xf32>
    %cst_175 = arith.constant 0xFF800000 : f32
    %215 = vector.broadcast %cst_175 : f32 to vector<2x64xf32>
    %216 = vector.extract_strided_slice %207 {offsets = [0, 0], sizes = [2, 256], strides = [1, 1]} : vector<4x512xf32> to vector<2x256xf32>
    %cst_176 = arith.constant dense<0.000000e+00> : vector<2x256xf32>
    %217 = tpu.matmul %210, %208, %cst_176 {dimension_numbers = #tpu.dot_dimension_numbers<[1], [0], [0], [1], [0, 0, 1, 1], [], []>} : vector<2x64xf32>, vector<64x256xf32>, vector<2x256xf32> -> vector<2x256xf32>
    %218 = arith.addf %216, %217 : vector<2x256xf32>
    %219 = vector.extract_strided_slice %207 {offsets = [2, 256], sizes = [2, 256], strides = [1, 1]} : vector<4x512xf32> to vector<2x256xf32>
    %cst_177 = arith.constant dense<0.000000e+00> : vector<2x256xf32>
    %220 = tpu.matmul %213, %209, %cst_177 {dimension_numbers = #tpu.dot_dimension_numbers<[1], [0], [0], [1], [0, 0, 1, 1], [], []>} : vector<2x64xf32>, vector<64x256xf32>, vector<2x256xf32> -> vector<2x256xf32>
    %221 = arith.addf %219, %220 : vector<2x256xf32>
    %222 = vector.extract_strided_slice %218 {offsets = [0, 0], sizes = [2, 64], strides = [1, 1]} : vector<2x256xf32> to vector<2x64xf32>
    %223 = arith.negf %222 : vector<2x64xf32>
    %224 = math.exp %223 : vector<2x64xf32>
    %cst_178 = arith.constant 1.000000e+00 : f32
    %225 = vector.broadcast %cst_178 : f32 to vector<2x64xf32>
    %226 = arith.addf %225, %224 : vector<2x64xf32>
    %227 = arith.divf %225, %226 : vector<2x64xf32>
    %228 = vector.extract_strided_slice %218 {offsets = [0, 64], sizes = [2, 64], strides = [1, 1]} : vector<2x256xf32> to vector<2x64xf32>
    %229 = arith.negf %228 : vector<2x64xf32>
    %230 = math.exp %229 : vector<2x64xf32>
    %cst_179 = arith.constant 1.000000e+00 : f32
    %231 = vector.broadcast %cst_179 : f32 to vector<2x64xf32>
    %232 = arith.addf %231, %230 : vector<2x64xf32>
    %233 = arith.divf %231, %232 : vector<2x64xf32>
    %234 = vector.extract_strided_slice %218 {offsets = [0, 128], sizes = [2, 64], strides = [1, 1]} : vector<2x256xf32> to vector<2x64xf32>
    %235 = math.tanh %234 : vector<2x64xf32>
    %236 = vector.extract_strided_slice %218 {offsets = [0, 192], sizes = [2, 64], strides = [1, 1]} : vector<2x256xf32> to vector<2x64xf32>
    %237 = arith.negf %236 : vector<2x64xf32>
    %238 = math.exp %237 : vector<2x64xf32>
    %cst_180 = arith.constant 1.000000e+00 : f32
    %239 = vector.broadcast %cst_180 : f32 to vector<2x64xf32>
    %240 = arith.addf %239, %238 : vector<2x64xf32>
    %241 = arith.divf %239, %240 : vector<2x64xf32>
    %242 = arith.mulf %233, %211 : vector<2x64xf32>
    %243 = arith.mulf %227, %235 : vector<2x64xf32>
    %244 = arith.addf %242, %243 : vector<2x64xf32>
    %245 = math.tanh %244 : vector<2x64xf32>
    %246 = arith.mulf %241, %245 : vector<2x64xf32>
    %247 = arith.maximumf %212, %246 : vector<2x64xf32>
    %248 = vector.extract_strided_slice %221 {offsets = [0, 0], sizes = [2, 64], strides = [1, 1]} : vector<2x256xf32> to vector<2x64xf32>
    %249 = arith.negf %248 : vector<2x64xf32>
    %250 = math.exp %249 : vector<2x64xf32>
    %cst_181 = arith.constant 1.000000e+00 : f32
    %251 = vector.broadcast %cst_181 : f32 to vector<2x64xf32>
    %252 = arith.addf %251, %250 : vector<2x64xf32>
    %253 = arith.divf %251, %252 : vector<2x64xf32>
    %254 = vector.extract_strided_slice %221 {offsets = [0, 64], sizes = [2, 64], strides = [1, 1]} : vector<2x256xf32> to vector<2x64xf32>
    %255 = arith.negf %254 : vector<2x64xf32>
    %256 = math.exp %255 : vector<2x64xf32>
    %cst_182 = arith.constant 1.000000e+00 : f32
    %257 = vector.broadcast %cst_182 : f32 to vector<2x64xf32>
    %258 = arith.addf %257, %256 : vector<2x64xf32>
    %259 = arith.divf %257, %258 : vector<2x64xf32>
    %260 = vector.extract_strided_slice %221 {offsets = [0, 128], sizes = [2, 64], strides = [1, 1]} : vector<2x256xf32> to vector<2x64xf32>
    %261 = math.tanh %260 : vector<2x64xf32>
    %262 = vector.extract_strided_slice %221 {offsets = [0, 192], sizes = [2, 64], strides = [1, 1]} : vector<2x256xf32> to vector<2x64xf32>
    %263 = arith.negf %262 : vector<2x64xf32>
    %264 = math.exp %263 : vector<2x64xf32>
    %cst_183 = arith.constant 1.000000e+00 : f32
    %265 = vector.broadcast %cst_183 : f32 to vector<2x64xf32>
    %266 = arith.addf %265, %264 : vector<2x64xf32>
    %267 = arith.divf %265, %266 : vector<2x64xf32>
    %268 = arith.mulf %259, %214 : vector<2x64xf32>
    %269 = arith.mulf %253, %261 : vector<2x64xf32>
    %270 = arith.addf %268, %269 : vector<2x64xf32>
    %271 = math.tanh %270 : vector<2x64xf32>
    %272 = arith.mulf %267, %271 : vector<2x64xf32>
    %273 = arith.maximumf %215, %272 : vector<2x64xf32>
    %274 = vector.extract_strided_slice %207 {offsets = [2, 0], sizes = [2, 256], strides = [1, 1]} : vector<4x512xf32> to vector<2x256xf32>
    %cst_184 = arith.constant dense<0.000000e+00> : vector<2x256xf32>
    %275 = tpu.matmul %246, %208, %cst_184 {dimension_numbers = #tpu.dot_dimension_numbers<[1], [0], [0], [1], [0, 0, 1, 1], [], []>} : vector<2x64xf32>, vector<64x256xf32>, vector<2x256xf32> -> vector<2x256xf32>
    %276 = arith.addf %274, %275 : vector<2x256xf32>
    %277 = vector.extract_strided_slice %207 {offsets = [0, 256], sizes = [2, 256], strides = [1, 1]} : vector<4x512xf32> to vector<2x256xf32>
    %cst_185 = arith.constant dense<0.000000e+00> : vector<2x256xf32>
    %278 = tpu.matmul %272, %209, %cst_185 {dimension_numbers = #tpu.dot_dimension_numbers<[1], [0], [0], [1], [0, 0, 1, 1], [], []>} : vector<2x64xf32>, vector<64x256xf32>, vector<2x256xf32> -> vector<2x256xf32>
    %279 = arith.addf %277, %278 : vector<2x256xf32>
    %280 = vector.extract_strided_slice %276 {offsets = [0, 0], sizes = [2, 64], strides = [1, 1]} : vector<2x256xf32> to vector<2x64xf32>
    %281 = arith.negf %280 : vector<2x64xf32>
    %282 = math.exp %281 : vector<2x64xf32>
    %cst_186 = arith.constant 1.000000e+00 : f32
    %283 = vector.broadcast %cst_186 : f32 to vector<2x64xf32>
    %284 = arith.addf %283, %282 : vector<2x64xf32>
    %285 = arith.divf %283, %284 : vector<2x64xf32>
    %286 = vector.extract_strided_slice %276 {offsets = [0, 64], sizes = [2, 64], strides = [1, 1]} : vector<2x256xf32> to vector<2x64xf32>
    %287 = arith.negf %286 : vector<2x64xf32>
    %288 = math.exp %287 : vector<2x64xf32>
    %cst_187 = arith.constant 1.000000e+00 : f32
    %289 = vector.broadcast %cst_187 : f32 to vector<2x64xf32>
    %290 = arith.addf %289, %288 : vector<2x64xf32>
    %291 = arith.divf %289, %290 : vector<2x64xf32>
    %292 = vector.extract_strided_slice %276 {offsets = [0, 128], sizes = [2, 64], strides = [1, 1]} : vector<2x256xf32> to vector<2x64xf32>
    %293 = math.tanh %292 : vector<2x64xf32>
    %294 = vector.extract_strided_slice %276 {offsets = [0, 192], sizes = [2, 64], strides = [1, 1]} : vector<2x256xf32> to vector<2x64xf32>
    %295 = arith.negf %294 : vector<2x64xf32>
    %296 = math.exp %295 : vector<2x64xf32>
    %cst_188 = arith.constant 1.000000e+00 : f32
    %297 = vector.broadcast %cst_188 : f32 to vector<2x64xf32>
    %298 = arith.addf %297, %296 : vector<2x64xf32>
    %299 = arith.divf %297, %298 : vector<2x64xf32>
    %300 = arith.mulf %291, %244 : vector<2x64xf32>
    %301 = arith.mulf %285, %293 : vector<2x64xf32>
    %302 = arith.addf %300, %301 : vector<2x64xf32>
    %303 = math.tanh %302 : vector<2x64xf32>
    %304 = arith.mulf %299, %303 : vector<2x64xf32>
    %305 = arith.maximumf %247, %304 : vector<2x64xf32>
    %306 = vector.extract_strided_slice %279 {offsets = [0, 0], sizes = [2, 64], strides = [1, 1]} : vector<2x256xf32> to vector<2x64xf32>
    %307 = arith.negf %306 : vector<2x64xf32>
    %308 = math.exp %307 : vector<2x64xf32>
    %cst_189 = arith.constant 1.000000e+00 : f32
    %309 = vector.broadcast %cst_189 : f32 to vector<2x64xf32>
    %310 = arith.addf %309, %308 : vector<2x64xf32>
    %311 = arith.divf %309, %310 : vector<2x64xf32>
    %312 = vector.extract_strided_slice %279 {offsets = [0, 64], sizes = [2, 64], strides = [1, 1]} : vector<2x256xf32> to vector<2x64xf32>
    %313 = arith.negf %312 : vector<2x64xf32>
    %314 = math.exp %313 : vector<2x64xf32>
    %cst_190 = arith.constant 1.000000e+00 : f32
    %315 = vector.broadcast %cst_190 : f32 to vector<2x64xf32>
    %316 = arith.addf %315, %314 : vector<2x64xf32>
    %317 = arith.divf %315, %316 : vector<2x64xf32>
    %318 = vector.extract_strided_slice %279 {offsets = [0, 128], sizes = [2, 64], strides = [1, 1]} : vector<2x256xf32> to vector<2x64xf32>
    %319 = math.tanh %318 : vector<2x64xf32>
    %320 = vector.extract_strided_slice %279 {offsets = [0, 192], sizes = [2, 64], strides = [1, 1]} : vector<2x256xf32> to vector<2x64xf32>
    %321 = arith.negf %320 : vector<2x64xf32>
    %322 = math.exp %321 : vector<2x64xf32>
    %cst_191 = arith.constant 1.000000e+00 : f32
    %323 = vector.broadcast %cst_191 : f32 to vector<2x64xf32>
    %324 = arith.addf %323, %322 : vector<2x64xf32>
    %325 = arith.divf %323, %324 : vector<2x64xf32>
    %326 = arith.mulf %317, %270 : vector<2x64xf32>
    %327 = arith.mulf %311, %319 : vector<2x64xf32>
    %328 = arith.addf %326, %327 : vector<2x64xf32>
    %329 = math.tanh %328 : vector<2x64xf32>
    %330 = arith.mulf %325, %329 : vector<2x64xf32>
    %331 = arith.maximumf %273, %330 : vector<2x64xf32>
    %c0_192 = arith.constant 0 : index
    %c0_193 = arith.constant 0 : index
    %332 = vector.load %arg1[%c0_192, %c0_193] : memref<2x3xf32, #tpu.memory_space<vmem>>, vector<2x3xf32>
    %c0_194 = arith.constant 0 : index
    %c0_195 = arith.constant 0 : index
    %333 = vector.load %arg20[%c0_194, %c0_195] : memref<3x32xf32, #tpu.memory_space<vmem>>, vector<3x32xf32>
    %cst_196 = arith.constant dense<0.000000e+00> : vector<2x32xf32>
    %334 = tpu.matmul %332, %333, %cst_196 {dimension_numbers = #tpu.dot_dimension_numbers<[1], [0], [0], [1], [0, 0, 1, 1], [], []>} : vector<2x3xf32>, vector<3x32xf32>, vector<2x32xf32> -> vector<2x32xf32>
    %c0_197 = arith.constant 0 : index
    %c0_198 = arith.constant 0 : index
    %335 = vector.load %arg21[%c0_197, %c0_198] : memref<1x32xf32, #tpu.memory_space<vmem>>, vector<1x32xf32>
    %336 = vector.broadcast %335 : vector<1x32xf32> to vector<2x32xf32>
    %337 = arith.addf %334, %336 : vector<2x32xf32>
    %cst_199 = arith.constant 0.000000e+00 : f32
    %338 = vector.broadcast %cst_199 : f32 to vector<2x32xf32>
    %339 = arith.maximumf %337, %338 : vector<2x32xf32>
    %c0_200 = arith.constant 0 : index
    %c0_201 = arith.constant 0 : index
    %340 = vector.load %arg22[%c0_200, %c0_201] : memref<64x7xf32, #tpu.memory_space<vmem>>, vector<64x7xf32>
    %cst_202 = arith.constant dense<0.000000e+00> : vector<2x7xf32>
    %341 = tpu.matmul %305, %340, %cst_202 {dimension_numbers = #tpu.dot_dimension_numbers<[1], [0], [0], [1], [0, 0, 1, 1], [], []>} : vector<2x64xf32>, vector<64x7xf32>, vector<2x7xf32> -> vector<2x7xf32>
    %c0_203 = arith.constant 0 : index
    %c0_204 = arith.constant 0 : index
    %342 = vector.load %arg23[%c0_203, %c0_204] : memref<64x7xf32, #tpu.memory_space<vmem>>, vector<64x7xf32>
    %cst_205 = arith.constant dense<0.000000e+00> : vector<2x7xf32>
    %343 = tpu.matmul %331, %342, %cst_205 {dimension_numbers = #tpu.dot_dimension_numbers<[1], [0], [0], [1], [0, 0, 1, 1], [], []>} : vector<2x64xf32>, vector<64x7xf32>, vector<2x7xf32> -> vector<2x7xf32>
    %344 = arith.addf %341, %343 : vector<2x7xf32>
    %c0_206 = arith.constant 0 : index
    %c0_207 = arith.constant 0 : index
    %345 = vector.load %arg24[%c0_206, %c0_207] : memref<32x7xf32, #tpu.memory_space<vmem>>, vector<32x7xf32>
    %cst_208 = arith.constant dense<0.000000e+00> : vector<2x7xf32>
    %346 = tpu.matmul %339, %345, %cst_208 {dimension_numbers = #tpu.dot_dimension_numbers<[1], [0], [0], [1], [0, 0, 1, 1], [], []>} : vector<2x32xf32>, vector<32x7xf32>, vector<2x7xf32> -> vector<2x7xf32>
    %347 = arith.addf %344, %346 : vector<2x7xf32>
    %c0_209 = arith.constant 0 : index
    %c0_210 = arith.constant 0 : index
    %348 = vector.load %arg25[%c0_209, %c0_210] : memref<1x7xf32, #tpu.memory_space<vmem>>, vector<1x7xf32>
    %349 = vector.broadcast %348 : vector<1x7xf32> to vector<2x7xf32>
    %350 = arith.addf %347, %349 : vector<2x7xf32>
    %351 = vector.extract_strided_slice %350 {offsets = [0, 0], sizes = [2, 3], strides = [1, 1]} : vector<2x7xf32> to vector<2x3xf32>
    %c0_211 = arith.constant 0 : index
    %c0_212 = arith.constant 0 : index
    %352 = vector.load %arg26[%c0_211, %c0_212] : memref<2x3xf32, #tpu.memory_space<vmem>>, vector<2x3xf32>
    tpu.vector_store %arg26[%c0_211, %c0_212], %351 {strides = array<i32>} : memref<2x3xf32, #tpu.memory_space<vmem>>, vector<2x3xf32>,
    %353 = vector.extract_strided_slice %350 {offsets = [0, 3], sizes = [2, 4], strides = [1, 1]} : vector<2x7xf32> to vector<2x4xf32>
    %c0_213 = arith.constant 0 : index
    %c0_214 = arith.constant 0 : index
    %354 = vector.load %arg27[%c0_213, %c0_214] : memref<2x4xf32, #tpu.memory_space<vmem>>, vector<2x4xf32>
    tpu.vector_store %arg27[%c0_213, %c0_214], %353 {strides = array<i32>} : memref<2x4xf32, #tpu.memory_space<vmem>>, vector<2x4xf32>,
    return
  }
}

</mosaic_0001>

<bundles_post_ra>
// kernel: forward.1
= control target key start
LH: loop header
LB: loop body
LE: loop exit
PB: predicated region body
PF: predicated region fallthrough
CT: control target
= control target key end

     0   :  { %s9978_s0 = inlined_call_operand.vmem [shape: f32[108,350], index: 0, kind: input, shape index: {}]   ;;  %s9979_s1 = inlined_call_operand.vmem [shape: f32[2,3], index: 1, kind: input, shape index: {}]   ;;  %s9980_s2 = inlined_call_operand.vmem [shape: f32[350,256], index: 2, kind: input, shape index: {}]   ;;  %s9981_s3 = inlined_call_operand.vmem [shape: f32[1,256], index: 3, kind: input, shape index: {}]   ;;  %s9982_s4 = inlined_call_operand.vmem [shape: f32[256,64], index: 4, kind: input, shape index: {}]   ;;  %s9983_s5 = inlined_call_operand.vmem [shape: f32[1,64], index: 5, kind: input, shape index: {}]   ;;  %s9984_s6 = inlined_call_operand.vmem [shape: f32[7,64,256], index: 6, kind: input, shape index: {}]   ;;  %s9985_s7 = inlined_call_operand.vmem [shape: f32[1,256], index: 7, kind: input, shape index: {}]   ;;  %s9986_s8 = inlined_call_operand.vmem [shape: f32[256,64], index: 8, kind: input, shape index: {}]   ;;  %s9987_s9 = inlined_call_operand.vmem [shape: f32[1,64], index: 9, kind: input, shape index: {}]   ;;  %s9988_s10 = inlined_call_operand.vmem [shape: f32[3,64,256], index: 10, kind: input, shape index: {}]   ;;  %s9989_s11 = inlined_call_operand.vmem [shape: f32[1,256], index: 11, kind: input, shape index: {}]   ;;  %s9990_s12 = inlined_call_operand.vmem [shape: f32[256,64], index: 12, kind: input, shape index: {}]   ;;  %s9991_s13 = inlined_call_operand.vmem [shape: f32[1,64], index: 13, kind: input, shape index: {}]   ;;  %s9992_s14 = inlined_call_operand.vmem [shape: f32[64,256], index: 14, kind: input, shape index: {}]   ;;  %s9993_s15 = inlined_call_operand.vmem [shape: f32[1,256], index: 15, kind: input, shape index: {}]   ;;  %s9994_s16 = inlined_call_operand.vmem [shape: f32[256,512], index: 16, kind: input, shape index: {}]   ;;  %s9995_s17 = inlined_call_operand.vmem [shape: f32[1,512], index: 17, kind: input, shape index: {}]   ;;  %s9996_s18 = inlined_call_operand.vmem [shape: f32[64,256], index: 18, kind: input, shape index: {}]   ;;  %s9997_s19 = inlined_call_operand.vmem [shape: f32[64,256], index: 19, kind: input, shape index: {}]   ;;  %s9998_s20 = inlined_call_operand.vmem [shape: f32[3,32], index: 20, kind: input, shape index: {}]   ;;  %s9999_s21 = inlined_call_operand.vmem [shape: f32[1,32], index: 21, kind: input, shape index: {}]   ;;  %s10000_s22 = inlined_call_operand.vmem [shape: f32[64,7], index: 22, kind: input, shape index: {}]   ;;  %s10001_s23 = inlined_call_operand.vmem [shape: f32[64,7], index: 23, kind: input, shape index: {}]   ;;  %s10002_s24 = inlined_call_operand.vmem [shape: f32[32,7], index: 24, kind: input, shape index: {}]   ;;  %s10003_s25 = inlined_call_operand.vmem [shape: f32[1,7], index: 25, kind: input, shape index: {}]   ;;  %s10004_s26 = inlined_call_operand.hbm [shape: f32[2,3], index: 26, kind: output, shape index: {0}]   ;;  %s10005_s27 = inlined_call_operand.hbm [shape: f32[2,4], index: 27, kind: output, shape index: {1}]  }
   0x1   :  { %10014 = sst [smem:[#allocation20_spill]] %s9978_s0 }
   0x2   :  { %10015 = sst [smem:[#allocation21_spill]] %s9979_s1 }
   0x3   :  { %10016 = sst [smem:[#allocation22_spill]] %s9980_s2 }
   0x4   :  { %10017 = sst [smem:[#allocation23_spill]] %s9981_s3 }
   0x5   :  { %10018 = sst [smem:[#allocation24_spill]] %s9982_s4 }
   0x6   :  { %10019 = sst [smem:[#allocation25_spill]] %s9983_s5 }
   0x7   :  { %10020 = sst [smem:[#allocation26_spill]] %s9984_s6 }
   0x8   :  { %10021 = sst [smem:[#allocation27_spill]] %s9985_s7 }
   0x9   :  { %10022 = sst [smem:[#allocation28_spill]] %s9986_s8 }
   0xa   :  { %10023 = sst [smem:[#allocation29_spill]] %s9987_s9 }
   0xb   :  { %10024 = sst [smem:[#allocation30_spill]] %s9988_s10 }
   0xc   :  { %10025 = sst [smem:[#allocation31_spill]] %s9989_s11 }
   0xd   :  { %33 = vsyncpa [#allocation6], 0  ;;  %s10026_s8 = sld [smem:[#allocation22_spill]]  ;;  %vm266_vm0 = vcmask 1045504   ;;  %vm223_vm1 = vcmask 769024  }
   0xe   :  { %s10027_s30 = sld [smem:[#allocation20_spill]] }
  0x13   :  { %v159_v0 = vld [vmem:[%s10026_s8 + $0xf0] sm:$0xff]  ;;  %v157_v2 = vld [vmem:[%s10026_s8 + $0xe0] sm:$0xff]  ;;  %v192_v36 = vld [vmem:[%s10026_s8 + $0x1f8] sm:$0xff] }
  0x14   :  { %v215_v1 = vld [vmem:[%s10026_s8 + $0x2b0] sm:$0x3f]  ;;  %273 = vmatpush.msra.mxu0 %v159_v0  ;;  %v213_v4 = vld [vmem:[%s10026_s8 + $0x2a0] sm:$0xff] }
  0x15   :  { %5315 = vmatpush.msk.msra.mxu2 %vm266_vm0, %v215_v1  ;;  %v191_v3 = vld [vmem:[%s10026_s8 + $0x1f0] sm:$0xff]  ;;  %v189_v6 = vld [vmem:[%s10026_s8 + $0x1e0] sm:$0xff] }
  0x16   :  { %332 = vmatpush.msra.mxu1 %v191_v3  ;;  %v155_v5 = vld [vmem:[%s10026_s8 + $0xd0] sm:$0xff]  ;;  %274 = vmatpush.msra.mxu0 %v157_v2  ;;  %v153_v9 = vld [vmem:[%s10026_s8 + $0xc0] sm:$0xff] }
  0x17   :  { %v211_v7 = vld [vmem:[%s10026_s8 + $0x290] sm:$0xff]  ;;  %396 = vmatpush.msra.mxu2 %v213_v4  ;;  %v209_v10 = vld [vmem:[%s10026_s8 + $0x280] sm:$0xff] }
  0x18   :  { %v187_v8 = vld [vmem:[%s10026_s8 + $0x1d0] sm:$0xff]  ;;  %333 = vmatpush.msra.mxu1 %v189_v6  ;;  %275 = vmatpush.msra.mxu0 %v155_v5  ;;  %v185_v11 = vld [vmem:[%s10026_s8 + $0x1c0] sm:$0xff] }
  0x19   :  { %397 = vmatpush.msra.mxu2 %v211_v7  ;;  %v151_v12 = vld [vmem:[%s10026_s8 + $0xb0] sm:$0xff]  ;;  %v149_v15 = vld [vmem:[%s10026_s8 + $0xa0] sm:$0xff] }
  0x1a   :  { %334 = vmatpush.msra.mxu1 %v187_v8  ;;  %v207_v13 = vld [vmem:[%s10026_s8 + $0x270] sm:$0xff]  ;;  %276 = vmatpush.msra.mxu0 %v153_v9  ;;  %v205_v16 = vld [vmem:[%s10026_s8 + $0x260] sm:$0xff] }
  0x1b   :  { %398 = vmatpush.msra.mxu2 %v209_v10  ;;  %v183_v14 = vld [vmem:[%s10026_s8 + $0x1b0] sm:$0xff]  ;;  %v181_v17 = vld [vmem:[%s10026_s8 + $0x1a0] sm:$0xff] }
  0x1c   :  { %335 = vmatpush.msra.mxu1 %v185_v11  ;;  %277 = vmatpush.msra.mxu0 %v151_v12  ;;  %v147_v18 = vld [vmem:[%s10026_s8 + $0x90] sm:$0xff]  ;;  %v145_v21 = vld [vmem:[%s10026_s8 + $0x80] sm:$0xff] }
  0x1d   :  { %399 = vmatpush.msra.mxu2 %v207_v13  ;;  %v203_v19 = vld [vmem:[%s10026_s8 + $0x250] sm:$0xff]  ;;  %v201_v22 = vld [vmem:[%s10026_s8 + $0x240] sm:$0xff] }
  0x1e   :  { %336 = vmatpush.msra.mxu1 %v183_v14  ;;  %278 = vmatpush.msra.mxu0 %v149_v15  ;;  %v179_v20 = vld [vmem:[%s10026_s8 + $0x190] sm:$0xff]  ;;  %v177_v23 = vld [vmem:[%s10026_s8 + $0x180] sm:$0xff] }
  0x1f   :  { %400 = vmatpush.msra.mxu2 %v205_v16  ;;  %v143_v24 = vld [vmem:[%s10026_s8 + $0x70] sm:$0xff]  ;;  %v141_v27 = vld [vmem:[%s10026_s8 + $0x60] sm:$0xff] }
  0x20   :  { %337 = vmatpush.msra.mxu1 %v181_v17  ;;  %279 = vmatpush.msra.mxu0 %v147_v18  ;;  %v199_v25 = vld [vmem:[%s10026_s8 + $0x230] sm:$0xff]  ;;  %v197_v28 = vld [vmem:[%s10026_s8 + $0x220] sm:$0xff] }
  0x21   :  { %401 = vmatpush.msra.mxu2 %v203_v19  ;;  %v175_v26 = vld [vmem:[%s10026_s8 + $0x170] sm:$0xff]  ;;  %v173_v29 = vld [vmem:[%s10026_s8 + $0x160] sm:$0xff] }
  0x22   :  { %338 = vmatpush.msra.mxu1 %v179_v20  ;;  %280 = vmatpush.msra.mxu0 %v145_v21  ;;  %v139_v30 = vld [vmem:[%s10026_s8 + $0x50] sm:$0xff]  ;;  %v137_v32 = vld [vmem:[%s10026_s8 + $0x40] sm:$0xff] }
  0x23   :  { %402 = vmatpush.msra.mxu2 %v201_v22  ;;  %v195_v31 = vld [vmem:[%s10026_s8 + $0x210] sm:$0xff]  ;;  %v193_v34 = vld [vmem:[%s10026_s8 + $0x200] sm:$0xff] }
  0x24   :  { %339 = vmatpush.msra.mxu1 %v177_v23  ;;  %281 = vmatpush.msra.mxu0 %v143_v24  ;;  %v171_v33 = vld [vmem:[%s10026_s8 + $0x150] sm:$0xff]  ;;  %v169_v38 = vld [vmem:[%s10026_s8 + $0x140] sm:$0xff] }
  0x25   :  { %403 = vmatpush.msra.mxu2 %v199_v25  ;;  %v6083_v35 = vld [vmem:[%s10027_s30 + $0x10] sm:$0xff] }
  0x26   :  { %340 = vmatpush.msra.mxu1 %v175_v26  ;;  %282 = vmatpush.msra.mxu0 %v141_v27  ;;  %v135_v37 = vld [vmem:[%s10026_s8 + $0x30] sm:$0xff] }
  0x27   :  { %404 = vmatpush.msra.mxu2 %v197_v28 }
  0x28   :  { %341 = vmatpush.msra.mxu1 %v173_v29  ;;  %283 = vmatpush.msra.mxu0 %v139_v30 }
  0x29   :  { %405 = vmatpush.msra.mxu2 %v195_v31 }
  0x2a   :  { %342 = vmatpush.msra.mxu1 %v171_v33 }
  0x2b   :  { %34 = vsyncpa [#allocation8], 0  ;;  %284 = vmatpush.msra.mxu0 %v137_v32  ;;  %406 = vmatpush.msra.mxu2 %v193_v34  ;;  %v167_v39 = vld [vmem:[%s10026_s8 + $0x130] sm:$0xff]  ;;  %v133_v40 = vld [vmem:[%s10026_s8 + $0x20] sm:$0xff]  ;;  %s10035_s29 = sld [smem:[#allocation23_spill]]  ;;  %vm697_vm2 = vcmask 1040384  }
  0x2c   :  { %5316 = vmatmul.msk.f32.vlgmr.msra.gmra.mxu2 %vm223_vm1, %v6083_v35  ;;  %343 = vmatpush.msra.mxu1 %v169_v38  ;;  %v190_v41 = vld [vmem:[%s10026_s8 + $0x1e8] sm:$0xff]  ;;  %v165_v42 = vld [vmem:[%s10026_s8 + $0x120] sm:$0xff]  ;;  %v131_v43 = vld [vmem:[%s10026_s8 + $0x10] sm:$0xff]  ;;  %vm699_vm3 = vcmask 1041409   ;;  %vm702_vm4 = vcmask 1042434   ;;  %vm705_vm5 = vcmask 1043459  }
  0x2d   :  { %509 = vmatpush.msrb.mxu2 %v192_v36  ;;  %285 = vmatpush.msra.mxu0 %v135_v37  ;;  %v188_v44 = vld [vmem:[%s10026_s8 + $0x1d8] sm:$0xff]  ;;  %v163_v45 = vld [vmem:[%s10026_s8 + $0x110] sm:$0xff]  ;;  %v129_v46 = vld [vmem:[%s10026_s8] sm:$0xff]  ;;  %vm708_vm6 = vcmask 1044484   ;;  %vm711_vm7 = vcmask 1045509   ;;  %vm714_vm8 = vcmask 1046534  }
  0x2e   :  { %344 = vmatpush.msra.mxu1 %v167_v39  ;;  %v186_v47 = vld [vmem:[%s10026_s8 + $0x1c8] sm:$0xff]  ;;  %v6126_v48 = vld [vmem:[%s10027_s30] sm:$0xff]  ;;  %v216_v50 = vld [vmem:[%s10026_s8 + $0x2b8] sm:$0x3f]  ;;  %vm717_vm9 = vcmask 1046528   ;;  %s10038_s11 = sld [smem:[#allocation24_spill]] }
  0x2f   :  { %286 = vmatpush.msra.mxu0 %v133_v40  ;;  %510 = vmatpush.msrb.mxu2 %v190_v41  ;;  %v6131_v49 = vld [vmem:[%s10027_s30 + $0x28] sm:$0xff]  ;;  %v161_v51 = vld [vmem:[%s10026_s8 + $0x100] sm:$0xff]  ;;  %v184_v53 = vld [vmem:[%s10026_s8 + $0x1b8] sm:$0xff]  ;;  %vm1161_vm10 = vcmask 1042432   ;;  %vm1780_vm11 = vcmask 1047559   ;;  %vm1920_vm12 = vcmask 523264  }
  0x30   :  { %345 = vmatpush.msra.mxu1 %v165_v42  ;;  %v6142_v52 = vld [vmem:[%s10027_s30 + $0x8] sm:$0xff]  ;;  %v212_v56 = vld [vmem:[%s10026_s8 + $0x298] sm:$0xff]  ;;  %v6175_v60 = vld [vmem:[%s10027_s30 + $0x40] sm:$0xff]  ;;  %s10044_s28 = sld [smem:[#allocation25_spill]]  ;;  %vm2192_vm13 = vcmask 1044480   ;;  %vm1927_vm14 = vcmask 517120  }
  0x31   :  { %287 = vmatpush.msra.mxu0 %v131_v43  ;;  %511 = vmatpush.msrb.mxu2 %v188_v44  ;;  %v214_v54 = vld [vmem:[%s10026_s8 + $0x2a8] sm:$0xff]  ;;  %v180_v57 = vld [vmem:[%s10026_s8 + $0x198] sm:$0xff]  ;;  %v6183_v62 = vld [vmem:[%s10027_s30 + $0x20] sm:$0xff]  ;;  %s10051_s10 = sld [smem:[#allocation26_spill]]  ;;  %vm3148_vm15 = vcmask 523266  }
  0x32   :  { %346 = vmatpush.msra.mxu1 %v163_v45  ;;  %v182_v55 = vld [vmem:[%s10026_s8 + $0x1a8] sm:$0xff]  ;;  %v6170_v59 = vld [vmem:[%s10027_s30 + $0x18] sm:$0xff]  ;;  %v6198_v1 = vld [vmem:[%s10027_s30 + $0x30] sm:$0xff]  ;;  %s10053_s0 = sld [smem:[#allocation27_spill]] }
  0x33   :  { %288 = vmatpush.msra.mxu0 %v129_v46  ;;  %512 = vmatpush.msrb.mxu2 %v186_v47  ;;  %v210_v58 = vld [vmem:[%s10026_s8 + $0x288] sm:$0xff]  ;;  %v208_v61 = vld [vmem:[%s10026_s8 + $0x278] sm:$0xff]  ;;  %v6228_v7 = vld [vmem:[%s10027_s30 + $0x70] sm:$0xff]  ;;  %s10056_s1 = sld [smem:[#allocation29_spill]] }
  0x34   :  { %289 = vmatmul.f32.vlgmr.msra.gmra.mxu0 %v6126_v48  ;;  %5317 = vmatmul.msk.f32.gmra.mxu2 %vm223_vm1, %v6131_v49  ;;  %v178_v63 = vld [vmem:[%s10026_s8 + $0x188] sm:$0xff]  ;;  %v6203_v2 = vld [vmem:[%s10027_s30 + $0x58] sm:$0xff]  ;;  %v6233_v8 = vld [vmem:[%s10027_s30 + $0x50] sm:$0xff]  ;;  %s10057_s3 = sld [smem:[#allocation31_spill]] }
  0x35   :  { %5330 = vmatpush.msk.msrb.mxu0 %vm266_vm0, %v216_v50  ;;  %347 = vmatpush.msra.mxu1 %v161_v51  ;;  %v206_v0 = vld [vmem:[%s10026_s8 + $0x268] sm:$0xff]  ;;  %v6208_v3 = vld [vmem:[%s10027_s30 + $0x38] sm:$0xff]  ;;  %v6248_v11 = vld [vmem:[%s10027_s30 + $0x60] sm:$0xff]  ;;  %s10058_s7 = sld [smem:[#allocation21_spill]] }
  0x36   :  { %348 = vmatmul.f32.vlgmr.msra.gmra.mxu1 %v6142_v52  ;;  %513 = vmatpush.msrb.mxu2 %v184_v53  ;;  %v176_v4 = vld [vmem:[%s10026_s8 + $0x178] sm:$0xff]  ;;  %v174_v5 = vld [vmem:[%s10026_s8 + $0x168] sm:$0xff]  ;;  %v6281_v18 = vld [vmem:[%s10027_s30 + $0xa0] sm:$0xff] }
  0x37   :  { %573 = vmatpush.msrb.mxu0 %v214_v54  ;;  %v6223_v6 = vld [vmem:[%s10027_s30 + $0x48] sm:$0xff]  ;;  %v204_v9 = vld [vmem:[%s10026_s8 + $0x258] sm:$0xff]  ;;  %v6286_v19 = vld [vmem:[%s10027_s30 + $0x80] sm:$0xff] }
  0x38   :  { %514 = vmatpush.msrb.mxu2 %v182_v55  ;;  %v172_v10 = vld [vmem:[%s10026_s8 + $0x158] sm:$0xff]  ;;  %v6253_v12 = vld [vmem:[%s10027_s30 + $0x88] sm:$0xff]  ;;  %v6313_v26 = vld [vmem:[%s10027_s30 + $0x90] sm:$0xff] }
  0x39   :  { %574 = vmatpush.msrb.mxu0 %v212_v56  ;;  %v6258_v13 = vld [vmem:[%s10027_s30 + $0x68] sm:$0xff]  ;;  %v160_v16 = vld [vmem:[%s10026_s8 + $0xf8] sm:$0xff]  ;;  %v6355_v37 = vld [vmem:[%s10027_s30 + $0xd0] sm:$0xff] }
  0x3a   :  { %515 = vmatpush.msrb.mxu2 %v180_v57  ;;  %v202_v14 = vld [vmem:[%s10026_s8 + $0x248] sm:$0xff]  ;;  %450 = vmatpush.msra.mxu3 %v160_v16  ;;  %v6276_v17 = vld [vmem:[%s10027_s30 + $0x78] sm:$0xff]  ;;  %v6360_v38 = vld [vmem:[%s10027_s30 + $0xb0] sm:$0xff] }
  0x3b   :  { %575 = vmatpush.msrb.mxu0 %v210_v58  ;;  %v170_v15 = vld [vmem:[%s10026_s8 + $0x148] sm:$0xff]  ;;  %v156_v21 = vld [vmem:[%s10026_s8 + $0xd8] sm:$0xff]  ;;  %v6387_v45 = vld [vmem:[%s10027_s30 + $0xc0] sm:$0xff] }
  0x3c   :  { %292 = vmatmul.f32.gmra.mxu0 %v6170_v59  ;;  %5318 = vmatmul.msk.f32.gmra.mxu2 %vm223_vm1, %v6175_v60  ;;  %v158_v20 = vld [vmem:[%s10026_s8 + $0xe8] sm:$0xff]  ;;  %v200_v22 = vld [vmem:[%s10026_s8 + $0x238] sm:$0xff]  ;;  %v6424_v57 = vld [vmem:[%s10027_s30 + $0x100] sm:$0xff] }
  0x3d   :  { %576 = vmatpush.msrb.mxu0 %v208_v61  ;;  %516 = vmatpush.msrb.mxu2 %v178_v63  ;;  %v168_v23 = vld [vmem:[%s10026_s8 + $0x138] sm:$0xff]  ;;  %v154_v24 = vld [vmem:[%s10026_s8 + $0xc8] sm:$0xff]  ;;  %v6430_v58 = vld [vmem:[%s10027_s30 + $0xe0] sm:$0xff] }
  0x3e   :  { %351 = vmatmul.f32.gmra.mxu1 %v6183_v62  ;;  %451 = vmatpush.msra.mxu3 %v158_v20  ;;  %v152_v25 = vld [vmem:[%s10026_s8 + $0xb8] sm:$0xff]  ;;  %v150_v29 = vld [vmem:[%s10026_s8 + $0xa8] sm:$0xff]  ;;  %v117_v61 = vld [vmem:[%s10027_s30 + $0xf0] sm:$0xff] }
  0x3f   :  { %577 = vmatpush.msrb.mxu0 %v206_v0  ;;  %517 = vmatpush.msrb.mxu2 %v176_v4  ;;  %v6318_v27 = vld [vmem:[%s10027_s30 + $0xb8] sm:$0xff]  ;;  %v166_v31 = vld [vmem:[%s10026_s8 + $0x128] sm:$0xff]  ;;  %v6458_v4 = vld [vmem:[%s10027_s30 + $0x130] sm:$0xff] }
  0x40   :  { %452 = vmatpush.msra.mxu3 %v156_v21  ;;  %v6323_v28 = vld [vmem:[%s10027_s30 + $0x98] sm:$0xff]  ;;  %v198_v32 = vld [vmem:[%s10026_s8 + $0x228] sm:$0xff] }
  0x41   :  { %518 = vmatpush.msrb.mxu2 %v174_v5  ;;  %578 = vmatpush.msrb.mxu0 %v204_v9  ;;  %v148_v30 = vld [vmem:[%s10026_s8 + $0x98] sm:$0xff]  ;;  %v146_v33 = vld [vmem:[%s10026_s8 + $0x88] sm:$0xff]  ;;  %v123_v5 = vld [vmem:[%s10027_s30 + $0x120] sm:$0xff] }
  0x42   :  { %453 = vmatpush.msra.mxu3 %v154_v24  ;;  %v144_v34 = vld [vmem:[%s10026_s8 + $0x78] sm:$0xff]  ;;  %v6350_v36 = vld [vmem:[%s10027_s30 + $0xa8] sm:$0xff] }
  0x43   :  { %519 = vmatpush.msrb.mxu2 %v172_v10  ;;  %579 = vmatpush.msrb.mxu0 %v202_v14  ;;  %v142_v39 = vld [vmem:[%s10026_s8 + $0x68] sm:$0xff]  ;;  %v164_v40 = vld [vmem:[%s10026_s8 + $0x118] sm:$0xff]  ;;  %v127_v14 = vld [vmem:[%s10027_s30 + $0x140] sm:$0xf] }
  0x44   :  { %295 = vmatmul.f32.gmra.mxu0 %v6198_v1  ;;  %5319 = vmatmul.msk.f32.gmra.mxu2 %vm223_vm1, %v6203_v2  ;;  %v140_v41 = vld [vmem:[%s10026_s8 + $0x58] sm:$0xff]  ;;  %v138_v42 = vld [vmem:[%s10026_s8 + $0x48] sm:$0xff] }
  0x45   :  { %520 = vmatpush.msrb.mxu2 %v170_v15  ;;  %580 = vmatpush.msrb.mxu0 %v200_v22  ;;  %v196_v43 = vld [vmem:[%s10026_s8 + $0x218] sm:$0xff]  ;;  %v6392_v46 = vld [vmem:[%s10027_s30 + $0xe8] sm:$0xff] }
  0x46   :  { %354 = vmatmul.f32.gmra.mxu1 %v6208_v3  ;;  %454 = vmatpush.msra.mxu3 %v152_v25  ;;  %v136_v44 = vld [vmem:[%s10026_s8 + $0x38] sm:$0xff]  ;;  %v6397_v47 = vld [vmem:[%s10027_s30 + $0xc8] sm:$0xff] }
  0x47   :  { %521 = vmatpush.msrb.mxu2 %v168_v23  ;;  %581 = vmatpush.msrb.mxu0 %v198_v32  ;;  %v134_v50 = vld [vmem:[%s10026_s8 + $0x28] sm:$0xff]  ;;  %v132_v53 = vld [vmem:[%s10026_s8 + $0x18] sm:$0xff] }
  0x48   :  { %455 = vmatpush.msra.mxu3 %v150_v29  ;;  %v162_v51 = vld [vmem:[%s10026_s8 + $0x108] sm:$0xff]  ;;  %v114_v56 = vld [vmem:[%s10027_s30 + $0xd8] sm:$0xff] }
  0x49   :  { %522 = vmatpush.msrb.mxu2 %v166_v31  ;;  %582 = vmatpush.msrb.mxu0 %v196_v43  ;;  %v130_v54 = vld [vmem:[%s10026_s8 + $0x8] sm:$0xff]  ;;  %v6441_v63 = vld [vmem:[%s10027_s30 + $0x118] sm:$0xff] }
  0x4a   :  { %456 = vmatpush.msra.mxu3 %v148_v30  ;;  %v194_v55 = vld [vmem:[%s10026_s8 + $0x208] sm:$0xff]  ;;  %v126_v10 = vld [vmem:[%s10027_s30 + $0x138] sm:$0xf] }
  0x4b   :  { %523 = vmatpush.msrb.mxu2 %v164_v40  ;;  %583 = vmatpush.msrb.mxu0 %v194_v55  ;;  %v120_v0 = vld [vmem:[%s10027_s30 + $0x108] sm:$0xff] }
  0x4c   :  { %298 = vmatmul.f32.gmra.mxu0 %v6223_v6  ;;  %5320 = vmatmul.msk.f32.gmra.mxu2 %vm223_vm1, %v6228_v7  ;;  %v6475_v9 = vld [vmem:[%s10027_s30 + $0x148] sm:$0xf] }
  0x4d   :  { %457 = vmatpush.msra.mxu3 %v146_v33  ;;  %524 = vmatpush.msrb.mxu2 %v162_v51 }
  0x4e   :  { %357 = vmatmul.f32.gmra.mxu1 %v6233_v8 }
  0x4f   :  { %458 = vmatpush.msra.mxu3 %v144_v34 }
  0x51   :  { %459 = vmatpush.msra.mxu3 %v142_v39 }
  0x53   :  { %460 = vmatpush.msra.mxu3 %v140_v41 }
  0x54   :  { %301 = vmatmul.f32.gmra.mxu0 %v6248_v11  ;;  %5321 = vmatmul.msk.f32.gmra.mxu2 %vm223_vm1, %v6253_v12 }
  0x55   :  { %461 = vmatpush.msra.mxu3 %v138_v42 }
  0x56   :  { %360 = vmatmul.f32.gmra.mxu1 %v6258_v13 }
  0x57   :  { %462 = vmatpush.msra.mxu3 %v136_v44 }
  0x59   :  { %463 = vmatpush.msra.mxu3 %v134_v50 }
  0x5b   :  { %464 = vmatpush.msra.mxu3 %v132_v53 }
  0x5c   :  { %304 = vmatmul.f32.gmra.mxu0 %v6276_v17  ;;  %5322 = vmatmul.msk.f32.gmra.mxu2 %vm223_vm1, %v6281_v18 }
  0x5d   :  { %465 = vmatpush.msra.mxu3 %v130_v54 }
  0x5e   :  { %363 = vmatmul.f32.gmra.mxu1 %v6286_v19  ;;  %466 = vmatmul.f32.vlgmr.msra.gmra.mxu3 %v6126_v48  ;;  %v6447_v48 = vld [vmem:[%s10027_s30 + $0xf8] sm:$0xff] }
  0x64   :  { %307 = vmatmul.f32.gmra.mxu0 %v6313_v26  ;;  %5323 = vmatmul.msk.f32.gmra.mxu2 %vm223_vm1, %v6318_v27 }
  0x66   :  { %366 = vmatmul.f32.gmra.mxu1 %v6323_v28  ;;  %469 = vmatmul.f32.gmra.mxu3 %v6170_v59  ;;  %v6464_v59 = vld [vmem:[%s10027_s30 + $0x110] sm:$0xff] }
  0x6c   :  { %310 = vmatmul.f32.gmra.mxu0 %v6350_v36  ;;  %5324 = vmatmul.msk.f32.gmra.mxu2 %vm223_vm1, %v6355_v37 }
  0x6e   :  { %369 = vmatmul.f32.gmra.mxu1 %v6360_v38  ;;  %472 = vmatmul.f32.gmra.mxu3 %v6198_v1  ;;  %v124_v1 = vld [vmem:[%s10027_s30 + $0x128] sm:$0xff] }
  0x74   :  { %313 = vmatmul.f32.gmra.mxu0 %v6387_v45  ;;  %5325 = vmatmul.msk.f32.gmra.mxu2 %vm223_vm1, %v6392_v46 }
  0x76   :  { %372 = vmatmul.f32.gmra.mxu1 %v6397_v47  ;;  %475 = vmatmul.f32.gmra.mxu3 %v6223_v6 }
  0x7c   :  { %316 = vmatmul.f32.gmra.mxu0 %v114_v56  ;;  %5326 = vmatmul.msk.f32.gmra.mxu2 %vm223_vm1, %v6424_v57 }
  0x7e   :  { %375 = vmatmul.f32.gmra.mxu1 %v6430_v58  ;;  %478 = vmatmul.f32.gmra.mxu3 %v6248_v11 }
  0x84   :  { %319 = vmatmul.f32.gmra.mxu0 %v117_v61  ;;  %5327 = vmatmul.msk.f32.gmra.mxu2 %vm223_vm1, %v6441_v63 }
  0x86   :  { %378 = vmatmul.f32.gmra.mxu1 %v6447_v48  ;;  %481 = vmatmul.f32.gmra.mxu3 %v6276_v17 }
  0x8c   :  { %322 = vmatmul.f32.gmra.mxu0 %v120_v0  ;;  %5328 = vmatmul.msk.f32.gmra.mxu2 %vm223_vm1, %v6458_v4 }
  0x8e   :  { %381 = vmatmul.f32.gmra.mxu1 %v6464_v59  ;;  %484 = vmatmul.f32.gmra.mxu3 %v6313_v26 }
  0x94   :  { %325 = vmatmul.f32.gmra.mxu0 %v123_v5  ;;  %5329 = vmatmul.msk.f32.gmra.mxu2 %vm223_vm1, %v6475_v9 }
  0x96   :  { %384 = vmatmul.f32.gmra.mxu1 %v124_v1  ;;  %487 = vmatmul.f32.gmra.mxu3 %v6350_v36 }
  0x9c   :  { %328 = vmatmul.f32.gmra.mxu0 %v126_v10  ;;  %525 = vmatmul.f32.vlgmr.msrb.gmra.mxu2 %v6142_v52 }
  0x9e   :  { %387 = vmatmul.f32.gmra.mxu1 %v127_v14  ;;  %490 = vmatmul.f32.gmra.mxu3 %v6387_v45 }
  0xa4   :  { %528 = vmatmul.f32.gmra.mxu2 %v6183_v62  ;;  %5331 = vmatmul.msk.f32.vlgmr.msrb.gmra.mxu0 %vm223_vm1, %v6083_v35 }
  0xa6   :  { %493 = vmatmul.f32.gmra.mxu3 %v114_v56 }
  0xac   :  { %531 = vmatmul.f32.gmra.mxu2 %v6208_v3  ;;  %5332 = vmatmul.msk.f32.gmra.mxu0 %vm223_vm1, %v6131_v49 }
  0xae   :  { %496 = vmatmul.f32.gmra.mxu3 %v117_v61 }
  0xaf   :  { %v6499_v6 = vpop.f32.mrf.mxu2 }
  0xb1   :  { %v290_v11 = vpop.f32.mrf.mxu0 }
  0xb3   :  { %v349_v36 = vpop.f32.mrf.mxu1 }
  0xb4   :  { %534 = vmatmul.f32.gmra.mxu2 %v6233_v8  ;;  %5333 = vmatmul.msk.f32.gmra.mxu0 %vm223_vm1, %v6175_v60 }
  0xb6   :  { %499 = vmatmul.f32.gmra.mxu3 %v120_v0 }
  0xb7   :  { %v6505_v52 = vpop.f32.mrf.mxu2 }
  0xb9   :  { %v6507_v35 = vpop.f32.mrf.mxu0 }
  0xbc   :  { %537 = vmatmul.f32.gmra.mxu2 %v6258_v13  ;;  %5334 = vmatmul.msk.f32.gmra.mxu0 %vm223_vm1, %v6203_v2 }
  0xbe   :  { %502 = vmatmul.f32.gmra.mxu3 %v123_v5 }
  0xbf   :  { %v6513_v49 = vpop.f32.mrf.mxu2 }
  0xc1   :  { %v6515_v62 = vpop.f32.mrf.mxu0 }
  0xc4   :  { %540 = vmatmul.f32.gmra.mxu2 %v6286_v19  ;;  %5335 = vmatmul.msk.f32.gmra.mxu0 %vm223_vm1, %v6228_v7 }
  0xc6   :  { %505 = vmatmul.f32.gmra.mxu3 %v126_v10 }
  0xc7   :  { %v6520_v60 = vpop.f32.mrf.mxu2 }
  0xc9   :  { %v6522_v3 = vpop.f32.mrf.mxu0 }
  0xcc   :  { %543 = vmatmul.f32.gmra.mxu2 %v6323_v28  ;;  %5336 = vmatmul.msk.f32.gmra.mxu0 %vm223_vm1, %v6253_v12  ;;  %v217_v28 = vld [vmem:[%s10035_s29] sm:$0x3]  ;;  %s10054_s29 = sld [smem:[#allocation28_spill]] }
  0xcd   :  { %v6587_v29 = vperm.slane %v217_v28, 0  ;;  %v6591_v31 = vperm.slane %v217_v28, 1 }
  0xcf   :  { %v6527_v2 = vpop.f32.mrf.mxu2  ;;  %v291_v34 = vadd.f32 %v290_v11, %v6587_v29  ;;  %v294_v0 = vadd.f32 %v6507_v35, %v6587_v29 }
  0xd1   :  { %v6529_v8 = vpop.f32.mrf.mxu0 }
  0xd4   :  { %546 = vmatmul.f32.gmra.mxu2 %v6360_v38  ;;  %5337 = vmatmul.msk.f32.gmra.mxu0 %vm223_vm1, %v6281_v18  ;;  %v350_v38 = vadd.f32 %v349_v36, %v291_v34 }
  0xd6   :  { %v409_v42 = vadd.f32 %v6499_v6, %v350_v38 }
  0xd7   :  { %v6534_v7 = vpop.f32.mrf.mxu2 }
  0xd8   :  { %v627_v45 = vmax.f32 %v409_v42, 0.0 }
  0xd9   :  { %v6536_v13 = vpop.f32.mrf.mxu0 }
  0xdc   :  { %549 = vmatmul.f32.gmra.mxu2 %v6397_v47  ;;  %5338 = vmatmul.msk.f32.gmra.mxu0 %vm223_vm1, %v6318_v27 }
  0xdf   :  { %v6541_v12 = vpop.f32.mrf.mxu2 }
  0xe1   :  { %v6543_v15 = vpop.f32.mrf.mxu0  ;;  %v467_v33 = vpop.f32.mrf.mxu3 }
  0xe4   :  { %552 = vmatmul.f32.gmra.mxu2 %v6430_v58  ;;  %5339 = vmatmul.msk.f32.gmra.mxu0 %vm223_vm1, %v6355_v37  ;;  %v468_v37 = vadd.f32 %v467_v33, %v6591_v31 }
  0xe7   :  { %v6548_v16 = vpop.f32.mrf.mxu2 }
  0xe9   :  { %v6550_v17 = vpop.f32.mrf.mxu0  ;;  %v470_v53 = vpop.f32.mrf.mxu3 }
  0xea   :  { %v471_v56 = vadd.f32 %v470_v53, %v6591_v31 }
  0xec   :  { %555 = vmatmul.f32.gmra.mxu2 %v6447_v48  ;;  %5340 = vmatmul.msk.f32.gmra.mxu0 %vm223_vm1, %v6392_v46 }
  0xef   :  { %v6555_v18 = vpop.f32.mrf.mxu2 }
  0xf1   :  { %v6557_v19 = vpop.f32.mrf.mxu0 }
  0xf4   :  { %558 = vmatmul.f32.gmra.mxu2 %v6464_v59  ;;  %5341 = vmatmul.msk.f32.gmra.mxu0 %vm223_vm1, %v6424_v57  ;;  %v352_v59 = vpop.f32.mrf.mxu1 }
  0xf5   :  { %v353_v11 = vadd.f32 %v352_v59, %v294_v0 }
  0xf7   :  { %v6562_v20 = vpop.f32.mrf.mxu2  ;;  %v412_v35 = vadd.f32 %v6505_v52, %v353_v11 }
  0xf8   :  { %10028 = vst [vmem:[#allocation11_spill] sm:$0xff] %v6562_v20 }
  0xf9   :  { %v6564_v21 = vpop.f32.mrf.mxu0  ;;  %v629_v38 = vmax.f32 %v412_v35, 0.0 }
  0xfc   :  { %561 = vmatmul.f32.gmra.mxu2 %v124_v1  ;;  %5342 = vmatmul.msk.f32.gmra.mxu0 %vm223_vm1, %v6441_v63 }
  0xff   :  { %v6568_v22 = vpop.f32.mrf.mxu2 }
 0x100   :  { %10029 = vst [vmem:[#allocation12_spill] sm:$0xff] %v6568_v22 }
 0x101   :  { %v6570_v23 = vpop.f32.mrf.mxu0 }
 0x102   :  { %10030 = vst [vmem:[#allocation13_spill] sm:$0xff] %v6570_v23 }
 0x104   :  { %564 = vmatmul.f32.gmra.mxu2 %v127_v14  ;;  %5343 = vmatmul.msk.f32.gmra.mxu0 %vm223_vm1, %v6458_v4 }
 0x107   :  { %v6574_v24 = vpop.f32.mrf.mxu2 }
 0x108   :  { %10031 = vst [vmem:[#allocation14_spill] sm:$0xff] %v6574_v24 }
 0x109   :  { %v6576_v25 = vpop.f32.mrf.mxu0 }
 0x10a   :  { %10032 = vst [vmem:[#allocation15_spill] sm:$0xff] %v6576_v25 }
 0x10c   :  { %5344 = vmatmul.msk.f32.gmra.mxu0 %vm223_vm1, %v6475_v9  ;;  %vm2279_vm1 = vcmask 1043456  }
 0x10f   :  { %v6580_v26 = vpop.f32.mrf.mxu2 }
 0x110   :  { %10033 = vst [vmem:[#allocation16_spill] sm:$0xff] %v6580_v26 }
 0x111   :  { %v6582_v27 = vpop.f32.mrf.mxu0 }
 0x112   :  { %10034 = vst [vmem:[#allocation17_spill] sm:$0xff] %v6582_v27 }
 0x117   :  { %v6589_v30 = vpop.f32.mrf.mxu2 }
 0x118   :  { %10036 = vst [vmem:[#allocation18_spill] sm:$0xff] %v6589_v30 }
 0x119   :  { %v6593_v32 = vpop.f32.mrf.mxu0 }
 0x11a   :  { %10037 = vst [vmem:[#allocation19_spill] sm:$0xff] %v6593_v32 }
 0x11f   :  { %v526_v39 = vpop.f32.mrf.mxu2 }
 0x120   :  { %v527_v40 = vadd.f32 %v526_v39, %v468_v37 }
 0x121   :  { %v585_v41 = vpop.f32.mrf.mxu0 }
 0x122   :  { %v586_v43 = vadd.f32 %v585_v41, %v527_v40 }
 0x124   :  { %v628_v44 = vmax.f32 %v586_v43, 0.0  ;;  %v473_v43 = vpop.f32.mrf.mxu3 }
 0x126   :  { %v683_v46 = vrot.slane %v628_v44, 7 }
 0x127   :  { %v529_v57 = vpop.f32.mrf.mxu2 }
 0x128   :  { %v698_v47 = vsel %vm697_vm2, %v627_v45, %v683_v46  ;;  %v700_v50 = vsel %vm699_vm3, %v627_v45, %v683_v46  ;;  %v703_v51 = vsel %vm702_vm4, %v627_v45, %v683_v46  ;;  %v706_v58 = vsel %vm705_vm5, %v627_v45, %v683_v46 }
 0x129   :  { %v701_v54 = vrot.slane %v700_v50, 1  ;;  %v704_v55 = vrot.slane %v703_v51, 2  ;;  %907 = vst [vmem:[#allocation1] ss:$9 sm:$0xff] %v698_v47  ;;  %v530_v61 = vadd.f32 %v529_v57, %v471_v56  ;;  %v709_v63 = vsel %vm708_vm6, %v627_v45, %v683_v46  ;;  %v588_v48 = vpop.f32.mrf.mxu0 }
 0x12a   :  { %v712_v4 = vsel %vm711_vm7, %v627_v45, %v683_v46  ;;  %v707_v5 = vrot.slane %v706_v58, 3  ;;  %v710_v9 = vrot.slane %v709_v63, 4  ;;  %v715_v33 = vsel %vm714_vm8, %v627_v45, %v683_v46 }
 0x12b   :  { %909 = vst [vmem:[#allocation1 + $0x1] ss:$9 sm:$0xff] %v701_v54  ;;  %v589_v14 = vadd.f32 %v588_v48, %v530_v61  ;;  %v713_v6 = vrot.slane %v712_v4, 5  ;;  %v718_v34 = vsel %vm717_vm9, %v683_v46, %v627_v45  ;;  %v716_v37 = vrot.slane %v715_v33, 6  ;;  %v355_v61 = vpop.f32.mrf.mxu1 }
 0x12c   :  { %911 = vst [vmem:[#allocation1 + $0x2] ss:$9 sm:$0xff] %v704_v55  ;;  %v719_v39 = vrot.slane %v718_v34, 7  ;;  %v474_v46 = vadd.f32 %v473_v43, %v6591_v31  ;;  %v297_v58 = vadd.f32 %v6515_v62, %v6587_v29 }
 0x12d   :  { %v630_v28 = vmax.f32 %v589_v14, 0.0 }
 0x12e   :  { %v356_v4 = vadd.f32 %v355_v61, %v297_v58  ;;  %v1680_v58 = vld [vmem:[%s10038_s11 + $0x70] sm:$0xff] }
 0x12f   :  { %v684_v36 = vrot.slane %v630_v28, 7  ;;  %v532_v50 = vpop.f32.mrf.mxu2  ;;  %v1696_v61 = vld [vmem:[%s10038_s11 + $0xf0] sm:$0xff] }
 0x130   :  { %v533_v56 = vadd.f32 %v532_v50, %v474_v46  ;;  %v415_v62 = vadd.f32 %v6513_v49, %v356_v4  ;;  %v1681_v50 = vld [vmem:[%s10038_s11 + $0x78] sm:$0xff] }
 0x131   :  { %v720_v42 = vsel %vm697_vm2, %v629_v38, %v684_v36  ;;  %v721_v52 = vsel %vm699_vm3, %v629_v38, %v684_v36  ;;  %v723_v44 = vsel %vm702_vm4, %v629_v38, %v684_v36  ;;  %v725_v45 = vsel %vm705_vm5, %v629_v38, %v684_v36  ;;  %v591_v57 = vpop.f32.mrf.mxu0  ;;  %1847 = vmatpush.msrb.mxu1 %v1681_v50 }
 0x132   :  { %v722_v47 = vrot.slane %v721_v52, 1  ;;  %v724_v51 = vrot.slane %v723_v44, 2  ;;  %v726_v55 = vrot.slane %v725_v45, 3  ;;  %v727_v63 = vsel %vm708_vm6, %v629_v38, %v684_v36  ;;  %v476_v45 = vpop.f32.mrf.mxu3 }
 0x133   :  { %v6607_v1 = vld [vmem:[#allocation1] sm:$0xff]  ;;  %v6609_v10 = vld [vmem:[#allocation1 + $0x9] sm:$0xff]  ;;  %v592_v48 = vadd.f32 %v591_v57, %v533_v56  ;;  %v729_v0 = vsel %vm711_vm7, %v629_v38, %v684_v36  ;;  %v731_v59 = vsel %vm714_vm8, %v629_v38, %v684_v36  ;;  %v631_v33 = vmax.f32 %v415_v62, 0.0  ;;  %v358_v46 = vpop.f32.mrf.mxu1  ;;  %1848 = vmatpush.msrb.mxu1 %v1680_v58 }
 0x134   :  { %914 = vst [vmem:[#allocation1] ss:$9 sm:$0xff] %v707_v5  ;;  %v728_v5 = vrot.slane %v727_v63, 4  ;;  %v732_v28 = vrot.slane %v731_v59, 6  ;;  %v733_v34 = vsel %vm717_vm9, %v684_v36, %v629_v38  ;;  %v477_v49 = vadd.f32 %v476_v45, %v6591_v31 }
 0x135   :  { %915 = vst [vmem:[#allocation1 + $0x1] ss:$9 sm:$0xff] %v710_v9  ;;  %v730_v9 = vrot.slane %v729_v0, 5  ;;  %v632_v11 = vmax.f32 %v592_v48, 0.0  ;;  %v300_v59 = vadd.f32 %v6522_v3, %v6587_v29  ;;  %v1678_v3 = vld [vmem:[%s10038_s11 + $0x60] sm:$0xff] }
 0x136   :  { %916 = vst [vmem:[#allocation1 + $0x2] ss:$9 sm:$0xff] %v713_v6 }
 0x137   :  { %v685_v35 = vrot.slane %v632_v11, 7  ;;  %v535_v36 = vpop.f32.mrf.mxu2  ;;  %v1695_v11 = vld [vmem:[%s10038_s11 + $0xe8] sm:$0xff] }
 0x138   :  { %v536_v57 = vadd.f32 %v535_v36, %v477_v49 }
 0x139   :  { %v735_v52 = vsel %vm697_vm2, %v631_v33, %v685_v35  ;;  %v740_v38 = vsel %vm705_vm5, %v631_v33, %v685_v35  ;;  %v594_v4 = vpop.f32.mrf.mxu0  ;;  %v744_v45 = vsel %vm711_vm7, %v631_v33, %v685_v35 }
 0x13a   :  { %v741_v63 = vrot.slane %v740_v38, 3  ;;  %v595_v62 = vadd.f32 %v594_v4, %v536_v57  ;;  %v748_v38 = vsel %vm717_vm9, %v685_v35, %v631_v33  ;;  %v1677_v4 = vld [vmem:[%s10038_s11 + $0x58] sm:$0xff] }
 0x13c   :  { %v634_v36 = vmax.f32 %v595_v62, 0.0 }
 0x13d   :  { %v6614_v40 = vld [vmem:[#allocation1] sm:$0xff]  ;;  %v6616_v41 = vld [vmem:[#allocation1 + $0x9] sm:$0xff] }
 0x13e   :  { %919 = vst [vmem:[#allocation1] ss:$9 sm:$0xff] %v716_v37  ;;  %v736_v37 = vsel %vm699_vm3, %v631_v33, %v685_v35 }
 0x13f   :  { %920 = vst [vmem:[#allocation1 + $0x1] ss:$9 sm:$0xff] %v719_v39  ;;  %v734_v39 = vrot.slane %v733_v34, 7  ;;  %v737_v44 = vrot.slane %v736_v37, 1  ;;  %v1694_v34 = vld [vmem:[%s10038_s11 + $0xe0] sm:$0xff]  ;;  %v359_v37 = vadd.f32 %v358_v46, %v300_v59  ;;  %v538_v49 = vpop.f32.mrf.mxu2  ;;  %v745_v46 = vrot.slane %v744_v45, 5 }
 0x140   :  { %921 = vst [vmem:[#allocation1 + $0x2] ss:$9 sm:$0xff] %v720_v42  ;;  %v1690_v45 = vld [vmem:[%s10038_s11 + $0xc0] sm:$0xff] }
 0x141   :  { %v418_v50 = vadd.f32 %v6520_v60, %v359_v37  ;;  %v597_v58 = vpop.f32.mrf.mxu0  ;;  %v1693_v60 = vld [vmem:[%s10038_s11 + $0xd8] sm:$0xff]  ;;  %v1691_v37 = vld [vmem:[%s10038_s11 + $0xc8] sm:$0xff] }
 0x147   :  { %v6623_v53 = vld [vmem:[#allocation1] sm:$0xff]  ;;  %v6625_v54 = vld [vmem:[#allocation1 + $0x9] sm:$0xff] }
 0x148   :  { %924 = vst [vmem:[#allocation1] ss:$9 sm:$0xff] %v722_v47  ;;  %v738_v47 = vsel %vm702_vm4, %v631_v33, %v685_v35 }
 0x149   :  { %925 = vst [vmem:[#allocation1 + $0x1] ss:$9 sm:$0xff] %v724_v51  ;;  %v1697_v51 = vld [vmem:[%s10038_s11 + $0xf8] sm:$0xff]  ;;  %v739_v56 = vrot.slane %v738_v47, 2  ;;  %v746_v47 = vsel %vm714_vm8, %v631_v33, %v685_v35 }
 0x14a   :  { %926 = vst [vmem:[#allocation1 + $0x2] ss:$9 sm:$0xff] %v726_v55  ;;  %v742_v55 = vsel %vm708_vm6, %v631_v33, %v685_v35  ;;  %1879 = vmatpush.msrb.mxu3 %v1697_v51  ;;  %v633_v35 = vmax.f32 %v418_v50, 0.0 }
 0x14c   :  { %1880 = vmatpush.msrb.mxu3 %v1696_v61  ;;  %v749_v61 = vrot.slane %v748_v38, 7 }
 0x14e   :  { %1881 = vmatpush.msrb.mxu3 %v1695_v11  ;;  %v1162_v11 = vsel %vm1161_vm10, %v6607_v1, -inf }
 0x150   :  { %1882 = vmatpush.msrb.mxu3 %v1694_v34  ;;  %v1675_v34 = vld [vmem:[%s10038_s11 + $0x48] sm:$0xff] }
 0x151   :  { %v6632_v14 = vld [vmem:[#allocation1] sm:$0xff]  ;;  %v6634_v6 = vld [vmem:[#allocation1 + $0x9] sm:$0xff] }
 0x152   :  { %929 = vst [vmem:[#allocation1] ss:$9 sm:$0xff] %v728_v5  ;;  %v743_v5 = vrot.slane %v742_v55, 4  ;;  %1883 = vmatpush.msrb.mxu3 %v1693_v60 }
 0x153   :  { %930 = vst [vmem:[#allocation1 + $0x1] ss:$9 sm:$0xff] %v730_v9  ;;  %v1679_v9 = vld [vmem:[%s10038_s11 + $0x68] sm:$0xff] }
 0x154   :  { %931 = vst [vmem:[#allocation1 + $0x2] ss:$9 sm:$0xff] %v732_v28  ;;  %v479_v28 = vpop.f32.mrf.mxu3  ;;  %1849 = vmatpush.msrb.mxu1 %v1679_v9  ;;  %v1692_v9 = vld [vmem:[%s10038_s11 + $0xd0] sm:$0xff] }
 0x155   :  { %1884 = vmatpush.msrb.mxu3 %v1692_v9 }
 0x156   :  { %1850 = vmatpush.msrb.mxu1 %v1678_v3 }
 0x157   :  { %1885 = vmatpush.msrb.mxu3 %v1691_v37 }
 0x158   :  { %1851 = vmatpush.msrb.mxu1 %v1677_v4 }
 0x159   :  { %1886 = vmatpush.msrb.mxu3 %v1690_v45 }
 0x15b   :  { %v6639_v42 = vld [vmem:[#allocation1] sm:$0xff]  ;;  %v6641_v43 = vld [vmem:[#allocation1 + $0x9] sm:$0xff] }
 0x15c   :  { %934 = vst [vmem:[#allocation1] ss:$9 sm:$0xff] %v734_v39  ;;  %v303_v39 = vadd.f32 %v6529_v8, %v6587_v29  ;;  %v482_v3 = vpop.f32.mrf.mxu3 }
 0x15d   :  { %935 = vst [vmem:[#allocation1 + $0x1] ss:$9 sm:$0xff] %v735_v52  ;;  %v480_v52 = vadd.f32 %v479_v28, %v6591_v31  ;;  %v1176_v28 = vsel %vm1161_vm10, %v6614_v40, -inf  ;;  %v6727_v50 = vadd.f32 %v482_v3, %v6591_v31 }
 0x15e   :  { %936 = vst [vmem:[#allocation1 + $0x2] ss:$9 sm:$0xff] %v737_v44  ;;  %v361_v44 = vpop.f32.mrf.mxu1 }
 0x15f   :  { %v362_v51 = vadd.f32 %v361_v44, %v303_v39  ;;  %v539_v55 = vadd.f32 %v538_v49, %v480_v52  ;;  %v1163_v39 = vrot.slane %v1162_v11, 4  ;;  %v1674_v44 = vld [vmem:[%s10038_s11 + $0x40] sm:$0xff]  ;;  %v1177_v49 = vrot.slane %v1176_v28, 4 }
 0x161   :  { %v421_v33 = vadd.f32 %v6527_v2, %v362_v51  ;;  %v598_v59 = vadd.f32 %v597_v58, %v539_v55  ;;  %v1164_v60 = vmax.f32 %v1162_v11, %v1163_v39  ;;  %v1178_v9 = vmax.f32 %v1176_v28, %v1177_v49 }
 0x163   :  { %v6717_v40 = vmax.f32 %v421_v33, 0.0  ;;  %v636_v52 = vmax.f32 %v598_v59, 0.0  ;;  %v1204_v33 = vsel %vm1161_vm10, %v6632_v14, -inf  ;;  %v1218_v59 = vsel %vm1161_vm10, %v6639_v42, -inf }
 0x164   :  { %v1205_v28 = vrot.slane %v1204_v33, 4  ;;  %v1165_v37 = vrot.slane %v1164_v60, 2 }
 0x165   :  { %v6660_v48 = vld [vmem:[#allocation1] sm:$0xff]  ;;  %v6662_v0 = vld [vmem:[#allocation1 + $0x9] sm:$0xff] }
 0x166   :  { %939 = vst [vmem:[#allocation1] ss:$9 sm:$0xff] %v739_v56  ;;  %v747_v56 = vrot.slane %v746_v47, 6  ;;  %v1232_v42 = vsel %vm1161_vm10, %v6660_v48, -inf }
 0x167   :  { %940 = vst [vmem:[#allocation1 + $0x1] ss:$9 sm:$0xff] %v741_v63  ;;  %v686_v63 = vrot.slane %v634_v36, 7  ;;  %v1233_v45 = vrot.slane %v1232_v42, 4 }
 0x168   :  { %941 = vst [vmem:[#allocation1 + $0x2] ss:$9 sm:$0xff] %v743_v5  ;;  %v1676_v5 = vld [vmem:[%s10038_s11 + $0x50] sm:$0xff] }
 0x169   :  { %1852 = vmatpush.msrb.mxu1 %v1676_v5  ;;  %v751_v2 = vsel %vm699_vm3, %v633_v35, %v686_v63  ;;  %v753_v62 = vsel %vm702_vm4, %v633_v35, %v686_v63  ;;  %v6715_v1 = vsel %vm705_vm5, %v633_v35, %v686_v63  ;;  %v750_v47 = vsel %vm697_vm2, %v633_v35, %v686_v63 }
 0x16a   :  { %v752_v36 = vrot.slane %v751_v2, 1  ;;  %v754_v38 = vrot.slane %v753_v62, 2  ;;  %v6734_v55 = vsel %vm711_vm7, %v633_v35, %v686_v63  ;;  %v6743_v4 = vsel %vm714_vm8, %v633_v35, %v686_v63 }
 0x16b   :  { %1853 = vmatpush.msrb.mxu1 %v1675_v34  ;;  %v6749_v5 = vrot.slane %v636_v52, 7  ;;  %v1183_v2 = vsel %vm1161_vm10, %v6616_v41, -inf  ;;  %v6757_v11 = vsel %vm717_vm9, %v686_v63, %v633_v35  ;;  %v760_v3 = vrot.slane %v6734_v55, 5 }
 0x16c   :  { %v1219_v34 = vrot.slane %v1218_v59, 4  ;;  %v1184_v39 = vrot.slane %v1183_v2, 4  ;;  %v1211_v55 = vsel %vm1161_vm10, %v6634_v6, -inf  ;;  %v1225_v41 = vsel %vm1161_vm10, %v6641_v43, -inf  ;;  %v1687_v6 = vld [vmem:[%s10038_s11 + $0xa8] sm:$0xff] }
 0x16d   :  { %1854 = vmatpush.msrb.mxu1 %v1674_v44  ;;  %v6775_v44 = vsel %vm697_vm2, %v6717_v40, %v6749_v5  ;;  %v6780_v49 = vsel %vm699_vm3, %v6717_v40, %v6749_v5  ;;  %v1234_v43 = vmax.f32 %v1232_v42, %v1233_v45  ;;  %v10039_v42 = vrot.slane %v6715_v1, 3 }
 0x16e   :  { %v1220_v52 = vmax.f32 %v1218_v59, %v1219_v34  ;;  %v1185_v30 = vmax.f32 %v1183_v2, %v1184_v39 }
 0x16f   :  { %v6685_v8 = vld [vmem:[#allocation1] sm:$0xff]  ;;  %v6687_v57 = vld [vmem:[#allocation1 + $0x9] sm:$0xff] }
 0x170   :  { %944 = vst [vmem:[#allocation1] ss:$9 sm:$0xff] %v745_v46  ;;  %v6731_v46 = vsel %vm708_vm6, %v633_v35, %v686_v63  ;;  %v1673_v63 = vld [vmem:[%s10038_s11 + $0x38] sm:$0xff]  ;;  %v1246_v59 = vsel %vm1161_vm10, %v6685_v8, -inf  ;;  %v6825_v8 = vsel %vm705_vm5, %v6717_v40, %v6749_v5  ;;  %v1221_v39 = vrot.slane %v1220_v52, 2 }
 0x171   :  { %945 = vst [vmem:[#allocation1 + $0x1] ss:$9 sm:$0xff] %v747_v56  ;;  %v1190_v56 = vsel %vm1161_vm10, %v6623_v53, -inf  ;;  %v1169_v53 = vsel %vm1161_vm10, %v6609_v10, -inf  ;;  %v758_v62 = vrot.slane %v6731_v46, 4  ;;  %v1197_v10 = vsel %vm1161_vm10, %v6625_v54, -inf  ;;  %1855 = vmatpush.msrb.mxu1 %v1673_v63 }
 0x172   :  { %946 = vst [vmem:[#allocation1 + $0x2] ss:$9 sm:$0xff] %v749_v61  ;;  %v1191_v14 = vrot.slane %v1190_v56, 4  ;;  %v1689_v35 = vld [vmem:[%s10038_s11 + $0xb8] sm:$0xff]  ;;  %v1170_v48 = vrot.slane %v1169_v53, 4  ;;  %v1179_v54 = vrot.slane %v1178_v9, 2  ;;  %v6793_v63 = vsel %vm702_vm4, %v6717_v40, %v6749_v5 }
 0x173   :  { %1887 = vmatpush.msrb.mxu3 %v1689_v35  ;;  %v1198_v46 = vrot.slane %v1197_v10, 4  ;;  %v1206_v35 = vmax.f32 %v1204_v33, %v1205_v28  ;;  %v1212_v28 = vrot.slane %v1211_v55, 4  ;;  %v1186_v45 = vrot.slane %v1185_v30, 2 }
 0x174   :  { %v1171_v51 = vmax.f32 %v1169_v53, %v1170_v48  ;;  %v6807_v33 = vmax.f32 %v1178_v9, %v1179_v54  ;;  %v1253_v9 = vsel %vm1161_vm10, %v6687_v57, -inf  ;;  %v1247_v54 = vrot.slane %v1246_v59, 4 }
 0x175   :  { %v1199_v2 = vmax.f32 %v1197_v10, %v1198_v46  ;;  %v1207_v48 = vrot.slane %v1206_v35, 2  ;;  %v1222_v25 = vmax.f32 %v1220_v52, %v1221_v39  ;;  %v1187_v52 = vmax.f32 %v1185_v30, %v1186_v45 }
 0x176   :  { %v1172_v1 = vrot.slane %v1171_v51, 2  ;;  %v1181_v46 = vrot.slane %v6807_v33, 1  ;;  %v1248_v32 = vmax.f32 %v1246_v59, %v1247_v54  ;;  %v10040_v45 = vrot.slane %v6743_v4, 6 }
 0x177   :  { %v1200_v26 = vrot.slane %v1199_v2, 2  ;;  %v1208_v24 = vmax.f32 %v1206_v35, %v1207_v48 }
 0x178   :  { %v1249_v22 = vrot.slane %v1248_v32, 2  ;;  %v1173_v48 = vmax.f32 %v1171_v51, %v1172_v1  ;;  %v1683_v51 = vld [vmem:[%s10038_s11 + $0x88] sm:$0xff] }
 0x179   :  { %v6738_v58 = vld [vmem:[#allocation1] sm:$0xff]  ;;  %v6740_v61 = vld [vmem:[#allocation1 + $0x9] sm:$0xff] }
 0x17a   :  { %949 = vst [vmem:[#allocation1] ss:$9 sm:$0xff] %v750_v47  ;;  %v1672_v47 = vld [vmem:[%s10038_s11 + $0x30] sm:$0xff] }
 0x17b   :  { %950 = vst [vmem:[#allocation1 + $0x1] ss:$9 sm:$0xff] %v752_v36  ;;  %v1688_v36 = vld [vmem:[%s10038_s11 + $0xb0] sm:$0xff]  ;;  %1856 = vmatpush.msrb.mxu1 %v1672_v47  ;;  %v1239_v47 = vsel %vm1161_vm10, %v6662_v0, -inf  ;;  %v1226_v0 = vrot.slane %v1225_v41, 4 }
 0x17c   :  { %951 = vst [vmem:[#allocation1 + $0x2] ss:$9 sm:$0xff] %v754_v38  ;;  %v1192_v38 = vmax.f32 %v1190_v56, %v1191_v14  ;;  %1888 = vmatpush.msrb.mxu3 %v1688_v36  ;;  %v1671_v56 = vld [vmem:[%s10038_s11 + $0x28] sm:$0xff]  ;;  %v6803_v14 = vmax.f32 %v1164_v60, %v1165_v37  ;;  %v1670_v60 = vld [vmem:[%s10038_s11 + $0x20] sm:$0xff]  ;;  %v1240_v10 = vrot.slane %v1239_v47, 4 }
 0x17d   :  { %1857 = vmatpush.msrb.mxu1 %v1671_v56  ;;  %v1686_v37 = vld [vmem:[%s10038_s11 + $0xa0] sm:$0xff]  ;;  %v1235_v56 = vrot.slane %v1234_v43, 2  ;;  %v1227_v27 = vmax.f32 %v1225_v41, %v1226_v0  ;;  %v1685_v41 = vld [vmem:[%s10038_s11 + $0x98] sm:$0xff]  ;;  %v1684_v0 = vld [vmem:[%s10038_s11 + $0x90] sm:$0xff] }
 0x17e   :  { %1889 = vmatpush.msrb.mxu3 %v1687_v6  ;;  %v1193_v53 = vrot.slane %v1192_v38, 2  ;;  %v1167_v57 = vrot.slane %v6803_v14, 1  ;;  %v1213_v6 = vmax.f32 %v1211_v55, %v1212_v28  ;;  %v1669_v55 = vld [vmem:[%s10038_s11 + $0x18] sm:$0xff] }
 0x17f   :  { %1858 = vmatpush.msrb.mxu1 %v1670_v60  ;;  %v1254_v60 = vrot.slane %v1253_v9, 4 }
 0x180   :  { %1890 = vmatpush.msrb.mxu3 %v1686_v37  ;;  %v1241_v37 = vmax.f32 %v1239_v47, %v1240_v10  ;;  %v1214_v35 = vrot.slane %v1213_v6, 2  ;;  %v1250_v47 = vmax.f32 %v1248_v32, %v1249_v22  ;;  %v1168_v22 = vmax.f32 %v6803_v14, %v1167_v57 }
 0x181   :  { %v1255_v20 = vmax.f32 %v1253_v9, %v1254_v60  ;;  %1859 = vmatpush.msrb.mxu1 %v1669_v55  ;;  %v1209_v9 = vrot.slane %v1208_v24, 1  ;;  %v1223_v32 = vrot.slane %v1222_v25, 1  ;;  %v10041_v14 = vrot.slane %v6757_v11, 7  ;;  %v1666_v55 = vld [vmem:[%s10038_s11] sm:$0xff] }
 0x182   :  { %1891 = vmatpush.msrb.mxu3 %v1685_v41  ;;  %v1242_v30 = vrot.slane %v1241_v37, 2  ;;  %v1251_v4 = vrot.slane %v1250_v47, 1  ;;  %v1188_v57 = vrot.slane %v1187_v52, 1 }
 0x183   :  { %v6811_v34 = vld [vmem:[#allocation1] sm:$0xff]  ;;  %v6813_v36 = vld [vmem:[#allocation1 + $0x9] sm:$0xff]  ;;  %v1256_v54 = vrot.slane %v1255_v20, 2  ;;  %v1210_v11 = vmax.f32 %v1208_v24, %v1209_v9 }
 0x184   :  { %954 = vst [vmem:[#allocation1] ss:$9 sm:$0xff] %v10039_v42  ;;  %v1194_v42 = vmax.f32 %v1192_v38, %v1193_v53  ;;  %v1236_v38 = vmax.f32 %v1234_v43, %v1235_v56  ;;  %v1228_v53 = vrot.slane %v1227_v27, 2  ;;  %v1201_v43 = vmax.f32 %v1199_v2, %v1200_v26  ;;  %1892 = vmatpush.msrb.mxu3 %v1684_v0  ;;  %v1667_v26 = vld [vmem:[%s10038_s11 + $0x8] sm:$0xff] }
 0x185   :  { %955 = vst [vmem:[#allocation1 + $0x1] ss:$9 sm:$0xff] %v758_v62  ;;  %v1260_v62 = vsel %vm1161_vm10, %v6738_v58, -inf  ;;  %v1215_v56 = vmax.f32 %v1213_v6, %v1214_v35  ;;  %v1682_v6 = vld [vmem:[%s10038_s11 + $0x80] sm:$0xff]  ;;  %v1243_v41 = vmax.f32 %v1241_v37, %v1242_v30  ;;  %v1174_v35 = vrot.slane %v1173_v48, 1 }
 0x186   :  { %956 = vst [vmem:[#allocation1 + $0x2] ss:$9 sm:$0xff] %v760_v3  ;;  %v1261_v23 = vrot.slane %v1260_v62, 4  ;;  %v1267_v3 = vsel %vm1161_vm10, %v6740_v61, -inf  ;;  %v1195_v58 = vrot.slane %v1194_v42, 1  ;;  %v1668_v61 = vld [vmem:[%s10038_s11 + $0x10] sm:$0xff]  ;;  %1893 = vmatpush.msrb.mxu3 %v1683_v51 }
 0x187   :  { %v1268_v59 = vrot.slane %v1267_v3, 4  ;;  %1860 = vmatpush.msrb.mxu1 %v1668_v61  ;;  %v1237_v2 = vrot.slane %v1236_v38, 1  ;;  %v1252_v61 = vmax.f32 %v1250_v47, %v1251_v4  ;;  %v1244_v9 = vrot.slane %v1243_v41, 1 }
 0x188   :  { %v1262_v28 = vmax.f32 %v1260_v62, %v1261_v23  ;;  %v1182_v23 = vmax.f32 %v6807_v33, %v1181_v46  ;;  %v1196_v33 = vmax.f32 %v1194_v42, %v1195_v58  ;;  %v1229_v46 = vmax.f32 %v1227_v27, %v1228_v53  ;;  %1894 = vmatpush.msrb.mxu3 %v1682_v6  ;;  %v364_v6 = vpop.f32.mrf.mxu1 }
 0x189   :  { %v1269_v60 = vmax.f32 %v1267_v3, %v1268_v59  ;;  %1861 = vmatpush.msrb.mxu1 %v1667_v26  ;;  %v767_v62 = vrot.slane %v6780_v49, 1  ;;  %v1202_v3 = vrot.slane %v1201_v43, 1  ;;  %v1224_v42 = vmax.f32 %v1222_v25, %v1223_v32 }
 0x18a   :  { %v1263_v1 = vrot.slane %v1262_v28, 2  ;;  %v1774_v27 = vsel %vm699_vm3, %v1182_v23, %v1168_v22  ;;  %v1257_v49 = vmax.f32 %v1255_v20, %v1256_v54  ;;  %v1238_v59 = vmax.f32 %v1236_v38, %v1237_v2  ;;  %v541_v20 = vpop.f32.mrf.mxu2 }
 0x18b   :  { %1862 = vmatpush.msrb.mxu1 %v1666_v55  ;;  %v1216_v58 = vrot.slane %v1215_v56, 1  ;;  %v1270_v53 = vrot.slane %v1269_v60, 2  ;;  %v1775_v0 = vsel %vm702_vm4, %v1196_v33, %v1774_v27  ;;  %v1230_v26 = vrot.slane %v1229_v46, 1  ;;  %v485_v27 = vpop.f32.mrf.mxu3 }
 0x18c   :  { %v1776_v24 = vsel %vm705_vm5, %v1210_v11, %v1775_v0  ;;  %v1203_v37 = vmax.f32 %v1201_v43, %v1202_v3  ;;  %v1258_v30 = vrot.slane %v1257_v49, 1  ;;  %v1175_v23 = vmax.f32 %v1173_v48, %v1174_v35 }
 0x18d   :  { %v6848_v39 = vld [vmem:[#allocation1] sm:$0xff]  ;;  %v6850_v10 = vld [vmem:[#allocation1 + $0x9] sm:$0xff]  ;;  %v1777_v25 = vsel %vm708_vm6, %v1224_v42, %v1776_v24  ;;  %v1271_v22 = vmax.f32 %v1269_v60, %v1270_v53  ;;  %v1217_v47 = vmax.f32 %v1215_v56, %v1216_v58  ;;  %v769_v32 = vrot.slane %v6793_v63, 2 }
 0x18e   :  { %959 = vst [vmem:[#allocation1] ss:$9 sm:$0xff] %v10040_v45  ;;  %v1189_v45 = vmax.f32 %v1187_v52, %v1188_v57  ;;  %v1231_v2 = vmax.f32 %v1229_v46, %v1230_v26  ;;  %v1245_v33 = vmax.f32 %v1243_v41, %v1244_v9  ;;  %v542_v48 = vadd.f32 %v541_v20, %v6727_v50  ;;  %v600_v57 = vpop.f32.mrf.mxu0 }
 0x18f   :  { %960 = vst [vmem:[#allocation1 + $0x1] ss:$9 sm:$0xff] %v10041_v14  ;;  %v771_v14 = vrot.slane %v6825_v8, 3  ;;  %v1259_v63 = vmax.f32 %v1257_v49, %v1258_v30  ;;  %v306_v8 = vadd.f32 %v6536_v13, %v6587_v29  ;;  %v772_v50 = vsel %vm708_vm6, %v6717_v40, %v6749_v5 }
 0x190   :  { %961 = vst [vmem:[#allocation1 + $0x2] ss:$9 sm:$0xff] %v6775_v44  ;;  %v1264_v44 = vmax.f32 %v1262_v28, %v1263_v1  ;;  %v1778_v28 = vsel %vm711_vm7, %v1238_v59, %v1777_v25  ;;  %v1272_v1 = vrot.slane %v1271_v22, 1  ;;  %v1782_v4 = vsel %vm699_vm3, %v1189_v45, %v1175_v23 }
 0x191   :  { %v1779_v43 = vsel %vm714_vm8, %v1252_v61, %v1778_v28  ;;  %v1783_v56 = vsel %vm702_vm4, %v1203_v37, %v1782_v4  ;;  %v601_v3 = vadd.f32 %v600_v57, %v542_v48  ;;  %v774_v42 = vsel %vm711_vm7, %v6717_v40, %v6749_v5 }
 0x192   :  { %v1265_v51 = vrot.slane %v1264_v44, 1  ;;  %v1273_v55 = vmax.f32 %v1271_v22, %v1272_v1  ;;  %v1784_v46 = vsel %vm705_vm5, %v1217_v47, %v1783_v56  ;;  %v365_v13 = vadd.f32 %v364_v6, %v306_v8  ;;  %v544_v26 = vpop.f32.mrf.mxu2  ;;  %v367_v22 = vpop.f32.mrf.mxu1 }
 0x193   :  { %v776_v49 = vsel %vm714_vm8, %v6717_v40, %v6749_v5  ;;  %v773_v59 = vrot.slane %v772_v50, 4  ;;  %v638_v61 = vmax.f32 %v601_v3, 0.0  ;;  %v486_v0 = vadd.f32 %v485_v27, %v6591_v31 }
 0x194   :  { %v1266_v38 = vmax.f32 %v1264_v44, %v1265_v51  ;;  %v775_v44 = vrot.slane %v774_v42, 5  ;;  %v777_v45 = vrot.slane %v776_v49, 6  ;;  %v424_v51 = vadd.f32 %v6534_v7, %v365_v13 }
 0x195   :  { %v688_v24 = vrot.slane %v638_v61, 7  ;;  %v545_v37 = vadd.f32 %v544_v26, %v486_v0  ;;  %v309_v9 = vadd.f32 %v6543_v15, %v6587_v29  ;;  %v778_v20 = vsel %vm717_vm9, %v6749_v5, %v6717_v40 }
 0x196   :  { %v1781_v60 = vsel %vm1780_vm11, %v1266_v38, %v1779_v43  ;;  %v603_v25 = vpop.f32.mrf.mxu0  ;;  %v637_v30 = vmax.f32 %v424_v51, 0.0  ;;  %v779_v47 = vrot.slane %v778_v20, 7  ;;  %v1281_v40 = vsel %vm1161_vm10, %v6813_v36, -inf }
 0x197   :  { %v6878_v52 = vld [vmem:[#allocation1] sm:$0xff]  ;;  %v6880_v54 = vld [vmem:[#allocation1 + $0x9] sm:$0xff]  ;;  %1863 = vmatmul.f32.vlgmr.msrb.gmra.mxu1 %v1781_v60  ;;  %v604_v28 = vadd.f32 %v603_v25, %v545_v37  ;;  %v368_v23 = vadd.f32 %v367_v22, %v309_v9  ;;  %v1295_v8 = vsel %vm1161_vm10, %v6850_v10, -inf  ;;  %v488_v25 = vpop.f32.mrf.mxu3 }
 0x198   :  { %964 = vst [vmem:[#allocation1] ss:$9 sm:$0xff] %v767_v62  ;;  %v1785_v62 = vsel %vm708_vm6, %v1231_v2, %v1784_v46  ;;  %v781_v38 = vsel %vm699_vm3, %v637_v30, %v688_v24  ;;  %v780_v43 = vsel %vm697_vm2, %v637_v30, %v688_v24  ;;  %v783_v5 = vsel %vm702_vm4, %v637_v30, %v688_v24 }
 0x199   :  { %965 = vst [vmem:[#allocation1 + $0x1] ss:$9 sm:$0xff] %v769_v32  ;;  %v1786_v11 = vsel %vm711_vm7, %v1245_v33, %v1785_v62  ;;  %v782_v2 = vrot.slane %v781_v38, 1  ;;  %v640_v15 = vmax.f32 %v604_v28, 0.0  ;;  %v427_v1 = vadd.f32 %v6541_v12, %v368_v23 }
 0x19a   :  { %966 = vst [vmem:[#allocation1 + $0x2] ss:$9 sm:$0xff] %v771_v14  ;;  %v1787_v41 = vsel %vm714_vm8, %v1259_v63, %v1786_v11  ;;  %v1274_v14 = vsel %vm1161_vm10, %v6811_v34, -inf  ;;  %v785_v60 = vsel %vm705_vm5, %v637_v30, %v688_v24  ;;  %v787_v33 = vsel %vm708_vm6, %v637_v30, %v688_v24 }
 0x19b   :  { %v1788_v35 = vsel %vm1780_vm11, %v1273_v55, %v1787_v41  ;;  %v6925_v4 = vrot.slane %v640_v15, 7  ;;  %v1275_v48 = vrot.slane %v1274_v14, 4  ;;  %v1282_v63 = vrot.slane %v1281_v40, 4 }
 0x19c   :  { %1895 = vmatmul.f32.vlgmr.msrb.gmra.mxu3 %v1788_v35  ;;  %v6927_v56 = vmax.f32 %v427_v1, 0.0  ;;  %v6931_v12 = vadd.f32 %v6550_v17, %v6587_v29  ;;  %v784_v34 = vrot.slane %v783_v5, 2  ;;  %v789_v57 = vsel %vm711_vm7, %v637_v30, %v688_v24 }
 0x19d   :  { %v6935_v36 = vsel %vm714_vm8, %v637_v30, %v688_v24  ;;  %v6938_v55 = vsel %vm717_vm9, %v688_v24, %v637_v30  ;;  %v1288_v46 = vsel %vm1161_vm10, %v6848_v39, -inf  ;;  %v786_v62 = vrot.slane %v785_v60, 3 }
 0x19e   :  { %v788_v6 = vrot.slane %v787_v33, 4  ;;  %v1302_v17 = vsel %vm1161_vm10, %v6878_v52, -inf  ;;  %v1309_v11 = vsel %vm1161_vm10, %v6880_v54, -inf  ;;  %v790_v50 = vrot.slane %v789_v57, 5 }
 0x19f   :  { %v6951_v42 = vsel %vm699_vm3, %v6927_v56, %v6925_v4  ;;  %v1276_v39 = vmax.f32 %v1274_v14, %v1275_v48  ;;  %v1283_v27 = vmax.f32 %v1281_v40, %v1282_v63  ;;  %v792_v10 = vrot.slane %v6935_v36, 6 }
 0x1a0   :  { %v794_v35 = vrot.slane %v6938_v55, 7  ;;  %v1289_v13 = vrot.slane %v1288_v46, 4  ;;  %v1296_v52 = vrot.slane %v1295_v8, 4  ;;  %v6958_v54 = vsel %vm697_vm2, %v6927_v56, %v6925_v4 }
 0x1a1   :  { %v6904_v58 = vld [vmem:[#allocation1] sm:$0xff]  ;;  %v6906_v53 = vld [vmem:[#allocation1 + $0x9] sm:$0xff]  ;;  %v6963_v49 = vsel %vm702_vm4, %v6927_v56, %v6925_v4  ;;  %v797_v61 = vrot.slane %v6951_v42, 1  ;;  %v6969_v0 = vsel %vm705_vm5, %v6927_v56, %v6925_v4  ;;  %v1277_v51 = vrot.slane %v1276_v39, 2 }
 0x1a2   :  { %969 = vst [vmem:[#allocation1] ss:$9 sm:$0xff] %v773_v59  ;;  %v1303_v59 = vrot.slane %v1302_v17, 4  ;;  %v1323_v26 = vsel %vm1161_vm10, %v6906_v53, -inf  ;;  %v1284_v37 = vrot.slane %v1283_v27, 2  ;;  %v1290_v30 = vmax.f32 %v1288_v46, %v1289_v13 }
 0x1a3   :  { %970 = vst [vmem:[#allocation1 + $0x1] ss:$9 sm:$0xff] %v775_v44  ;;  %v1310_v44 = vrot.slane %v1309_v11, 4  ;;  %v1297_v20 = vmax.f32 %v1295_v8, %v1296_v52  ;;  %v801_v53 = vrot.slane %v6969_v0, 3  ;;  %v489_v15 = vadd.f32 %v488_v25, %v6591_v31 }
 0x1a4   :  { %971 = vst [vmem:[#allocation1 + $0x2] ss:$9 sm:$0xff] %v777_v45  ;;  %v1316_v45 = vsel %vm1161_vm10, %v6904_v58, -inf  ;;  %v1304_v28 = vmax.f32 %v1302_v17, %v1303_v59  ;;  %v1324_v58 = vrot.slane %v1323_v26, 4  ;;  %v1278_v40 = vmax.f32 %v1276_v39, %v1277_v51 }
 0x1a5   :  { %v1317_v23 = vrot.slane %v1316_v45, 4  ;;  %v1291_v5 = vrot.slane %v1290_v30, 2  ;;  %v1285_v60 = vmax.f32 %v1283_v27, %v1284_v37  ;;  %v1298_v33 = vrot.slane %v1297_v20, 2 }
 0x1a6   :  { %v1305_v57 = vrot.slane %v1304_v28, 2  ;;  %v1325_v46 = vmax.f32 %v1323_v26, %v1324_v58  ;;  %v1279_v52 = vrot.slane %v1278_v40, 1 }
 0x1a7   :  { %v1318_v36 = vmax.f32 %v1316_v45, %v1317_v23  ;;  %v1286_v59 = vrot.slane %v1285_v60, 1 }
 0x1a8   :  { %v1326_v26 = vrot.slane %v1325_v46, 2 }
 0x1a9   :  { %v1319_v45 = vrot.slane %v1318_v36, 2 }
 0x1ab   :  { %v972_v7 = vld [vmem:[#allocation1] sm:$0xff]  ;;  %v973_v32 = vld [vmem:[#allocation1 + $0x9] sm:$0xff] }
 0x1ac   :  { %974 = vst [vmem:[#allocation1] ss:$9 sm:$0xff] %v779_v47  ;;  %v1330_v24 = vsel %vm1161_vm10, %v972_v7, -inf  ;;  %v1337_v9 = vsel %vm1161_vm10, %v973_v32, -inf  ;;  %v1311_v47 = vmax.f32 %v1309_v11, %v1310_v44  ;;  %v6984_v32 = vsel %vm708_vm6, %v6927_v56, %v6925_v4  ;;  %v606_v44 = vpop.f32.mrf.mxu0 }
 0x1ad   :  { %975 = vst [vmem:[#allocation1 + $0x1] ss:$9 sm:$0xff] %v780_v43  ;;  %v799_v43 = vrot.slane %v6963_v49, 2  ;;  %v1338_v7 = vrot.slane %v1337_v9, 4  ;;  %v803_v27 = vrot.slane %v6984_v32, 4 }
 0x1ae   :  { %976 = vst [vmem:[#allocation1 + $0x2] ss:$9 sm:$0xff] %v782_v2  ;;  %v1331_v2 = vrot.slane %v1330_v24, 4  ;;  %v1312_v55 = vrot.slane %v1311_v47, 2 }
 0x1b0   :  { %v1332_v8 = vmax.f32 %v1330_v24, %v1331_v2  ;;  %v1292_v24 = vmax.f32 %v1290_v30, %v1291_v5  ;;  %v1313_v23 = vmax.f32 %v1311_v47, %v1312_v55  ;;  %v1327_v30 = vmax.f32 %v1325_v46, %v1326_v26 }
 0x1b2   :  { %v1333_v37 = vrot.slane %v1332_v8, 2  ;;  %v1293_v5 = vrot.slane %v1292_v24, 1  ;;  %v1328_v46 = vrot.slane %v1327_v30, 1 }
 0x1b5   :  { %v977_v3 = vld [vmem:[#allocation1] sm:$0xff]  ;;  %v978_v41 = vld [vmem:[#allocation1 + $0x9] sm:$0xff] }
 0x1b6   :  { %979 = vst [vmem:[#allocation1] ss:$9 sm:$0xff] %v784_v34  ;;  %v1344_v22 = vsel %vm1161_vm10, %v977_v3, -inf  ;;  %v1351_v38 = vsel %vm1161_vm10, %v978_v41, -inf  ;;  %v547_v34 = vpop.f32.mrf.mxu2 }
 0x1b7   :  { %980 = vst [vmem:[#allocation1 + $0x1] ss:$9 sm:$0xff] %v786_v62  ;;  %v1345_v1 = vrot.slane %v1344_v22, 4  ;;  %v1352_v14 = vrot.slane %v1351_v38, 4  ;;  %v548_v13 = vadd.f32 %v547_v34, %v489_v15  ;;  %v1280_v15 = vmax.f32 %v1278_v40, %v1279_v52 }
 0x1b8   :  { %981 = vst [vmem:[#allocation1 + $0x2] ss:$9 sm:$0xff] %v788_v6  ;;  %v1339_v6 = vmax.f32 %v1337_v9, %v1338_v7  ;;  %v1299_v9 = vmax.f32 %v1297_v20, %v1298_v33  ;;  %v1334_v20 = vmax.f32 %v1332_v8, %v1333_v37 }
 0x1b9   :  { %v1346_v11 = vmax.f32 %v1344_v22, %v1345_v1  ;;  %v1353_v41 = vmax.f32 %v1351_v38, %v1352_v14  ;;  %v6995_v58 = vadd.f32 %v606_v44, %v548_v13  ;;  %v1320_v1 = vmax.f32 %v1318_v36, %v1319_v45 }
 0x1ba   :  { %v1340_v25 = vrot.slane %v1339_v6, 2  ;;  %v1287_v14 = vmax.f32 %v1285_v60, %v1286_v59  ;;  %v1300_v33 = vrot.slane %v1299_v9, 1 }
 0x1bb   :  { %v1347_v22 = vrot.slane %v1346_v11, 2  ;;  %v1354_v38 = vrot.slane %v1353_v41, 2  ;;  %v1321_v60 = vrot.slane %v1320_v1, 1  ;;  %v642_v0 = vmax.f32 %v6995_v58, 0.0 }
 0x1bd   :  { %v1348_v34 = vmax.f32 %v1346_v11, %v1347_v22  ;;  %v1355_v55 = vmax.f32 %v1353_v41, %v1354_v38  ;;  %v1335_v11 = vrot.slane %v1334_v20, 1  ;;  %v1301_v41 = vmax.f32 %v1299_v9, %v1300_v33  ;;  %v370_v9 = vpop.f32.mrf.mxu1 }
 0x1bf   :  { %v982_v48 = vld [vmem:[#allocation1] sm:$0xff]  ;;  %v983_v63 = vld [vmem:[#allocation1 + $0x9] sm:$0xff]  ;;  %v1356_v52 = vrot.slane %v1355_v55, 1 }
 0x1c0   :  { %984 = vst [vmem:[#allocation1] ss:$9 sm:$0xff] %v790_v50  ;;  %v1358_v62 = vsel %vm1161_vm10, %v982_v48, -inf  ;;  %v1365_v17 = vsel %vm1161_vm10, %v983_v63, -inf }
 0x1c1   :  { %985 = vst [vmem:[#allocation1 + $0x1] ss:$9 sm:$0xff] %v792_v10  ;;  %v1359_v3 = vrot.slane %v1358_v62, 4  ;;  %v1366_v39 = vrot.slane %v1365_v17, 4  ;;  %v1306_v10 = vmax.f32 %v1304_v28, %v1305_v57  ;;  %v1341_v28 = vmax.f32 %v1339_v6, %v1340_v25 }
 0x1c2   :  { %986 = vst [vmem:[#allocation1 + $0x2] ss:$9 sm:$0xff] %v794_v35  ;;  %v6993_v35 = vsel %vm711_vm7, %v6927_v56, %v6925_v4  ;;  %v1314_v57 = vrot.slane %v1313_v23, 1  ;;  %v1294_v6 = vmax.f32 %v1292_v24, %v1293_v5  ;;  %v1336_v25 = vmax.f32 %v1334_v20, %v1335_v11  ;;  %v491_v11 = vpop.f32.mrf.mxu3 }
 0x1c3   :  { %v1360_v50 = vmax.f32 %v1358_v62, %v1359_v3  ;;  %v1367_v51 = vmax.f32 %v1365_v17, %v1366_v39  ;;  %v1307_v63 = vrot.slane %v1306_v10, 1  ;;  %v1349_v39 = vrot.slane %v1348_v34, 1 }
 0x1c4   :  { %v1789_v49 = vsel %vm699_vm3, %v1294_v6, %v1280_v15  ;;  %v1796_v24 = vsel %vm699_vm3, %v1301_v41, %v1287_v14 }
 0x1c5   :  { %v1361_v2 = vrot.slane %v1360_v50, 2  ;;  %v1368_v7 = vrot.slane %v1367_v51, 2  ;;  %v1308_v44 = vmax.f32 %v1306_v10, %v1307_v63  ;;  %v1350_v22 = vmax.f32 %v1348_v34, %v1349_v39 }
 0x1c7   :  { %v1362_v62 = vmax.f32 %v1360_v50, %v1361_v2  ;;  %v1369_v3 = vmax.f32 %v1367_v51, %v1368_v7  ;;  %v1315_v50 = vmax.f32 %v1313_v23, %v1314_v57  ;;  %v1329_v51 = vmax.f32 %v1327_v30, %v1328_v46 }
 0x1c8   :  { %v1357_v2 = vmax.f32 %v1355_v55, %v1356_v52  ;;  %v1790_v10 = vsel %vm702_vm4, %v1308_v44, %v1789_v49  ;;  %v550_v52 = vpop.f32.mrf.mxu2 }
 0x1c9   :  { %v987_v48 = vld [vmem:[#allocation1] sm:$0xff]  ;;  %v988_v47 = vld [vmem:[#allocation1 + $0x9] sm:$0xff]  ;;  %v1363_v45 = vrot.slane %v1362_v62, 1  ;;  %v1370_v42 = vrot.slane %v1369_v3, 1 }
 0x1ca   :  { %989 = vst [vmem:[#allocation1] ss:$9 sm:$0xff] %v6958_v54  ;;  %v1372_v17 = vsel %vm1161_vm10, %v987_v48, -inf  ;;  %v1379_v40 = vsel %vm1161_vm10, %v988_v47, -inf  ;;  %v1342_v54 = vrot.slane %v1341_v28, 1  ;;  %v371_v48 = vadd.f32 %v370_v9, %v6931_v12 }
 0x1cb   :  { %990 = vst [vmem:[#allocation1 + $0x1] ss:$9 sm:$0xff] %v797_v61  ;;  %v1373_v36 = vrot.slane %v1372_v17, 4  ;;  %v1380_v8 = vrot.slane %v1379_v40, 4  ;;  %v1322_v61 = vmax.f32 %v1320_v1, %v1321_v60  ;;  %v1364_v5 = vmax.f32 %v1362_v62, %v1363_v45 }
 0x1cc   :  { %991 = vst [vmem:[#allocation1 + $0x2] ss:$9 sm:$0xff] %v799_v43  ;;  %v1343_v43 = vmax.f32 %v1341_v28, %v1342_v54  ;;  %v1371_v23 = vmax.f32 %v1369_v3, %v1370_v42  ;;  %v1797_v1 = vsel %vm702_vm4, %v1315_v50, %v1796_v24  ;;  %v805_v47 = vrot.slane %v6993_v35, 5  ;;  %v373_v54 = vpop.f32.mrf.mxu1 }
 0x1cd   :  { %v1374_v13 = vmax.f32 %v1372_v17, %v1373_v36  ;;  %v1381_v59 = vmax.f32 %v1379_v40, %v1380_v8  ;;  %v1791_v15 = vsel %vm705_vm5, %v1322_v61, %v1790_v10  ;;  %v1798_v14 = vsel %vm705_vm5, %v1329_v51, %v1797_v1  ;;  %v609_v61 = vpop.f32.mrf.mxu0 }
 0x1ce   :  { %v1792_v63 = vsel %vm708_vm6, %v1336_v25, %v1791_v15  ;;  %v1799_v34 = vsel %vm708_vm6, %v1343_v43, %v1798_v14  ;;  %v430_v32 = vadd.f32 %v6548_v16, %v371_v48  ;;  %v808_v40 = vsel %vm717_vm9, %v6925_v4, %v6927_v56  ;;  %v494_v43 = vpop.f32.mrf.mxu3 }
 0x1cf   :  { %v1375_v26 = vrot.slane %v1374_v13, 2  ;;  %v1382_v37 = vrot.slane %v1381_v59, 2  ;;  %v1793_v55 = vsel %vm711_vm7, %v1350_v22, %v1792_v63  ;;  %v1800_v17 = vsel %vm711_vm7, %v1357_v2, %v1799_v34 }
 0x1d0   :  { %v1794_v12 = vsel %vm714_vm8, %v1364_v5, %v1793_v55  ;;  %v1801_v35 = vsel %vm714_vm8, %v1371_v23, %v1800_v17  ;;  %v690_v60 = vrot.slane %v642_v0, 7  ;;  %v641_v46 = vmax.f32 %v430_v32, 0.0  ;;  %v10042_v17 = vld [vmem:[#allocation11_spill] sm:$0xff] }
 0x1d1   :  { %v1376_v38 = vmax.f32 %v1374_v13, %v1375_v26  ;;  %v1383_v7 = vmax.f32 %v1381_v59, %v1382_v37  ;;  %v809_v58 = vrot.slane %v808_v40, 7  ;;  %v315_v26 = vadd.f32 %v6557_v19, %v6587_v29  ;;  %v553_v19 = vpop.f32.mrf.mxu2 }
 0x1d2   :  { %v810_v16 = vsel %vm697_vm2, %v641_v46, %v690_v60  ;;  %v811_v41 = vsel %vm699_vm3, %v641_v46, %v690_v60  ;;  %v813_v39 = vsel %vm702_vm4, %v641_v46, %v690_v60  ;;  %v817_v51 = vsel %vm708_vm6, %v641_v46, %v690_v60 }
 0x1d3   :  { %v7008_v33 = vld [vmem:[#allocation1] sm:$0xff]  ;;  %v7010_v30 = vld [vmem:[#allocation1 + $0x9] sm:$0xff]  ;;  %v1377_v20 = vrot.slane %v1376_v38, 1  ;;  %v1384_v28 = vrot.slane %v1383_v7, 1  ;;  %v812_v13 = vrot.slane %v811_v41, 1  ;;  %v814_v59 = vrot.slane %v813_v39, 2 }
 0x1d4   :  { %994 = vst [vmem:[#allocation1] ss:$9 sm:$0xff] %v801_v53  ;;  %v376_v25 = vpop.f32.mrf.mxu1  ;;  %v819_v49 = vsel %vm711_vm7, %v641_v46, %v690_v60  ;;  %v374_v24 = vadd.f32 %v373_v54, %v315_v26  ;;  %v821_v9 = vsel %vm714_vm8, %v641_v46, %v690_v60  ;;  %v818_v22 = vrot.slane %v817_v51, 4 }
 0x1d5   :  { %995 = vst [vmem:[#allocation1 + $0x1] ss:$9 sm:$0xff] %v803_v27  ;;  %v1378_v57 = vmax.f32 %v1376_v38, %v1377_v20  ;;  %v1385_v62 = vmax.f32 %v1383_v7, %v1384_v28  ;;  %v806_v27 = vsel %vm714_vm8, %v6927_v56, %v6925_v4  ;;  %v815_v4 = vsel %vm705_vm5, %v641_v46, %v690_v60  ;;  %v612_v14 = vpop.f32.mrf.mxu0 }
 0x1d6   :  { %996 = vst [vmem:[#allocation1 + $0x2] ss:$9 sm:$0xff] %v805_v47  ;;  %v807_v36 = vrot.slane %v806_v27, 6  ;;  %v492_v56 = vadd.f32 %v491_v11, %v6591_v31  ;;  %v816_v50 = vrot.slane %v815_v4, 3  ;;  %v820_v38 = vrot.slane %v819_v49, 5 }
 0x1d7   :  { %v1795_v53 = vsel %vm1780_vm11, %v1378_v57, %v1794_v12  ;;  %v1802_v3 = vsel %vm1780_vm11, %v1385_v62, %v1801_v35  ;;  %v495_v10 = vadd.f32 %v494_v43, %v6591_v31  ;;  %v822_v23 = vrot.slane %v821_v9, 6 }
 0x1d8   :  { %1866 = vmatmul.f32.gmra.mxu1 %v1795_v53  ;;  %1898 = vmatmul.f32.gmra.mxu3 %v1802_v3  ;;  %v551_v42 = vadd.f32 %v550_v52, %v492_v56  ;;  %v433_v1 = vadd.f32 %v6555_v18, %v374_v24  ;;  %v318_v20 = vadd.f32 %v6564_v21, %v6587_v29  ;;  %v7064_v53 = vpop.f32.mrf.mxu3  ;;  %v1386_v32 = vsel %vm1161_vm10, %v7008_v33, -inf }
 0x1d9   :  { %v554_v28 = vadd.f32 %v553_v19, %v495_v10  ;;  %v823_v63 = vsel %vm717_vm9, %v690_v60, %v641_v46  ;;  %v1393_v60 = vsel %vm1161_vm10, %v7010_v30, -inf  ;;  %v1387_v30 = vrot.slane %v1386_v32, 4 }
 0x1da   :  { %v610_v37 = vadd.f32 %v609_v61, %v551_v42  ;;  %v643_v48 = vmax.f32 %v433_v1, 0.0  ;;  %v377_v47 = vadd.f32 %v376_v25, %v318_v20  ;;  %v824_v62 = vrot.slane %v823_v63, 7 }
 0x1db   :  { %v613_v55 = vadd.f32 %v612_v14, %v554_v28  ;;  %v1394_v4 = vrot.slane %v1393_v60, 4  ;;  %v1388_v9 = vmax.f32 %v1386_v32, %v1387_v30 }
 0x1dc   :  { %v644_v5 = vmax.f32 %v610_v37, 0.0  ;;  %v7059_v34 = vpop.f32.mrf.mxu1  ;;  %v436_v18 = vadd.f32 %v10042_v17, %v377_v47 }
 0x1dd   :  { %v7036_v8 = vld [vmem:[#allocation1] sm:$0xff]  ;;  %v7038_v6 = vld [vmem:[#allocation1 + $0x9] sm:$0xff]  ;;  %v646_v3 = vmax.f32 %v613_v55, 0.0  ;;  %v1389_v14 = vrot.slane %v1388_v9, 2 }
 0x1de   :  { %999 = vst [vmem:[#allocation1] ss:$9 sm:$0xff] %v807_v36  ;;  %v691_v15 = vrot.slane %v644_v5, 7  ;;  %v7068_v27 = vmax.f32 %v436_v18, 0.0  ;;  %v1400_v40 = vsel %vm1161_vm10, %v7036_v8, -inf  ;;  %v1407_v36 = vsel %vm1161_vm10, %v7038_v6, -inf }
 0x1df   :  { %1000 = vst [vmem:[#allocation1 + $0x1] ss:$9 sm:$0xff] %v809_v58  ;;  %v7086_v8 = vrot.slane %v646_v3, 7  ;;  %v1401_v39 = vrot.slane %v1400_v40, 4  ;;  %v1408_v56 = vrot.slane %v1407_v36, 4 }
 0x1e0   :  { %1001 = vst [vmem:[#allocation1 + $0x2] ss:$9 sm:$0xff] %v810_v16  ;;  %v826_v57 = vsel %vm699_vm3, %v643_v48, %v691_v15  ;;  %v825_v21 = vsel %vm697_vm2, %v643_v48, %v691_v15  ;;  %v828_v46 = vsel %vm702_vm4, %v643_v48, %v691_v15  ;;  %v830_v58 = vsel %vm705_vm5, %v643_v48, %v691_v15 }
 0x1e1   :  { %v827_v0 = vrot.slane %v826_v57, 1  ;;  %v832_v16 = vsel %vm708_vm6, %v643_v48, %v691_v15  ;;  %v7081_v33 = vsel %vm711_vm7, %v643_v48, %v691_v15  ;;  %v7084_v41 = vsel %vm714_vm8, %v643_v48, %v691_v15 }
 0x1e2   :  { %v7091_v6 = vsel %vm717_vm9, %v691_v15, %v643_v48  ;;  %v833_v42 = vrot.slane %v832_v16, 4  ;;  %v835_v61 = vrot.slane %v7081_v33, 5  ;;  %v837_v37 = vrot.slane %v7084_v41, 6 }
 0x1e3   :  { %v839_v25 = vrot.slane %v7091_v6, 7  ;;  %v7106_v24 = vsel %vm699_vm3, %v7068_v27, %v7086_v8  ;;  %v1409_v5 = vmax.f32 %v1407_v36, %v1408_v56  ;;  %v7115_v10 = vsel %vm697_vm2, %v7068_v27, %v7086_v8  ;;  %v556_v56 = vpop.f32.mrf.mxu2 }
 0x1e4   :  { %v7088_v54 = vpop.f32.mrf.mxu1  ;;  %v842_v20 = vrot.slane %v7106_v24, 1  ;;  %v7121_v15 = vsel %vm702_vm4, %v7068_v27, %v7086_v8 }
 0x1e7   :  { %v1002_v44 = vld [vmem:[#allocation1] sm:$0xff]  ;;  %v7045_v45 = vld [vmem:[#allocation1 + $0x9] sm:$0xff] }
 0x1e8   :  { %1004 = vst [vmem:[#allocation1] ss:$9 sm:$0xff] %v812_v13  ;;  %v1414_v11 = vsel %vm1161_vm10, %v1002_v44, -inf  ;;  %v10043_v13 = vld [vmem:[#allocation13_spill] sm:$0xff]  ;;  %v831_v44 = vrot.slane %v830_v58, 3  ;;  %v1421_v51 = vsel %vm1161_vm10, %v7045_v45, -inf }
 0x1e9   :  { %1005 = vst [vmem:[#allocation1 + $0x1] ss:$9 sm:$0xff] %v814_v59  ;;  %v7095_v52 = vadd.f32 %v10043_v13, %v6587_v29  ;;  %v829_v59 = vrot.slane %v828_v46, 2  ;;  %v1422_v1 = vrot.slane %v1421_v51, 4  ;;  %v498_v46 = vadd.f32 %v7064_v53, %v6591_v31 }
 0x1ea   :  { %1006 = vst [vmem:[#allocation1 + $0x2] ss:$9 sm:$0xff] %v816_v50  ;;  %v1415_v50 = vrot.slane %v1414_v11, 4 }
 0x1eb   :  { %v1423_v3 = vmax.f32 %v1421_v51, %v1422_v1 }
 0x1ec   :  { %v7132_v32 = vpop.f32.mrf.mxu1 }
 0x1f1   :  { %v1007_v2 = vld [vmem:[#allocation1] sm:$0xff]  ;;  %v7052_v7 = vld [vmem:[#allocation1 + $0x9] sm:$0xff] }
 0x1f2   :  { %1009 = vst [vmem:[#allocation1] ss:$9 sm:$0xff] %v818_v22  ;;  %v1428_v26 = vsel %vm1161_vm10, %v1007_v2, -inf  ;;  %v7108_v22 = vpop.f32.mrf.mxu3  ;;  %v1395_v2 = vmax.f32 %v1393_v60, %v1394_v4  ;;  %v1435_v45 = vsel %vm1161_vm10, %v7052_v7, -inf  ;;  %v7126_v7 = vsel %vm705_vm5, %v7068_v27, %v7086_v8 }
 0x1f3   :  { %1010 = vst [vmem:[#allocation1 + $0x1] ss:$9 sm:$0xff] %v820_v38  ;;  %v1402_v38 = vmax.f32 %v1400_v40, %v1401_v39  ;;  %v1429_v19 = vrot.slane %v1428_v26, 4  ;;  %v1436_v47 = vrot.slane %v1435_v45, 4  ;;  %v844_v40 = vrot.slane %v7121_v15, 2 }
 0x1f4   :  { %1011 = vst [vmem:[#allocation1 + $0x2] ss:$9 sm:$0xff] %v822_v23  ;;  %v1416_v23 = vmax.f32 %v1414_v11, %v1415_v50  ;;  %v1396_v55 = vrot.slane %v1395_v2, 2  ;;  %v1390_v11 = vmax.f32 %v1388_v9, %v1389_v14  ;;  %v1424_v50 = vrot.slane %v1423_v3, 2  ;;  %v7150_v6 = vpop.f32.mrf.mxu1 }
 0x1f5   :  { %v1403_v57 = vrot.slane %v1402_v38, 2  ;;  %v1437_v58 = vmax.f32 %v1435_v45, %v1436_v47  ;;  %v557_v45 = vadd.f32 %v556_v56, %v498_v46 }
 0x1f6   :  { %v1417_v18 = vrot.slane %v1416_v23, 2  ;;  %v1397_v41 = vmax.f32 %v1395_v2, %v1396_v55  ;;  %v1425_v14 = vmax.f32 %v1423_v3, %v1424_v50 }
 0x1f7   :  { %v1404_v33 = vmax.f32 %v1402_v38, %v1403_v57  ;;  %v1438_v9 = vrot.slane %v1437_v58, 2 }
 0x1f8   :  { %v1418_v13 = vmax.f32 %v1416_v23, %v1417_v18  ;;  %v1398_v23 = vrot.slane %v1397_v41, 1 }
 0x1f9   :  { %v1405_v47 = vrot.slane %v1404_v33, 1 }
 0x1fa   :  { %v1419_v55 = vrot.slane %v1418_v13, 1 }
 0x1fb   :  { %v1012_v12 = vld [vmem:[#allocation1] sm:$0xff]  ;;  %v1013_v35 = vld [vmem:[#allocation1 + $0x9] sm:$0xff] }
 0x1fc   :  { %1014 = vst [vmem:[#allocation1] ss:$9 sm:$0xff] %v824_v62  ;;  %v1442_v28 = vsel %vm1161_vm10, %v1012_v12, -inf  ;;  %v1449_v63 = vsel %vm1161_vm10, %v1013_v35, -inf  ;;  %v1410_v62 = vrot.slane %v1409_v5, 2  ;;  %v846_v12 = vrot.slane %v7126_v7, 3 }
 0x1fd   :  { %1015 = vst [vmem:[#allocation1 + $0x1] ss:$9 sm:$0xff] %v825_v21  ;;  %v1430_v21 = vmax.f32 %v1428_v26, %v1429_v19  ;;  %v1450_v36 = vrot.slane %v1449_v63, 4  ;;  %v7139_v35 = vsel %vm708_vm6, %v7068_v27, %v7086_v8  ;;  %v615_v19 = vpop.f32.mrf.mxu0 }
 0x1fe   :  { %1016 = vst [vmem:[#allocation1 + $0x2] ss:$9 sm:$0xff] %v827_v0  ;;  %v1443_v0 = vrot.slane %v1442_v28, 4  ;;  %v1411_v30 = vmax.f32 %v1409_v5, %v1410_v62  ;;  %v848_v5 = vrot.slane %v7139_v35, 4  ;;  %v10045_v35 = vld [vmem:[#allocation12_spill] sm:$0xff] }
 0x1ff   :  { %v1451_v53 = vmax.f32 %v1449_v63, %v1450_v36 }
 0x201   :  { %v1452_v57 = vrot.slane %v1451_v53, 2 }
 0x205   :  { %v1017_v49 = vld [vmem:[#allocation1] sm:$0xff]  ;;  %v1018_v43 = vld [vmem:[#allocation1 + $0x9] sm:$0xff] }
 0x206   :  { %1019 = vst [vmem:[#allocation1] ss:$9 sm:$0xff] %v829_v59  ;;  %v1456_v48 = vsel %vm1161_vm10, %v1017_v49, -inf  ;;  %v1463_v17 = vsel %vm1161_vm10, %v1018_v43, -inf  ;;  %v1431_v59 = vrot.slane %v1430_v21, 2 }
 0x207   :  { %1020 = vst [vmem:[#allocation1 + $0x1] ss:$9 sm:$0xff] %v831_v44  ;;  %v1457_v60 = vrot.slane %v1456_v48, 4  ;;  %v1464_v16 = vrot.slane %v1463_v17, 4  ;;  %v1444_v44 = vmax.f32 %v1442_v28, %v1443_v0  ;;  %v7157_v0 = vadd.f32 %v615_v19, %v557_v45 }
 0x208   :  { %1021 = vst [vmem:[#allocation1 + $0x2] ss:$9 sm:$0xff] %v833_v42  ;;  %v7143_v42 = vpop.f32.mrf.mxu3  ;;  %v1432_v62 = vmax.f32 %v1430_v21, %v1431_v59  ;;  %v5829_v19 = vmov 0.0  }
 0x209   :  { %v1458_v26 = vmax.f32 %v1456_v48, %v1457_v60  ;;  %v1465_v38 = vmax.f32 %v1463_v17, %v1464_v16  ;;  %v1445_v1 = vrot.slane %v1444_v44, 2  ;;  %v1439_v17 = vmax.f32 %v1437_v58, %v1438_v9  ;;  %1921 = vst.msk [vmem:[#allocation3] sm:$0xff] %vm1920_vm12, %v5829_v19 }
 0x20a   :  { %v1399_v16 = vmax.f32 %v1397_v41, %v1398_v23  ;;  %v1453_v58 = vmax.f32 %v1451_v53, %v1452_v57  ;;  %1922 = vst.msk [vmem:[#allocation3 + $0x8] sm:$0xff] %vm1920_vm12, %v5829_v19  ;;  %v648_v7 = vmax.f32 %v7157_v0, 0.0 }
 0x20b   :  { %v1459_v63 = vrot.slane %v1458_v26, 2  ;;  %v1466_v18 = vrot.slane %v1465_v38, 2  ;;  %v1446_v46 = vmax.f32 %v1444_v44, %v1445_v1  ;;  %1923 = vst.msk [vmem:[#allocation3 + $0x10] sm:$0xff] %vm1920_vm12, %v5829_v19 }
 0x20c   :  { %1924 = vst.msk [vmem:[#allocation4] sm:$0xff] %vm1920_vm12, %v5829_v19 }
 0x20d   :  { %v1460_v56 = vmax.f32 %v1458_v26, %v1459_v63  ;;  %v1467_v9 = vmax.f32 %v1465_v38, %v1466_v18  ;;  %v7171_v38 = vld [vmem:[%s10044_s28] ss:$0 sm:$0xff] }
 0x20f   :  { %v1022_v39 = vld [vmem:[#allocation1] sm:$0xff]  ;;  %v1023_v4 = vld [vmem:[#allocation1 + $0x9] sm:$0xff]  ;;  %v1461_v53 = vrot.slane %v1460_v56, 1  ;;  %v1468_v24 = vrot.slane %v1467_v9, 1 }
 0x210   :  { %1024 = vst [vmem:[#allocation1] ss:$9 sm:$0xff] %v835_v61  ;;  %v1470_v51 = vsel %vm1161_vm10, %v1022_v39, -inf  ;;  %v1477_v49 = vsel %vm1161_vm10, %v1023_v4, -inf  ;;  %v1391_v61 = vrot.slane %v1390_v11, 1  ;;  %v1426_v39 = vrot.slane %v1425_v14, 1 }
 0x211   :  { %1025 = vst [vmem:[#allocation1 + $0x1] ss:$9 sm:$0xff] %v837_v37  ;;  %v1471_v43 = vrot.slane %v1470_v51, 4  ;;  %v1478_v2 = vrot.slane %v1477_v49, 4  ;;  %v1412_v37 = vrot.slane %v1411_v30, 1  ;;  %v1406_v4 = vmax.f32 %v1404_v33, %v1405_v47 }
 0x212   :  { %1026 = vst [vmem:[#allocation1 + $0x2] ss:$9 sm:$0xff] %v839_v25  ;;  %v7155_v25 = vsel %vm711_vm7, %v7068_v27, %v7086_v8  ;;  %v1392_v36 = vmax.f32 %v1390_v11, %v1391_v61  ;;  %v1447_v33 = vrot.slane %v1446_v46, 1  ;;  %v1427_v26 = vmax.f32 %v1425_v14, %v1426_v39 }
 0x213   :  { %v1472_v28 = vmax.f32 %v1470_v51, %v1471_v43  ;;  %v1479_v48 = vmax.f32 %v1477_v49, %v1478_v2  ;;  %v1413_v21 = vmax.f32 %v1411_v30, %v1412_v37  ;;  %v1420_v51 = vmax.f32 %v1418_v13, %v1419_v55  ;;  %v7160_v2 = vpop.f32.mrf.mxu3 }
 0x214   :  { %v1433_v49 = vrot.slane %v1432_v62, 1  ;;  %v1440_v43 = vrot.slane %v1439_v17, 1  ;;  %v1803_v23 = vsel %vm699_vm3, %v1406_v4, %v1392_v36  ;;  %v1864_v1 = vpop.f32.mrf.mxu1  ;;  %v1462_v57 = vmax.f32 %v1460_v56, %v1461_v53 }
 0x215   :  { %v1473_v60 = vrot.slane %v1472_v28, 2  ;;  %v1480_v3 = vrot.slane %v1479_v48, 2  ;;  %v1810_v37 = vsel %vm699_vm3, %v1413_v21, %v1399_v16  ;;  %v1804_v55 = vsel %vm702_vm4, %v1420_v51, %v1803_v23 }
 0x216   :  { %v1434_v15 = vmax.f32 %v1432_v62, %v1433_v49  ;;  %v1811_v62 = vsel %vm702_vm4, %v1427_v26, %v1810_v37  ;;  %v851_v26 = vsel %vm714_vm8, %v7068_v27, %v7086_v8  ;;  %v693_v53 = vrot.slane %v648_v7, 7 }
 0x217   :  { %v1474_v45 = vmax.f32 %v1472_v28, %v1473_v60  ;;  %v1481_v44 = vmax.f32 %v1479_v48, %v1480_v3  ;;  %v1441_v28 = vmax.f32 %v1439_v17, %v1440_v43  ;;  %v1448_v48 = vmax.f32 %v1446_v46, %v1447_v33 }
 0x218   :  { %v1865_v17 = vadd.f32 %v7171_v38, %v1864_v1  ;;  %v1469_v3 = vmax.f32 %v1467_v9, %v1468_v24  ;;  %v1805_v16 = vsel %vm705_vm5, %v1434_v15, %v1804_v55  ;;  %v380_v43 = vadd.f32 %v7059_v34, %v7095_v52  ;;  %v10046_v55 = vld [vmem:[#allocation15_spill] sm:$0xff] }
 0x219   :  { %v1027_v59 = vld [vmem:[#allocation1] sm:$0xff]  ;;  %v1028_v50 = vld [vmem:[#allocation1 + $0x9] sm:$0xff]  ;;  %v1482_v14 = vrot.slane %v1481_v44, 1  ;;  %v1812_v4 = vsel %vm705_vm5, %v1441_v28, %v1811_v62  ;;  %v850_v9 = vrot.slane %v7155_v25, 5  ;;  %v852_v0 = vrot.slane %v851_v26, 6  ;;  %v559_v28 = vpop.f32.mrf.mxu2 }
 0x21a   :  { %1029 = vst [vmem:[#allocation1] ss:$9 sm:$0xff] %v7115_v10  ;;  %v1484_v11 = vsel %vm1161_vm10, %v1027_v59, -inf  ;;  %v1491_v41 = vsel %vm1161_vm10, %v1028_v50, -inf  ;;  %v1454_v10 = vrot.slane %v1453_v58, 1  ;;  %v1806_v50 = vsel %vm708_vm6, %v1448_v48, %v1805_v16 }
 0x21b   :  { %1030 = vst [vmem:[#allocation1 + $0x1] ss:$9 sm:$0xff] %v842_v20  ;;  %v1485_v30 = vrot.slane %v1484_v11, 4  ;;  %v1492_v13 = vrot.slane %v1491_v41, 4  ;;  %v1483_v39 = vmax.f32 %v1481_v44, %v1482_v14 }
 0x21c   :  { %1031 = vst [vmem:[#allocation1 + $0x2] ss:$9 sm:$0xff] %v844_v40  ;;  %v1475_v40 = vrot.slane %v1474_v45, 1  ;;  %v1455_v18 = vmax.f32 %v1453_v58, %v1454_v10 }
 0x21d   :  { %v1486_v61 = vmax.f32 %v1484_v11, %v1485_v30  ;;  %v1493_v20 = vmax.f32 %v1491_v41, %v1492_v13  ;;  %v853_v13 = vsel %vm717_vm9, %v7086_v8, %v7068_v27  ;;  %v501_v27 = vadd.f32 %v7108_v22, %v6591_v31 }
 0x21e   :  { %v1476_v46 = vmax.f32 %v1474_v45, %v1475_v40  ;;  %v1807_v45 = vsel %vm711_vm7, %v1462_v57, %v1806_v50  ;;  %v1813_v11 = vsel %vm708_vm6, %v1455_v18, %v1812_v4  ;;  %v618_v57 = vpop.f32.mrf.mxu0  ;;  %v324_v18 = vadd.f32 %v10046_v55, %v6587_v29 }
 0x21f   :  { %v1487_v47 = vrot.slane %v1486_v61, 2  ;;  %v1494_v63 = vrot.slane %v1493_v20, 2  ;;  %v1896_v56 = vpop.f32.mrf.mxu3  ;;  %v1814_v33 = vsel %vm711_vm7, %v1469_v3, %v1813_v11  ;;  %v560_v37 = vadd.f32 %v559_v28, %v501_v27 }
 0x220   :  { %v1897_v49 = vadd.f32 %v1896_v56, %v1865_v17  ;;  %v1808_v34 = vsel %vm714_vm8, %v1476_v46, %v1807_v45  ;;  %v1815_v52 = vsel %vm714_vm8, %v1483_v39, %v1814_v33 }
 0x221   :  { %v1488_v60 = vmax.f32 %v1486_v61, %v1487_v47  ;;  %v1495_v36 = vmax.f32 %v1493_v20, %v1494_v63  ;;  %v854_v61 = vrot.slane %v853_v13, 7  ;;  %v619_v17 = vadd.f32 %v618_v57, %v560_v37  ;;  %v562_v16 = vpop.f32.mrf.mxu2 }
 0x222   :  { %v1911_v30 = vmax.f32 %v1897_v49, 0.0 }
 0x223   :  { %v7188_v21 = vld [vmem:[#allocation1] sm:$0xff]  ;;  %v7190_v58 = vld [vmem:[#allocation1 + $0x9] sm:$0xff]  ;;  %v1489_v59 = vrot.slane %v1488_v60, 1  ;;  %v1496_v51 = vrot.slane %v1495_v36, 1 }
 0x224   :  { %1034 = vst [vmem:[#allocation1] ss:$9 sm:$0xff] %v846_v12  ;;  %v1498_v13 = vsel %vm1161_vm10, %v7188_v21, -inf }
 0x225   :  { %1035 = vst [vmem:[#allocation1 + $0x1] ss:$9 sm:$0xff] %v848_v5  ;;  %v1490_v44 = vmax.f32 %v1488_v60, %v1489_v59  ;;  %v1497_v41 = vmax.f32 %v1495_v36, %v1496_v51  ;;  %v439_v5 = vadd.f32 %v10045_v35, %v380_v43  ;;  %v383_v60 = vadd.f32 %v7088_v54, %v324_v18  ;;  %v10047_v51 = vld [vmem:[#allocation14_spill] sm:$0xff]  ;;  %v10048_v43 = vld [vmem:[#allocation17_spill] sm:$0xff] }
 0x226   :  { %1036 = vst [vmem:[#allocation1 + $0x2] ss:$9 sm:$0xff] %v850_v9  ;;  %v504_v36 = vadd.f32 %v7143_v42, %v6591_v31  ;;  %v650_v59 = vmax.f32 %v619_v17, 0.0  ;;  %v327_v9 = vadd.f32 %v10048_v43, %v6587_v29  ;;  %v621_v45 = vpop.f32.mrf.mxu0 }
 0x227   :  { %v1809_v12 = vsel %vm1780_vm11, %v1490_v44, %v1808_v34  ;;  %v1816_v25 = vsel %vm1780_vm11, %v1497_v41, %v1815_v52  ;;  %1925 = vst.msk [vmem:[#allocation3 + $0x3] sm:$0xff] %vm1920_vm12, %v1911_v30  ;;  %v647_v10 = vmax.f32 %v439_v5, 0.0  ;;  %v442_v49 = vadd.f32 %v10047_v51, %v383_v60  ;;  %v10049_v52 = vld [vmem:[#allocation16_spill] sm:$0xff] }
 0x228   :  { %1869 = vmatmul.f32.gmra.mxu1 %v1809_v12  ;;  %1901 = vmatmul.f32.gmra.mxu3 %v1816_v25  ;;  %v563_v54 = vadd.f32 %v562_v16, %v504_v36  ;;  %v694_v11 = vrot.slane %v650_v59, 7  ;;  %v386_v44 = vadd.f32 %v7132_v32, %v327_v9  ;;  %v1505_v32 = vsel %vm1161_vm10, %v7190_v58, -inf }
 0x229   :  { %v855_v20 = vsel %vm697_vm2, %v647_v10, %v693_v53  ;;  %v856_v1 = vsel %vm699_vm3, %v647_v10, %v693_v53  ;;  %v858_v15 = vsel %vm702_vm4, %v647_v10, %v693_v53  ;;  %v860_v40 = vsel %vm705_vm5, %v647_v10, %v693_v53  ;;  %v565_v57 = vpop.f32.mrf.mxu2 }
 0x22a   :  { %v857_v8 = vrot.slane %v856_v1, 1  ;;  %v859_v14 = vrot.slane %v858_v15, 2  ;;  %v861_v63 = vrot.slane %v860_v40, 3  ;;  %v862_v62 = vsel %vm708_vm6, %v647_v10, %v693_v53  ;;  %v10050_v40 = vld [vmem:[#allocation19_spill] sm:$0xff] }
 0x22b   :  { %v864_v22 = vsel %vm711_vm7, %v647_v10, %v693_v53  ;;  %v866_v3 = vsel %vm714_vm8, %v647_v10, %v693_v53  ;;  %v863_v46 = vrot.slane %v862_v62, 4  ;;  %v649_v42 = vmax.f32 %v442_v49, 0.0 }
 0x22c   :  { %v865_v39 = vrot.slane %v864_v22, 5  ;;  %v867_v50 = vrot.slane %v866_v3, 6  ;;  %v868_v41 = vsel %vm717_vm9, %v693_v53, %v647_v10  ;;  %v622_v33 = vadd.f32 %v621_v45, %v563_v54 }
 0x22d   :  { %v1037_v23 = vld [vmem:[#allocation1] sm:$0xff]  ;;  %v1038_v24 = vld [vmem:[#allocation1 + $0x9] sm:$0xff]  ;;  %v871_v30 = vsel %vm699_vm3, %v649_v42, %v694_v11  ;;  %v869_v34 = vrot.slane %v868_v41, 7  ;;  %v445_v7 = vadd.f32 %v10049_v52, %v386_v44  ;;  %v870_v5 = vsel %vm697_vm2, %v649_v42, %v694_v11  ;;  %v5410_v41 = vld [vmem:[%s10051_s10 + $0x1f8] sm:$0xff] }
 0x22e   :  { %1039 = vst [vmem:[#allocation1] ss:$9 sm:$0xff] %v852_v0  ;;  %v652_v35 = vmax.f32 %v622_v33, 0.0  ;;  %v872_v26 = vrot.slane %v871_v30, 1  ;;  %v873_v53 = vsel %vm702_vm4, %v649_v42, %v694_v11  ;;  %v1512_v0 = vsel %vm1161_vm10, %v1037_v23, -inf  ;;  %v5409_v44 = vld [vmem:[%s10051_s10 + $0x1f0] sm:$0xff]  ;;  %2238 = vmatpush.msra.mxu0 %v5410_v41 }
 0x22f   :  { %1040 = vst [vmem:[#allocation1 + $0x1] ss:$9 sm:$0xff] %v854_v61  ;;  %v1519_v10 = vsel %vm1161_vm10, %v1038_v24, -inf  ;;  %v1506_v1 = vrot.slane %v1505_v32, 4  ;;  %v7255_v15 = vmax.f32 %v445_v7, 0.0  ;;  %v7259_v21 = vadd.f32 %v10050_v40, %v6587_v29  ;;  %v5407_v33 = vld [vmem:[%s10051_s10 + $0x1e0] sm:$0xff]  ;;  %2212 = vmatpush.msra.mxu2 %v5409_v44 }
 0x230   :  { %1041 = vst [vmem:[#allocation1 + $0x2] ss:$9 sm:$0xff] %v855_v20  ;;  %v7253_v61 = vrot.slane %v652_v35, 7  ;;  %v1499_v20 = vrot.slane %v1498_v13, 4  ;;  %v875_v58 = vsel %vm705_vm5, %v649_v42, %v694_v11  ;;  %v874_v27 = vrot.slane %v873_v53, 2  ;;  %v5355_v44 = vld [vmem:[%s10051_s10 + $0xd0] sm:$0xff] }
 0x231   :  { %v1513_v28 = vrot.slane %v1512_v0, 4  ;;  %v7264_v23 = vsel %vm711_vm7, %v649_v42, %v694_v11  ;;  %v7267_v24 = vsel %vm714_vm8, %v649_v42, %v694_v11  ;;  %v507_v29 = vadd.f32 %v7160_v2, %v6591_v31  ;;  %2213 = vmatpush.msra.mxu2 %v5407_v33 }
 0x232   :  { %v7277_v37 = vsel %vm699_vm3, %v7255_v15, %v7253_v61  ;;  %v1500_v55 = vmax.f32 %v1498_v13, %v1499_v20  ;;  %v7281_v62 = vmax.f32 %v1505_v32, %v1506_v1  ;;  %v876_v17 = vrot.slane %v875_v58, 3 }
 0x233   :  { %v880_v31 = vrot.slane %v7264_v23, 5  ;;  %v882_v2 = vrot.slane %v7267_v24, 6  ;;  %v1514_v16 = vmax.f32 %v1512_v0, %v1513_v28  ;;  %v7296_v54 = vsel %vm702_vm4, %v7255_v15, %v7253_v61  ;;  %v5399_v23 = vld [vmem:[%s10051_s10 + $0x1a0] sm:$0xff] }
 0x234   :  { %v1501_v49 = vrot.slane %v1500_v55, 2  ;;  %v1508_v43 = vrot.slane %v7281_v62, 2  ;;  %v7301_v45 = vsel %vm705_vm5, %v7255_v15, %v7253_v61 }
 0x235   :  { %v1515_v30 = vrot.slane %v1514_v16, 2  ;;  %v891_v20 = vrot.slane %v7301_v45, 3 }
 0x237   :  { %v7222_v48 = vld [vmem:[#allocation1] sm:$0xff]  ;;  %v7224_v47 = vld [vmem:[#allocation1 + $0x9] sm:$0xff] }
 0x238   :  { %1044 = vst [vmem:[#allocation1] ss:$9 sm:$0xff] %v857_v8  ;;  %v877_v8 = vsel %vm708_vm6, %v649_v42, %v694_v11  ;;  %v1526_v18 = vsel %vm1161_vm10, %v7222_v48, -inf  ;;  %v1533_v3 = vsel %vm1161_vm10, %v7224_v47, -inf  ;;  %v887_v48 = vrot.slane %v7277_v37, 1 }
 0x239   :  { %1045 = vst [vmem:[#allocation1 + $0x1] ss:$9 sm:$0xff] %v859_v14  ;;  %v1520_v14 = vrot.slane %v1519_v10, 4  ;;  %v878_v22 = vrot.slane %v877_v8, 4  ;;  %v1527_v51 = vrot.slane %v1526_v18, 4  ;;  %v1534_v9 = vrot.slane %v1533_v3, 4 }
 0x23a   :  { %1046 = vst [vmem:[#allocation1 + $0x2] ss:$9 sm:$0xff] %v861_v63  ;;  %v7270_v63 = vsel %vm717_vm9, %v694_v11, %v649_v42  ;;  %v7306_v11 = vsel %vm708_vm6, %v7255_v15, %v7253_v61  ;;  %v5404_v8 = vld [vmem:[%s10051_s10 + $0x1c8] sm:$0xff] }
 0x23b   :  { %v884_v59 = vrot.slane %v7270_v63, 7  ;;  %v7336_v53 = vmax.f32 %v1533_v3, %v1534_v9  ;;  %v893_v28 = vrot.slane %v7306_v11, 4  ;;  %v7364_v3 = vmax.f32 %v7281_v62, %v1508_v43 }
 0x23c   :  { %v896_v11 = vsel %vm714_vm8, %v7255_v15, %v7253_v61 }
 0x241   :  { %v1047_v4 = vld [vmem:[#allocation1] sm:$0xff]  ;;  %v7234_v56 = vld [vmem:[#allocation1 + $0x9] sm:$0xff] }
 0x242   :  { %1049 = vst [vmem:[#allocation1] ss:$9 sm:$0xff] %v863_v46  ;;  %v1540_v60 = vsel %vm1161_vm10, %v1047_v4, -inf  ;;  %v1547_v42 = vsel %vm1161_vm10, %v7234_v56, -inf  ;;  %v5408_v56 = vld [vmem:[%s10051_s10 + $0x1e8] sm:$0xff] }
 0x243   :  { %1050 = vst [vmem:[#allocation1 + $0x1] ss:$9 sm:$0xff] %v865_v39  ;;  %v1521_v39 = vmax.f32 %v1519_v10, %v1520_v14  ;;  %v1541_v47 = vrot.slane %v1540_v60, 4  ;;  %v1548_v0 = vrot.slane %v1547_v42, 4  ;;  %2239 = vmatpush.msra.mxu0 %v5408_v56  ;;  %v7349_v14 = vmax.f32 %v1500_v55, %v1501_v49 }
 0x244   :  { %1051 = vst [vmem:[#allocation1 + $0x2] ss:$9 sm:$0xff] %v867_v50  ;;  %v7290_v50 = vadd.f32 %v565_v57, %v507_v29 }
 0x245   :  { %v1522_v52 = vrot.slane %v1521_v39, 2  ;;  %v7334_v32 = vmax.f32 %v1540_v60, %v1541_v47  ;;  %v7360_v60 = vmax.f32 %v1514_v16, %v1515_v30  ;;  %v5358_v16 = vld [vmem:[%s10051_s10 + $0xe8] sm:$0xff]  ;;  %v1536_v47 = vrot.slane %v7336_v53, 2 }
 0x246   :  { %v1549_v43 = vmax.f32 %v1547_v42, %v1548_v0 }
 0x24b   :  { %v1052_v12 = vld [vmem:[#allocation1] sm:$0xff]  ;;  %v7243_v25 = vld [vmem:[#allocation1 + $0x9] sm:$0xff] }
 0x24c   :  { %1054 = vst [vmem:[#allocation1] ss:$9 sm:$0xff] %v869_v34  ;;  %v1554_v34 = vsel %vm1161_vm10, %v1052_v12, -inf  ;;  %v1561_v7 = vsel %vm1161_vm10, %v7243_v25, -inf  ;;  %v5405_v12 = vld [vmem:[%s10051_s10 + $0x1d0] sm:$0xff]  ;;  %v889_v25 = vrot.slane %v7296_v54, 2 }
 0x24d   :  { %1055 = vst [vmem:[#allocation1 + $0x1] ss:$9 sm:$0xff] %v870_v5  ;;  %v7326_v5 = vmax.f32 %v1526_v18, %v1527_v51  ;;  %v1555_v1 = vrot.slane %v1554_v34, 4  ;;  %v1562_v40 = vrot.slane %v1561_v7, 4  ;;  %2214 = vmatpush.msra.mxu2 %v5405_v12  ;;  %v5401_v18 = vld [vmem:[%s10051_s10 + $0x1b0] sm:$0xff]  ;;  %v5357_v51 = vld [vmem:[%s10051_s10 + $0xe0] sm:$0xff] }
 0x24e   :  { %1056 = vst [vmem:[#allocation1 + $0x2] ss:$9 sm:$0xff] %v872_v26 }
 0x24f   :  { %v1529_v55 = vrot.slane %v7326_v5, 2  ;;  %v1556_v41 = vmax.f32 %v1554_v34, %v1555_v1  ;;  %v1563_v30 = vmax.f32 %v1561_v7, %v1562_v40  ;;  %v885_v34 = vsel %vm697_vm2, %v7255_v15, %v7253_v61 }
 0x250   :  { %v1510_v7 = vrot.slane %v7364_v3, 1 }
 0x251   :  { %v1530_v1 = vmax.f32 %v7326_v5, %v1529_v55  ;;  %v1557_v40 = vrot.slane %v1556_v41, 2  ;;  %v5395_v5 = vld [vmem:[%s10051_s10 + $0x180] sm:$0xff]  ;;  %v5396_v55 = vld [vmem:[%s10051_s10 + $0x188] sm:$0xff] }
 0x255   :  { %v1057_v36 = vld [vmem:[#allocation1] sm:$0xff]  ;;  %v1058_v46 = vld [vmem:[#allocation1 + $0x9] sm:$0xff]  ;;  %v1867_v4 = vpop.f32.mrf.mxu1 }
 0x256   :  { %1059 = vst [vmem:[#allocation1] ss:$9 sm:$0xff] %v874_v27  ;;  %v1868_v35 = vadd.f32 %v7171_v38, %v1867_v4  ;;  %v1568_v26 = vsel %vm1161_vm10, %v1057_v36, -inf  ;;  %v1575_v13 = vsel %vm1161_vm10, %v1058_v46, -inf  ;;  %v5406_v38 = vld [vmem:[%s10051_s10 + $0x1d8] sm:$0xff]  ;;  %v5403_v27 = vld [vmem:[%s10051_s10 + $0x1c0] sm:$0xff]  ;;  %v7366_v36 = vmax.f32 %v1521_v39, %v1522_v52  ;;  %v624_v4 = vpop.f32.mrf.mxu0 }
 0x257   :  { %1060 = vst [vmem:[#allocation1 + $0x1] ss:$9 sm:$0xff] %v876_v17  ;;  %v1569_v29 = vrot.slane %v1568_v26, 4  ;;  %v1576_v57 = vrot.slane %v1575_v13, 4  ;;  %v5359_v17 = vld [vmem:[%s10051_s10 + $0xf0] sm:$0xff]  ;;  %2240 = vmatpush.msra.mxu0 %v5406_v38  ;;  %v5402_v46 = vld [vmem:[%s10051_s10 + $0x1b8] sm:$0xff]  ;;  %2215 = vmatpush.msra.mxu2 %v5403_v27  ;;  %v7398_v24 = vadd.f32 %v624_v4, %v7290_v50  ;;  %v1511_v4 = vmax.f32 %v7364_v3, %v1510_v7 }
 0x258   :  { %1061 = vst [vmem:[#allocation1 + $0x2] ss:$9 sm:$0xff] %v878_v22  ;;  %v5360_v22 = vld [vmem:[%s10051_s10 + $0xf8] sm:$0xff]  ;;  %1987 = vmatpush.msra.mxu1 %v5359_v17  ;;  %v1543_v39 = vrot.slane %v7334_v32, 2  ;;  %v1517_v50 = vrot.slane %v7360_v60, 1  ;;  %v1564_v27 = vrot.slane %v1563_v30, 2  ;;  %v1537_v17 = vmax.f32 %v7336_v53, %v1536_v47 }
 0x259   :  { %2013 = vmatpush.msra.mxu3 %v5360_v22  ;;  %2241 = vmatpush.msra.mxu0 %v5404_v8  ;;  %v1570_v42 = vmax.f32 %v1568_v26, %v1569_v29  ;;  %v5356_v26 = vld [vmem:[%s10051_s10 + $0xd8] sm:$0xff]  ;;  %v7420_v8 = vld [vmem:[#allocation3] sm:$0xff]  ;;  %v1558_v47 = vmax.f32 %v1556_v41, %v1557_v40 }
 0x25a   :  { %1988 = vmatpush.msra.mxu1 %v5357_v51  ;;  %2216 = vmatpush.msra.mxu2 %v5401_v18  ;;  %v5398_v38 = vld [vmem:[%s10051_s10 + $0x198] sm:$0xff]  ;;  %v5354_v29 = vld [vmem:[%s10051_s10 + $0xc8] sm:$0xff] }
 0x25b   :  { %v1899_v10 = vpop.f32.mrf.mxu3  ;;  %2014 = vmatpush.msra.mxu3 %v5358_v16  ;;  %2242 = vmatpush.msra.mxu0 %v5402_v46  ;;  %v1571_v18 = vrot.slane %v1570_v42, 2  ;;  %v7436_v46 = vsel %vm711_vm7, %v7255_v15, %v7253_v61  ;;  %v1518_v16 = vmax.f32 %v7360_v60, %v1517_v50  ;;  %v1559_v7 = vrot.slane %v1558_v47, 1 }
 0x25c   :  { %v1900_v58 = vadd.f32 %v1899_v10, %v1868_v35  ;;  %v1577_v35 = vmax.f32 %v1575_v13, %v1576_v57  ;;  %1989 = vmatpush.msra.mxu1 %v5355_v44  ;;  %v5353_v13 = vld [vmem:[%s10051_s10 + $0xc0] sm:$0xff]  ;;  %v1550_v10 = vrot.slane %v1549_v43, 2  ;;  %2217 = vmatpush.msra.mxu2 %v5399_v23  ;;  %v1544_v57 = vmax.f32 %v7334_v32, %v1543_v39 }
 0x25d   :  { %2015 = vmatpush.msra.mxu3 %v5356_v26  ;;  %v1531_v39 = vrot.slane %v1530_v1, 1  ;;  %v1565_v44 = vmax.f32 %v1563_v30, %v1564_v27  ;;  %v1560_v54 = vmax.f32 %v1558_v47, %v1559_v7  ;;  %v895_v47 = vrot.slane %v7436_v46, 5  ;;  %v5350_v7 = vld [vmem:[%s10051_s10 + $0xa8] sm:$0xff] }
 0x25e   :  { %v1912_v9 = vmax.f32 %v1900_v58, 0.0  ;;  %v1524_v58 = vrot.slane %v7366_v36, 1  ;;  %v1578_v22 = vrot.slane %v1577_v35, 2  ;;  %1990 = vmatpush.msra.mxu1 %v5353_v13  ;;  %v654_v46 = vmax.f32 %v7398_v24, 0.0 }
 0x25f   :  { %v1062_v49 = vld [vmem:[#allocation1] sm:$0xff]  ;;  %v1063_v62 = vld [vmem:[#allocation1 + $0x9] sm:$0xff]  ;;  %2016 = vmatpush.msra.mxu3 %v5354_v29  ;;  %v1566_v26 = vrot.slane %v1565_v44, 1 }
 0x260   :  { %1064 = vst [vmem:[#allocation1] ss:$9 sm:$0xff] %v880_v31  ;;  %v1582_v33 = vsel %vm1161_vm10, %v1062_v49, -inf  ;;  %v1589_v52 = vsel %vm1161_vm10, %v1063_v62, -inf  ;;  %v5400_v31 = vld [vmem:[%s10051_s10 + $0x1a8] sm:$0xff]  ;;  %v1551_v49 = vmax.f32 %v1549_v43, %v1550_v10  ;;  %v2193_v62 = vrot.slane %v7420_v8, 3 }
 0x261   :  { %1065 = vst [vmem:[#allocation1 + $0x1] ss:$9 sm:$0xff] %v882_v2  ;;  %v1583_v56 = vrot.slane %v1582_v33, 4  ;;  %v1590_v12 = vrot.slane %v1589_v52, 4  ;;  %v1503_v2 = vrot.slane %v7349_v14, 1  ;;  %2243 = vmatpush.msra.mxu0 %v5400_v31  ;;  %v1579_v23 = vmax.f32 %v1577_v35, %v1578_v22 }
 0x262   :  { %1066 = vst [vmem:[#allocation1 + $0x2] ss:$9 sm:$0xff] %v884_v59  ;;  %v5397_v59 = vld [vmem:[%s10051_s10 + $0x190] sm:$0xff] }
 0x263   :  { %v1584_v0 = vmax.f32 %v1582_v33, %v1583_v56  ;;  %v1591_v63 = vmax.f32 %v1589_v52, %v1590_v12  ;;  %1926 = vst.msk [vmem:[#allocation3 + $0xb] sm:$0xff] %vm1920_vm12, %v1912_v9  ;;  %v1504_v32 = vmax.f32 %v7349_v14, %v1503_v2  ;;  %2218 = vmatpush.msra.mxu2 %v5397_v59  ;;  %v1545_v33 = vrot.slane %v1544_v57, 1 }
 0x264   :  { %2244 = vmatpush.msra.mxu0 %v5398_v38  ;;  %v1525_v9 = vmax.f32 %v7366_v36, %v1524_v58  ;;  %v1572_v52 = vmax.f32 %v1570_v42, %v1571_v18  ;;  %v1538_v12 = vrot.slane %v1537_v17, 1  ;;  %v1552_v36 = vrot.slane %v1551_v49, 1 }
 0x265   :  { %v1585_v51 = vrot.slane %v1584_v0, 2  ;;  %v1592_v53 = vrot.slane %v1591_v63, 2  ;;  %2219 = vmatpush.msra.mxu2 %v5395_v5  ;;  %v1532_v42 = vmax.f32 %v1530_v1, %v1531_v39  ;;  %v1567_v58 = vmax.f32 %v1565_v44, %v1566_v26 }
 0x266   :  { %2245 = vmatpush.msra.mxu0 %v5396_v55  ;;  %v1573_v13 = vrot.slane %v1572_v52, 1  ;;  %v1553_v1 = vmax.f32 %v1551_v49, %v1552_v36  ;;  %v1824_v27 = vsel %vm699_vm3, %v1525_v9, %v1511_v4  ;;  %v389_v4 = vadd.f32 %v7150_v6, %v7259_v21 }
 0x267   :  { %v1586_v60 = vmax.f32 %v1584_v0, %v1585_v51  ;;  %v1593_v43 = vmax.f32 %v1591_v63, %v1592_v53  ;;  %v1539_v63 = vmax.f32 %v1537_v17, %v1538_v12 }
 0x268   :  { %v1574_v29 = vmax.f32 %v1572_v52, %v1573_v13 }
 0x269   :  { %v1067_v14 = vld [vmem:[#allocation1] sm:$0xff]  ;;  %v1068_v56 = vld [vmem:[#allocation1 + $0x9] sm:$0xff]  ;;  %v1587_v10 = vrot.slane %v1586_v60, 1  ;;  %v1594_v59 = vrot.slane %v1593_v43, 1  ;;  %v1825_v51 = vsel %vm702_vm4, %v1539_v63, %v1824_v27 }
 0x26a   :  { %v1596_v3 = vsel %vm1161_vm10, %v1067_v14, -inf  ;;  %v1603_v31 = vsel %vm1161_vm10, %v1068_v56, -inf  ;;  %1069 = vst [vmem:[#allocation1] ss:$9 sm:$0xff] %v885_v34  ;;  %v7445_v2 = vld [vmem:[#allocation3 + $0x8] sm:$0xff]  ;;  %v1580_v34 = vrot.slane %v1579_v23, 1  ;;  %v1826_v39 = vsel %vm705_vm5, %v1553_v1, %v1825_v51 }
 0x26b   :  { %v1597_v41 = vrot.slane %v1596_v3, 4  ;;  %v1604_v30 = vrot.slane %v1603_v31, 4  ;;  %1070 = vst [vmem:[#allocation1 + $0x1] ss:$9 sm:$0xff] %v887_v48  ;;  %v2194_v35 = vrot.slane %v7445_v2, 3  ;;  %v1546_v48 = vmax.f32 %v1544_v57, %v1545_v33 }
 0x26c   :  { %1071 = vst [vmem:[#allocation1 + $0x2] ss:$9 sm:$0xff] %v889_v25  ;;  %v1817_v25 = vsel %vm699_vm3, %v1518_v16, %v1504_v32  ;;  %v1581_v17 = vmax.f32 %v1579_v23, %v1580_v34  ;;  %v1588_v5 = vmax.f32 %v1586_v60, %v1587_v10  ;;  %v1595_v55 = vmax.f32 %v1593_v43, %v1594_v59  ;;  %v5348_v34 = vld [vmem:[%s10051_s10 + $0x98] sm:$0xff] }
 0x26d   :  { %v1598_v50 = vmax.f32 %v1596_v3, %v1597_v41  ;;  %v1605_v0 = vmax.f32 %v1603_v31, %v1604_v30  ;;  %v2195_v37 = vsel %vm2192_vm13, %v2193_v62, %v2194_v35  ;;  %v1818_v57 = vsel %vm702_vm4, %v1532_v42, %v1817_v25  ;;  %v5351_v30 = vld [vmem:[%s10051_s10 + $0xb0] sm:$0xff]  ;;  %v5352_v42 = vld [vmem:[%s10051_s10 + $0xb8] sm:$0xff] }
 0x26e   :  { %5411 = vmatmul.msk.f32.vlgmr.msra.gmra.mxu2 %vm1920_vm12, %v2195_v37  ;;  %5414 = vmatmul.msk.f32.vlgmr.msra.gmra.mxu0 %vm1920_vm12, %v2195_v37  ;;  %v1819_v49 = vsel %vm705_vm5, %v1546_v48, %v1818_v57  ;;  %v1827_v44 = vsel %vm708_vm6, %v1567_v58, %v1826_v39  ;;  %v696_v60 = vrot.slane %v654_v46, 7  ;;  %v897_v3 = vrot.slane %v896_v11, 6  ;;  %v5345_v37 = vld [vmem:[%s10051_s10 + $0x80] sm:$0xff]  ;;  %v5346_v48 = vld [vmem:[%s10051_s10 + $0x88] sm:$0xff] }
 0x26f   :  { %v1599_v38 = vrot.slane %v1598_v50, 2  ;;  %v1606_v40 = vrot.slane %v1605_v0, 2  ;;  %v1820_v9 = vsel %vm708_vm6, %v1560_v54, %v1819_v49  ;;  %v1828_v56 = vsel %vm711_vm7, %v1581_v17, %v1827_v44  ;;  %1991 = vmatpush.msra.mxu1 %v5351_v30  ;;  %2017 = vmatpush.msra.mxu3 %v5352_v42 }
 0x270   :  { %v1821_v33 = vsel %vm711_vm7, %v1574_v29, %v1820_v9  ;;  %v1829_v21 = vsel %vm714_vm8, %v1595_v55, %v1828_v56 }
 0x271   :  { %v1600_v18 = vmax.f32 %v1598_v50, %v1599_v38  ;;  %v1607_v22 = vmax.f32 %v1605_v0, %v1606_v40  ;;  %v1822_v6 = vsel %vm714_vm8, %v1588_v5, %v1821_v33  ;;  %v5347_v50 = vld [vmem:[%s10051_s10 + $0x90] sm:$0xff]  ;;  %2018 = vmatpush.msra.mxu3 %v5350_v7 }
 0x273   :  { %v1601_v53 = vrot.slane %v1600_v18, 1  ;;  %v1608_v62 = vrot.slane %v1607_v22, 1  ;;  %v1072_v32 = vld [vmem:[#allocation1] sm:$0xff]  ;;  %v1073_v16 = vld [vmem:[#allocation1 + $0x9] sm:$0xff]  ;;  %2019 = vmatpush.msra.mxu3 %v5348_v34 }
 0x274   :  { %1074 = vst [vmem:[#allocation1] ss:$9 sm:$0xff] %v891_v20  ;;  %v10052_v20 = vld [vmem:[#allocation18_spill] sm:$0xff]  ;;  %v1610_v26 = vsel %vm1161_vm10, %v1072_v32, -inf  ;;  %v1617_v59 = vsel %vm1161_vm10, %v1073_v16, -inf }
 0x275   :  { %v1602_v14 = vmax.f32 %v1600_v18, %v1601_v53  ;;  %v1609_v52 = vmax.f32 %v1607_v22, %v1608_v62  ;;  %1075 = vst [vmem:[#allocation1 + $0x1] ss:$9 sm:$0xff] %v893_v28  ;;  %v448_v23 = vadd.f32 %v10052_v20, %v389_v4  ;;  %v898_v28 = vsel %vm717_vm9, %v7253_v61, %v7255_v15  ;;  %v5349_v61 = vld [vmem:[%s10051_s10 + $0xa0] sm:$0xff] }
 0x276   :  { %1076 = vst [vmem:[#allocation1 + $0x2] ss:$9 sm:$0xff] %v895_v47  ;;  %v899_v24 = vrot.slane %v898_v28, 7  ;;  %1992 = vmatpush.msra.mxu1 %v5349_v61  ;;  %v1611_v1 = vrot.slane %v1610_v26, 4  ;;  %v1618_v29 = vrot.slane %v1617_v59, 4  ;;  %2020 = vmatpush.msra.mxu3 %v5346_v48 }
 0x277   :  { %v1823_v12 = vsel %vm1780_vm11, %v1602_v14, %v1822_v6  ;;  %v1830_v45 = vsel %vm1780_vm11, %v1609_v52, %v1829_v21  ;;  %v653_v43 = vmax.f32 %v448_v23, 0.0  ;;  %v1947_v21 = vld [vmem:[%s10051_s10 + $0x78] sm:$0xff]  ;;  %v1945_v23 = vld [vmem:[%s10051_s10 + $0x68] sm:$0xff]  ;;  %vm2452_vm11 = vcmask 1041408  }
 0x278   :  { %1872 = vmatmul.f32.gmra.mxu1 %v1823_v12  ;;  %1904 = vmatmul.f32.gmra.mxu3 %v1830_v45  ;;  %v1612_v57 = vmax.f32 %v1610_v26, %v1611_v1  ;;  %v1619_v62 = vmax.f32 %v1617_v59, %v1618_v29 }
 0x279   :  { %v900_v36 = vsel %vm697_vm2, %v653_v43, %v696_v60  ;;  %v901_v0 = vsel %vm699_vm3, %v653_v43, %v696_v60  ;;  %v903_v10 = vsel %vm702_vm4, %v653_v43, %v696_v60  ;;  %v905_v38 = vsel %vm705_vm5, %v653_v43, %v696_v60  ;;  %1993 = vmatpush.msra.mxu1 %v5347_v50 }
 0x27a   :  { %v902_v54 = vrot.slane %v901_v0, 1  ;;  %v904_v25 = vrot.slane %v903_v10, 2  ;;  %v906_v18 = vrot.slane %v905_v38, 3  ;;  %v1613_v16 = vrot.slane %v1612_v57, 2  ;;  %2071 = vmatpush.msrb.mxu3 %v1947_v21  ;;  %v1946_v38 = vld [vmem:[%s10051_s10 + $0x70] sm:$0xff]  ;;  %v5443_v21 = vld [vmem:[%s10051_s10 + $0x2a0] sm:$0xff] }
 0x27b   :  { %1994 = vmatpush.msra.mxu1 %v5345_v37  ;;  %v1620_v44 = vrot.slane %v1619_v62, 2 }
 0x27c   :  { %v1614_v52 = vmax.f32 %v1612_v57, %v1613_v16  ;;  %2072 = vmatpush.msrb.mxu3 %v1945_v23  ;;  %v5452_v57 = vld [vmem:[%s10051_s10 + $0x2e8] sm:$0xff]  ;;  %v1940_v16 = vld [vmem:[%s10051_s10 + $0x40] sm:$0xff] }
 0x27d   :  { %v1077_v31 = vld [vmem:[#allocation1] sm:$0xff]  ;;  %v1078_v41 = vld [vmem:[#allocation1 + $0x9] sm:$0xff]  ;;  %v1621_v28 = vmax.f32 %v1619_v62, %v1620_v44  ;;  %2045 = vmatpush.msrb.mxu1 %v1946_v38 }
 0x27e   :  { %1079 = vst [vmem:[#allocation1] ss:$9 sm:$0xff] %v897_v3  ;;  %v1624_v15 = vsel %vm1161_vm10, %v1077_v31, -inf  ;;  %v1631_v13 = vsel %vm1161_vm10, %v1078_v41, -inf  ;;  %v1943_v3 = vld [vmem:[%s10051_s10 + $0x58] sm:$0xff]  ;;  %v5449_v62 = vld [vmem:[%s10051_s10 + $0x2d0] sm:$0xff] }
 0x27f   :  { %1080 = vst [vmem:[#allocation1 + $0x1] ss:$9 sm:$0xff] %v899_v24  ;;  %v1625_v63 = vrot.slane %v1624_v15, 4  ;;  %v1632_v40 = vrot.slane %v1631_v13, 4  ;;  %2073 = vmatpush.msrb.mxu3 %v1943_v3  ;;  %v1938_v44 = vld [vmem:[%s10051_s10 + $0x30] sm:$0xff]  ;;  %v1933_v23 = vld [vmem:[%s10051_s10 + $0x8] sm:$0xff] }
 0x280   :  { %1081 = vst [vmem:[#allocation1 + $0x2] ss:$9 sm:$0xff] %v900_v36  ;;  %v1615_v36 = vrot.slane %v1614_v52, 1  ;;  %v7628_v3 = vld [vmem:[%s10044_s28] ss:$0 sm:$0xff]  ;;  %s10055_s28 = sld [smem:[#allocation30_spill]] }
 0x281   :  { %v1626_v17 = vmax.f32 %v1624_v15, %v1625_v63  ;;  %v1633_v51 = vmax.f32 %v1631_v13, %v1632_v40  ;;  %v1622_v15 = vrot.slane %v1621_v28, 1  ;;  %v1941_v40 = vld [vmem:[%s10051_s10 + $0x48] sm:$0xff] }
 0x282   :  { %v1616_v0 = vmax.f32 %v1614_v52, %v1615_v36  ;;  %2074 = vmatpush.msrb.mxu3 %v1941_v40  ;;  %v1968_v52 = vrot.slane %v7420_v8, 1  ;;  %v5388_v36 = vld [vmem:[%s10051_s10 + $0x178] sm:$0xff] }
 0x283   :  { %v1627_v32 = vrot.slane %v1626_v17, 2  ;;  %v1634_v4 = vrot.slane %v1633_v51, 2  ;;  %v1623_v37 = vmax.f32 %v1621_v28, %v1622_v15  ;;  %v5442_v28 = vld [vmem:[%s10051_s10 + $0x298] sm:$0xff] }
 0x284   :  { %v5376_v40 = vld [vmem:[%s10051_s10 + $0x118] sm:$0xff] }
 0x285   :  { %v1628_v14 = vmax.f32 %v1626_v17, %v1627_v32  ;;  %v1635_v6 = vmax.f32 %v1633_v51, %v1634_v4  ;;  %v5451_v17 = vld [vmem:[%s10051_s10 + $0x2e0] sm:$0xff]  ;;  %v1942_v51 = vld [vmem:[%s10051_s10 + $0x50] sm:$0xff]  ;;  %v5450_v32 = vld [vmem:[%s10051_s10 + $0x2d8] sm:$0xff] }
 0x286   :  { %v5447_v4 = vld [vmem:[%s10051_s10 + $0x2c0] sm:$0xff] }
 0x287   :  { %v1082_v58 = vld [vmem:[#allocation1] sm:$0xff]  ;;  %v1083_v27 = vld [vmem:[#allocation1 + $0x9] sm:$0xff]  ;;  %v1629_v43 = vrot.slane %v1628_v14, 1  ;;  %v1636_v31 = vrot.slane %v1635_v6, 1 }
 0x288   :  { %1084 = vst [vmem:[#allocation1] ss:$9 sm:$0xff] %v902_v54  ;;  %v1638_v22 = vsel %vm1161_vm10, %v1082_v58, -inf  ;;  %v1645_v5 = vsel %vm1161_vm10, %v1083_v27, -inf  ;;  %v5453_v54 = vld [vmem:[%s10051_s10 + $0x2f0] sm:$0xff] }
 0x289   :  { %1085 = vst [vmem:[#allocation1 + $0x1] ss:$9 sm:$0xff] %v904_v25  ;;  %v1639_v55 = vrot.slane %v1638_v22, 4  ;;  %v1646_v53 = vrot.slane %v1645_v5, 4  ;;  %v1630_v26 = vmax.f32 %v1628_v14, %v1629_v43  ;;  %v1637_v50 = vmax.f32 %v1635_v6, %v1636_v31  ;;  %v5454_v25 = vld [vmem:[%s10051_s10 + $0x2f8] sm:$0xff]  ;;  %2385 = vmatpush.msrb.mxu2 %v5453_v54  ;;  %v5445_v14 = vld [vmem:[%s10051_s10 + $0x2b0] sm:$0xff] }
 0x28a   :  { %1086 = vst [vmem:[#allocation1 + $0x2] ss:$9 sm:$0xff] %v906_v18  ;;  %v1944_v18 = vld [vmem:[%s10051_s10 + $0x60] sm:$0xff]  ;;  %2411 = vmatpush.msrb.mxu0 %v5454_v25  ;;  %v5440_v31 = vld [vmem:[%s10051_s10 + $0x288] sm:$0xff]  ;;  %v5375_v25 = vld [vmem:[%s10051_s10 + $0x110] sm:$0xff] }
 0x28b   :  { %v1640_v49 = vmax.f32 %v1638_v22, %v1639_v55  ;;  %v1647_v39 = vmax.f32 %v1645_v5, %v1646_v53  ;;  %v1831_v1 = vsel %vm699_vm3, %v1630_v26, %v1616_v0  ;;  %v1834_v29 = vsel %vm699_vm3, %v1637_v50, %v1623_v37  ;;  %2046 = vmatpush.msrb.mxu1 %v1944_v18  ;;  %v1939_v55 = vld [vmem:[%s10051_s10 + $0x38] sm:$0xff]  ;;  %v1936_v6 = vld [vmem:[%s10051_s10 + $0x20] sm:$0xff]  ;;  %v5382_v26 = vld [vmem:[%s10051_s10 + $0x148] sm:$0xff] }
 0x28c   :  { %2386 = vmatpush.msrb.mxu2 %v5451_v17  ;;  %2075 = vmatpush.msrb.mxu3 %v1939_v55  ;;  %v5380_v50 = vld [vmem:[%s10051_s10 + $0x138] sm:$0xff]  ;;  %v5378_v0 = vld [vmem:[%s10051_s10 + $0x128] sm:$0xff] }
 0x28d   :  { %v1641_v47 = vrot.slane %v1640_v49, 2  ;;  %v1648_v9 = vrot.slane %v1647_v39, 2  ;;  %2412 = vmatpush.msrb.mxu0 %v5452_v57  ;;  %2047 = vmatpush.msrb.mxu1 %v1942_v51  ;;  %v5374_v54 = vld [vmem:[%s10051_s10 + $0x108] sm:$0xff]  ;;  %v5432_v18 = vld [vmem:[%s10051_s10 + $0x278] sm:$0xff]  ;;  %v2107_v51 = vrot.slane %v7445_v2, 2 }
 0x28e   :  { %2387 = vmatpush.msrb.mxu2 %v5449_v62  ;;  %v5430_v57 = vld [vmem:[%s10051_s10 + $0x268] sm:$0xff]  ;;  %v5428_v55 = vld [vmem:[%s10051_s10 + $0x258] sm:$0xff] }
 0x28f   :  { %v1642_v46 = vmax.f32 %v1640_v49, %v1641_v47  ;;  %v1649_v45 = vmax.f32 %v1647_v39, %v1648_v9  ;;  %v1937_v39 = vld [vmem:[%s10051_s10 + $0x28] sm:$0xff]  ;;  %v1969_v9 = vrot.slane %v7445_v2, 1  ;;  %2413 = vmatpush.msrb.mxu0 %v5450_v32  ;;  %2048 = vmatpush.msrb.mxu1 %v1940_v16  ;;  %v5424_v32 = vld [vmem:[%s10051_s10 + $0x238] sm:$0xff] }
 0x290   :  { %2076 = vmatpush.msrb.mxu3 %v1937_v39  ;;  %v5448_v47 = vld [vmem:[%s10051_s10 + $0x2c8] sm:$0xff]  ;;  %2388 = vmatpush.msrb.mxu2 %v5447_v4  ;;  %v5429_v39 = vld [vmem:[%s10051_s10 + $0x260] sm:$0xff]  ;;  %v5427_v4 = vld [vmem:[%s10051_s10 + $0x250] sm:$0xff] }
 0x291   :  { %v1087_v33 = vld [vmem:[#allocation1] sm:$0xff]  ;;  %v1088_v56 = vld [vmem:[#allocation1 + $0x9] sm:$0xff]  ;;  %v1643_v30 = vrot.slane %v1642_v46, 1  ;;  %v1650_v42 = vrot.slane %v1649_v45, 1  ;;  %2414 = vmatpush.msrb.mxu0 %v5448_v47  ;;  %2049 = vmatpush.msrb.mxu1 %v1938_v44  ;;  %v5420_v44 = vld [vmem:[%s10051_s10 + $0x218] sm:$0xff] }
 0x292   :  { %v1652_v12 = vsel %vm1161_vm10, %v1087_v33, -inf  ;;  %v1659_v20 = vsel %vm1161_vm10, %v1088_v56, -inf  ;;  %v5446_v33 = vld [vmem:[%s10051_s10 + $0x2b8] sm:$0xff]  ;;  %2389 = vmatpush.msrb.mxu2 %v5445_v14  ;;  %v5426_v62 = vld [vmem:[%s10051_s10 + $0x248] sm:$0xff] }
 0x293   :  { %v1653_v11 = vrot.slane %v1652_v12, 4  ;;  %v1660_v60 = vrot.slane %v1659_v20, 4  ;;  %v1644_v10 = vmax.f32 %v1642_v46, %v1643_v30  ;;  %v1651_v63 = vmax.f32 %v1649_v45, %v1650_v42  ;;  %v1935_v56 = vld [vmem:[%s10051_s10 + $0x18] sm:$0xff]  ;;  %v5444_v46 = vld [vmem:[%s10051_s10 + $0x2a8] sm:$0xff]  ;;  %2415 = vmatpush.msrb.mxu0 %v5446_v33  ;;  %2050 = vmatpush.msrb.mxu1 %v1936_v6  ;;  %v5423_v33 = vld [vmem:[%s10051_s10 + $0x230] sm:$0xff] }
 0x294   :  { %2077 = vmatpush.msrb.mxu3 %v1935_v56  ;;  %2390 = vmatpush.msrb.mxu2 %v5443_v21  ;;  %v5386_v42 = vld [vmem:[%s10051_s10 + $0x168] sm:$0xff]  ;;  %v5421_v56 = vld [vmem:[%s10051_s10 + $0x220] sm:$0xff]  ;;  %v5476_v6 = vld [vmem:[%s10051_s10 + $0x378] sm:$0xff] }
 0x295   :  { %v1654_v24 = vmax.f32 %v1652_v12, %v1653_v11  ;;  %v1661_v41 = vmax.f32 %v1659_v20, %v1660_v60  ;;  %v1832_v22 = vsel %vm702_vm4, %v1644_v10, %v1831_v1  ;;  %v1835_v5 = vsel %vm702_vm4, %v1651_v63, %v1834_v29  ;;  %v1934_v20 = vld [vmem:[%s10051_s10 + $0x10] sm:$0xff]  ;;  %2416 = vmatpush.msrb.mxu0 %v5444_v46  ;;  %v1932_v60 = vld [vmem:[%s10051_s10] sm:$0xff]  ;;  %v5422_v47 = vld [vmem:[%s10051_s10 + $0x228] sm:$0xff] }
 0x296   :  { %v1970_v12 = vsel %vm717_vm9, %v1968_v52, %v1969_v9  ;;  %v5441_v11 = vld [vmem:[%s10051_s10 + $0x290] sm:$0xff]  ;;  %2051 = vmatpush.msrb.mxu1 %v1934_v20  ;;  %2078 = vmatpush.msrb.mxu3 %v1933_v23  ;;  %v5381_v63 = vld [vmem:[%s10051_s10 + $0x140] sm:$0xff]  ;;  %v2366_v29 = vrot.slane %v7420_v8, 5  ;;  %v5418_v52 = vld [vmem:[%s10051_s10 + $0x208] sm:$0xff] }
 0x297   :  { %v1655_v61 = vrot.slane %v1654_v24, 2  ;;  %v1662_v7 = vrot.slane %v1661_v41, 2  ;;  %2391 = vmatpush.msrb.mxu2 %v5441_v11  ;;  %2417 = vmatpush.msrb.mxu0 %v5442_v28  ;;  %v5379_v1 = vld [vmem:[%s10051_s10 + $0x130] sm:$0xff]  ;;  %v5472_v20 = vld [vmem:[%s10051_s10 + $0x358] sm:$0xff]  ;;  %v5470_v11 = vld [vmem:[%s10051_s10 + $0x348] sm:$0xff]  ;;  %v2281_v28 = vrot.slane %v7445_v2, 4 }
 0x298   :  { %2052 = vmatpush.msrb.mxu1 %v1932_v60  ;;  %v5419_v46 = vld [vmem:[%s10051_s10 + $0x210] sm:$0xff] }
 0x299   :  { %v1656_v13 = vmax.f32 %v1654_v24, %v1655_v61  ;;  %v1663_v34 = vmax.f32 %v1661_v41, %v1662_v7  ;;  %v5439_v24 = vld [vmem:[%s10051_s10 + $0x280] sm:$0xff]  ;;  %2418 = vmatpush.msrb.mxu0 %v5440_v31  ;;  %v5384_v61 = vld [vmem:[%s10051_s10 + $0x158] sm:$0xff]  ;;  %v5387_v7 = vld [vmem:[%s10051_s10 + $0x170] sm:$0xff] }
 0x29a   :  { %2392 = vmatpush.msrb.mxu2 %v5439_v24  ;;  %v5475_v23 = vld [vmem:[%s10051_s10 + $0x370] sm:$0xff] }
 0x29b   :  { %v1657_v59 = vrot.slane %v1656_v13, 1  ;;  %v1664_v48 = vrot.slane %v1663_v34, 1 }
 0x29d   :  { %v1658_v58 = vmax.f32 %v1656_v13, %v1657_v59  ;;  %v1665_v27 = vmax.f32 %v1663_v34, %v1664_v48  ;;  %v5385_v13 = vld [vmem:[%s10051_s10 + $0x160] sm:$0xff]  ;;  %v5383_v34 = vld [vmem:[%s10051_s10 + $0x150] sm:$0xff] }
 0x29f   :  { %v1833_v53 = vsel %vm705_vm5, %v1658_v58, %v1832_v22  ;;  %v1836_v49 = vsel %vm705_vm5, %v1665_v27, %v1835_v5  ;;  %v5373_v58 = vld [vmem:[%s10051_s10 + $0x100] sm:$0xff]  ;;  %v2367_v27 = vrot.slane %v7445_v2, 5 }
 0x2a0   :  { %1875 = vmatmul.f32.gmra.mxu1 %v1833_v53  ;;  %1907 = vmatmul.f32.gmra.mxu3 %v1836_v49  ;;  %v2106_v53 = vrot.slane %v7420_v8, 2  ;;  %v5431_v49 = vld [vmem:[%s10051_s10 + $0x270] sm:$0xff] }
 0x2a1   :  { %v2368_v17 = vsel %vm1161_vm10, %v2366_v29, %v2367_v27 }
 0x2a2   :  { %v2108_v16 = vsel %vm266_vm0, %v2106_v53, %v2107_v51 }
 0x2a5   :  { %v1870_v45 = vpop.f32.mrf.mxu1 }
 0x2a6   :  { %v1871_v43 = vadd.f32 %v7628_v3, %v1870_v45  ;;  %v5417_v45 = vld [vmem:[%s10051_s10 + $0x200] sm:$0xff] }
 0x2a8   :  { %5361 = vmatmul.msk.f32.vlgmr.msra.gmra.mxu1 %vm1920_vm12, %v1970_v12  ;;  %5364 = vmatmul.msk.f32.vlgmr.msra.gmra.mxu3 %vm1920_vm12, %v1970_v12  ;;  %v5474_v12 = vld [vmem:[%s10051_s10 + $0x368] sm:$0xff] }
 0x2a9   :  { %2151 = vmatpush.msra.mxu3 %v5388_v36  ;;  %2125 = vmatpush.msra.mxu1 %v5387_v7  ;;  %v5471_v7 = vld [vmem:[%s10051_s10 + $0x350] sm:$0xff] }
 0x2ab   :  { %v1902_v41 = vpop.f32.mrf.mxu3  ;;  %2152 = vmatpush.msra.mxu3 %v5386_v42  ;;  %2126 = vmatpush.msra.mxu1 %v5385_v13  ;;  %v5466_v13 = vld [vmem:[%s10051_s10 + $0x328] sm:$0xff] }
 0x2ac   :  { %v1903_v30 = vadd.f32 %v1902_v41, %v1871_v43  ;;  %v2280_v43 = vrot.slane %v7420_v8, 4 }
 0x2ad   :  { %2153 = vmatpush.msra.mxu3 %v5384_v61  ;;  %2127 = vmatpush.msra.mxu1 %v5383_v34  ;;  %v5467_v34 = vld [vmem:[%s10051_s10 + $0x330] sm:$0xff] }
 0x2ae   :  { %v1913_v15 = vmax.f32 %v1903_v30, 0.0  ;;  %v2282_v31 = vsel %vm2279_vm1, %v2280_v43, %v2281_v28  ;;  %v5473_v30 = vld [vmem:[%s10051_s10 + $0x360] sm:$0xff] }
 0x2af   :  { %2154 = vmatpush.msra.mxu3 %v5382_v26  ;;  %2128 = vmatpush.msra.mxu1 %v5381_v63  ;;  %v5469_v26 = vld [vmem:[%s10051_s10 + $0x340] sm:$0xff]  ;;  %v5464_v63 = vld [vmem:[%s10051_s10 + $0x318] sm:$0xff] }
 0x2b0   :  { %1928 = vst.msk [vmem:[#allocation3 + $0x13] sm:$0x3] %vm1927_vm14, %v1913_v15  ;;  %vm3151_vm14 = vcmask 519168  }
 0x2b1   :  { %3149 = vst.msk [vmem:[#allocation3 + $0x1] sm:$0xfc] %vm3148_vm15, %v1913_v15  ;;  %2155 = vmatpush.msra.mxu3 %v5380_v50  ;;  %2129 = vmatpush.msra.mxu1 %v5379_v1  ;;  %v5468_v15 = vld [vmem:[%s10051_s10 + $0x338] sm:$0xff]  ;;  %v2453_v1 = vrot.slane %v7420_v8, 6  ;;  %vm2809_vm15 = vcmask 521216  }
 0x2b3   :  { %2156 = vmatpush.msra.mxu3 %v5378_v0  ;;  %v5465_v0 = vld [vmem:[%s10051_s10 + $0x320] sm:$0xff] }
 0x2b5   :  { %2157 = vmatpush.msra.mxu3 %v5376_v40 }
 0x2b7   :  { %v7664_v10 = vld [vmem:[#allocation3 + $0x10] sm:$0xff]  ;;  %2158 = vmatpush.msra.mxu3 %v5374_v54 }
 0x2b8   :  { %v1971_v59 = vrot.slane %v7664_v10, 1  ;;  %v2196_v37 = vrot.slane %v7664_v10, 3  ;;  %v2369_v22 = vrot.slane %v7664_v10, 5  ;;  %v2109_v14 = vrot.slane %v7664_v10, 2 }
 0x2b9   :  { %v2283_v61 = vrot.slane %v7664_v10, 4 }
 0x2ba   :  { %v1972_v48 = vsel %vm717_vm9, %v1969_v9, %v1971_v59  ;;  %v2197_v38 = vsel %vm2192_vm13, %v2194_v35, %v2196_v37  ;;  %v5377_v35 = vld [vmem:[%s10051_s10 + $0x120] sm:$0xff]  ;;  %v2370_v5 = vsel %vm1161_vm10, %v2367_v27, %v2369_v22  ;;  %v2110_v21 = vsel %vm266_vm0, %v2107_v51, %v2109_v14 }
 0x2bb   :  { %5362 = vmatmul.msk.f32.gmra.mxu1 %vm1920_vm12, %v1972_v48  ;;  %5365 = vmatmul.msk.f32.gmra.mxu3 %vm1920_vm12, %v1972_v48  ;;  %v5425_v9 = vld [vmem:[%s10051_s10 + $0x240] sm:$0xff]  ;;  %v2284_v50 = vsel %vm2279_vm1, %v2281_v28, %v2283_v61 }
 0x2bc   :  { %5412 = vmatmul.msk.f32.gmra.mxu2 %vm1920_vm12, %v2197_v38  ;;  %5415 = vmatmul.msk.f32.gmra.mxu0 %vm1920_vm12, %v2197_v38  ;;  %v5461_v48 = vld [vmem:[%s10051_s10 + $0x300] sm:$0xff]  ;;  %v2454_v38 = vrot.slane %v7445_v2, 6 }
 0x2bd   :  { %2130 = vmatpush.msra.mxu1 %v5377_v35  ;;  %v2456_v35 = vrot.slane %v7664_v10, 6 }
 0x2be   :  { %v2455_v40 = vsel %vm2452_vm11, %v2453_v1, %v2454_v38  ;;  %v2721_v1 = vld [vmem:[%s10054_s29 + $0x60] sm:$0xff] }
 0x2bf   :  { %2131 = vmatpush.msra.mxu1 %v5375_v25  ;;  %v2457_v54 = vsel %vm2452_vm11, %v2454_v38, %v2456_v35 }
 0x2c1   :  { %2132 = vmatpush.msra.mxu1 %v5373_v58 }
 0x2c3   :  { %5363 = vmatmul.msk.f32.gmra.mxu1 %vm1920_vm12, %v1971_v59  ;;  %5366 = vmatmul.msk.f32.gmra.mxu3 %vm1920_vm12, %v1971_v59  ;;  %v5463_v59 = vld [vmem:[%s10051_s10 + $0x310] sm:$0xff] }
 0x2c4   :  { %5413 = vmatmul.msk.f32.gmra.mxu2 %vm1920_vm12, %v2196_v37  ;;  %5416 = vmatmul.msk.f32.gmra.mxu0 %vm1920_vm12, %v2196_v37  ;;  %v5462_v37 = vld [vmem:[%s10051_s10 + $0x308] sm:$0xff] }
 0x2cb   :  { %5367 = vmatmul.msk.f32.vlgmr.msrb.gmra.mxu1 %vm1920_vm12, %v7420_v8  ;;  %5370 = vmatmul.msk.f32.vlgmr.msrb.gmra.mxu3 %vm1920_vm12, %v7420_v8 }
 0x2cc   :  { %5455 = vmatmul.msk.f32.vlgmr.msrb.gmra.mxu2 %vm1920_vm12, %v2368_v17  ;;  %5458 = vmatmul.msk.f32.vlgmr.msrb.gmra.mxu0 %vm1920_vm12, %v2368_v17 }
 0x2cd   :  { %2325 = vmatpush.msrb.mxu3 %v5432_v18  ;;  %2299 = vmatpush.msrb.mxu1 %v5431_v49 }
 0x2cf   :  { %2326 = vmatpush.msrb.mxu3 %v5430_v57  ;;  %2300 = vmatpush.msrb.mxu1 %v5429_v39 }
 0x2d1   :  { %2327 = vmatpush.msrb.mxu3 %v5428_v55  ;;  %2301 = vmatpush.msrb.mxu1 %v5427_v4 }
 0x2d3   :  { %5368 = vmatmul.msk.f32.gmra.mxu1 %vm1920_vm12, %v7445_v2  ;;  %5371 = vmatmul.msk.f32.gmra.mxu3 %vm1920_vm12, %v7445_v2 }
 0x2d4   :  { %5456 = vmatmul.msk.f32.gmra.mxu2 %vm1920_vm12, %v2370_v5  ;;  %5459 = vmatmul.msk.f32.gmra.mxu0 %vm1920_vm12, %v2370_v5 }
 0x2d5   :  { %2328 = vmatpush.msrb.mxu3 %v5426_v62  ;;  %2302 = vmatpush.msrb.mxu1 %v5425_v9 }
 0x2d7   :  { %2329 = vmatpush.msrb.mxu3 %v5424_v32  ;;  %2303 = vmatpush.msrb.mxu1 %v5423_v33 }
 0x2d9   :  { %2330 = vmatpush.msrb.mxu3 %v5422_v47  ;;  %2304 = vmatpush.msrb.mxu1 %v5421_v56 }
 0x2db   :  { %5369 = vmatmul.msk.f32.gmra.mxu1 %vm1920_vm12, %v7664_v10  ;;  %5372 = vmatmul.msk.f32.gmra.mxu3 %vm1920_vm12, %v7664_v10 }
 0x2dc   :  { %5457 = vmatmul.msk.f32.gmra.mxu2 %vm1920_vm12, %v2369_v22  ;;  %5460 = vmatmul.msk.f32.gmra.mxu0 %vm1920_vm12, %v2369_v22 }
 0x2dd   :  { %2331 = vmatpush.msrb.mxu3 %v5420_v44  ;;  %2305 = vmatpush.msrb.mxu1 %v5419_v46 }
 0x2df   :  { %2332 = vmatpush.msrb.mxu3 %v5418_v52  ;;  %2306 = vmatpush.msrb.mxu1 %v5417_v45 }
 0x2e3   :  { %5389 = vmatmul.msk.f32.vlgmr.msra.gmra.mxu1 %vm1920_vm12, %v2108_v16  ;;  %5392 = vmatmul.msk.f32.vlgmr.msra.gmra.mxu3 %vm1920_vm12, %v2108_v16 }
 0x2e4   :  { %2498 = vmatpush.msra.mxu3 %v5476_v6  ;;  %2472 = vmatpush.msra.mxu1 %v5475_v23 }
 0x2e6   :  { %2499 = vmatpush.msra.mxu3 %v5474_v12  ;;  %2473 = vmatpush.msra.mxu1 %v5473_v30 }
 0x2e8   :  { %2500 = vmatpush.msra.mxu3 %v5472_v20  ;;  %2474 = vmatpush.msra.mxu1 %v5471_v7  ;;  %v2723_v7 = vld [vmem:[%s10054_s29 + $0x70] sm:$0xff] }
 0x2ea   :  { %2501 = vmatpush.msra.mxu3 %v5470_v11  ;;  %2475 = vmatpush.msra.mxu1 %v5469_v26 }
 0x2eb   :  { %5390 = vmatmul.msk.f32.gmra.mxu1 %vm1920_vm12, %v2110_v21  ;;  %5393 = vmatmul.msk.f32.gmra.mxu3 %vm1920_vm12, %v2110_v21  ;;  %v2247_v44 = vpop.f32.mrf.mxu0 }
 0x2ec   :  { %2502 = vmatpush.msra.mxu3 %v5468_v15  ;;  %2476 = vmatpush.msra.mxu1 %v5467_v34  ;;  %v2740_v15 = vld [vmem:[%s10054_s29 + $0xf8] sm:$0xff]  ;;  %v2722_v34 = vld [vmem:[%s10054_s29 + $0x68] sm:$0xff] }
 0x2ed   :  { %2788 = vmatpush.msra.mxu0 %v2740_v15 }
 0x2ee   :  { %2503 = vmatpush.msra.mxu3 %v5466_v13  ;;  %2477 = vmatpush.msra.mxu1 %v5465_v0  ;;  %v2739_v13 = vld [vmem:[%s10054_s29 + $0xf0] sm:$0xff]  ;;  %v2738_v0 = vld [vmem:[%s10054_s29 + $0xe8] sm:$0xff] }
 0x2ef   :  { %2789 = vmatpush.msra.mxu0 %v2739_v13  ;;  %v2712_v13 = vld [vmem:[%s10054_s29 + $0x18] sm:$0xff] }
 0x2f0   :  { %2504 = vmatpush.msra.mxu3 %v5464_v63  ;;  %2478 = vmatpush.msra.mxu1 %v5463_v59 }
 0x2f1   :  { %v2221_v47 = vpop.f32.mrf.mxu2  ;;  %2790 = vmatpush.msra.mxu0 %v2738_v0 }
 0x2f2   :  { %2505 = vmatpush.msra.mxu3 %v5462_v37  ;;  %2479 = vmatpush.msra.mxu1 %v5461_v48 }
 0x2f3   :  { %5391 = vmatmul.msk.f32.gmra.mxu1 %vm1920_vm12, %v2109_v14  ;;  %5394 = vmatmul.msk.f32.gmra.mxu3 %vm1920_vm12, %v2109_v14 }
 0x2f5   :  { %v1873_v60 = vpop.f32.mrf.mxu1 }
 0x2f6   :  { %v1874_v24 = vadd.f32 %v7628_v3, %v1873_v60 }
 0x2fb   :  { %v1905_v41 = vpop.f32.mrf.mxu3  ;;  %5433 = vmatmul.msk.f32.vlgmr.msrb.gmra.mxu1 %vm1920_vm12, %v2282_v31  ;;  %5436 = vmatmul.msk.f32.vlgmr.msrb.gmra.mxu3 %vm1920_vm12, %v2282_v31 }
 0x2fc   :  { %v1906_v36 = vadd.f32 %v1905_v41, %v1874_v24 }
 0x2fe   :  { %v1914_v42 = vmax.f32 %v1906_v36, 0.0  ;;  %v1916_v36 = vld [vmem:[%s10053_s0] sm:$0x3] }
 0x2ff   :  { %v7911_v59 = vperm.slane %v1916_v36, 0  ;;  %v7913_v48 = vperm.slane %v1916_v36, 1  ;;  %v2714_v36 = vld [vmem:[%s10054_s29 + $0x28] sm:$0xff] }
 0x300   :  { %3150 = vst.msk [vmem:[#allocation3 + $0x9] sm:$0xff] %vm1920_vm12, %v1914_v42 }
 0x303   :  { %5434 = vmatmul.msk.f32.gmra.mxu1 %vm1920_vm12, %v2284_v50  ;;  %5437 = vmatmul.msk.f32.gmra.mxu3 %vm1920_vm12, %v2284_v50 }
 0x30b   :  { %5435 = vmatmul.msk.f32.gmra.mxu1 %vm1920_vm12, %v2283_v61  ;;  %5438 = vmatmul.msk.f32.gmra.mxu3 %vm1920_vm12, %v2283_v61  ;;  %v2724_v61 = vld [vmem:[%s10054_s29 + $0x78] sm:$0xff] }
 0x30c   :  { %2768 = vmatpush.msra.mxu2 %v2724_v61 }
 0x30e   :  { %2769 = vmatpush.msra.mxu2 %v2723_v7 }
 0x310   :  { %2770 = vmatpush.msra.mxu2 %v2722_v34 }
 0x312   :  { %2771 = vmatpush.msra.mxu2 %v2721_v1 }
 0x313   :  { %5477 = vmatmul.msk.f32.vlgmr.msra.gmra.mxu1 %vm1920_vm12, %v2455_v40  ;;  %5480 = vmatmul.msk.f32.vlgmr.msra.gmra.mxu3 %vm1920_vm12, %v2455_v40  ;;  %v2737_v40 = vld [vmem:[%s10054_s29 + $0xe0] sm:$0xff] }
 0x314   :  { %2791 = vmatpush.msra.mxu0 %v2737_v40  ;;  %v2711_v40 = vld [vmem:[%s10054_s29 + $0x10] sm:$0xff] }
 0x31b   :  { %5478 = vmatmul.msk.f32.gmra.mxu1 %vm1920_vm12, %v2457_v54  ;;  %5481 = vmatmul.msk.f32.gmra.mxu3 %vm1920_vm12, %v2457_v54 }
 0x31d   :  { %v1876_v25 = vpop.f32.mrf.mxu1 }
 0x31e   :  { %v1877_v2 = vadd.f32 %v7628_v3, %v1876_v25  ;;  %v2720_v25 = vld [vmem:[%s10054_s29 + $0x58] sm:$0xff] }
 0x31f   :  { %2772 = vmatpush.msra.mxu2 %v2720_v25 }
 0x323   :  { %v1908_v58 = vpop.f32.mrf.mxu3  ;;  %5479 = vmatmul.msk.f32.gmra.mxu1 %vm1920_vm12, %v2456_v35  ;;  %5482 = vmatmul.msk.f32.gmra.mxu3 %vm1920_vm12, %v2456_v35 }
 0x324   :  { %v1909_v8 = vadd.f32 %v1908_v58, %v1877_v2  ;;  %v2736_v2 = vld [vmem:[%s10054_s29 + $0xd8] sm:$0xff] }
 0x325   :  { %v1996_v29 = vpop.f32.mrf.mxu1  ;;  %2792 = vmatpush.msra.mxu0 %v2736_v2  ;;  %v2727_v2 = vld [vmem:[%s10054_s29 + $0x90] sm:$0xff] }
 0x326   :  { %v1915_v27 = vmax.f32 %v1909_v8, 0.0 }
 0x328   :  { %3152 = vst.msk [vmem:[#allocation3 + $0x11] sm:$0xf] %vm3151_vm14, %v1915_v27 }
 0x32b   :  { %v2022_v10 = vpop.f32.mrf.mxu3 }
 0x338   :  { %v7858_v18 = vpop.f32.mrf.mxu1 }
 0x339   :  { %v2250_v56 = vpop.f32.mrf.mxu0 }
 0x33e   :  { %v2025_v17 = vpop.f32.mrf.mxu3 }
 0x33f   :  { %v7876_v33 = vpop.f32.mrf.mxu2 }
 0x340   :  { %v7860_v22 = vpop.f32.mrf.mxu1 }
 0x341   :  { %v7886_v11 = vpop.f32.mrf.mxu0 }
 0x346   :  { %v7862_v5 = vpop.f32.mrf.mxu3 }
 0x347   :  { %v7882_v12 = vpop.f32.mrf.mxu2 }
 0x348   :  { %v2054_v57 = vpop.f32.mrf.mxu1 }
 0x349   :  { %v2055_v46 = vadd.f32 %v2054_v57, %v1996_v29  ;;  %v2420_v50 = vpop.f32.mrf.mxu0  ;;  %v2719_v29 = vld [vmem:[%s10054_s29 + $0x50] sm:$0xff]  ;;  %v2718_v57 = vld [vmem:[%s10054_s29 + $0x48] sm:$0xff] }
 0x34a   :  { %2773 = vmatpush.msra.mxu2 %v2719_v29 }
 0x34c   :  { %2774 = vmatpush.msra.mxu2 %v2718_v57 }
 0x34e   :  { %v2080_v3 = vpop.f32.mrf.mxu3 }
 0x34f   :  { %v2081_v20 = vadd.f32 %v2080_v3, %v2022_v10  ;;  %v2394_v30 = vpop.f32.mrf.mxu2  ;;  %v2735_v10 = vld [vmem:[%s10054_s29 + $0xd0] sm:$0xff] }
 0x350   :  { %v7864_v55 = vpop.f32.mrf.mxu1  ;;  %2793 = vmatpush.msra.mxu0 %v2735_v10  ;;  %v2709_v10 = vld [vmem:[%s10054_s29] sm:$0xff] }
 0x356   :  { %v2083_v51 = vpop.f32.mrf.mxu3 }
 0x357   :  { %v2084_v54 = vadd.f32 %v2083_v51, %v2025_v17 }
 0x358   :  { %v7866_v53 = vpop.f32.mrf.mxu1 }
 0x35e   :  { %v7868_v49 = vpop.f32.mrf.mxu3 }
 0x35f   :  { %v2087_v57 = vadd.f32 %v7868_v49, %v7862_v5 }
 0x360   :  { %v2134_v62 = vpop.f32.mrf.mxu1 }
 0x361   :  { %v2169_v23 = vadd.f32 %v2134_v62, %v2055_v46  ;;  %v2734_v62 = vld [vmem:[%s10054_s29 + $0xc8] sm:$0xff] }
 0x362   :  { %2794 = vmatpush.msra.mxu0 %v2734_v62 }
 0x363   :  { %v2256_v60 = vadd.f32 %v2221_v47, %v2169_v23  ;;  %v2717_v47 = vld [vmem:[%s10054_s29 + $0x40] sm:$0xff]  ;;  %v2716_v23 = vld [vmem:[%s10054_s29 + $0x38] sm:$0xff] }
 0x364   :  { %2775 = vmatpush.msra.mxu2 %v2717_v47 }
 0x366   :  { %v2160_v39 = vpop.f32.mrf.mxu3  ;;  %2776 = vmatpush.msra.mxu2 %v2716_v23 }
 0x367   :  { %v2170_v28 = vadd.f32 %v2160_v39, %v2081_v20  ;;  %v2058_v39 = vadd.f32 %v7864_v55, %v7858_v18  ;;  %v2733_v18 = vld [vmem:[%s10054_s29 + $0xc0] sm:$0xff] }
 0x368   :  { %v7870_v32 = vpop.f32.mrf.mxu1  ;;  %2795 = vmatpush.msra.mxu0 %v2733_v18 }
 0x369   :  { %v2257_v31 = vadd.f32 %v2247_v44, %v2170_v28  ;;  %v2171_v55 = vadd.f32 %v7870_v32, %v2058_v39  ;;  %v2732_v28 = vld [vmem:[%s10054_s29 + $0xb8] sm:$0xff]  ;;  %v2715_v32 = vld [vmem:[%s10054_s29 + $0x30] sm:$0xff] }
 0x36a   :  { %2796 = vmatpush.msra.mxu0 %v2732_v28  ;;  %2777 = vmatpush.msra.mxu2 %v2715_v32 }
 0x36c   :  { %2778 = vmatpush.msra.mxu2 %v2714_v36 }
 0x36e   :  { %v2163_v16 = vpop.f32.mrf.mxu3 }
 0x36f   :  { %v2172_v27 = vadd.f32 %v2163_v16, %v2084_v54 }
 0x370   :  { %v7872_v4 = vpop.f32.mrf.mxu1 }
 0x371   :  { %v2259_v16 = vadd.f32 %v2250_v56, %v2172_v27  ;;  %v2726_v27 = vld [vmem:[%s10054_s29 + $0x88] sm:$0xff] }
 0x376   :  { %v7874_v9 = vpop.f32.mrf.mxu3 }
 0x377   :  { %v2174_v47 = vadd.f32 %v7874_v9, %v2087_v57 }
 0x378   :  { %v2308_v14 = vpop.f32.mrf.mxu1 }
 0x379   :  { %v2343_v24 = vadd.f32 %v2308_v14, %v2256_v60 }
 0x37b   :  { %v2429_v26 = vadd.f32 %v2394_v30, %v2343_v24  ;;  %v2731_v24 = vld [vmem:[%s10054_s29 + $0xb0] sm:$0xff]  ;;  %v2730_v30 = vld [vmem:[%s10054_s29 + $0xa8] sm:$0xff] }
 0x37c   :  { %2797 = vmatpush.msra.mxu0 %v2731_v24 }
 0x37e   :  { %v2334_v52 = vpop.f32.mrf.mxu3  ;;  %2798 = vmatpush.msra.mxu0 %v2730_v30 }
 0x37f   :  { %v2344_v41 = vadd.f32 %v2334_v52, %v2257_v31  ;;  %v2258_v31 = vadd.f32 %v7876_v33, %v2171_v55  ;;  %v2713_v33 = vld [vmem:[%s10054_s29 + $0x20] sm:$0xff]  ;;  %v2261_v55 = vadd.f32 %v7886_v11, %v2174_v47 }
 0x380   :  { %v7878_v6 = vpop.f32.mrf.mxu1  ;;  %2779 = vmatpush.msra.mxu2 %v2713_v33 }
 0x381   :  { %v2430_v37 = vadd.f32 %v2420_v50, %v2344_v41  ;;  %v2397_v50 = vpop.f32.mrf.mxu2 }
 0x382   :  { %2780 = vmatpush.msra.mxu2 %v2712_v13 }
 0x384   :  { %2781 = vmatpush.msra.mxu2 %v2711_v40  ;;  %v5498_v40 = vld [vmem:[%s10055_s28 + $0xf8] sm:$0xff] }
 0x385   :  { %2877 = vmatpush.msrb.mxu3 %v5498_v40 }
 0x386   :  { %v7880_v21 = vpop.f32.mrf.mxu3 }
 0x387   :  { %v2346_v56 = vadd.f32 %v7880_v21, %v2259_v16  ;;  %v2423_v21 = vpop.f32.mrf.mxu0 }
 0x388   :  { %v7884_v45 = vpop.f32.mrf.mxu1 }
 0x389   :  { %v2432_v41 = vadd.f32 %v2423_v21, %v2346_v56 }
 0x38e   :  { %v7888_v43 = vpop.f32.mrf.mxu3 }
 0x38f   :  { %v2348_v9 = vadd.f32 %v7888_v43, %v2261_v55 }
 0x390   :  { %v2481_v42 = vpop.f32.mrf.mxu1 }
 0x391   :  { %v2516_v63 = vadd.f32 %v2481_v42, %v2429_v26  ;;  %v2345_v42 = vadd.f32 %v7878_v6, %v2258_v31  ;;  %v2729_v26 = vld [vmem:[%s10054_s29 + $0xa0] sm:$0xff] }
 0x392   :  { %2799 = vmatpush.msra.mxu0 %v2729_v26 }
 0x393   :  { %v2527_v58 = vadd.f32 %v7911_v59, %v2516_v63  ;;  %v2728_v63 = vld [vmem:[%s10054_s29 + $0x98] sm:$0xff] }
 0x394   :  { %2800 = vmatpush.msra.mxu0 %v2728_v63 }
 0x395   :  { %v7938_v3 = vmax.f32 %v2527_v58, 0.0 }
 0x396   :  { %v2507_v38 = vpop.f32.mrf.mxu3  ;;  %2801 = vmatpush.msra.mxu0 %v2727_v2 }
 0x397   :  { %v2517_v35 = vadd.f32 %v2507_v38, %v2430_v37  ;;  %v2431_v38 = vadd.f32 %v2397_v50, %v2345_v42 }
 0x398   :  { %v2484_v0 = vpop.f32.mrf.mxu1  ;;  %2802 = vmatpush.msra.mxu0 %v2726_v27 }
 0x399   :  { %v2528_v8 = vadd.f32 %v7913_v48, %v2517_v35  ;;  %v2518_v58 = vadd.f32 %v2484_v0, %v2431_v38 }
 0x39b   :  { %v2534_v17 = vmax.f32 %v2528_v8, 0.0  ;;  %v2710_v8 = vld [vmem:[%s10054_s29 + $0x8] sm:$0xff]  ;;  %v2529_v39 = vadd.f32 %v7911_v59, %v2518_v58 }
 0x39c   :  { %2782 = vmatpush.msra.mxu2 %v2710_v8 }
 0x39d   :  { %v7940_v51 = vrot.slane %v2534_v17, 7  ;;  %v2725_v17 = vld [vmem:[%s10054_s29 + $0x80] sm:$0xff]  ;;  %v2535_v5 = vmax.f32 %v2529_v39, 0.0 }
 0x39e   :  { %v2510_v60 = vpop.f32.mrf.mxu3  ;;  %2783 = vmatpush.msra.mxu2 %v2709_v10  ;;  %2803 = vmatpush.msra.mxu0 %v2725_v17 }
 0x39f   :  { %v2548_v44 = vsel %vm697_vm2, %v7938_v3, %v7940_v51  ;;  %v2549_v14 = vsel %vm699_vm3, %v7938_v3, %v7940_v51  ;;  %v2551_v52 = vsel %vm702_vm4, %v7938_v3, %v7940_v51  ;;  %v2553_v61 = vsel %vm705_vm5, %v7938_v3, %v7940_v51 }
 0x3a0   :  { %v2550_v46 = vrot.slane %v2549_v14, 1  ;;  %v2552_v20 = vrot.slane %v2551_v52, 2  ;;  %2581 = vst [vmem:[#allocation1] ss:$9 sm:$0xff] %v2548_v44  ;;  %v2519_v15 = vadd.f32 %v2510_v60, %v2432_v41  ;;  %v2555_v7 = vsel %vm708_vm6, %v7938_v3, %v7940_v51  ;;  %v2400_v41 = vpop.f32.mrf.mxu2  ;;  %v2487_v36 = vpop.f32.mrf.mxu1 }
 0x3a1   :  { %v2557_v6 = vsel %vm711_vm7, %v7938_v3, %v7940_v51  ;;  %v2554_v34 = vrot.slane %v2553_v61, 3  ;;  %v2556_v37 = vrot.slane %v2555_v7, 4  ;;  %v2559_v62 = vsel %vm714_vm8, %v7938_v3, %v7940_v51 }
 0x3a2   :  { %2583 = vst [vmem:[#allocation1 + $0x1] ss:$9 sm:$0xff] %v2550_v46  ;;  %v2530_v1 = vadd.f32 %v7913_v48, %v2519_v15  ;;  %v2558_v25 = vrot.slane %v2557_v6, 5  ;;  %v2561_v16 = vsel %vm717_vm9, %v7940_v51, %v7938_v3  ;;  %v2560_v14 = vrot.slane %v2559_v62, 6 }
 0x3a3   :  { %2585 = vst [vmem:[#allocation1 + $0x2] ss:$9 sm:$0xff] %v2552_v20  ;;  %v2562_v52 = vrot.slane %v2561_v16, 7  ;;  %v2061_v3 = vadd.f32 %v7866_v53, %v7860_v22  ;;  %v2426_v20 = vpop.f32.mrf.mxu0 }
 0x3a4   :  { %v2536_v29 = vmax.f32 %v2530_v1, 0.0  ;;  %v2434_v32 = vadd.f32 %v2426_v20, %v2348_v9 }
 0x3a5   :  { %v2173_v51 = vadd.f32 %v7872_v4, %v2061_v3 }
 0x3a6   :  { %v8038_v44 = vrot.slane %v2536_v29, 7  ;;  %v2513_v11 = vpop.f32.mrf.mxu3  ;;  %v5494_v29 = vld [vmem:[%s10055_s28 + $0xd8] sm:$0xff] }
 0x3a7   :  { %v2260_v21 = vadd.f32 %v7882_v12, %v2173_v51  ;;  %v2521_v60 = vadd.f32 %v2513_v11, %v2434_v32 }
 0x3a8   :  { %v2563_v56 = vsel %vm697_vm2, %v2535_v5, %v8038_v44  ;;  %v2564_v46 = vsel %vm699_vm3, %v2535_v5, %v8038_v44  ;;  %v2566_v23 = vsel %vm702_vm4, %v2535_v5, %v8038_v44  ;;  %v2568_v28 = vsel %vm705_vm5, %v2535_v5, %v8038_v44 }
 0x3a9   :  { %v2565_v22 = vrot.slane %v2564_v46, 1  ;;  %v2567_v53 = vrot.slane %v2566_v23, 2  ;;  %v2347_v4 = vadd.f32 %v7884_v45, %v2260_v21  ;;  %v2569_v31 = vrot.slane %v2568_v28, 3 }
 0x3aa   :  { %v8009_v35 = vld [vmem:[#allocation1] sm:$0xff]  ;;  %v8011_v54 = vld [vmem:[#allocation1 + $0x9] sm:$0xff]  ;;  %v2532_v30 = vadd.f32 %v7913_v48, %v2521_v60  ;;  %v2570_v61 = vsel %vm708_vm6, %v2535_v5, %v8038_v44  ;;  %v2572_v12 = vsel %vm711_vm7, %v2535_v5, %v8038_v44  ;;  %v2574_v33 = vsel %vm714_vm8, %v2535_v5, %v8038_v44 }
 0x3ab   :  { %2588 = vst [vmem:[#allocation1] ss:$9 sm:$0xff] %v2554_v34  ;;  %v2433_v42 = vadd.f32 %v2400_v41, %v2347_v4  ;;  %v2571_v7 = vrot.slane %v2570_v61, 4  ;;  %v2573_v26 = vrot.slane %v2572_v12, 5  ;;  %v2575_v50 = vrot.slane %v2574_v33, 6 }
 0x3ac   :  { %2589 = vst [vmem:[#allocation1 + $0x1] ss:$9 sm:$0xff] %v2556_v37  ;;  %v2538_v45 = vmax.f32 %v2532_v30, 0.0  ;;  %v2625_v63 = vsel %vm1161_vm10, %v8009_v35, -inf  ;;  %v2632_v37 = vsel %vm1161_vm10, %v8011_v54, -inf  ;;  %v2576_v10 = vsel %vm717_vm9, %v8038_v44, %v2535_v5 }
 0x3ad   :  { %2590 = vst [vmem:[#allocation1 + $0x2] ss:$9 sm:$0xff] %v2558_v25  ;;  %v2520_v15 = vadd.f32 %v2487_v36, %v2433_v42  ;;  %v5496_v25 = vld [vmem:[%s10055_s28 + $0xe8] sm:$0xff]  ;;  %v2626_v54 = vrot.slane %v2625_v63, 4  ;;  %v2633_v57 = vrot.slane %v2632_v37, 4 }
 0x3ae   :  { %v2547_v0 = vrot.slane %v2538_v45, 7  ;;  %2878 = vmatpush.msrb.mxu3 %v5496_v25 }
 0x3af   :  { %v2531_v34 = vadd.f32 %v7911_v59, %v2520_v15  ;;  %v2627_v55 = vmax.f32 %v2625_v63, %v2626_v54  ;;  %v2634_v44 = vmax.f32 %v2632_v37, %v2633_v57 }
 0x3b0   :  { %2879 = vmatpush.msrb.mxu3 %v5494_v29 }
 0x3b1   :  { %v2537_v58 = vmax.f32 %v2531_v34, 0.0  ;;  %v2628_v4 = vrot.slane %v2627_v55, 2  ;;  %v2635_v41 = vrot.slane %v2634_v44, 2 }
 0x3b3   :  { %v2579_v39 = vsel %vm699_vm3, %v2537_v58, %v2547_v0  ;;  %v2629_v45 = vmax.f32 %v2627_v55, %v2628_v4 }
 0x3b4   :  { %v2591_v49 = vld [vmem:[#allocation1] sm:$0xff]  ;;  %v2592_v18 = vld [vmem:[#allocation1 + $0x9] sm:$0xff] }
 0x3b5   :  { %2593 = vst [vmem:[#allocation1] ss:$9 sm:$0xff] %v2560_v14  ;;  %v2639_v38 = vsel %vm1161_vm10, %v2591_v49, -inf  ;;  %v2646_v1 = vsel %vm1161_vm10, %v2592_v18, -inf  ;;  %v2577_v49 = vrot.slane %v2576_v10, 7  ;;  %v2578_v18 = vsel %vm697_vm2, %v2537_v58, %v2547_v0 }
 0x3b6   :  { %2594 = vst [vmem:[#allocation1 + $0x1] ss:$9 sm:$0xff] %v2562_v52  ;;  %v2640_v17 = vrot.slane %v2639_v38, 4  ;;  %v2647_v62 = vrot.slane %v2646_v1, 4  ;;  %v2630_v58 = vrot.slane %v2629_v45, 1 }
 0x3b7   :  { %2595 = vst [vmem:[#allocation1 + $0x2] ss:$9 sm:$0xff] %v2563_v56  ;;  %v2580_v56 = vrot.slane %v2579_v39, 1 }
 0x3b8   :  { %v2641_v51 = vmax.f32 %v2639_v38, %v2640_v17  ;;  %v2648_v5 = vmax.f32 %v2646_v1, %v2647_v62 }
 0x3be   :  { %v2596_v43 = vld [vmem:[#allocation1] sm:$0xff]  ;;  %v2597_v24 = vld [vmem:[#allocation1 + $0x9] sm:$0xff] }
 0x3bf   :  { %2598 = vst [vmem:[#allocation1] ss:$9 sm:$0xff] %v2565_v22  ;;  %v2653_v2 = vsel %vm1161_vm10, %v2596_v43, -inf  ;;  %v2660_v35 = vsel %vm1161_vm10, %v2597_v24, -inf  ;;  %v2649_v43 = vrot.slane %v2648_v5, 2 }
 0x3c0   :  { %2599 = vst [vmem:[#allocation1 + $0x1] ss:$9 sm:$0xff] %v2567_v53  ;;  %v2654_v16 = vrot.slane %v2653_v2, 4  ;;  %v2661_v47 = vrot.slane %v2660_v35, 4  ;;  %v2642_v53 = vrot.slane %v2641_v51, 2 }
 0x3c1   :  { %2600 = vst [vmem:[#allocation1 + $0x2] ss:$9 sm:$0xff] %v2569_v31  ;;  %v2650_v33 = vmax.f32 %v2648_v5, %v2649_v43 }
 0x3c2   :  { %v2655_v46 = vmax.f32 %v2653_v2, %v2654_v16  ;;  %v2662_v23 = vmax.f32 %v2660_v35, %v2661_v47  ;;  %v2643_v15 = vmax.f32 %v2641_v51, %v2642_v53 }
 0x3c3   :  { %v2651_v2 = vrot.slane %v2650_v33, 1 }
 0x3c4   :  { %v2656_v31 = vrot.slane %v2655_v46, 2  ;;  %v2663_v36 = vrot.slane %v2662_v23, 2  ;;  %v2644_v40 = vrot.slane %v2643_v15, 1 }
 0x3c6   :  { %v2645_v16 = vmax.f32 %v2643_v15, %v2644_v40  ;;  %v5516_v15 = vld [vmem:[%s10055_s28 + $0x168] sm:$0xff]  ;;  %v5487_v40 = vld [vmem:[%s10055_s28 + $0xa0] sm:$0xff] }
 0x3c8   :  { %v2601_v6 = vld [vmem:[#allocation1] sm:$0xff]  ;;  %v2602_v13 = vld [vmem:[#allocation1 + $0x9] sm:$0xff] }
 0x3c9   :  { %2603 = vst [vmem:[#allocation1] ss:$9 sm:$0xff] %v2571_v7  ;;  %v2667_v8 = vsel %vm1161_vm10, %v2601_v6, -inf  ;;  %v2674_v27 = vsel %vm1161_vm10, %v2602_v13, -inf  ;;  %v2657_v7 = vmax.f32 %v2655_v46, %v2656_v31  ;;  %v2664_v6 = vmax.f32 %v2662_v23, %v2663_v36  ;;  %v5492_v36 = vld [vmem:[%s10055_s28 + $0xc8] sm:$0xff] }
 0x3ca   :  { %2604 = vst [vmem:[#allocation1 + $0x1] ss:$9 sm:$0xff] %v2573_v26  ;;  %v2668_v14 = vrot.slane %v2667_v8, 4  ;;  %v2675_v52 = vrot.slane %v2674_v27, 4  ;;  %v2636_v26 = vmax.f32 %v2634_v44, %v2635_v41  ;;  %2880 = vmatpush.msrb.mxu3 %v5492_v36 }
 0x3cb   :  { %2605 = vst [vmem:[#allocation1 + $0x2] ss:$9 sm:$0xff] %v2575_v50  ;;  %v2658_v54 = vrot.slane %v2657_v7, 1 }
 0x3cc   :  { %v2669_v28 = vmax.f32 %v2667_v8, %v2668_v14  ;;  %v2676_v21 = vmax.f32 %v2674_v27, %v2675_v52  ;;  %v2637_v8 = vrot.slane %v2636_v26, 1  ;;  %v2665_v27 = vrot.slane %v2664_v6, 1 }
 0x3cd   :  { %v2652_v14 = vmax.f32 %v2650_v33, %v2651_v2  ;;  %v5488_v33 = vld [vmem:[%s10055_s28 + $0xa8] sm:$0xff] }
 0x3ce   :  { %v2670_v30 = vrot.slane %v2669_v28, 2  ;;  %v2677_v42 = vrot.slane %v2676_v21, 2  ;;  %v2638_v55 = vmax.f32 %v2636_v26, %v2637_v8  ;;  %v5486_v26 = vld [vmem:[%s10055_s28 + $0x98] sm:$0xff]  ;;  %v5508_v2 = vld [vmem:[%s10055_s28 + $0x128] sm:$0xff] }
 0x3cf   :  { %v5506_v8 = vld [vmem:[%s10055_s28 + $0x118] sm:$0xff] }
 0x3d0   :  { %v2671_v50 = vmax.f32 %v2669_v28, %v2670_v30  ;;  %v2678_v0 = vmax.f32 %v2676_v21, %v2677_v42  ;;  %v2761_v28 = vsel %vm699_vm3, %v2652_v14, %v2638_v55  ;;  %v5497_v30 = vld [vmem:[%s10055_s28 + $0xf0] sm:$0xff]  ;;  %v5518_v42 = vld [vmem:[%s10055_s28 + $0x178] sm:$0xff]  ;;  %v2813_v55 = vld [vmem:[%s10055_s28 + $0x8] sm:$0xff] }
 0x3d1   :  { %2857 = vmatpush.msrb.mxu1 %v5497_v30  ;;  %2979 = vmatpush.msrb.mxu0 %v5518_v42  ;;  %v2815_v14 = vld [vmem:[%s10055_s28 + $0x18] sm:$0xff]  ;;  %v5535_v30 = vld [vmem:[%s10051_s10 + $0xf0] sm:$0xff] }
 0x3d2   :  { %v2606_v3 = vld [vmem:[#allocation1] sm:$0xff]  ;;  %v2607_v9 = vld [vmem:[#allocation1 + $0x9] sm:$0xff]  ;;  %v2672_v29 = vrot.slane %v2671_v50, 1  ;;  %v2679_v17 = vrot.slane %v2678_v0, 1  ;;  %v3171_v42 = vld [vmem:[%s10051_s10 + $0x78] sm:$0xff] }
 0x3d3   :  { %2608 = vst [vmem:[#allocation1] ss:$9 sm:$0xff] %v2577_v49  ;;  %v2681_v20 = vsel %vm1161_vm10, %v2606_v3, -inf  ;;  %v2688_v11 = vsel %vm1161_vm10, %v2607_v9, -inf  ;;  %v2631_v49 = vmax.f32 %v2629_v45, %v2630_v58  ;;  %v5493_v45 = vld [vmem:[%s10055_s28 + $0xd0] sm:$0xff]  ;;  %2980 = vmatpush.msrb.mxu0 %v5516_v15  ;;  %v3169_v15 = vld [vmem:[%s10051_s10 + $0x68] sm:$0xff] }
 0x3d4   :  { %2609 = vst [vmem:[#allocation1 + $0x1] ss:$9 sm:$0xff] %v2578_v18  ;;  %v2682_v32 = vrot.slane %v2681_v20, 4  ;;  %v2689_v22 = vrot.slane %v2688_v11, 4  ;;  %v2659_v18 = vmax.f32 %v2657_v7, %v2658_v54  ;;  %v2673_v3 = vmax.f32 %v2671_v50, %v2672_v29  ;;  %v5514_v7 = vld [vmem:[%s10055_s28 + $0x158] sm:$0xff]  ;;  %v5512_v50 = vld [vmem:[%s10055_s28 + $0x148] sm:$0xff] }
 0x3d5   :  { %2610 = vst [vmem:[#allocation1 + $0x2] ss:$9 sm:$0xff] %v2580_v56  ;;  %v2666_v56 = vmax.f32 %v2664_v6, %v2665_v27  ;;  %v2680_v51 = vmax.f32 %v2678_v0, %v2679_v17  ;;  %v2756_v23 = vsel %vm699_vm3, %v2645_v16, %v2631_v49  ;;  %2981 = vmatpush.msrb.mxu0 %v5514_v7  ;;  %v2827_v6 = vld [vmem:[%s10055_s28 + $0x78] sm:$0xff]  ;;  %v2825_v0 = vld [vmem:[%s10055_s28 + $0x68] sm:$0xff]  ;;  %v5485_v58 = vld [vmem:[%s10055_s28 + $0x90] sm:$0xff] }
 0x3d6   :  { %v2683_v60 = vmax.f32 %v2681_v20, %v2682_v32  ;;  %v2690_v24 = vmax.f32 %v2688_v11, %v2689_v22  ;;  %v2757_v32 = vsel %vm702_vm4, %v2659_v18, %v2756_v23  ;;  %2919 = vmatpush.msrb.mxu2 %v2827_v6  ;;  %v5513_v54 = vld [vmem:[%s10055_s28 + $0x150] sm:$0xff]  ;;  %v2819_v27 = vld [vmem:[%s10055_s28 + $0x38] sm:$0xff]  ;;  %v5483_v29 = vld [vmem:[%s10055_s28 + $0x80] sm:$0xff] }
 0x3d7   :  { %v2762_v21 = vsel %vm702_vm4, %v2666_v56, %v2761_v28  ;;  %v2758_v53 = vsel %vm705_vm5, %v2673_v3, %v2757_v32  ;;  %2982 = vmatpush.msrb.mxu0 %v5512_v50  ;;  %v5504_v17 = vld [vmem:[%s10055_s28 + $0x108] sm:$0xff]  ;;  %v5509_v16 = vld [vmem:[%s10055_s28 + $0x130] sm:$0xff]  ;;  %v5507_v49 = vld [vmem:[%s10055_s28 + $0x120] sm:$0xff] }
 0x3d8   :  { %v2684_v61 = vrot.slane %v2683_v60, 2  ;;  %v2691_v12 = vrot.slane %v2690_v24, 2  ;;  %v2763_v43 = vsel %vm705_vm5, %v2680_v51, %v2762_v21  ;;  %2920 = vmatpush.msrb.mxu2 %v2825_v0  ;;  %v2822_v18 = vld [vmem:[%s10055_s28 + $0x50] sm:$0xff]  ;;  %v5532_v56 = vld [vmem:[%s10051_s10 + $0xd8] sm:$0xff]  ;;  %v5530_v51 = vld [vmem:[%s10051_s10 + $0xc8] sm:$0xff] }
 0x3d9   :  { %v5505_v3 = vld [vmem:[%s10055_s28 + $0x110] sm:$0xff]  ;;  %v5526_v23 = vld [vmem:[%s10051_s10 + $0xa8] sm:$0xff]  ;;  %v5524_v28 = vld [vmem:[%s10051_s10 + $0x98] sm:$0xff] }
 0x3da   :  { %v2685_v63 = vmax.f32 %v2683_v60, %v2684_v61  ;;  %v2692_v38 = vmax.f32 %v2690_v24, %v2691_v12  ;;  %v5490_v61 = vld [vmem:[%s10055_s28 + $0xb8] sm:$0xff]  ;;  %v5495_v12 = vld [vmem:[%s10055_s28 + $0xe0] sm:$0xff]  ;;  %v5527_v50 = vld [vmem:[%s10051_s10 + $0xb0] sm:$0xff] }
 0x3db   :  { %2881 = vmatpush.msrb.mxu3 %v5490_v61  ;;  %2858 = vmatpush.msrb.mxu1 %v5495_v12  ;;  %v5722_v32 = vld [vmem:[%s10056_s1] ss:$0 sm:$0xff]  ;;  %v8276_v12 = vld [vmem:[#allocation3 + $0x8] sm:$0xff] }
 0x3dc   :  { %v2611_v13 = vld [vmem:[#allocation1] sm:$0xff]  ;;  %v2612_v34 = vld [vmem:[#allocation1 + $0x9] sm:$0xff]  ;;  %v2686_v62 = vrot.slane %v2685_v63, 1  ;;  %v2693_v39 = vrot.slane %v2692_v38, 1  ;;  %v3167_v7 = vld [vmem:[%s10051_s10 + $0x58] sm:$0xff]  ;;  %v3192_v6 = vrot.slane %v8276_v12, 1 }
 0x3dd   :  { %v2695_v37 = vsel %vm1161_vm10, %v2611_v13, -inf  ;;  %v2702_v1 = vsel %vm1161_vm10, %v2612_v34, -inf  ;;  %2882 = vmatpush.msrb.mxu3 %v5488_v33  ;;  %2859 = vmatpush.msrb.mxu1 %v5493_v45  ;;  %v5491_v13 = vld [vmem:[%s10055_s28 + $0xc0] sm:$0xff]  ;;  %v5484_v34 = vld [vmem:[%s10055_s28 + $0x88] sm:$0xff]  ;;  %v5531_v33 = vld [vmem:[%s10051_s10 + $0xd0] sm:$0xff] }
 0x3de   :  { %v2696_v25 = vrot.slane %v2695_v37, 4  ;;  %v2703_v35 = vrot.slane %v2702_v1, 4  ;;  %v2687_v5 = vmax.f32 %v2685_v63, %v2686_v62  ;;  %v2694_v46 = vmax.f32 %v2692_v38, %v2693_v39  ;;  %v5489_v63 = vld [vmem:[%s10055_s28 + $0xb0] sm:$0xff]  ;;  %v5510_v38 = vld [vmem:[%s10055_s28 + $0x138] sm:$0xff]  ;;  %v2817_v62 = vld [vmem:[%s10055_s28 + $0x28] sm:$0xff] }
 0x3df   :  { %2883 = vmatpush.msrb.mxu3 %v5486_v26  ;;  %2860 = vmatpush.msrb.mxu1 %v5491_v13  ;;  %v5536_v39 = vld [vmem:[%s10051_s10 + $0xf8] sm:$0xff]  ;;  %v2812_v21 = vld [vmem:[%s10055_s28] sm:$0xff]  ;;  %v8284_v45 = vld [vmem:[#allocation3] sm:$0xff] }
 0x3e0   :  { %v2697_v10 = vmax.f32 %v2695_v37, %v2696_v25  ;;  %v2704_v57 = vmax.f32 %v2702_v1, %v2703_v35  ;;  %v2759_v24 = vsel %vm708_vm6, %v2687_v5, %v2758_v53  ;;  %v2764_v4 = vsel %vm708_vm6, %v2694_v46, %v2763_v43  ;;  %v5517_v37 = vld [vmem:[%s10055_s28 + $0x170] sm:$0xff]  ;;  %v2823_v1 = vld [vmem:[%s10055_s28 + $0x58] sm:$0xff]  ;;  %v5515_v25 = vld [vmem:[%s10055_s28 + $0x160] sm:$0xff]  ;;  %2983 = vmatpush.msrb.mxu0 %v5510_v38 }
 0x3e1   :  { %2884 = vmatpush.msrb.mxu3 %v5484_v34  ;;  %2861 = vmatpush.msrb.mxu1 %v5489_v63  ;;  %v2821_v35 = vld [vmem:[%s10055_s28 + $0x48] sm:$0xff]  ;;  %v2818_v5 = vld [vmem:[%s10055_s28 + $0x30] sm:$0xff]  ;;  %v5528_v46 = vld [vmem:[%s10051_s10 + $0xb8] sm:$0xff]  ;;  %v3191_v13 = vrot.slane %v8284_v45, 1 }
 0x3e2   :  { %v2698_v47 = vrot.slane %v2697_v10, 2  ;;  %v2705_v52 = vrot.slane %v2704_v57, 2  ;;  %2921 = vmatpush.msrb.mxu2 %v2823_v1  ;;  %2984 = vmatpush.msrb.mxu0 %v5508_v2  ;;  %v5533_v61 = vld [vmem:[%s10051_s10 + $0xe0] sm:$0xff]  ;;  %v3165_v34 = vld [vmem:[%s10051_s10 + $0x48] sm:$0xff]  ;;  %v3163_v38 = vld [vmem:[%s10051_s10 + $0x38] sm:$0xff] }
 0x3e3   :  { %2959 = vmatpush.msra.mxu3 %v5517_v37  ;;  %2862 = vmatpush.msrb.mxu1 %v5487_v40  ;;  %v5529_v26 = vld [vmem:[%s10051_s10 + $0xc0] sm:$0xff]  ;;  %v3193_v0 = vsel %vm717_vm9, %v3191_v13, %v3192_v6  ;;  %v5523_v1 = vld [vmem:[%s10051_s10 + $0x90] sm:$0xff]  ;;  %v3161_v40 = vld [vmem:[%s10051_s10 + $0x28] sm:$0xff]  ;;  %v3584_v13 = vrot.slane %v8276_v12, 5 }
 0x3e4   :  { %v2699_v9 = vmax.f32 %v2697_v10, %v2698_v47  ;;  %v2706_v44 = vmax.f32 %v2704_v57, %v2705_v52  ;;  %2922 = vmatpush.msrb.mxu2 %v2821_v35  ;;  %v5511_v10 = vld [vmem:[%s10055_s28 + $0x140] sm:$0xff]  ;;  %v2826_v57 = vld [vmem:[%s10055_s28 + $0x70] sm:$0xff]  ;;  %2985 = vmatpush.msrb.mxu0 %v5506_v8  ;;  %v5534_v52 = vld [vmem:[%s10051_s10 + $0xe8] sm:$0xff] }
 0x3e5   :  { %2960 = vmatpush.msra.mxu3 %v5515_v25  ;;  %2863 = vmatpush.msrb.mxu1 %v5485_v58  ;;  %v2824_v47 = vld [vmem:[%s10055_s28 + $0x60] sm:$0xff]  ;;  %v3159_v35 = vld [vmem:[%s10051_s10 + $0x18] sm:$0xff]  ;;  %v3170_v58 = vld [vmem:[%s10051_s10 + $0x70] sm:$0xff] }
 0x3e6   :  { %v2700_v20 = vrot.slane %v2699_v9, 1  ;;  %v2707_v11 = vrot.slane %v2706_v44, 1  ;;  %2923 = vmatpush.msrb.mxu2 %v2819_v27  ;;  %2986 = vmatpush.msrb.mxu0 %v5504_v17  ;;  %v5525_v63 = vld [vmem:[%s10051_s10 + $0xa0] sm:$0xff]  ;;  %v5584_v17 = vld [vmem:[%s10051_s10 + $0x1e8] sm:$0xff] }
 0x3e7   :  { %2961 = vmatpush.msra.mxu3 %v5513_v54  ;;  %2864 = vmatpush.msrb.mxu1 %v5483_v29  ;;  %v8307_v37 = vld [vmem:[#allocation3 + $0x10] sm:$0xff]  ;;  %v3157_v54 = vld [vmem:[%s10051_s10 + $0x8] sm:$0xff] }
 0x3e8   :  { %v2701_v22 = vmax.f32 %v2699_v9, %v2700_v20  ;;  %v2708_v60 = vmax.f32 %v2706_v44, %v2707_v11  ;;  %2924 = vmatpush.msrb.mxu2 %v2817_v62  ;;  %v2820_v9 = vld [vmem:[%s10055_s28 + $0x40] sm:$0xff]  ;;  %v2814_v11 = vld [vmem:[%s10055_s28 + $0x10] sm:$0xff]  ;;  %v3194_v2 = vrot.slane %v8307_v37, 1  ;;  %v5586_v29 = vld [vmem:[%s10051_s10 + $0x1f8] sm:$0xff] }
 0x3e9   :  { %2962 = vmatpush.msra.mxu3 %v5511_v10  ;;  %2899 = vmatpush.msra.mxu1 %v2826_v57  ;;  %v5503_v44 = vld [vmem:[%s10055_s28 + $0x100] sm:$0xff]  ;;  %v3166_v10 = vld [vmem:[%s10051_s10 + $0x50] sm:$0xff]  ;;  %v5582_v62 = vld [vmem:[%s10051_s10 + $0x1d8] sm:$0xff] }
 0x3ea   :  { %v2760_v31 = vsel %vm711_vm7, %v2701_v22, %v2759_v24  ;;  %v2765_v41 = vsel %vm711_vm7, %v2708_v60, %v2764_v4  ;;  %2925 = vmatpush.msrb.mxu2 %v2815_v14  ;;  %v2816_v20 = vld [vmem:[%s10055_s28 + $0x20] sm:$0xff]  ;;  %v5522_v22 = vld [vmem:[%s10051_s10 + $0x88] sm:$0xff]  ;;  %v3195_v8 = vsel %vm717_vm9, %v3192_v6, %v3194_v2  ;;  %v5578_v14 = vld [vmem:[%s10051_s10 + $0x1b8] sm:$0xff] }
 0x3eb   :  { %2784 = vmatmul.f32.vlgmr.msra.gmra.mxu2 %v2760_v31  ;;  %2804 = vmatmul.f32.vlgmr.msra.gmra.mxu0 %v2765_v41  ;;  %v5521_v25 = vld [vmem:[%s10051_s10 + $0x80] sm:$0xff] }
 0x3ec   :  { %3236 = vmatpush.msra.mxu0 %v5536_v39  ;;  %2963 = vmatpush.msra.mxu3 %v5509_v16  ;;  %v3168_v27 = vld [vmem:[%s10051_s10 + $0x60] sm:$0xff]  ;;  %v3162_v39 = vld [vmem:[%s10051_s10 + $0x30] sm:$0xff]  ;;  %v5580_v16 = vld [vmem:[%s10051_s10 + $0x1c8] sm:$0xff] }
 0x3ed   :  { %2900 = vmatpush.msra.mxu1 %v2824_v47  ;;  %2926 = vmatpush.msrb.mxu2 %v2813_v55  ;;  %v3164_v57 = vld [vmem:[%s10051_s10 + $0x40] sm:$0xff]  ;;  %v5574_v55 = vld [vmem:[%s10051_s10 + $0x198] sm:$0xff] }
 0x3ee   :  { %3237 = vmatpush.msra.mxu0 %v5534_v52  ;;  %2964 = vmatpush.msra.mxu3 %v5507_v49  ;;  %v3160_v47 = vld [vmem:[%s10051_s10 + $0x20] sm:$0xff]  ;;  %v3158_v52 = vld [vmem:[%s10051_s10 + $0x10] sm:$0xff]  ;;  %v5576_v49 = vld [vmem:[%s10051_s10 + $0x1a8] sm:$0xff] }
 0x3ef   :  { %2901 = vmatpush.msra.mxu1 %v2822_v18  ;;  %v3156_v18 = vld [vmem:[%s10051_s10] sm:$0xff] }
 0x3f0   :  { %3238 = vmatpush.msra.mxu0 %v5532_v56  ;;  %2965 = vmatpush.msra.mxu3 %v5505_v3  ;;  %v5585_v56 = vld [vmem:[%s10051_s10 + $0x1f0] sm:$0xff]  ;;  %v5572_v3 = vld [vmem:[%s10051_s10 + $0x188] sm:$0xff] }
 0x3f1   :  { %2902 = vmatpush.msra.mxu1 %v2820_v9  ;;  %v5583_v9 = vld [vmem:[%s10051_s10 + $0x1e0] sm:$0xff] }
 0x3f2   :  { %3239 = vmatpush.msra.mxu0 %v5530_v51  ;;  %2966 = vmatpush.msra.mxu3 %v5503_v44  ;;  %v5630_v51 = vld [vmem:[%s10051_s10 + $0x2f8] sm:$0xff]  ;;  %v5581_v44 = vld [vmem:[%s10051_s10 + $0x1d0] sm:$0xff] }
 0x3f3   :  { %2903 = vmatpush.msra.mxu1 %v2818_v5  ;;  %v5628_v5 = vld [vmem:[%s10051_s10 + $0x2e8] sm:$0xff] }
 0x3f4   :  { %3240 = vmatpush.msra.mxu0 %v5528_v46  ;;  %v5579_v46 = vld [vmem:[%s10051_s10 + $0x1c0] sm:$0xff] }
 0x3f5   :  { %2904 = vmatpush.msra.mxu1 %v2816_v20  ;;  %v5626_v20 = vld [vmem:[%s10051_s10 + $0x2d8] sm:$0xff] }
 0x3f6   :  { %3241 = vmatpush.msra.mxu0 %v5526_v23  ;;  %v5577_v23 = vld [vmem:[%s10051_s10 + $0x1b0] sm:$0xff] }
 0x3f7   :  { %2905 = vmatpush.msra.mxu1 %v2814_v11  ;;  %v5624_v11 = vld [vmem:[%s10051_s10 + $0x2c8] sm:$0xff] }
 0x3f8   :  { %3242 = vmatpush.msra.mxu0 %v5524_v28  ;;  %v5575_v28 = vld [vmem:[%s10051_s10 + $0x1a0] sm:$0xff] }
 0x3f9   :  { %2906 = vmatpush.msra.mxu1 %v2812_v21  ;;  %v5573_v21 = vld [vmem:[%s10051_s10 + $0x190] sm:$0xff] }
 0x3fa   :  { %3243 = vmatpush.msra.mxu0 %v5522_v22  ;;  %v5620_v22 = vld [vmem:[%s10051_s10 + $0x2a8] sm:$0xff] }
 0x468   :  { %v2805_v43 = vpop.f32.mrf.mxu0 }
 0x46e   :  { %v2785_v53 = vpop.f32.mrf.mxu2 }
 0x46f   :  { %v2786_v60 = vadd.f32 %v5722_v32, %v2785_v53  ;;  %v5622_v32 = vld [vmem:[%s10051_s10 + $0x2b8] sm:$0xff]  ;;  %v5571_v53 = vld [vmem:[%s10051_s10 + $0x180] sm:$0xff] }
 0x471   :  { %v2806_v24 = vadd.f32 %v2805_v43, %v2786_v60  ;;  %v5618_v60 = vld [vmem:[%s10051_s10 + $0x298] sm:$0xff]  ;;  %v5629_v43 = vld [vmem:[%s10051_s10 + $0x2f0] sm:$0xff] }
 0x473   :  { %v2808_v4 = vmax.f32 %v2806_v24, 0.0  ;;  %v5616_v24 = vld [vmem:[%s10051_s10 + $0x288] sm:$0xff] }
 0x475   :  { %2810 = vst.msk [vmem:[#allocation4 + $0x1] sm:$0x3f] %vm2809_vm15, %v2808_v4  ;;  %v5627_v4 = vld [vmem:[%s10051_s10 + $0x2e0] sm:$0xff] }
 0x47c   :  { %v2811_v31 = vld [vmem:[#allocation4] sm:$0xff] }
 0x47d   :  { %v2846_v41 = vrot.slane %v2811_v31, 1  ;;  %5502 = vmatmul.msk.f32.vlgmr.msrb.gmra.mxu2 %vm1920_vm12, %v2811_v31  ;;  %v2948_v36 = vrot.slane %v2811_v31, 2 }
 0x47f   :  { %5499 = vmatmul.msk.f32.vlgmr.msrb.gmra.mxu1 %vm1920_vm12, %v2846_v41  ;;  %5500 = vmatmul.msk.f32.vlgmr.msrb.gmra.mxu3 %vm1920_vm12, %v2846_v41  ;;  %v3414_v41 = vrot.slane %v8276_v12, 3 }
 0x480   :  { %5520 = vmatmul.msk.f32.vlgmr.msrb.gmra.mxu0 %vm1920_vm12, %v2948_v36  ;;  %3210 = vmatpush.msrb.mxu3 %v5535_v30  ;;  %v3413_v30 = vrot.slane %v8284_v45, 3 }
 0x481   :  { %3294 = vmatpush.msrb.mxu0 %v3171_v42  ;;  %v5621_v42 = vld [vmem:[%s10051_s10 + $0x2b0] sm:$0xff] }
 0x482   :  { %3211 = vmatpush.msrb.mxu3 %v5533_v61  ;;  %v3415_v61 = vsel %vm2192_vm13, %v3413_v30, %v3414_v41  ;;  %v3078_v30 = vld [vmem:[%s9990_s12 + $0x90] sm:$0xff] }
 0x483   :  { %3295 = vmatpush.msrb.mxu0 %v3169_v15  ;;  %v5619_v15 = vld [vmem:[%s10051_s10 + $0x2a0] sm:$0xff] }
 0x484   :  { %3212 = vmatpush.msrb.mxu3 %v5531_v33  ;;  %v5617_v33 = vld [vmem:[%s10051_s10 + $0x290] sm:$0xff] }
 0x485   :  { %3296 = vmatpush.msrb.mxu0 %v3167_v7  ;;  %v3416_v7 = vrot.slane %v8307_v37, 3 }
 0x486   :  { %3213 = vmatpush.msrb.mxu3 %v5529_v26  ;;  %v5615_v26 = vld [vmem:[%s10051_s10 + $0x280] sm:$0xff] }
 0x487   :  { %5501 = vmatmul.msk.f32.vlgmr.msra.gmra.mxu1 %vm1920_vm12, %v2811_v31  ;;  %5519 = vmatmul.msk.f32.vlgmr.msra.gmra.mxu3 %vm1920_vm12, %v2948_v36  ;;  %v5625_v31 = vld [vmem:[%s10051_s10 + $0x2d0] sm:$0xff]  ;;  %v5623_v36 = vld [vmem:[%s10051_s10 + $0x2c0] sm:$0xff]  ;;  %v3417_v6 = vsel %vm2192_vm13, %v3414_v41, %v3416_v7  ;;  %vm3146_vm13 = vcmask 517121  }
 0x488   :  { %5540 = vmatmul.msk.f32.vlgmr.msra.gmra.mxu0 %vm1920_vm12, %v3193_v0  ;;  %3214 = vmatpush.msrb.mxu3 %v5527_v50  ;;  %v3583_v50 = vrot.slane %v8284_v45, 5 }
 0x489   :  { %3297 = vmatpush.msrb.mxu0 %v3165_v34 }
 0x48a   :  { %3215 = vmatpush.msrb.mxu3 %v5525_v63  ;;  %v3585_v34 = vsel %vm1161_vm10, %v3583_v50, %v3584_v13  ;;  %v3076_v50 = vld [vmem:[%s9990_s12 + $0x80] sm:$0xff] }
 0x48b   :  { %3298 = vmatpush.msrb.mxu0 %v3163_v38  ;;  %v3075_v38 = vld [vmem:[%s9990_s12 + $0x78] sm:$0xff] }
 0x48c   :  { %3216 = vmatpush.msrb.mxu3 %v5523_v1  ;;  %v3091_v1 = vld [vmem:[%s9990_s12 + $0xf8] sm:$0xff]  ;;  %3103 = vmatpush.msrb.mxu1 %v3075_v38  ;;  %v5563_v38 = vld [vmem:[%s10051_s10 + $0x170] sm:$0xff] }
 0x48d   :  { %3299 = vmatpush.msrb.mxu0 %v3161_v40  ;;  %v3074_v40 = vld [vmem:[%s9990_s12 + $0x70] sm:$0xff]  ;;  %3123 = vmatpush.msra.mxu2 %v3091_v1  ;;  %v5564_v1 = vld [vmem:[%s10051_s10 + $0x178] sm:$0xff] }
 0x48e   :  { %3217 = vmatpush.msrb.mxu3 %v5521_v25  ;;  %v3090_v25 = vld [vmem:[%s9990_s12 + $0xf0] sm:$0xff]  ;;  %3104 = vmatpush.msrb.mxu1 %v3074_v40  ;;  %v5561_v40 = vld [vmem:[%s10051_s10 + $0x160] sm:$0xff] }
 0x48f   :  { %5537 = vmatmul.msk.f32.vlgmr.msrb.gmra.mxu3 %vm1920_vm12, %v3193_v0  ;;  %3300 = vmatpush.msrb.mxu0 %v3159_v35  ;;  %v3586_v0 = vrot.slane %v8307_v37, 5  ;;  %v3089_v35 = vld [vmem:[%s9990_s12 + $0xe8] sm:$0xff] }
 0x490   :  { %5541 = vmatmul.msk.f32.gmra.mxu0 %vm1920_vm12, %v3195_v8  ;;  %3268 = vmatpush.msra.mxu3 %v3170_v58  ;;  %v3072_v58 = vld [vmem:[%s9990_s12 + $0x60] sm:$0xff] }
 0x491   :  { %3301 = vmatpush.msrb.mxu0 %v3157_v54  ;;  %v3587_v63 = vsel %vm1161_vm10, %v3584_v13, %v3586_v0  ;;  %3124 = vmatpush.msra.mxu2 %v3090_v25  ;;  %v3088_v54 = vld [vmem:[%s9990_s12 + $0xe0] sm:$0xff]  ;;  %v5562_v25 = vld [vmem:[%s10051_s10 + $0x168] sm:$0xff] }
 0x492   :  { %3269 = vmatpush.msra.mxu3 %v3168_v27  ;;  %v3087_v27 = vld [vmem:[%s9990_s12 + $0xd8] sm:$0xff]  ;;  %v3060_v13 = vld [vmem:[%s9990_s12] sm:$0xff] }
 0x493   :  { %3458 = vmatpush.msra.mxu0 %v5586_v29  ;;  %3125 = vmatpush.msra.mxu2 %v3089_v35  ;;  %v5559_v35 = vld [vmem:[%s10051_s10 + $0x150] sm:$0xff] }
 0x494   :  { %3270 = vmatpush.msra.mxu3 %v3166_v10 }
 0x495   :  { %3459 = vmatpush.msra.mxu0 %v5584_v17  ;;  %3126 = vmatpush.msra.mxu2 %v3088_v54  ;;  %v3070_v17 = vld [vmem:[%s9990_s12 + $0x50] sm:$0xff] }
 0x496   :  { %3271 = vmatpush.msra.mxu3 %v3164_v57  ;;  %v3086_v57 = vld [vmem:[%s9990_s12 + $0xd0] sm:$0xff] }
 0x497   :  { %3460 = vmatpush.msra.mxu0 %v5582_v62  ;;  %5538 = vmatmul.msk.f32.gmra.mxu3 %vm1920_vm12, %v3195_v8  ;;  %v3071_v8 = vld [vmem:[%s9990_s12 + $0x58] sm:$0xff]  ;;  %v3069_v62 = vld [vmem:[%s9990_s12 + $0x48] sm:$0xff] }
 0x498   :  { %5542 = vmatmul.msk.f32.gmra.mxu0 %vm1920_vm12, %v3194_v2  ;;  %3272 = vmatpush.msra.mxu3 %v3162_v39  ;;  %v3085_v39 = vld [vmem:[%s9990_s12 + $0xc8] sm:$0xff] }
 0x499   :  { %3461 = vmatpush.msra.mxu0 %v5580_v16  ;;  %3127 = vmatpush.msra.mxu2 %v3087_v27  ;;  %v8533_v16 = vld [vmem:[%s10057_s3] sm:$0x3]  ;;  %v5558_v27 = vld [vmem:[%s10051_s10 + $0x148] sm:$0xff] }
 0x49a   :  { %3273 = vmatpush.msra.mxu3 %v3160_v47  ;;  %v3068_v47 = vld [vmem:[%s9990_s12 + $0x40] sm:$0xff] }
 0x49b   :  { %3462 = vmatpush.msra.mxu0 %v5578_v14  ;;  %3128 = vmatpush.msra.mxu2 %v3086_v57  ;;  %v3084_v14 = vld [vmem:[%s9990_s12 + $0xc0] sm:$0xff]  ;;  %v5555_v57 = vld [vmem:[%s10051_s10 + $0x130] sm:$0xff] }
 0x49c   :  { %3274 = vmatpush.msra.mxu3 %v3158_v52 }
 0x49d   :  { %3463 = vmatpush.msra.mxu0 %v5576_v49  ;;  %3129 = vmatpush.msra.mxu2 %v3085_v39 }
 0x49e   :  { %3275 = vmatpush.msra.mxu3 %v3156_v18 }
 0x49f   :  { %5539 = vmatmul.msk.f32.gmra.mxu3 %vm1920_vm12, %v3194_v2  ;;  %3464 = vmatpush.msra.mxu0 %v5574_v55  ;;  %v3073_v2 = vld [vmem:[%s9990_s12 + $0x68] sm:$0xff]  ;;  %v2995_v55 = vperm.slane %v8533_v16, 1 }
 0x4a0   :  { %5546 = vmatmul.msk.f32.vlgmr.msrb.gmra.mxu0 %vm1920_vm12, %v8284_v45  ;;  %3432 = vmatpush.msrb.mxu3 %v5585_v56  ;;  %v3067_v56 = vld [vmem:[%s9990_s12 + $0x38] sm:$0xff] }
 0x4a1   :  { %3465 = vmatpush.msra.mxu0 %v5572_v3  ;;  %3105 = vmatpush.msrb.mxu1 %v3073_v2  ;;  %v3083_v3 = vld [vmem:[%s9990_s12 + $0xb8] sm:$0xff] }
 0x4a2   :  { %3433 = vmatpush.msrb.mxu3 %v5583_v9  ;;  %3130 = vmatpush.msra.mxu2 %v3084_v14 }
 0x4a3   :  { %3628 = vmatpush.msrb.mxu0 %v5630_v51  ;;  %3106 = vmatpush.msrb.mxu1 %v3072_v58  ;;  %v5560_v58 = vld [vmem:[%s10051_s10 + $0x158] sm:$0xff] }
 0x4a4   :  { %3434 = vmatpush.msrb.mxu3 %v5581_v44  ;;  %v3066_v44 = vld [vmem:[%s9990_s12 + $0x30] sm:$0xff]  ;;  %3131 = vmatpush.msra.mxu2 %v3083_v3 }
 0x4a5   :  { %3629 = vmatpush.msrb.mxu0 %v5628_v5  ;;  %3107 = vmatpush.msrb.mxu1 %v3071_v8  ;;  %v3082_v5 = vld [vmem:[%s9990_s12 + $0xb0] sm:$0xff]  ;;  %v5557_v8 = vld [vmem:[%s10051_s10 + $0x140] sm:$0xff] }
 0x4a6   :  { %3435 = vmatpush.msrb.mxu3 %v5579_v46  ;;  %3132 = vmatpush.msra.mxu2 %v3082_v5 }
 0x4a7   :  { %3630 = vmatpush.msrb.mxu0 %v5626_v20  ;;  %5543 = vmatmul.msk.f32.vlgmr.msra.gmra.mxu3 %vm1920_vm12, %v8284_v45 }
 0x4a8   :  { %5547 = vmatmul.msk.f32.gmra.mxu0 %vm1920_vm12, %v8276_v12  ;;  %3436 = vmatpush.msrb.mxu3 %v5577_v23  ;;  %v3065_v23 = vld [vmem:[%s9990_s12 + $0x28] sm:$0xff] }
 0x4a9   :  { %3631 = vmatpush.msrb.mxu0 %v5624_v11  ;;  %3108 = vmatpush.msrb.mxu1 %v3070_v17  ;;  %v3081_v11 = vld [vmem:[%s9990_s12 + $0xa8] sm:$0xff] }
 0x4aa   :  { %3437 = vmatpush.msrb.mxu3 %v5575_v28  ;;  %3133 = vmatpush.msra.mxu2 %v3081_v11  ;;  %v5549_v11 = vld [vmem:[%s10051_s10 + $0x100] sm:$0xff] }
 0x4ab   :  { %3632 = vmatpush.msrb.mxu0 %v5622_v32  ;;  %3109 = vmatpush.msrb.mxu1 %v3069_v62  ;;  %v2994_v32 = vperm.slane %v8533_v16, 0  ;;  %v5556_v62 = vld [vmem:[%s10051_s10 + $0x138] sm:$0xff] }
 0x4ac   :  { %3438 = vmatpush.msrb.mxu3 %v5573_v21  ;;  %v3064_v21 = vld [vmem:[%s9990_s12 + $0x20] sm:$0xff] }
 0x4ad   :  { %3633 = vmatpush.msrb.mxu0 %v5620_v22  ;;  %3110 = vmatpush.msrb.mxu1 %v3068_v47  ;;  %v3080_v22 = vld [vmem:[%s9990_s12 + $0xa0] sm:$0xff] }
 0x4ae   :  { %3439 = vmatpush.msrb.mxu3 %v5571_v53  ;;  %3134 = vmatpush.msra.mxu2 %v3080_v22  ;;  %v5553_v47 = vld [vmem:[%s10051_s10 + $0x120] sm:$0xff] }
 0x4af   :  { %5544 = vmatmul.msk.f32.gmra.mxu3 %vm1920_vm12, %v8276_v12  ;;  %3634 = vmatpush.msrb.mxu0 %v5618_v60 }
 0x4b0   :  { %5548 = vmatmul.msk.f32.gmra.mxu0 %vm1920_vm12, %v8307_v37  ;;  %3602 = vmatpush.msra.mxu3 %v5629_v43 }
 0x4b1   :  { %3635 = vmatpush.msrb.mxu0 %v5616_v24  ;;  %3111 = vmatpush.msrb.mxu1 %v3067_v56  ;;  %v3063_v24 = vld [vmem:[%s9990_s12 + $0x18] sm:$0xff] }
 0x4b2   :  { %3603 = vmatpush.msra.mxu3 %v5627_v4  ;;  %v3079_v4 = vld [vmem:[%s9990_s12 + $0x98] sm:$0xff] }
 0x4b3   :  { %3112 = vmatpush.msrb.mxu1 %v3066_v44  ;;  %3135 = vmatpush.msra.mxu2 %v3079_v4 }
 0x4b4   :  { %3604 = vmatpush.msra.mxu3 %v5625_v31 }
 0x4b5   :  { %3113 = vmatpush.msrb.mxu1 %v3065_v23  ;;  %3136 = vmatpush.msra.mxu2 %v3078_v30  ;;  %v5552_v23 = vld [vmem:[%s10051_s10 + $0x118] sm:$0xff] }
 0x4b6   :  { %3605 = vmatpush.msra.mxu3 %v5623_v36  ;;  %v3062_v36 = vld [vmem:[%s9990_s12 + $0x10] sm:$0xff] }
 0x4b7   :  { %5545 = vmatmul.msk.f32.gmra.mxu3 %vm1920_vm12, %v8307_v37  ;;  %3114 = vmatpush.msrb.mxu1 %v3064_v21 }
 0x4b8   :  { %5590 = vmatmul.msk.f32.vlgmr.msra.gmra.mxu0 %vm1920_vm12, %v3415_v61  ;;  %3606 = vmatpush.msra.mxu3 %v5621_v42 }
 0x4b9   :  { %3115 = vmatpush.msrb.mxu1 %v3063_v24 }
 0x4ba   :  { %3607 = vmatpush.msra.mxu3 %v5619_v15  ;;  %v3061_v15 = vld [vmem:[%s9990_s12 + $0x8] sm:$0xff] }
 0x4bb   :  { %3116 = vmatpush.msrb.mxu1 %v3062_v36 }
 0x4bc   :  { %3608 = vmatpush.msra.mxu3 %v5617_v33  ;;  %v3077_v33 = vld [vmem:[%s9990_s12 + $0x88] sm:$0xff] }
 0x4bd   :  { %3117 = vmatpush.msrb.mxu1 %v3061_v15  ;;  %3137 = vmatpush.msra.mxu2 %v3077_v33 }
 0x4be   :  { %3609 = vmatpush.msra.mxu3 %v5615_v26 }
 0x4bf   :  { %5587 = vmatmul.msk.f32.vlgmr.msrb.gmra.mxu3 %vm1920_vm12, %v3415_v61  ;;  %3118 = vmatpush.msrb.mxu1 %v3060_v13 }
 0x4c0   :  { %5591 = vmatmul.msk.f32.gmra.mxu0 %vm1920_vm12, %v3417_v6  ;;  %3138 = vmatpush.msra.mxu2 %v3076_v50 }
 0x4c1   :  { %3347 = vmatpush.msra.mxu1 %v5563_v38 }
 0x4c2   :  { %3373 = vmatpush.msrb.mxu2 %v5564_v1 }
 0x4c3   :  { %3348 = vmatpush.msra.mxu1 %v5561_v40 }
 0x4c4   :  { %3374 = vmatpush.msrb.mxu2 %v5562_v25 }
 0x4c5   :  { %3349 = vmatpush.msra.mxu1 %v5559_v35 }
 0x4c6   :  { %3375 = vmatpush.msrb.mxu2 %v5560_v58 }
 0x4c7   :  { %5588 = vmatmul.msk.f32.gmra.mxu3 %vm1920_vm12, %v3417_v6  ;;  %3350 = vmatpush.msra.mxu1 %v5557_v8 }
 0x4c8   :  { %5592 = vmatmul.msk.f32.gmra.mxu0 %vm1920_vm12, %v3416_v7  ;;  %3376 = vmatpush.msrb.mxu2 %v5558_v27 }
 0x4c9   :  { %3351 = vmatpush.msra.mxu1 %v5555_v57  ;;  %v5608_v57 = vld [vmem:[%s10051_s10 + $0x278] sm:$0xff] }
 0x4ca   :  { %3377 = vmatpush.msrb.mxu2 %v5556_v62 }
 0x4cb   :  { %3352 = vmatpush.msra.mxu1 %v5553_v47  ;;  %v5606_v47 = vld [vmem:[%s10051_s10 + $0x268] sm:$0xff] }
 0x4cf   :  { %5589 = vmatmul.msk.f32.gmra.mxu3 %vm1920_vm12, %v3416_v7 }
 0x4d0   :  { %5634 = vmatmul.msk.f32.vlgmr.msrb.gmra.mxu0 %vm1920_vm12, %v3585_v34 }
 0x4d7   :  { %5631 = vmatmul.msk.f32.vlgmr.msra.gmra.mxu3 %vm1920_vm12, %v3585_v34 }
 0x4d8   :  { %5635 = vmatmul.msk.f32.gmra.mxu0 %vm1920_vm12, %v3587_v63 }
 0x4df   :  { %5632 = vmatmul.msk.f32.gmra.mxu3 %vm1920_vm12, %v3587_v63 }
 0x4e0   :  { %5636 = vmatmul.msk.f32.gmra.mxu0 %vm1920_vm12, %v3586_v0 }
 0x4e7   :  { %5633 = vmatmul.msk.f32.gmra.mxu3 %vm1920_vm12, %v3586_v0 }
 0x4fc   :  { %v2866_v29 = vpop.f32.mrf.mxu1 }
 0x4fd   :  { %v2988_v10 = vpop.f32.mrf.mxu0 }
 0x500   :  { %v2928_v52 = vpop.f32.mrf.mxu2 }
 0x502   :  { %v2886_v49 = vpop.f32.mrf.mxu3 }
 0x503   :  { %v2929_v18 = vadd.f32 %v2928_v52, %v2886_v49 }
 0x504   :  { %v2908_v46 = vpop.f32.mrf.mxu1 }
 0x505   :  { %v2992_v9 = vadd.f32 %v2988_v10, %v2929_v18  ;;  %v8548_v51 = vpop.f32.mrf.mxu0  ;;  %v2909_v28 = vadd.f32 %v2908_v46, %v2866_v29  ;;  %v5554_v18 = vld [vmem:[%s10051_s10 + $0x128] sm:$0xff] }
 0x506   :  { %3378 = vmatpush.msrb.mxu2 %v5554_v18  ;;  %v3329_v18 = vrot.slane %v8276_v12, 2 }
 0x507   :  { %v2999_v20 = vadd.f32 %v2995_v55, %v2992_v9 }
 0x508   :  { %3379 = vmatpush.msrb.mxu2 %v5552_v23  ;;  %v5599_v23 = vld [vmem:[%s10051_s10 + $0x230] sm:$0xff] }
 0x509   :  { %v3001_v60 = vmax.f32 %v2999_v20, 0.0  ;;  %v5551_v20 = vld [vmem:[%s10051_s10 + $0x110] sm:$0xff] }
 0x50a   :  { %v2968_v53 = vpop.f32.mrf.mxu3  ;;  %3353 = vmatpush.msra.mxu1 %v5551_v20  ;;  %v5600_v20 = vld [vmem:[%s10051_s10 + $0x238] sm:$0xff] }
 0x50b   :  { %v2991_v43 = vadd.f32 %v2968_v53, %v2909_v28  ;;  %v3004_v42 = vrot.slane %v3001_v60, 7  ;;  %v5550_v28 = vld [vmem:[%s10051_s10 + $0x108] sm:$0xff] }
 0x50c   :  { %3354 = vmatpush.msra.mxu1 %v5549_v11  ;;  %3380 = vmatpush.msrb.mxu2 %v5550_v28  ;;  %v5598_v28 = vld [vmem:[%s10051_s10 + $0x228] sm:$0xff] }
 0x50d   :  { %v2998_v31 = vadd.f32 %v2994_v32, %v2991_v43  ;;  %v8579_v41 = vpop.f32.mrf.mxu0 }
 0x50f   :  { %v3000_v61 = vmax.f32 %v2998_v31, 0.0 }
 0x511   :  { %v3005_v7 = vsel %vm697_vm2, %v3000_v61, %v3004_v42  ;;  %v3006_v26 = vsel %vm699_vm3, %v3000_v61, %v3004_v42  ;;  %v3008_v6 = vsel %vm702_vm4, %v3000_v61, %v3004_v42  ;;  %v3010_v54 = vsel %vm705_vm5, %v3000_v61, %v3004_v42 }
 0x512   :  { %v3007_v34 = vrot.slane %v3006_v26, 1  ;;  %v3009_v0 = vrot.slane %v3008_v6, 2  ;;  %3016 = vst [vmem:[#allocation1] ss:$9 sm:$0xff] %v3005_v7  ;;  %v8602_v63 = vpop.f32.mrf.mxu3  ;;  %v3012_v29 = vsel %vm708_vm6, %v3000_v61, %v3004_v42  ;;  %v3014_v10 = vsel %vm711_vm7, %v3000_v61, %v3004_v42 }
 0x513   :  { %v3011_v39 = vrot.slane %v3010_v54, 3  ;;  %v3013_v14 = vrot.slane %v3012_v29, 4  ;;  %v3015_v56 = vrot.slane %v3014_v10, 5 }
 0x514   :  { %3018 = vst [vmem:[#allocation1 + $0x1] ss:$9 sm:$0xff] %v3007_v34 }
 0x515   :  { %3020 = vst [vmem:[#allocation1 + $0x2] ss:$9 sm:$0xff] %v3009_v0  ;;  %v8616_v2 = vpop.f32.mrf.mxu0 }
 0x51a   :  { %v8633_v17 = vpop.f32.mrf.mxu3 }
 0x51c   :  { %v3021_v52 = vld [vmem:[#allocation1] sm:$0xff]  ;;  %v3022_v49 = vld [vmem:[#allocation1 + $0x9] sm:$0xff] }
 0x51d   :  { %v8647_v3 = vpop.f32.mrf.mxu0  ;;  %3023 = vst [vmem:[#allocation1] ss:$9 sm:$0xff] %v3011_v39  ;;  %v3032_v9 = vsel %vm1161_vm10, %v3021_v52, -inf  ;;  %v3039_v44 = vsel %vm1161_vm10, %v3022_v49, -inf  ;;  %v5604_v52 = vld [vmem:[%s10051_s10 + $0x258] sm:$0xff]  ;;  %v5603_v49 = vld [vmem:[%s10051_s10 + $0x250] sm:$0xff] }
 0x51e   :  { %3024 = vst [vmem:[#allocation1 + $0x1] ss:$9 sm:$0xff] %v3013_v14  ;;  %v3033_v5 = vrot.slane %v3032_v9, 4  ;;  %v3040_v46 = vrot.slane %v3039_v44, 4  ;;  %v5605_v14 = vld [vmem:[%s10051_s10 + $0x260] sm:$0xff] }
 0x51f   :  { %3025 = vst [vmem:[#allocation1 + $0x2] ss:$9 sm:$0xff] %v3015_v56  ;;  %v5602_v56 = vld [vmem:[%s10051_s10 + $0x248] sm:$0xff] }
 0x520   :  { %v3034_v21 = vmax.f32 %v3032_v9, %v3033_v5  ;;  %v3041_v53 = vmax.f32 %v3039_v44, %v3040_v46  ;;  %v5601_v9 = vld [vmem:[%s10051_s10 + $0x240] sm:$0xff]  ;;  %v3328_v5 = vrot.slane %v8284_v45, 2 }
 0x522   :  { %v3225_v22 = vpop.f32.mrf.mxu3  ;;  %v3035_v43 = vrot.slane %v3034_v21, 2  ;;  %v3042_v31 = vrot.slane %v3041_v53, 2  ;;  %v3330_v11 = vsel %vm266_vm0, %v3328_v5, %v3329_v18 }
 0x524   :  { %v3036_v15 = vmax.f32 %v3034_v21, %v3035_v43  ;;  %v3043_v26 = vmax.f32 %v3041_v53, %v3042_v31  ;;  %v5597_v21 = vld [vmem:[%s10051_s10 + $0x220] sm:$0xff]  ;;  %v5595_v53 = vld [vmem:[%s10051_s10 + $0x210] sm:$0xff]  ;;  %v3331_v43 = vrot.slane %v8307_v37, 2  ;;  %v5652_v31 = vld [vmem:[%s10051_s10 + $0x378] sm:$0xff] }
 0x525   :  { %v8663_v60 = vpop.f32.mrf.mxu0 }
 0x526   :  { %v3026_v24 = vld [vmem:[#allocation1] sm:$0xff]  ;;  %v3027_v4 = vld [vmem:[#allocation1 + $0x9] sm:$0xff]  ;;  %v3037_v0 = vrot.slane %v3036_v15, 1  ;;  %v3044_v40 = vrot.slane %v3043_v26, 1 }
 0x527   :  { %v3046_v36 = vsel %vm1161_vm10, %v3026_v24, -inf  ;;  %v3053_v30 = vsel %vm1161_vm10, %v3027_v4, -inf  ;;  %v5594_v24 = vld [vmem:[%s10051_s10 + $0x208] sm:$0xff]  ;;  %v5593_v4 = vld [vmem:[%s10051_s10 + $0x200] sm:$0xff] }
 0x528   :  { %v3047_v42 = vrot.slane %v3046_v36, 4  ;;  %v3054_v61 = vrot.slane %v3053_v30, 4  ;;  %v3038_v54 = vmax.f32 %v3036_v15, %v3037_v0  ;;  %v3045_v27 = vmax.f32 %v3043_v26, %v3044_v40  ;;  %v5648_v15 = vld [vmem:[%s10051_s10 + $0x358] sm:$0xff]  ;;  %v5646_v26 = vld [vmem:[%s10051_s10 + $0x348] sm:$0xff]  ;;  %v5641_v0 = vld [vmem:[%s10051_s10 + $0x320] sm:$0xff] }
 0x529   :  { %v5639_v40 = vld [vmem:[%s10051_s10 + $0x310] sm:$0xff] }
 0x52a   :  { %v8667_v33 = vpop.f32.mrf.mxu3  ;;  %v3048_v7 = vmax.f32 %v3046_v36, %v3047_v42  ;;  %v3055_v6 = vmax.f32 %v3053_v30, %v3054_v61  ;;  %v5651_v36 = vld [vmem:[%s10051_s10 + $0x370] sm:$0xff]  ;;  %v3332_v30 = vsel %vm266_vm0, %v3329_v18, %v3331_v43  ;;  %v5650_v42 = vld [vmem:[%s10051_s10 + $0x368] sm:$0xff]  ;;  %v5649_v61 = vld [vmem:[%s10051_s10 + $0x360] sm:$0xff]  ;;  %vm3144_vm0 = vcmask 516096  }
 0x52c   :  { %v3049_v13 = vrot.slane %v3048_v7, 2  ;;  %v3056_v50 = vrot.slane %v3055_v6, 2 }
 0x52d   :  { %v3309_v34 = vpop.f32.mrf.mxu0 }
 0x52e   :  { %v8670_v38 = vadd.f32 %v3309_v34, %v8616_v2  ;;  %v3050_v1 = vmax.f32 %v3048_v7, %v3049_v13  ;;  %v3057_v25 = vmax.f32 %v3055_v6, %v3056_v50  ;;  %v5607_v2 = vld [vmem:[%s10051_s10 + $0x270] sm:$0xff]  ;;  %v5645_v6 = vld [vmem:[%s10051_s10 + $0x340] sm:$0xff]  ;;  %v5644_v13 = vld [vmem:[%s10051_s10 + $0x338] sm:$0xff] }
 0x52f   :  { %v5647_v7 = vld [vmem:[%s10051_s10 + $0x350] sm:$0xff]  ;;  %v5642_v34 = vld [vmem:[%s10051_s10 + $0x328] sm:$0xff] }
 0x530   :  { %v3051_v35 = vrot.slane %v3050_v1, 1  ;;  %v3058_v58 = vrot.slane %v3057_v25, 1  ;;  %v5643_v50 = vld [vmem:[%s10051_s10 + $0x330] sm:$0xff] }
 0x532   :  { %v3052_v8 = vmax.f32 %v3050_v1, %v3051_v35  ;;  %v3059_v29 = vmax.f32 %v3057_v25, %v3058_v58  ;;  %v8672_v10 = vpop.f32.mrf.mxu3  ;;  %v5640_v1 = vld [vmem:[%s10051_s10 + $0x318] sm:$0xff]  ;;  %v3499_v25 = vrot.slane %v8276_v12, 4  ;;  %v5638_v35 = vld [vmem:[%s10051_s10 + $0x308] sm:$0xff]  ;;  %v5637_v58 = vld [vmem:[%s10051_s10 + $0x300] sm:$0xff] }
 0x534   :  { %v3099_v62 = vsel %vm699_vm3, %v3052_v8, %v3038_v54  ;;  %v3100_v39 = vsel %vm699_vm3, %v3059_v29, %v3045_v27  ;;  %v3498_v54 = vrot.slane %v8284_v45, 4  ;;  %v3501_v27 = vrot.slane %v8307_v37, 4 }
 0x535   :  { %3119 = vmatmul.f32.vlgmr.msrb.gmra.mxu1 %v3099_v62  ;;  %3139 = vmatmul.f32.vlgmr.msra.gmra.mxu2 %v3100_v39  ;;  %v3671_v39 = vrot.slane %v8307_v37, 6 }
 0x536   :  { %3543 = vmatpush.msra.mxu2 %v5608_v57  ;;  %3517 = vmatpush.msrb.mxu1 %v5607_v2  ;;  %v3500_v8 = vsel %vm2279_vm1, %v3498_v54, %v3499_v25  ;;  %v3502_v29 = vsel %vm2279_vm1, %v3499_v25, %v3501_v27  ;;  %v3669_v57 = vrot.slane %v8276_v12, 6  ;;  %v3668_v2 = vrot.slane %v8284_v45, 6  ;;  %v5723_v45 = vld [vmem:[%s9991_s13] ss:$0 sm:$0xff] }
 0x538   :  { %3544 = vmatpush.msra.mxu2 %v5606_v47  ;;  %3518 = vmatpush.msrb.mxu1 %v5605_v14  ;;  %v3670_v62 = vsel %vm2452_vm11, %v3668_v2, %v3669_v57  ;;  %v3672_v47 = vsel %vm2452_vm11, %v3669_v57, %v3671_v39 }
 0x53a   :  { %v3283_v44 = vpop.f32.mrf.mxu3  ;;  %3545 = vmatpush.msra.mxu2 %v5604_v52  ;;  %3519 = vmatpush.msrb.mxu1 %v5603_v49 }
 0x53b   :  { %v8702_v46 = vadd.f32 %v3283_v44, %v3225_v22  ;;  %v5596_v22 = vld [vmem:[%s10051_s10 + $0x218] sm:$0xff] }
 0x53c   :  { %3546 = vmatpush.msra.mxu2 %v5602_v56  ;;  %3520 = vmatpush.msrb.mxu1 %v5601_v9 }
 0x53d   :  { %5565 = vmatmul.msk.f32.vlgmr.msra.gmra.mxu1 %vm1920_vm12, %v3330_v11  ;;  %5568 = vmatmul.msk.f32.vlgmr.msrb.gmra.mxu2 %vm1920_vm12, %v3330_v11 }
 0x53e   :  { %3547 = vmatpush.msra.mxu2 %v5600_v20  ;;  %3521 = vmatpush.msrb.mxu1 %v5599_v23  ;;  %v3467_v20 = vpop.f32.mrf.mxu0 }
 0x540   :  { %3548 = vmatpush.msra.mxu2 %v5598_v28  ;;  %3522 = vmatpush.msrb.mxu1 %v5597_v21 }
 0x542   :  { %3549 = vmatpush.msra.mxu2 %v5596_v22  ;;  %3523 = vmatpush.msrb.mxu1 %v5595_v53  ;;  %v3441_v11 = vpop.f32.mrf.mxu3 }
 0x544   :  { %3550 = vmatpush.msra.mxu2 %v5594_v24  ;;  %3524 = vmatpush.msrb.mxu1 %v5593_v4 }
 0x545   :  { %5566 = vmatmul.msk.f32.gmra.mxu1 %vm1920_vm12, %v3332_v30  ;;  %5569 = vmatmul.msk.f32.gmra.mxu2 %vm1920_vm12, %v3332_v30 }
 0x546   :  { %3713 = vmatpush.msrb.mxu2 %v5652_v31  ;;  %3687 = vmatpush.msra.mxu1 %v5651_v36  ;;  %v3470_v53 = vpop.f32.mrf.mxu0 }
 0x548   :  { %3714 = vmatpush.msrb.mxu2 %v5650_v42  ;;  %3688 = vmatpush.msra.mxu1 %v5649_v61  ;;  %v3278_v42 = vadd.f32 %v8667_v33, %v8602_v63  ;;  %v3281_v63 = vadd.f32 %v8672_v10, %v8633_v17  ;;  %v3933_v33 = vld [vmem:[%s10054_s29 + $0x70] sm:$0xff]  ;;  %v3932_v10 = vld [vmem:[%s10054_s29 + $0x68] sm:$0xff] }
 0x54a   :  { %3715 = vmatpush.msrb.mxu2 %v5648_v15  ;;  %3689 = vmatpush.msra.mxu1 %v5647_v7 }
 0x54c   :  { %3716 = vmatpush.msrb.mxu2 %v5646_v26  ;;  %3690 = vmatpush.msra.mxu1 %v5645_v6 }
 0x54d   :  { %5567 = vmatmul.msk.f32.gmra.mxu1 %vm1920_vm12, %v3331_v43  ;;  %5570 = vmatmul.msk.f32.gmra.mxu2 %vm1920_vm12, %v3331_v43  ;;  %v3444_v43 = vpop.f32.mrf.mxu3 }
 0x54e   :  { %3717 = vmatpush.msrb.mxu2 %v5644_v13  ;;  %3691 = vmatpush.msra.mxu1 %v5643_v50  ;;  %v8818_v31 = vpop.f32.mrf.mxu0 }
 0x550   :  { %3718 = vmatpush.msrb.mxu2 %v5642_v34  ;;  %3692 = vmatpush.msra.mxu1 %v5641_v0 }
 0x552   :  { %3719 = vmatpush.msrb.mxu2 %v5640_v1  ;;  %3693 = vmatpush.msra.mxu1 %v5639_v40  ;;  %v3307_v40 = vadd.f32 %v8663_v60, %v8579_v41  ;;  %v3949_v41 = vld [vmem:[%s10054_s29 + $0xf0] sm:$0xff] }
 0x554   :  { %3720 = vmatpush.msrb.mxu2 %v5638_v35  ;;  %3694 = vmatpush.msra.mxu1 %v5637_v58  ;;  %v3948_v35 = vld [vmem:[%s10054_s29 + $0xe8] sm:$0xff] }
 0x555   :  { %5609 = vmatmul.msk.f32.vlgmr.msrb.gmra.mxu1 %vm1920_vm12, %v3500_v8  ;;  %5612 = vmatmul.msk.f32.vlgmr.msra.gmra.mxu2 %vm1920_vm12, %v3500_v8  ;;  %v3447_v36 = vpop.f32.mrf.mxu3 }
 0x556   :  { %v3637_v6 = vpop.f32.mrf.mxu0 }
 0x55d   :  { %5610 = vmatmul.msk.f32.gmra.mxu1 %vm1920_vm12, %v3502_v29  ;;  %5613 = vmatmul.msk.f32.gmra.mxu2 %vm1920_vm12, %v3502_v29  ;;  %v3611_v34 = vpop.f32.mrf.mxu3  ;;  %v3947_v29 = vld [vmem:[%s10054_s29 + $0xe0] sm:$0xff] }
 0x565   :  { %5611 = vmatmul.msk.f32.gmra.mxu1 %vm1920_vm12, %v3501_v27  ;;  %5614 = vmatmul.msk.f32.gmra.mxu2 %vm1920_vm12, %v3501_v27  ;;  %v3931_v27 = vld [vmem:[%s10054_s29 + $0x60] sm:$0xff] }
 0x56d   :  { %5653 = vmatmul.msk.f32.vlgmr.msra.gmra.mxu1 %vm1920_vm12, %v3670_v62  ;;  %5656 = vmatmul.msk.f32.vlgmr.msrb.gmra.mxu2 %vm1920_vm12, %v3670_v62 }
 0x575   :  { %5654 = vmatmul.msk.f32.gmra.mxu1 %vm1920_vm12, %v3672_v47  ;;  %5657 = vmatmul.msk.f32.gmra.mxu2 %vm1920_vm12, %v3672_v47  ;;  %v3946_v47 = vld [vmem:[%s10054_s29 + $0xd8] sm:$0xff] }
 0x57d   :  { %5655 = vmatmul.msk.f32.gmra.mxu1 %vm1920_vm12, %v3671_v39  ;;  %5658 = vmatmul.msk.f32.gmra.mxu2 %vm1920_vm12, %v3671_v39  ;;  %v3930_v39 = vld [vmem:[%s10054_s29 + $0x58] sm:$0xff] }
 0x5b2   :  { %v3120_v12 = vpop.f32.mrf.mxu1 }
 0x5b3   :  { %v3121_v14 = vadd.f32 %v5723_v45, %v3120_v12  ;;  %v3640_v12 = vpop.f32.mrf.mxu0 }
 0x5b8   :  { %v3140_v52 = vpop.f32.mrf.mxu2 }
 0x5b9   :  { %v3141_v49 = vadd.f32 %v3140_v52, %v3121_v14  ;;  %v3614_v52 = vpop.f32.mrf.mxu3 }
 0x5ba   :  { %v3356_v37 = vpop.f32.mrf.mxu1 }
 0x5bb   :  { %v3143_v18 = vmax.f32 %v3141_v49, 0.0  ;;  %v3391_v15 = vadd.f32 %v3356_v37, %v3278_v42 }
 0x5bd   :  { %3145 = vst.msk [vmem:[#allocation2] sm:$0x1] %vm3144_vm0, %v3143_v18 }
 0x5be   :  { %3147 = vst.msk [vmem:[#allocation2 + $0x1] sm:$0x2] %vm3146_vm13, %v3143_v18 }
 0x5c0   :  { %v3382_v56 = vpop.f32.mrf.mxu2 }
 0x5c2   :  { %v3359_v9 = vpop.f32.mrf.mxu1 }
 0x5c3   :  { %v3393_v17 = vadd.f32 %v3359_v9, %v3281_v63  ;;  %v3945_v9 = vld [vmem:[%s10054_s29 + $0xd0] sm:$0xff]  ;;  %v3643_v63 = vpop.f32.mrf.mxu0 }
 0x5c5   :  { %v3478_v2 = vadd.f32 %v3444_v43, %v3393_v17  ;;  %v3924_v17 = vld [vmem:[%s10054_s29 + $0x28] sm:$0xff] }
 0x5c8   :  { %v3385_v44 = vpop.f32.mrf.mxu2 }
 0x5c9   :  { %v3394_v60 = vadd.f32 %v3385_v44, %v3307_v40 }
 0x5ca   :  { %v3362_v5 = vpop.f32.mrf.mxu1 }
 0x5cb   :  { %v8813_v23 = vadd.f32 %v3362_v5, %v8702_v46  ;;  %v3304_v46 = vadd.f32 %v8647_v3, %v8548_v51  ;;  %v3934_v51 = vld [vmem:[%s10054_s29 + $0x78] sm:$0xff]  ;;  %v3479_v62 = vadd.f32 %v3470_v53, %v3394_v60 }
 0x5cc   :  { %v3950_v3 = vld [vmem:[%s10054_s29 + $0xf8] sm:$0xff]  ;;  %3975 = vmatpush.msrb.mxu3 %v3934_v51  ;;  %v3941_v51 = vld [vmem:[%s10054_s29 + $0xb0] sm:$0xff] }
 0x5cd   :  { %v3392_v7 = vadd.f32 %v3382_v56, %v3304_v46  ;;  %3995 = vmatpush.msra.mxu0 %v3950_v3  ;;  %v3929_v56 = vld [vmem:[%s10054_s29 + $0x50] sm:$0xff]  ;;  %v3480_v5 = vadd.f32 %v3447_v36, %v8813_v23  ;;  %v3927_v23 = vld [vmem:[%s10054_s29 + $0x40] sm:$0xff]  ;;  %v3617_v3 = vpop.f32.mrf.mxu3 }
 0x5ce   :  { %3976 = vmatpush.msrb.mxu3 %v3933_v33 }
 0x5cf   :  { %v3477_v50 = vadd.f32 %v3467_v20, %v3392_v7  ;;  %3996 = vmatpush.msra.mxu0 %v3949_v41  ;;  %v3928_v20 = vld [vmem:[%s10054_s29 + $0x48] sm:$0xff] }
 0x5d0   :  { %v3388_v28 = vpop.f32.mrf.mxu2  ;;  %3977 = vmatpush.msrb.mxu3 %v3932_v10 }
 0x5d1   :  { %v8816_v21 = vadd.f32 %v3388_v28, %v8670_v38  ;;  %v3476_v38 = vadd.f32 %v3441_v11, %v3391_v15  ;;  %3997 = vmatpush.msra.mxu0 %v3948_v35  ;;  %v3940_v35 = vld [vmem:[%s10054_s29 + $0xa8] sm:$0xff] }
 0x5d2   :  { %v3526_v22 = vpop.f32.mrf.mxu1  ;;  %3978 = vmatpush.msrb.mxu3 %v3931_v27 }
 0x5d3   :  { %v3561_v13 = vadd.f32 %v3526_v22, %v3476_v38  ;;  %3998 = vmatpush.msra.mxu0 %v3947_v29  ;;  %v3944_v22 = vld [vmem:[%s10054_s29 + $0xc8] sm:$0xff]  ;;  %v3481_v43 = vadd.f32 %v8818_v31, %v8816_v21  ;;  %v3943_v21 = vld [vmem:[%s10054_s29 + $0xc0] sm:$0xff] }
 0x5d4   :  { %3979 = vmatpush.msrb.mxu3 %v3930_v39  ;;  %v3922_v39 = vld [vmem:[%s10054_s29 + $0x18] sm:$0xff] }
 0x5d5   :  { %v3646_v25 = vadd.f32 %v3611_v34, %v3561_v13  ;;  %3999 = vmatpush.msra.mxu0 %v3946_v47 }
 0x5d6   :  { %3980 = vmatpush.msrb.mxu3 %v3929_v56  ;;  %v3921_v56 = vld [vmem:[%s10054_s29 + $0x10] sm:$0xff] }
 0x5d7   :  { %4000 = vmatpush.msra.mxu0 %v3945_v9 }
 0x5d8   :  { %v3552_v24 = vpop.f32.mrf.mxu2  ;;  %3981 = vmatpush.msrb.mxu3 %v3928_v20 }
 0x5d9   :  { %v3562_v1 = vadd.f32 %v3552_v24, %v3477_v50  ;;  %4001 = vmatpush.msra.mxu0 %v3944_v22 }
 0x5da   :  { %v3529_v4 = vpop.f32.mrf.mxu1  ;;  %3982 = vmatpush.msrb.mxu3 %v3927_v23 }
 0x5db   :  { %v3647_v54 = vadd.f32 %v3637_v6, %v3562_v1  ;;  %v3563_v49 = vadd.f32 %v3529_v4, %v3478_v2  ;;  %v3926_v6 = vld [vmem:[%s10054_s29 + $0x38] sm:$0xff]  ;;  %4002 = vmatpush.msra.mxu0 %v3943_v21 }
 0x5dc   :  { %v3942_v1 = vld [vmem:[%s10054_s29 + $0xb8] sm:$0xff]  ;;  %3983 = vmatpush.msrb.mxu3 %v3926_v6 }
 0x5dd   :  { %v3648_v24 = vadd.f32 %v3614_v52, %v3563_v49  ;;  %4003 = vmatpush.msra.mxu0 %v3942_v1 }
 0x5df   :  { %4004 = vmatpush.msra.mxu0 %v3941_v51 }
 0x5e0   :  { %v3555_v30 = vpop.f32.mrf.mxu2 }
 0x5e1   :  { %v3564_v37 = vadd.f32 %v3555_v30, %v3479_v62  ;;  %4005 = vmatpush.msra.mxu0 %v3940_v35 }
 0x5e2   :  { %v3532_v61 = vpop.f32.mrf.mxu1 }
 0x5e3   :  { %v3565_v53 = vadd.f32 %v3532_v61, %v3480_v5  ;;  %v3649_v4 = vadd.f32 %v3640_v12, %v3564_v37 }
 0x5e5   :  { %v3650_v60 = vadd.f32 %v3617_v3, %v3565_v53 }
 0x5e8   :  { %v8824_v26 = vpop.f32.mrf.mxu2 }
 0x5e9   :  { %v3566_v13 = vadd.f32 %v8824_v26, %v3481_v43  ;;  %v3925_v26 = vld [vmem:[%s10054_s29 + $0x30] sm:$0xff]  ;;  %v3920_v43 = vld [vmem:[%s10054_s29 + $0x8] sm:$0xff] }
 0x5ea   :  { %v3696_v0 = vpop.f32.mrf.mxu1  ;;  %3984 = vmatpush.msrb.mxu3 %v3925_v26 }
 0x5eb   :  { %v3731_v58 = vadd.f32 %v3696_v0, %v3646_v25  ;;  %v3651_v10 = vadd.f32 %v3643_v63, %v3566_v13 }
 0x5ec   :  { %3985 = vmatpush.msrb.mxu3 %v3924_v17 }
 0x5ed   :  { %v3737_v45 = vadd.f32 %v3731_v58, %v7911_v59 }
 0x5ef   :  { %v3743_v11 = vmax.f32 %v3737_v45, 0.0 }
 0x5f0   :  { %v3722_v8 = vpop.f32.mrf.mxu2 }
 0x5f1   :  { %v3732_v57 = vadd.f32 %v3722_v8, %v3647_v54  ;;  %v3923_v8 = vld [vmem:[%s10054_s29 + $0x20] sm:$0xff] }
 0x5f2   :  { %v3699_v18 = vpop.f32.mrf.mxu1  ;;  %3986 = vmatpush.msrb.mxu3 %v3923_v8 }
 0x5f3   :  { %v3738_v14 = vadd.f32 %v3732_v57, %v7913_v48  ;;  %v3733_v38 = vadd.f32 %v3699_v18, %v3648_v24  ;;  %v3939_v57 = vld [vmem:[%s10054_s29 + $0xa0] sm:$0xff]  ;;  %v3936_v24 = vld [vmem:[%s10054_s29 + $0x88] sm:$0xff] }
 0x5f4   :  { %4006 = vmatpush.msra.mxu0 %v3939_v57  ;;  %3987 = vmatpush.msrb.mxu3 %v3922_v39 }
 0x5f5   :  { %v3744_v44 = vmax.f32 %v3738_v14, 0.0  ;;  %v3739_v33 = vadd.f32 %v3733_v38, %v7911_v59  ;;  %v3938_v14 = vld [vmem:[%s10054_s29 + $0x98] sm:$0xff] }
 0x5f6   :  { %4007 = vmatpush.msra.mxu0 %v3938_v14  ;;  %3988 = vmatpush.msrb.mxu3 %v3921_v56 }
 0x5f7   :  { %v3755_v28 = vrot.slane %v3744_v44, 7  ;;  %v3745_v2 = vmax.f32 %v3739_v33, 0.0 }
 0x5f8   :  { %v3725_v30 = vpop.f32.mrf.mxu2  ;;  %3989 = vmatpush.msrb.mxu3 %v3920_v43 }
 0x5f9   :  { %v3758_v36 = vsel %vm697_vm2, %v3743_v11, %v3755_v28  ;;  %v3759_v42 = vsel %vm699_vm3, %v3743_v11, %v3755_v28  ;;  %v3761_v46 = vsel %vm702_vm4, %v3743_v11, %v3755_v28  ;;  %v8884_v15 = vsel %vm705_vm5, %v3743_v11, %v3755_v28 }
 0x5fa   :  { %v3760_v31 = vrot.slane %v3759_v42, 1  ;;  %v3762_v61 = vrot.slane %v3761_v46, 2  ;;  %v8890_v7 = vsel %vm708_vm6, %v3743_v11, %v3755_v28  ;;  %3791 = vst [vmem:[#allocation1] ss:$9 sm:$0xff] %v3758_v36  ;;  %v8897_v50 = vsel %vm711_vm7, %v3743_v11, %v3755_v28  ;;  %v3702_v41 = vpop.f32.mrf.mxu1  ;;  %v3935_v36 = vld [vmem:[%s10054_s29 + $0x80] sm:$0xff] }
 0x5fb   :  { %v8900_v34 = vsel %vm714_vm8, %v3743_v11, %v3755_v28  ;;  %v8903_v0 = vsel %vm717_vm9, %v3755_v28, %v3743_v11  ;;  %v3734_v40 = vadd.f32 %v3725_v30, %v3649_v4  ;;  %v3735_v27 = vadd.f32 %v3702_v41, %v3650_v60  ;;  %v3937_v11 = vld [vmem:[%s10054_s29 + $0x90] sm:$0xff]  ;;  %v3919_v4 = vld [vmem:[%s10054_s29] sm:$0xff] }
 0x5fc   :  { %3793 = vst [vmem:[#allocation1 + $0x1] ss:$9 sm:$0xff] %v3760_v31  ;;  %v3764_v47 = vrot.slane %v8884_v15, 3  ;;  %v3766_v12 = vrot.slane %v8890_v7, 4  ;;  %v3768_v44 = vrot.slane %v8897_v50, 5  ;;  %4008 = vmatpush.msra.mxu0 %v3937_v11  ;;  %3990 = vmatpush.msrb.mxu3 %v3919_v4  ;;  %v3770_v15 = vrot.slane %v8900_v34, 6 }
 0x5fd   :  { %3795 = vst [vmem:[#allocation1 + $0x2] ss:$9 sm:$0xff] %v3762_v61  ;;  %v3740_v25 = vadd.f32 %v3734_v40, %v7913_v48  ;;  %v3741_v20 = vadd.f32 %v3735_v27, %v7911_v59  ;;  %v3772_v21 = vrot.slane %v8903_v0, 7 }
 0x5fe   :  { %4009 = vmatpush.msra.mxu0 %v3936_v24 }
 0x5ff   :  { %v3746_v58 = vmax.f32 %v3740_v25, 0.0  ;;  %v3747_v30 = vmax.f32 %v3741_v20, 0.0  ;;  %v5674_v25 = vld [vmem:[%s10055_s28 + $0xf8] sm:$0xff] }
 0x600   :  { %v3728_v54 = vpop.f32.mrf.mxu2  ;;  %4010 = vmatpush.msra.mxu0 %v3935_v36  ;;  %4082 = vmatpush.msra.mxu2 %v5674_v25 }
 0x601   :  { %v3736_v29 = vadd.f32 %v3728_v54, %v3651_v10  ;;  %v3756_v62 = vrot.slane %v3746_v58, 7 }
 0x603   :  { %v3742_v45 = vadd.f32 %v3736_v29, %v7913_v48  ;;  %v3773_v52 = vsel %vm697_vm2, %v3745_v2, %v3756_v62  ;;  %v3774_v49 = vsel %vm699_vm3, %v3745_v2, %v3756_v62  ;;  %v3776_v37 = vsel %vm702_vm4, %v3745_v2, %v3756_v62 }
 0x604   :  { %v3778_v18 = vsel %vm705_vm5, %v3745_v2, %v3756_v62  ;;  %v3796_v9 = vld [vmem:[#allocation1] sm:$0xff]  ;;  %v3797_v48 = vld [vmem:[#allocation1 + $0x9] sm:$0xff]  ;;  %v3780_v5 = vsel %vm708_vm6, %v3745_v2, %v3756_v62  ;;  %v3782_v28 = vsel %vm711_vm7, %v3745_v2, %v3756_v62  ;;  %v3784_v22 = vsel %vm714_vm8, %v3745_v2, %v3756_v62 }
 0x605   :  { %3798 = vst [vmem:[#allocation1] ss:$9 sm:$0xff] %v3764_v47  ;;  %v8953_v53 = vsel %vm717_vm9, %v3756_v62, %v3745_v2  ;;  %v3748_v59 = vmax.f32 %v3742_v45, 0.0  ;;  %v3775_v7 = vrot.slane %v3774_v49, 1  ;;  %v3777_v38 = vrot.slane %v3776_v37, 2 }
 0x606   :  { %3799 = vst [vmem:[#allocation1 + $0x1] ss:$9 sm:$0xff] %v3766_v12  ;;  %v3779_v50 = vrot.slane %v3778_v18, 3  ;;  %v3781_v1 = vrot.slane %v3780_v5, 4  ;;  %v3783_v40 = vrot.slane %v3782_v28, 5  ;;  %v3785_v34 = vrot.slane %v3784_v22, 6 }
 0x607   :  { %3800 = vst [vmem:[#allocation1 + $0x2] ss:$9 sm:$0xff] %v3768_v44  ;;  %v3757_v23 = vrot.slane %v3748_v59, 7  ;;  %v3835_v0 = vsel %vm1161_vm10, %v3796_v9, -inf  ;;  %v3842_v3 = vsel %vm1161_vm10, %v3797_v48, -inf  ;;  %v3787_v62 = vrot.slane %v8953_v53, 7 }
 0x608   :  { %v3836_v60 = vrot.slane %v3835_v0, 4  ;;  %v3843_v54 = vrot.slane %v3842_v3, 4 }
 0x609   :  { %v3788_v42 = vsel %vm697_vm2, %v3747_v30, %v3757_v23  ;;  %v3789_v46 = vsel %vm699_vm3, %v3747_v30, %v3757_v23 }
 0x60a   :  { %v3837_v39 = vmax.f32 %v3835_v0, %v3836_v60  ;;  %v3790_v47 = vrot.slane %v3789_v46, 1 }
 0x60c   :  { %v3838_v43 = vrot.slane %v3837_v39, 2 }
 0x60e   :  { %v3801_v31 = vld [vmem:[#allocation1] sm:$0xff]  ;;  %v3802_v61 = vld [vmem:[#allocation1 + $0x9] sm:$0xff] }
 0x60f   :  { %3803 = vst [vmem:[#allocation1] ss:$9 sm:$0xff] %v3770_v15  ;;  %v3849_v51 = vsel %vm1161_vm10, %v3801_v31, -inf  ;;  %v3856_v33 = vsel %vm1161_vm10, %v3802_v61, -inf }
 0x610   :  { %3804 = vst [vmem:[#allocation1 + $0x1] ss:$9 sm:$0xff] %v3772_v21  ;;  %v3850_v58 = vrot.slane %v3849_v51, 4  ;;  %v3857_v8 = vrot.slane %v3856_v33, 4 }
 0x611   :  { %3805 = vst [vmem:[#allocation1 + $0x2] ss:$9 sm:$0xff] %v3773_v52  ;;  %v3844_v52 = vmax.f32 %v3842_v3, %v3843_v54 }
 0x612   :  { %v3851_v14 = vmax.f32 %v3849_v51, %v3850_v58  ;;  %v3858_v49 = vmax.f32 %v3856_v33, %v3857_v8 }
 0x613   :  { %v3845_v24 = vrot.slane %v3844_v52, 2 }
 0x614   :  { %v3852_v11 = vrot.slane %v3851_v14, 2  ;;  %v3859_v22 = vrot.slane %v3858_v49, 2 }
 0x615   :  { %v3846_v61 = vmax.f32 %v3844_v52, %v3845_v24 }
 0x616   :  { %v3853_v15 = vmax.f32 %v3851_v14, %v3852_v11  ;;  %v3860_v21 = vmax.f32 %v3858_v49, %v3859_v22 }
 0x618   :  { %v3806_v6 = vld [vmem:[#allocation1] sm:$0xff]  ;;  %v3807_v13 = vld [vmem:[#allocation1 + $0x9] sm:$0xff]  ;;  %v3861_v51 = vrot.slane %v3860_v21, 1 }
 0x619   :  { %3808 = vst [vmem:[#allocation1] ss:$9 sm:$0xff] %v3775_v7  ;;  %v3863_v41 = vsel %vm1161_vm10, %v3806_v6, -inf  ;;  %v3870_v17 = vsel %vm1161_vm10, %v3807_v13, -inf }
 0x61a   :  { %3809 = vst [vmem:[#allocation1 + $0x1] ss:$9 sm:$0xff] %v3777_v38  ;;  %v3864_v27 = vrot.slane %v3863_v41, 4  ;;  %v3871_v29 = vrot.slane %v3870_v17, 4 }
 0x61b   :  { %3810 = vst [vmem:[#allocation1 + $0x2] ss:$9 sm:$0xff] %v3779_v50 }
 0x61c   :  { %v3865_v37 = vmax.f32 %v3863_v41, %v3864_v27  ;;  %v3872_v56 = vmax.f32 %v3870_v17, %v3871_v29  ;;  %v3847_v41 = vrot.slane %v3846_v61, 1 }
 0x61e   :  { %v3866_v59 = vrot.slane %v3865_v37, 2  ;;  %v3873_v4 = vrot.slane %v3872_v56, 2 }
 0x620   :  { %v3867_v31 = vmax.f32 %v3865_v37, %v3866_v59  ;;  %v3874_v7 = vmax.f32 %v3872_v56, %v3873_v4 }
 0x622   :  { %v3811_v26 = vld [vmem:[#allocation1] sm:$0xff]  ;;  %v3812_v63 = vld [vmem:[#allocation1 + $0x9] sm:$0xff]  ;;  %v3868_v25 = vrot.slane %v3867_v31, 1  ;;  %v3875_v17 = vrot.slane %v3874_v7, 1 }
 0x623   :  { %3813 = vst [vmem:[#allocation1] ss:$9 sm:$0xff] %v3781_v1  ;;  %v3877_v10 = vsel %vm1161_vm10, %v3811_v26, -inf  ;;  %v3884_v35 = vsel %vm1161_vm10, %v3812_v63, -inf }
 0x624   :  { %3814 = vst [vmem:[#allocation1 + $0x1] ss:$9 sm:$0xff] %v3783_v40  ;;  %v3878_v57 = vrot.slane %v3877_v10, 4  ;;  %v3885_v2 = vrot.slane %v3884_v35, 4 }
 0x625   :  { %3815 = vst [vmem:[#allocation1 + $0x2] ss:$9 sm:$0xff] %v3785_v34  ;;  %v3854_v34 = vrot.slane %v3853_v15, 1 }
 0x626   :  { %v3879_v48 = vmax.f32 %v3877_v10, %v3878_v57  ;;  %v3886_v5 = vmax.f32 %v3884_v35, %v3885_v2  ;;  %v3862_v57 = vmax.f32 %v3860_v21, %v3861_v51  ;;  %v5667_v21 = vld [vmem:[%s10055_s28 + $0xc0] sm:$0xff]  ;;  %v5688_v51 = vld [vmem:[%s10055_s28 + $0x148] sm:$0xff] }
 0x627   :  { %v3855_v27 = vmax.f32 %v3853_v15, %v3854_v34  ;;  %v5669_v15 = vld [vmem:[%s10055_s28 + $0xd0] sm:$0xff]  ;;  %v5662_v34 = vld [vmem:[%s10055_s28 + $0x98] sm:$0xff] }
 0x628   :  { %v3880_v30 = vrot.slane %v3879_v48, 2  ;;  %v3887_v23 = vrot.slane %v3886_v5, 2 }
 0x62a   :  { %v3881_v6 = vmax.f32 %v3879_v48, %v3880_v30  ;;  %v3888_v50 = vmax.f32 %v3886_v5, %v3887_v23  ;;  %v5673_v30 = vld [vmem:[%s10055_s28 + $0xf0] sm:$0xff]  ;;  %v5672_v23 = vld [vmem:[%s10055_s28 + $0xe8] sm:$0xff] }
 0x62b   :  { %4062 = vmatpush.msrb.mxu1 %v5673_v30  ;;  %4083 = vmatpush.msra.mxu2 %v5672_v23  ;;  %v4272_v30 = vld [vmem:[%s9990_s12 + $0x68] sm:$0xff] }
 0x62c   :  { %v3816_v12 = vld [vmem:[#allocation1] sm:$0xff]  ;;  %v3817_v45 = vld [vmem:[#allocation1 + $0x9] sm:$0xff]  ;;  %v3882_v60 = vrot.slane %v3881_v6, 1  ;;  %v3889_v35 = vrot.slane %v3888_v50, 1 }
 0x62d   :  { %3818 = vst [vmem:[#allocation1] ss:$9 sm:$0xff] %v3787_v62  ;;  %v3891_v18 = vsel %vm1161_vm10, %v3816_v12, -inf  ;;  %v3898_v9 = vsel %vm1161_vm10, %v3817_v45, -inf  ;;  %v3876_v12 = vmax.f32 %v3874_v7, %v3875_v17  ;;  %v5665_v7 = vld [vmem:[%s10055_s28 + $0xb0] sm:$0xff]  ;;  %v4288_v23 = vld [vmem:[%s9990_s12 + $0xe8] sm:$0xff] }
 0x62e   :  { %3819 = vst [vmem:[#allocation1 + $0x1] ss:$9 sm:$0xff] %v3788_v42  ;;  %v3892_v44 = vrot.slane %v3891_v18, 4  ;;  %v3899_v20 = vrot.slane %v3898_v9, 4  ;;  %v3839_v42 = vmax.f32 %v3837_v39, %v3838_v43  ;;  %v3869_v39 = vmax.f32 %v3867_v31, %v3868_v25  ;;  %v5693_v31 = vld [vmem:[%s10055_s28 + $0x170] sm:$0xff] }
 0x62f   :  { %3820 = vst [vmem:[#allocation1 + $0x2] ss:$9 sm:$0xff] %v3790_v47  ;;  %v3848_v47 = vmax.f32 %v3846_v61, %v3847_v41  ;;  %v3883_v45 = vmax.f32 %v3881_v6, %v3882_v60  ;;  %v3890_v52 = vmax.f32 %v3888_v50, %v3889_v35  ;;  %v5694_v61 = vld [vmem:[%s10055_s28 + $0x178] sm:$0xff]  ;;  %4163 = vmatpush.msra.mxu3 %v5693_v31  ;;  %v5691_v6 = vld [vmem:[%s10055_s28 + $0x160] sm:$0xff]  ;;  %v4032_v25 = vld [vmem:[%s10055_s28 + $0x70] sm:$0xff] }
 0x630   :  { %v3893_v28 = vmax.f32 %v3891_v18, %v3892_v44  ;;  %v3900_v53 = vmax.f32 %v3898_v9, %v3899_v20  ;;  %v3840_v33 = vrot.slane %v3839_v42, 1  ;;  %4183 = vmatpush.msrb.mxu0 %v5694_v61  ;;  %v5663_v50 = vld [vmem:[%s10055_s28 + $0xa0] sm:$0xff]  ;;  %v4033_v41 = vld [vmem:[%s10055_s28 + $0x78] sm:$0xff]  ;;  %v5685_v17 = vld [vmem:[%s10055_s28 + $0x130] sm:$0xff] }
 0x631   :  { %v3968_v44 = vsel %vm699_vm3, %v3862_v57, %v3848_v47  ;;  %4164 = vmatpush.msra.mxu3 %v5691_v6  ;;  %v5686_v60 = vld [vmem:[%s10055_s28 + $0x138] sm:$0xff]  ;;  %v4031_v35 = vld [vmem:[%s10055_s28 + $0x68] sm:$0xff]  ;;  %v4269_v31 = vld [vmem:[%s9990_s12 + $0x50] sm:$0xff] }
 0x632   :  { %v3894_v36 = vrot.slane %v3893_v28, 2  ;;  %v3901_v46 = vrot.slane %v3900_v53, 2  ;;  %v3841_v62 = vmax.f32 %v3839_v42, %v3840_v33  ;;  %v3969_v20 = vsel %vm702_vm4, %v3876_v12, %v3968_v44  ;;  %v5668_v42 = vld [vmem:[%s10055_s28 + $0xc8] sm:$0xff]  ;;  %v5682_v57 = vld [vmem:[%s10055_s28 + $0x118] sm:$0xff]  ;;  %v4024_v12 = vld [vmem:[%s10055_s28 + $0x30] sm:$0xff] }
 0x633   :  { %v5660_v33 = vld [vmem:[%s10055_s28 + $0x88] sm:$0xff]  ;;  %v4285_v61 = vld [vmem:[%s9990_s12 + $0xd0] sm:$0xff] }
 0x634   :  { %v3895_v1 = vmax.f32 %v3893_v28, %v3894_v36  ;;  %v3902_v26 = vmax.f32 %v3900_v53, %v3901_v46  ;;  %v3963_v9 = vsel %vm699_vm3, %v3855_v27, %v3841_v62  ;;  %v3970_v53 = vsel %vm705_vm5, %v3890_v52, %v3969_v20  ;;  %v5671_v36 = vld [vmem:[%s10055_s28 + $0xe0] sm:$0xff]  ;;  %v5670_v46 = vld [vmem:[%s10055_s28 + $0xd8] sm:$0xff]  ;;  %v4027_v62 = vld [vmem:[%s10055_s28 + $0x48] sm:$0xff] }
 0x635   :  { %v3964_v5 = vsel %vm702_vm4, %v3869_v39, %v3963_v9  ;;  %4063 = vmatpush.msrb.mxu1 %v5671_v36  ;;  %4084 = vmatpush.msra.mxu2 %v5670_v46  ;;  %v4029_v27 = vld [vmem:[%s10055_s28 + $0x58] sm:$0xff]  ;;  %v5679_v39 = vld [vmem:[%s10055_s28 + $0x100] sm:$0xff]  ;;  %v5680_v47 = vld [vmem:[%s10055_s28 + $0x108] sm:$0xff] }
 0x636   :  { %v3821_v38 = vld [vmem:[#allocation1] sm:$0xff]  ;;  %v3822_v13 = vld [vmem:[#allocation1 + $0x9] sm:$0xff]  ;;  %v3896_v54 = vrot.slane %v3895_v1, 1  ;;  %v3903_v8 = vrot.slane %v3902_v26, 1  ;;  %v3965_v28 = vsel %vm705_vm5, %v3883_v45, %v3964_v5  ;;  %v4025_v45 = vld [vmem:[%s10055_s28 + $0x38] sm:$0xff] }
 0x637   :  { %v3905_v40 = vsel %vm1161_vm10, %v3821_v38, -inf  ;;  %v3912_v63 = vsel %vm1161_vm10, %v3822_v13, -inf  ;;  %4064 = vmatpush.msrb.mxu1 %v5669_v15  ;;  %4085 = vmatpush.msra.mxu2 %v5668_v42  ;;  %v5666_v38 = vld [vmem:[%s10055_s28 + $0xb8] sm:$0xff]  ;;  %v5692_v13 = vld [vmem:[%s10055_s28 + $0x168] sm:$0xff]  ;;  %v4271_v46 = vld [vmem:[%s9990_s12 + $0x60] sm:$0xff] }
 0x638   :  { %v3906_v0 = vrot.slane %v3905_v40, 4  ;;  %v3913_v3 = vrot.slane %v3912_v63, 4  ;;  %v3897_v37 = vmax.f32 %v3895_v1, %v3896_v54  ;;  %v3904_v18 = vmax.f32 %v3902_v26, %v3903_v8  ;;  %4184 = vmatpush.msrb.mxu0 %v5692_v13  ;;  %v5664_v1 = vld [vmem:[%s10055_s28 + $0xa8] sm:$0xff]  ;;  %v5690_v26 = vld [vmem:[%s10055_s28 + $0x158] sm:$0xff]  ;;  %v4028_v8 = vld [vmem:[%s10055_s28 + $0x50] sm:$0xff] }
 0x639   :  { %4065 = vmatpush.msrb.mxu1 %v5667_v21  ;;  %4086 = vmatpush.msra.mxu2 %v5666_v38  ;;  %v5684_v54 = vld [vmem:[%s10055_s28 + $0x128] sm:$0xff]  ;;  %v4287_v15 = vld [vmem:[%s9990_s12 + $0xe0] sm:$0xff]  ;;  %v4270_v21 = vld [vmem:[%s9990_s12 + $0x58] sm:$0xff] }
 0x63a   :  { %v3907_v10 = vmax.f32 %v3905_v40, %v3906_v0  ;;  %v3914_v58 = vmax.f32 %v3912_v63, %v3913_v3  ;;  %v3966_v43 = vsel %vm708_vm6, %v3897_v37, %v3965_v28  ;;  %v3971_v59 = vsel %vm708_vm6, %v3904_v18, %v3970_v53  ;;  %v5689_v40 = vld [vmem:[%s10055_s28 + $0x150] sm:$0xff]  ;;  %4185 = vmatpush.msrb.mxu0 %v5690_v26  ;;  %v5687_v0 = vld [vmem:[%s10055_s28 + $0x140] sm:$0xff]  ;;  %v4023_v52 = vld [vmem:[%s10055_s28 + $0x28] sm:$0xff] }
 0x63b   :  { %4066 = vmatpush.msrb.mxu1 %v5665_v7  ;;  %4087 = vmatpush.msra.mxu2 %v5664_v1  ;;  %v5661_v63 = vld [vmem:[%s10055_s28 + $0x90] sm:$0xff]  ;;  %v5659_v3 = vld [vmem:[%s10055_s28 + $0x80] sm:$0xff]  ;;  %v4021_v37 = vld [vmem:[%s10055_s28 + $0x18] sm:$0xff] }
 0x63c   :  { %v3908_v29 = vrot.slane %v3907_v10, 2  ;;  %v3915_v2 = vrot.slane %v3914_v58, 2  ;;  %4165 = vmatpush.msra.mxu3 %v5689_v40  ;;  %4186 = vmatpush.msrb.mxu0 %v5688_v51  ;;  %v4018_v18 = vld [vmem:[%s10055_s28] sm:$0xff]  ;;  %v4286_v42 = vld [vmem:[%s9990_s12 + $0xd8] sm:$0xff]  ;;  %v4268_v38 = vld [vmem:[%s9990_s12 + $0x48] sm:$0xff] }
 0x63d   :  { %4067 = vmatpush.msrb.mxu1 %v5663_v50  ;;  %4088 = vmatpush.msra.mxu2 %v5662_v34  ;;  %v4284_v6 = vld [vmem:[%s9990_s12 + $0xc8] sm:$0xff]  ;;  %v4267_v50 = vld [vmem:[%s9990_s12 + $0x40] sm:$0xff]  ;;  %v4266_v40 = vld [vmem:[%s9990_s12 + $0x38] sm:$0xff] }
 0x63e   :  { %v3909_v14 = vmax.f32 %v3907_v10, %v3908_v29  ;;  %v3916_v49 = vmax.f32 %v3914_v58, %v3915_v2  ;;  %4166 = vmatpush.msra.mxu3 %v5687_v0  ;;  %v4030_v10 = vld [vmem:[%s10055_s28 + $0x60] sm:$0xff]  ;;  %4187 = vmatpush.msrb.mxu0 %v5686_v60  ;;  %v5681_v29 = vld [vmem:[%s10055_s28 + $0x110] sm:$0xff]  ;;  %v4282_v26 = vld [vmem:[%s9990_s12 + $0xb8] sm:$0xff] }
 0x63f   :  { %4068 = vmatpush.msrb.mxu1 %v5661_v63  ;;  %4089 = vmatpush.msra.mxu2 %v5660_v33  ;;  %v5683_v58 = vld [vmem:[%s10055_s28 + $0x120] sm:$0xff]  ;;  %v4265_v34 = vld [vmem:[%s9990_s12 + $0x30] sm:$0xff]  ;;  %v4264_v33 = vld [vmem:[%s9990_s12 + $0x28] sm:$0xff] }
 0x640   :  { %v3910_v56 = vrot.slane %v3909_v14, 1  ;;  %v3917_v48 = vrot.slane %v3916_v49, 1  ;;  %4167 = vmatpush.msra.mxu3 %v5685_v17  ;;  %4188 = vmatpush.msrb.mxu0 %v5684_v54  ;;  %v4026_v2 = vld [vmem:[%s10055_s28 + $0x40] sm:$0xff]  ;;  %v4281_v0 = vld [vmem:[%s9990_s12 + $0xb0] sm:$0xff]  ;;  %v4262_v54 = vld [vmem:[%s9990_s12 + $0x18] sm:$0xff] }
 0x641   :  { %4069 = vmatpush.msrb.mxu1 %v5659_v3  ;;  %4124 = vmatpush.msrb.mxu2 %v4033_v41  ;;  %v4283_v1 = vld [vmem:[%s9990_s12 + $0xc0] sm:$0xff] }
 0x642   :  { %v3911_v11 = vmax.f32 %v3909_v14, %v3910_v56  ;;  %v3918_v22 = vmax.f32 %v3916_v49, %v3917_v48  ;;  %4168 = vmatpush.msra.mxu3 %v5683_v58  ;;  %4189 = vmatpush.msrb.mxu0 %v5682_v57  ;;  %v4022_v14 = vld [vmem:[%s10055_s28 + $0x20] sm:$0xff]  ;;  %v4020_v49 = vld [vmem:[%s10055_s28 + $0x10] sm:$0xff]  ;;  %v4019_v56 = vld [vmem:[%s10055_s28 + $0x8] sm:$0xff] }
 0x643   :  { %4104 = vmatpush.msra.mxu1 %v4032_v25  ;;  %4125 = vmatpush.msrb.mxu2 %v4031_v35  ;;  %v5775_v48 = vld [vmem:[%s10056_s1] ss:$0 sm:$0xff]  ;;  %v4280_v25 = vld [vmem:[%s9990_s12 + $0xa8] sm:$0xff]  ;;  %v4261_v57 = vld [vmem:[%s9990_s12 + $0x10] sm:$0xff] }
 0x644   :  { %v3967_v24 = vsel %vm711_vm7, %v3911_v11, %v3966_v43  ;;  %v3972_v4 = vsel %vm711_vm7, %v3918_v22, %v3971_v59  ;;  %4169 = vmatpush.msra.mxu3 %v5681_v29  ;;  %4190 = vmatpush.msrb.mxu0 %v5680_v47  ;;  %v4274_v43 = vld [vmem:[%s9990_s12 + $0x78] sm:$0xff]  ;;  %v4279_v35 = vld [vmem:[%s9990_s12 + $0xa0] sm:$0xff] }
 0x645   :  { %3991 = vmatmul.f32.vlgmr.msrb.gmra.mxu3 %v3967_v24  ;;  %4011 = vmatmul.f32.vlgmr.msra.gmra.mxu0 %v3972_v4  ;;  %v4290_v59 = vld [vmem:[%s9990_s12 + $0xf8] sm:$0xff]  ;;  %v4273_v24 = vld [vmem:[%s9990_s12 + $0x70] sm:$0xff]  ;;  %v4259_v47 = vld [vmem:[%s9990_s12] sm:$0xff] }
 0x646   :  { %4105 = vmatpush.msra.mxu1 %v4030_v10  ;;  %4126 = vmatpush.msrb.mxu2 %v4029_v27  ;;  %v4289_v4 = vld [vmem:[%s9990_s12 + $0xf0] sm:$0xff]  ;;  %v4263_v10 = vld [vmem:[%s9990_s12 + $0x20] sm:$0xff] }
 0x647   :  { %4170 = vmatpush.msra.mxu3 %v5679_v39 }
 0x648   :  { %4106 = vmatpush.msra.mxu1 %v4028_v8  ;;  %4127 = vmatpush.msrb.mxu2 %v4027_v62  ;;  %v4278_v8 = vld [vmem:[%s9990_s12 + $0x98] sm:$0xff] }
 0x64a   :  { %4107 = vmatpush.msra.mxu1 %v4026_v2  ;;  %4128 = vmatpush.msrb.mxu2 %v4025_v45  ;;  %v4277_v2 = vld [vmem:[%s9990_s12 + $0x90] sm:$0xff] }
 0x64c   :  { %4108 = vmatpush.msra.mxu1 %v4024_v12  ;;  %4129 = vmatpush.msrb.mxu2 %v4023_v52  ;;  %v4275_v52 = vld [vmem:[%s9990_s12 + $0x80] sm:$0xff] }
 0x64e   :  { %4109 = vmatpush.msra.mxu1 %v4022_v14  ;;  %4130 = vmatpush.msrb.mxu2 %v4021_v37 }
 0x650   :  { %4110 = vmatpush.msra.mxu1 %v4020_v49  ;;  %4131 = vmatpush.msrb.mxu2 %v4019_v56 }
 0x652   :  { %4111 = vmatpush.msra.mxu1 %v4018_v18 }
 0x6c2   :  { %v4012_v5 = vpop.f32.mrf.mxu0 }
 0x6c8   :  { %v3992_v9 = vpop.f32.mrf.mxu3 }
 0x6c9   :  { %v3993_v44 = vadd.f32 %v5775_v48, %v3992_v9 }
 0x6cb   :  { %v4013_v20 = vadd.f32 %v4012_v5, %v3993_v44 }
 0x6cd   :  { %v4015_v11 = vmax.f32 %v4013_v20, 0.0 }
 0x6cf   :  { %4016 = vst.msk [vmem:[#allocation4 + $0x1] sm:$0x3f] %vm2809_vm15, %v4015_v11 }
 0x6d6   :  { %v4017_v28 = vld [vmem:[#allocation4] sm:$0xff] }
 0x6d7   :  { %v4051_v22 = vrot.slane %v4017_v28, 1  ;;  %v4152_v53 = vrot.slane %v4017_v28, 2 }
 0x6d9   :  { %5675 = vmatmul.msk.f32.vlgmr.msrb.gmra.mxu1 %vm1920_vm12, %v4051_v22  ;;  %5676 = vmatmul.msk.f32.vlgmr.msra.gmra.mxu2 %vm1920_vm12, %v4051_v22 }
 0x6da   :  { %5695 = vmatmul.msk.f32.vlgmr.msra.gmra.mxu3 %vm1920_vm12, %v4152_v53  ;;  %5696 = vmatmul.msk.f32.vlgmr.msrb.gmra.mxu0 %vm1920_vm12, %v4152_v53 }
 0x6db   :  { %4299 = vmatpush.msrb.mxu1 %v4274_v43  ;;  %4319 = vmatpush.msra.mxu2 %v4290_v59 }
 0x6dd   :  { %4300 = vmatpush.msrb.mxu1 %v4273_v24  ;;  %4320 = vmatpush.msra.mxu2 %v4289_v4 }
 0x6df   :  { %4301 = vmatpush.msrb.mxu1 %v4272_v30  ;;  %4321 = vmatpush.msra.mxu2 %v4288_v23 }
 0x6e1   :  { %5677 = vmatmul.msk.f32.vlgmr.msra.gmra.mxu1 %vm1920_vm12, %v4017_v28  ;;  %5678 = vmatmul.msk.f32.vlgmr.msrb.gmra.mxu2 %vm1920_vm12, %v4017_v28 }
 0x6e2   :  { %4302 = vmatpush.msrb.mxu1 %v4271_v46  ;;  %4322 = vmatpush.msra.mxu2 %v4287_v15 }
 0x6e4   :  { %4303 = vmatpush.msrb.mxu1 %v4270_v21  ;;  %4323 = vmatpush.msra.mxu2 %v4286_v42 }
 0x6e6   :  { %4304 = vmatpush.msrb.mxu1 %v4269_v31  ;;  %4324 = vmatpush.msra.mxu2 %v4285_v61 }
 0x6e8   :  { %4305 = vmatpush.msrb.mxu1 %v4268_v38  ;;  %4325 = vmatpush.msra.mxu2 %v4284_v6 }
 0x6ea   :  { %4306 = vmatpush.msrb.mxu1 %v4267_v50  ;;  %4326 = vmatpush.msra.mxu2 %v4283_v1 }
 0x6ec   :  { %4307 = vmatpush.msrb.mxu1 %v4266_v40  ;;  %4327 = vmatpush.msra.mxu2 %v4282_v26 }
 0x6ee   :  { %4308 = vmatpush.msrb.mxu1 %v4265_v34  ;;  %4328 = vmatpush.msra.mxu2 %v4281_v0 }
 0x6f0   :  { %4309 = vmatpush.msrb.mxu1 %v4264_v33  ;;  %4329 = vmatpush.msra.mxu2 %v4280_v25 }
 0x6f2   :  { %4310 = vmatpush.msrb.mxu1 %v4263_v10  ;;  %4330 = vmatpush.msra.mxu2 %v4279_v35  ;;  %v4355_v10 = vld [vmem:[%s9992_s14 + $0x60] sm:$0xff]  ;;  %v4356_v35 = vld [vmem:[%s9992_s14 + $0x68] sm:$0xff] }
 0x6f4   :  { %4311 = vmatpush.msrb.mxu1 %v4262_v54  ;;  %4331 = vmatpush.msra.mxu2 %v4278_v8  ;;  %v4354_v54 = vld [vmem:[%s9992_s14 + $0x58] sm:$0xff]  ;;  %v4351_v8 = vld [vmem:[%s9992_s14 + $0x40] sm:$0xff] }
 0x6f6   :  { %4312 = vmatpush.msrb.mxu1 %v4261_v57  ;;  %4332 = vmatpush.msra.mxu2 %v4277_v2  ;;  %v4350_v57 = vld [vmem:[%s9992_s14 + $0x38] sm:$0xff]  ;;  %v4347_v2 = vld [vmem:[%s9992_s14 + $0x20] sm:$0xff] }
 0x756   :  { %v4071_v36 = vpop.f32.mrf.mxu1 }
 0x757   :  { %v4192_v60 = vpop.f32.mrf.mxu0 }
 0x75c   :  { %v4091_v7 = vpop.f32.mrf.mxu2 }
 0x75d   :  { %v4172_v51 = vpop.f32.mrf.mxu3 }
 0x75e   :  { %v4113_v13 = vpop.f32.mrf.mxu1 }
 0x75f   :  { %v4114_v63 = vadd.f32 %v4113_v13, %v4071_v36 }
 0x761   :  { %v4195_v41 = vadd.f32 %v4172_v51, %v4114_v63 }
 0x763   :  { %v4197_v27 = vadd.f32 %v4195_v41, %v2994_v32  ;;  %v4260_v32 = vld [vmem:[%s9990_s12 + $0x8] sm:$0xff] }
 0x764   :  { %v4133_v3 = vpop.f32.mrf.mxu2  ;;  %4313 = vmatpush.msrb.mxu1 %v4260_v32  ;;  %v4345_v32 = vld [vmem:[%s9992_s14 + $0x10] sm:$0xff] }
 0x765   :  { %v4134_v17 = vadd.f32 %v4133_v3, %v4091_v7  ;;  %v4199_v39 = vmax.f32 %v4197_v27, 0.0  ;;  %v4352_v27 = vld [vmem:[%s9992_s14 + $0x48] sm:$0xff] }
 0x766   :  { %4314 = vmatpush.msrb.mxu1 %v4259_v47  ;;  %v4534_v47 = vld [vmem:[%s9994_s16 + $0x3e0] sm:$0xff] }
 0x767   :  { %v4196_v58 = vadd.f32 %v4192_v60, %v4134_v17  ;;  %v4357_v17 = vld [vmem:[%s9992_s14 + $0x70] sm:$0xff]  ;;  %v4358_v60 = vld [vmem:[%s9992_s14 + $0x78] sm:$0xff] }
 0x768   :  { %4376 = vmatpush.msrb.mxu3 %v4357_v17  ;;  %4396 = vmatpush.msra.mxu0 %v4358_v60  ;;  %v4490_v17 = vld [vmem:[%s9994_s16 + $0x280] sm:$0xff]  ;;  %v4491_v60 = vld [vmem:[%s9994_s16 + $0x288] sm:$0xff] }
 0x769   :  { %v4198_v29 = vadd.f32 %v4196_v58, %v2995_v55  ;;  %v4276_v55 = vld [vmem:[%s9990_s12 + $0x88] sm:$0xff]  ;;  %v4353_v58 = vld [vmem:[%s9992_s14 + $0x50] sm:$0xff] }
 0x76a   :  { %4333 = vmatpush.msra.mxu2 %v4276_v55  ;;  %4377 = vmatpush.msrb.mxu3 %v4355_v10  ;;  %v4344_v55 = vld [vmem:[%s9992_s14 + $0x8] sm:$0xff] }
 0x76b   :  { %v4200_v62 = vmax.f32 %v4198_v29, 0.0  ;;  %4397 = vmatpush.msra.mxu0 %v4356_v35  ;;  %v4349_v29 = vld [vmem:[%s9992_s14 + $0x30] sm:$0xff]  ;;  %v4430_v35 = vld [vmem:[%s9994_s16 + $0xa0] sm:$0xff] }
 0x76c   :  { %4334 = vmatpush.msra.mxu2 %v4275_v52  ;;  %4378 = vmatpush.msrb.mxu3 %v4353_v58  ;;  %v4526_v52 = vld [vmem:[%s9994_s16 + $0x3a0] sm:$0xff]  ;;  %v4431_v58 = vld [vmem:[%s9994_s16 + $0xa8] sm:$0xff] }
 0x76d   :  { %v4203_v16 = vrot.slane %v4200_v62, 7  ;;  %4398 = vmatpush.msra.mxu0 %v4354_v54  ;;  %v4348_v62 = vld [vmem:[%s9992_s14 + $0x28] sm:$0xff]  ;;  %v4486_v54 = vld [vmem:[%s9994_s16 + $0x260] sm:$0xff] }
 0x76e   :  { %4379 = vmatpush.msrb.mxu3 %v4351_v8  ;;  %v4487_v8 = vld [vmem:[%s9994_s16 + $0x268] sm:$0xff] }
 0x76f   :  { %v4204_v12 = vsel %vm697_vm2, %v4199_v39, %v4203_v16  ;;  %v4205_v45 = vsel %vm699_vm3, %v4199_v39, %v4203_v16  ;;  %v4207_v14 = vsel %vm702_vm4, %v4199_v39, %v4203_v16  ;;  %v4209_v18 = vsel %vm705_vm5, %v4199_v39, %v4203_v16  ;;  %4399 = vmatpush.msra.mxu0 %v4352_v27  ;;  %v4426_v27 = vld [vmem:[%s9994_s16 + $0x80] sm:$0xff] }
 0x770   :  { %v4206_v49 = vrot.slane %v4205_v45, 1  ;;  %v4208_v37 = vrot.slane %v4207_v14, 2  ;;  %4215 = vst [vmem:[#allocation1] ss:$9 sm:$0xff] %v4204_v12  ;;  %v4211_v56 = vsel %vm708_vm6, %v4199_v39, %v4203_v16  ;;  %v4213_v9 = vsel %vm711_vm7, %v4199_v39, %v4203_v16  ;;  %4380 = vmatpush.msrb.mxu3 %v4349_v29  ;;  %v4346_v39 = vld [vmem:[%s9992_s14 + $0x18] sm:$0xff]  ;;  %v4343_v16 = vld [vmem:[%s9992_s14] sm:$0xff] }
 0x771   :  { %v4210_v48 = vrot.slane %v4209_v18, 3  ;;  %v4212_v44 = vrot.slane %v4211_v56, 4  ;;  %v4214_v11 = vrot.slane %v4213_v9, 5  ;;  %4400 = vmatpush.msra.mxu0 %v4350_v57  ;;  %v4535_v12 = vld [vmem:[%s9994_s16 + $0x3e8] sm:$0xff]  ;;  %v4530_v45 = vld [vmem:[%s9994_s16 + $0x3c0] sm:$0xff] }
 0x772   :  { %4217 = vst [vmem:[#allocation1 + $0x1] ss:$9 sm:$0xff] %v4206_v49  ;;  %4381 = vmatpush.msrb.mxu3 %v4347_v2  ;;  %4608 = vmatpush.msrb.mxu2 %v4535_v12  ;;  %v4531_v14 = vld [vmem:[%s9994_s16 + $0x3c8] sm:$0xff]  ;;  %v4466_v56 = vld [vmem:[%s9994_s16 + $0x1c0] sm:$0xff] }
 0x773   :  { %4219 = vst [vmem:[#allocation1 + $0x2] ss:$9 sm:$0xff] %v4208_v37  ;;  %4401 = vmatpush.msra.mxu0 %v4348_v62  ;;  %v4527_v49 = vld [vmem:[%s9994_s16 + $0x3a8] sm:$0xff]  ;;  %v4470_v37 = vld [vmem:[%s9994_s16 + $0x1e0] sm:$0xff] }
 0x774   :  { %4382 = vmatpush.msrb.mxu3 %v4345_v32  ;;  %v4471_v18 = vld [vmem:[%s9994_s16 + $0x1e8] sm:$0xff]  ;;  %4609 = vmatpush.msrb.mxu2 %v4531_v14  ;;  %v4522_v9 = vld [vmem:[%s9994_s16 + $0x380] sm:$0xff]  ;;  %v4536_v14 = vld [vmem:[%s9994_s16 + $0x3f0] sm:$0xff] }
 0x775   :  { %4402 = vmatpush.msra.mxu0 %v4346_v39  ;;  %4588 = vmatpush.msra.mxu1 %v4471_v18  ;;  %v4427_v29 = vld [vmem:[%s9994_s16 + $0x88] sm:$0xff]  ;;  %v4482_v57 = vld [vmem:[%s9994_s16 + $0x240] sm:$0xff] }
 0x776   :  { %4383 = vmatpush.msrb.mxu3 %v4343_v16  ;;  %4610 = vmatpush.msrb.mxu2 %v4527_v49  ;;  %v4483_v2 = vld [vmem:[%s9994_s16 + $0x248] sm:$0xff]  ;;  %v4422_v62 = vld [vmem:[%s9994_s16 + $0x60] sm:$0xff] }
 0x777   :  { %4403 = vmatpush.msra.mxu0 %v4344_v55  ;;  %v4423_v32 = vld [vmem:[%s9994_s16 + $0x68] sm:$0xff]  ;;  %v4478_v39 = vld [vmem:[%s9994_s16 + $0x220] sm:$0xff] }
 0x778   :  { %4548 = vmatpush.msra.mxu3 %v4470_v37  ;;  %v4479_v16 = vld [vmem:[%s9994_s16 + $0x228] sm:$0xff]  ;;  %v4418_v55 = vld [vmem:[%s9994_s16 + $0x40] sm:$0xff] }
 0x779   :  { %4568 = vmatpush.msrb.mxu0 %v4534_v47  ;;  %v4419_v47 = vld [vmem:[%s9994_s16 + $0x48] sm:$0xff]  ;;  %v4474_v12 = vld [vmem:[%s9994_s16 + $0x200] sm:$0xff] }
 0x77a   :  { %v4220_v5 = vld [vmem:[#allocation1] sm:$0xff]  ;;  %v4221_v20 = vld [vmem:[#allocation1 + $0x9] sm:$0xff]  ;;  %4549 = vmatpush.msra.mxu3 %v4466_v56 }
 0x77b   :  { %4222 = vst [vmem:[#allocation1] ss:$9 sm:$0xff] %v4210_v48  ;;  %v4231_v28 = vsel %vm1161_vm10, %v4220_v5, -inf  ;;  %v4238_v22 = vsel %vm1161_vm10, %v4221_v20, -inf  ;;  %4569 = vmatpush.msrb.mxu0 %v4530_v45  ;;  %v4523_v48 = vld [vmem:[%s9994_s16 + $0x388] sm:$0xff]  ;;  %v4462_v5 = vld [vmem:[%s9994_s16 + $0x1a0] sm:$0xff] }
 0x77c   :  { %4223 = vst [vmem:[#allocation1 + $0x1] ss:$9 sm:$0xff] %v4212_v44  ;;  %v4232_v53 = vrot.slane %v4231_v28, 4  ;;  %v4239_v43 = vrot.slane %v4238_v22, 4  ;;  %v4467_v44 = vld [vmem:[%s9994_s16 + $0x1c8] sm:$0xff]  ;;  %4611 = vmatpush.msrb.mxu2 %v4523_v48  ;;  %4550 = vmatpush.msra.mxu3 %v4462_v5  ;;  %v4414_v37 = vld [vmem:[%s9994_s16 + $0x20] sm:$0xff] }
 0x77d   :  { %4224 = vst [vmem:[#allocation1 + $0x2] ss:$9 sm:$0xff] %v4214_v11  ;;  %4570 = vmatpush.msrb.mxu0 %v4526_v52  ;;  %v4463_v20 = vld [vmem:[%s9994_s16 + $0x1a8] sm:$0xff]  ;;  %v4518_v11 = vld [vmem:[%s9994_s16 + $0x360] sm:$0xff]  ;;  %4589 = vmatpush.msra.mxu1 %v4467_v44  ;;  %v4537_v52 = vld [vmem:[%s9994_s16 + $0x3f8] sm:$0xff] }
 0x77e   :  { %v4233_v59 = vmax.f32 %v4231_v28, %v4232_v53  ;;  %v4240_v24 = vmax.f32 %v4238_v22, %v4239_v43  ;;  %v4519_v28 = vld [vmem:[%s9994_s16 + $0x368] sm:$0xff]  ;;  %v4458_v22 = vld [vmem:[%s9994_s16 + $0x180] sm:$0xff]  ;;  %v4532_v56 = vld [vmem:[%s9994_s16 + $0x3d0] sm:$0xff] }
 0x77f   :  { %4571 = vmatpush.msrb.mxu0 %v4522_v9  ;;  %v4459_v53 = vld [vmem:[%s9994_s16 + $0x188] sm:$0xff]  ;;  %v4514_v43 = vld [vmem:[%s9994_s16 + $0x340] sm:$0xff]  ;;  %4590 = vmatpush.msra.mxu1 %v4463_v20  ;;  %v4533_v9 = vld [vmem:[%s9994_s16 + $0x3d8] sm:$0xff] }
 0x780   :  { %v4234_v30 = vrot.slane %v4233_v59, 2  ;;  %v4241_v36 = vrot.slane %v4240_v24, 2  ;;  %4612 = vmatpush.msrb.mxu2 %v4519_v28  ;;  %4551 = vmatpush.msra.mxu3 %v4458_v22  ;;  %v4475_v45 = vld [vmem:[%s9994_s16 + $0x208] sm:$0xff]  ;;  %v4410_v48 = vld [vmem:[%s9994_s16] sm:$0xff]  ;;  %v4528_v5 = vld [vmem:[%s9994_s16 + $0x3b0] sm:$0xff] }
 0x781   :  { %4572 = vmatpush.msrb.mxu0 %v4518_v11  ;;  %4591 = vmatpush.msra.mxu1 %v4459_v53  ;;  %v4415_v18 = vld [vmem:[%s9994_s16 + $0x28] sm:$0xff]  ;;  %v4529_v20 = vld [vmem:[%s9994_s16 + $0x3b8] sm:$0xff]  ;;  %v4472_v11 = vld [vmem:[%s9994_s16 + $0x1f0] sm:$0xff] }
 0x782   :  { %v4235_v31 = vmax.f32 %v4233_v59, %v4234_v30  ;;  %v4242_v7 = vmax.f32 %v4240_v24, %v4241_v36  ;;  %v4515_v59 = vld [vmem:[%s9994_s16 + $0x348] sm:$0xff]  ;;  %v4454_v24 = vld [vmem:[%s9994_s16 + $0x160] sm:$0xff]  ;;  %v4473_v28 = vld [vmem:[%s9994_s16 + $0x1f8] sm:$0xff] }
 0x783   :  { %v4510_v30 = vld [vmem:[%s9994_s16 + $0x320] sm:$0xff]  ;;  %4573 = vmatpush.msrb.mxu0 %v4514_v43  ;;  %4613 = vmatpush.msrb.mxu2 %v4515_v59  ;;  %v4411_v44 = vld [vmem:[%s9994_s16 + $0x8] sm:$0xff]  ;;  %v4524_v22 = vld [vmem:[%s9994_s16 + $0x390] sm:$0xff] }
 0x784   :  { %v4225_v4 = vld [vmem:[#allocation1] sm:$0xff]  ;;  %v4226_v23 = vld [vmem:[#allocation1 + $0x9] sm:$0xff]  ;;  %v4236_v50 = vrot.slane %v4235_v31, 1  ;;  %v4243_v40 = vrot.slane %v4242_v7, 1  ;;  %4552 = vmatpush.msra.mxu3 %v4454_v24  ;;  %v4525_v53 = vld [vmem:[%s9994_s16 + $0x398] sm:$0xff] }
 0x785   :  { %v4245_v46 = vsel %vm1161_vm10, %v4225_v4, -inf  ;;  %v4252_v15 = vsel %vm1161_vm10, %v4226_v23, -inf  ;;  %v4455_v4 = vld [vmem:[%s9994_s16 + $0x168] sm:$0xff]  ;;  %v4450_v36 = vld [vmem:[%s9994_s16 + $0x140] sm:$0xff]  ;;  %4574 = vmatpush.msrb.mxu0 %v4510_v30  ;;  %v4468_v43 = vld [vmem:[%s9994_s16 + $0x1d0] sm:$0xff] }
 0x786   :  { %v4246_v21 = vrot.slane %v4245_v46, 4  ;;  %v4253_v42 = vrot.slane %v4252_v15, 4  ;;  %v4237_v0 = vmax.f32 %v4235_v31, %v4236_v50  ;;  %v4244_v3 = vmax.f32 %v4242_v7, %v4243_v40  ;;  %v4511_v23 = vld [vmem:[%s9994_s16 + $0x328] sm:$0xff]  ;;  %4592 = vmatpush.msra.mxu1 %v4455_v4  ;;  %4553 = vmatpush.msra.mxu3 %v4450_v36  ;;  %v4502_v7 = vld [vmem:[%s9994_s16 + $0x2e0] sm:$0xff]  ;;  %v4469_v59 = vld [vmem:[%s9994_s16 + $0x1d8] sm:$0xff] }
 0x787   :  { %4614 = vmatpush.msrb.mxu2 %v4511_v23  ;;  %v4447_v31 = vld [vmem:[%s9994_s16 + $0x128] sm:$0xff]  ;;  %v4498_v50 = vld [vmem:[%s9994_s16 + $0x2c0] sm:$0xff]  ;;  %v4520_v24 = vld [vmem:[%s9994_s16 + $0x370] sm:$0xff] }
 0x788   :  { %v4247_v61 = vmax.f32 %v4245_v46, %v4246_v21  ;;  %v4254_v38 = vmax.f32 %v4252_v15, %v4253_v42  ;;  %v4451_v46 = vld [vmem:[%s9994_s16 + $0x148] sm:$0xff]  ;;  %v4506_v15 = vld [vmem:[%s9994_s16 + $0x300] sm:$0xff]  ;;  %v4521_v4 = vld [vmem:[%s9994_s16 + $0x378] sm:$0xff] }
 0x789   :  { %v4507_v21 = vld [vmem:[%s9994_s16 + $0x308] sm:$0xff]  ;;  %v4446_v42 = vld [vmem:[%s9994_s16 + $0x120] sm:$0xff]  ;;  %4593 = vmatpush.msra.mxu1 %v4451_v46  ;;  %4575 = vmatpush.msrb.mxu0 %v4506_v15  ;;  %v4464_v30 = vld [vmem:[%s9994_s16 + $0x1b0] sm:$0xff] }
 0x78a   :  { %v4248_v6 = vrot.slane %v4247_v61, 2  ;;  %v4255_v13 = vrot.slane %v4254_v38, 2  ;;  %4615 = vmatpush.msrb.mxu2 %v4507_v21  ;;  %4554 = vmatpush.msra.mxu3 %v4446_v42  ;;  %v5776_v40 = vld [vmem:[%s9991_s13] ss:$0 sm:$0xff]  ;;  %v4465_v23 = vld [vmem:[%s9994_s16 + $0x1b8] sm:$0xff]  ;;  %v4516_v36 = vld [vmem:[%s9994_s16 + $0x350] sm:$0xff] }
 0x78b   :  { %4594 = vmatpush.msra.mxu1 %v4447_v31  ;;  %4576 = vmatpush.msrb.mxu0 %v4502_v7  ;;  %v4517_v46 = vld [vmem:[%s9994_s16 + $0x358] sm:$0xff]  ;;  %v4460_v15 = vld [vmem:[%s9994_s16 + $0x190] sm:$0xff] }
 0x78c   :  { %v4249_v1 = vmax.f32 %v4247_v61, %v4248_v6  ;;  %v4256_v26 = vmax.f32 %v4254_v38, %v4255_v13  ;;  %v4503_v38 = vld [vmem:[%s9994_s16 + $0x2e8] sm:$0xff]  ;;  %v4442_v6 = vld [vmem:[%s9994_s16 + $0x100] sm:$0xff]  ;;  %v4461_v21 = vld [vmem:[%s9994_s16 + $0x198] sm:$0xff] }
 0x78d   :  { %v4443_v13 = vld [vmem:[%s9994_s16 + $0x108] sm:$0xff]  ;;  %4616 = vmatpush.msrb.mxu2 %v4503_v38  ;;  %4555 = vmatpush.msra.mxu3 %v4442_v6  ;;  %v4512_v42 = vld [vmem:[%s9994_s16 + $0x330] sm:$0xff]  ;;  %v4513_v31 = vld [vmem:[%s9994_s16 + $0x338] sm:$0xff] }
 0x78e   :  { %v4250_v63 = vrot.slane %v4249_v1, 1  ;;  %v4257_v34 = vrot.slane %v4256_v26, 1  ;;  %4595 = vmatpush.msra.mxu1 %v4443_v13  ;;  %4577 = vmatpush.msrb.mxu0 %v4498_v50  ;;  %v4457_v7 = vld [vmem:[%s9994_s16 + $0x178] sm:$0xff]  ;;  %v4508_v38 = vld [vmem:[%s9994_s16 + $0x310] sm:$0xff] }
 0x78f   :  { %v4509_v6 = vld [vmem:[%s9994_s16 + $0x318] sm:$0xff]  ;;  %v4452_v13 = vld [vmem:[%s9994_s16 + $0x150] sm:$0xff] }
 0x790   :  { %v4251_v51 = vmax.f32 %v4249_v1, %v4250_v63  ;;  %v4258_v33 = vmax.f32 %v4256_v26, %v4257_v34  ;;  %v4499_v1 = vld [vmem:[%s9994_s16 + $0x2c8] sm:$0xff]  ;;  %v4438_v63 = vld [vmem:[%s9994_s16 + $0xe0] sm:$0xff]  ;;  %v4453_v50 = vld [vmem:[%s9994_s16 + $0x158] sm:$0xff] }
 0x791   :  { %v4439_v34 = vld [vmem:[%s9994_s16 + $0xe8] sm:$0xff]  ;;  %4617 = vmatpush.msrb.mxu2 %v4499_v1  ;;  %4556 = vmatpush.msra.mxu3 %v4438_v63  ;;  %v4504_v1 = vld [vmem:[%s9994_s16 + $0x2f0] sm:$0xff]  ;;  %v4449_v63 = vld [vmem:[%s9994_s16 + $0x138] sm:$0xff] }
 0x792   :  { %v4295_v25 = vsel %vm699_vm3, %v4251_v51, %v4237_v0  ;;  %v4296_v41 = vsel %vm699_vm3, %v4258_v33, %v4244_v3  ;;  %v4494_v51 = vld [vmem:[%s9994_s16 + $0x2a0] sm:$0xff]  ;;  %v4495_v3 = vld [vmem:[%s9994_s16 + $0x2a8] sm:$0xff]  ;;  %4596 = vmatpush.msra.mxu1 %v4439_v34  ;;  %v4500_v34 = vld [vmem:[%s9994_s16 + $0x2d0] sm:$0xff] }
 0x793   :  { %4315 = vmatmul.f32.vlgmr.msrb.gmra.mxu1 %v4295_v25  ;;  %4335 = vmatmul.f32.vlgmr.msra.gmra.mxu2 %v4296_v41  ;;  %v4434_v25 = vld [vmem:[%s9994_s16 + $0xc0] sm:$0xff]  ;;  %v4435_v41 = vld [vmem:[%s9994_s16 + $0xc8] sm:$0xff] }
 0x794   :  { %4578 = vmatpush.msrb.mxu0 %v4494_v51  ;;  %4618 = vmatpush.msrb.mxu2 %v4495_v3  ;;  %v4444_v51 = vld [vmem:[%s9994_s16 + $0x110] sm:$0xff]  ;;  %v4445_v3 = vld [vmem:[%s9994_s16 + $0x118] sm:$0xff] }
 0x795   :  { %4557 = vmatpush.msra.mxu3 %v4434_v25  ;;  %4597 = vmatpush.msra.mxu1 %v4435_v41  ;;  %v4497_v25 = vld [vmem:[%s9994_s16 + $0x2b8] sm:$0xff]  ;;  %v4440_v41 = vld [vmem:[%s9994_s16 + $0xf0] sm:$0xff] }
 0x796   :  { %4579 = vmatpush.msrb.mxu0 %v4490_v17  ;;  %4619 = vmatpush.msrb.mxu2 %v4491_v60  ;;  %v4441_v17 = vld [vmem:[%s9994_s16 + $0xf8] sm:$0xff]  ;;  %v4492_v60 = vld [vmem:[%s9994_s16 + $0x290] sm:$0xff] }
 0x797   :  { %4558 = vmatpush.msra.mxu3 %v4430_v35  ;;  %4598 = vmatpush.msra.mxu1 %v4431_v58  ;;  %v4436_v35 = vld [vmem:[%s9994_s16 + $0xd0] sm:$0xff]  ;;  %v4437_v58 = vld [vmem:[%s9994_s16 + $0xd8] sm:$0xff] }
 0x798   :  { %4580 = vmatpush.msrb.mxu0 %v4486_v54  ;;  %4620 = vmatpush.msrb.mxu2 %v4487_v8  ;;  %v4488_v54 = vld [vmem:[%s9994_s16 + $0x270] sm:$0xff]  ;;  %v4489_v8 = vld [vmem:[%s9994_s16 + $0x278] sm:$0xff] }
 0x799   :  { %4559 = vmatpush.msra.mxu3 %v4426_v27  ;;  %4599 = vmatpush.msra.mxu1 %v4427_v29  ;;  %v4432_v27 = vld [vmem:[%s9994_s16 + $0xb0] sm:$0xff] }
 0x79a   :  { %4581 = vmatpush.msrb.mxu0 %v4482_v57  ;;  %4621 = vmatpush.msrb.mxu2 %v4483_v2  ;;  %v4484_v29 = vld [vmem:[%s9994_s16 + $0x250] sm:$0xff]  ;;  %v4433_v57 = vld [vmem:[%s9994_s16 + $0xb8] sm:$0xff] }
 0x79b   :  { %4560 = vmatpush.msra.mxu3 %v4422_v62  ;;  %4600 = vmatpush.msra.mxu1 %v4423_v32  ;;  %v4485_v2 = vld [vmem:[%s9994_s16 + $0x258] sm:$0xff]  ;;  %v4428_v62 = vld [vmem:[%s9994_s16 + $0x90] sm:$0xff] }
 0x79c   :  { %4582 = vmatpush.msrb.mxu0 %v4478_v39  ;;  %4622 = vmatpush.msrb.mxu2 %v4479_v16  ;;  %v4480_v32 = vld [vmem:[%s9994_s16 + $0x230] sm:$0xff]  ;;  %v4429_v39 = vld [vmem:[%s9994_s16 + $0x98] sm:$0xff] }
 0x79d   :  { %4561 = vmatpush.msra.mxu3 %v4418_v55  ;;  %4601 = vmatpush.msra.mxu1 %v4419_v47  ;;  %v4481_v16 = vld [vmem:[%s9994_s16 + $0x238] sm:$0xff]  ;;  %v4424_v55 = vld [vmem:[%s9994_s16 + $0x70] sm:$0xff] }
 0x79e   :  { %4583 = vmatpush.msrb.mxu0 %v4474_v12  ;;  %4623 = vmatpush.msrb.mxu2 %v4475_v45  ;;  %v4476_v47 = vld [vmem:[%s9994_s16 + $0x210] sm:$0xff]  ;;  %v4425_v12 = vld [vmem:[%s9994_s16 + $0x78] sm:$0xff] }
 0x79f   :  { %4562 = vmatpush.msra.mxu3 %v4414_v37  ;;  %4602 = vmatpush.msra.mxu1 %v4415_v18  ;;  %v4477_v45 = vld [vmem:[%s9994_s16 + $0x218] sm:$0xff]  ;;  %v4412_v18 = vld [vmem:[%s9994_s16 + $0x10] sm:$0xff] }
 0x7a0   :  { %4688 = vmatpush.msra.mxu2 %v4537_v52  ;;  %v4421_v52 = vld [vmem:[%s9994_s16 + $0x58] sm:$0xff] }
 0x7a1   :  { %4563 = vmatpush.msra.mxu3 %v4410_v48  ;;  %4603 = vmatpush.msra.mxu1 %v4411_v44  ;;  %v4417_v37 = vld [vmem:[%s9994_s16 + $0x38] sm:$0xff] }
 0x7a2   :  { %4689 = vmatpush.msra.mxu2 %v4533_v9  ;;  %v4359_v9 = vld [vmem:[%s9993_s15] sm:$0x3]  ;;  %s5832_s15 = smov 125  }
 0x7a3   :  { %4668 = vmatpush.msrb.mxu1 %v4473_v28  ;;  %v4362_v48 = vperm.slane %v4359_v9, 1  ;;  %v9705_v28 = vld [vmem:[%s9996_s18 + $0x78] sm:$0xff] }
 0x7a4   :  { %4690 = vmatpush.msra.mxu2 %v4529_v20 }
 0x7a5   :  { %4669 = vmatpush.msrb.mxu1 %v4469_v59 }
 0x7a6   :  { %4691 = vmatpush.msra.mxu2 %v4525_v53  ;;  %v9715_v53 = vld [vmem:[%s9996_s18 + $0x68] sm:$0xff] }
 0x7a7   :  { %4670 = vmatpush.msrb.mxu1 %v4465_v23 }
 0x7a8   :  { %4692 = vmatpush.msra.mxu2 %v4521_v4  ;;  %v9727_v4 = vld [vmem:[%s9996_s18 + $0x58] sm:$0xff] }
 0x7a9   :  { %4671 = vmatpush.msrb.mxu1 %v4461_v21  ;;  %v9756_v21 = vld [vmem:[%s9997_s19 + $0x48] sm:$0xff] }
 0x7aa   :  { %4693 = vmatpush.msra.mxu2 %v4517_v46  ;;  %v9744_v46 = vld [vmem:[%s9996_s18 + $0x48] sm:$0xff] }
 0x7ab   :  { %4672 = vmatpush.msrb.mxu1 %v4457_v7  ;;  %v9776_v7 = vld [vmem:[%s9997_s19 + $0x38] sm:$0xff] }
 0x7ac   :  { %4694 = vmatpush.msra.mxu2 %v4513_v31  ;;  %v9766_v31 = vld [vmem:[%s9996_s18 + $0x38] sm:$0xff] }
 0x7ad   :  { %4673 = vmatpush.msrb.mxu1 %v4453_v50  ;;  %v4729_v50 = vld [vmem:[%s9997_s19 + $0x28] sm:$0xff] }
 0x7ae   :  { %4695 = vmatpush.msra.mxu2 %v4509_v6  ;;  %v4713_v6 = vld [vmem:[%s9996_s18 + $0x28] sm:$0xff] }
 0x7af   :  { %4674 = vmatpush.msrb.mxu1 %v4449_v63  ;;  %v4727_v63 = vld [vmem:[%s9997_s19 + $0x18] sm:$0xff] }
 0x7b1   :  { %4675 = vmatpush.msrb.mxu1 %v4445_v3  ;;  %v4725_v3 = vld [vmem:[%s9997_s19 + $0x8] sm:$0xff] }
 0x7b3   :  { %4676 = vmatpush.msrb.mxu1 %v4441_v17  ;;  %v4726_v17 = vld [vmem:[%s9997_s19 + $0x10] sm:$0xff] }
 0x7b5   :  { %4677 = vmatpush.msrb.mxu1 %v4437_v58 }
 0x7b7   :  { %4678 = vmatpush.msrb.mxu1 %v4433_v57 }
 0x7b9   :  { %4679 = vmatpush.msrb.mxu1 %v4429_v39 }
 0x7bb   :  { %4680 = vmatpush.msrb.mxu1 %v4425_v12 }
 0x7bd   :  { %4681 = vmatpush.msrb.mxu1 %v4421_v52 }
 0x7bf   :  { %4682 = vmatpush.msrb.mxu1 %v4417_v37 }
 0x810   :  { %v4316_v61 = vpop.f32.mrf.mxu1 }
 0x811   :  { %v4317_v26 = vadd.f32 %v5776_v40, %v4316_v61  ;;  %v4456_v61 = vld [vmem:[%s9994_s16 + $0x170] sm:$0xff]  ;;  %v4505_v40 = vld [vmem:[%s9994_s16 + $0x2f8] sm:$0xff] }
 0x812   :  { %4696 = vmatpush.msra.mxu2 %v4505_v40  ;;  %v4711_v40 = vld [vmem:[%s9996_s18 + $0x18] sm:$0xff] }
 0x816   :  { %v4336_v0 = vpop.f32.mrf.mxu2 }
 0x817   :  { %v4337_v33 = vadd.f32 %v4336_v0, %v4317_v26  ;;  %v4448_v26 = vld [vmem:[%s9994_s16 + $0x130] sm:$0xff]  ;;  %v4501_v0 = vld [vmem:[%s9994_s16 + $0x2d8] sm:$0xff] }
 0x818   :  { %4697 = vmatpush.msra.mxu2 %v4501_v0  ;;  %v4709_v0 = vld [vmem:[%s9996_s18 + $0x8] sm:$0xff] }
 0x819   :  { %v4339_v10 = vmax.f32 %v4337_v33, 0.0  ;;  %v4496_v33 = vld [vmem:[%s9994_s16 + $0x2b0] sm:$0xff] }
 0x81a   :  { %4698 = vmatpush.msra.mxu2 %v4497_v25  ;;  %v4728_v25 = vld [vmem:[%s9997_s19 + $0x20] sm:$0xff] }
 0x81b   :  { %4340 = vst.msk [vmem:[#allocation2 + $0x1] sm:$0x1] %vm3144_vm0, %v4339_v10 }
 0x81c   :  { %4341 = vst.msk [vmem:[#allocation2 + $0x2] sm:$0x2] %vm3146_vm13, %v4339_v10  ;;  %v4493_v10 = vld [vmem:[%s9994_s16 + $0x298] sm:$0xff] }
 0x81d   :  { %4699 = vmatpush.msra.mxu2 %v4493_v10  ;;  %v4724_v10 = vld [vmem:[%s9997_s19] sm:$0xff] }
 0x81f   :  { %4700 = vmatpush.msra.mxu2 %v4489_v8  ;;  %v4538_v8 = vld [vmem:[%s9995_s17] sm:$0xf]  ;;  %s5830_s17 = smov 64  }
 0x821   :  { %4701 = vmatpush.msra.mxu2 %v4485_v2 }
 0x823   :  { %v4342_v49 = vld [vmem:[#allocation2] sm:$0xf]  ;;  %4702 = vmatpush.msra.mxu2 %v4481_v16 }
 0x824   :  { %5697 = vmatmul.msk.f32.vlgmr.msrb.gmra.mxu3 %vm1920_vm12, %v4342_v49  ;;  %5698 = vmatmul.msk.f32.vlgmr.msra.gmra.mxu0 %vm1920_vm12, %v4342_v49  ;;  %v4416_v49 = vld [vmem:[%s9994_s16 + $0x30] sm:$0xff] }
 0x825   :  { %4648 = vmatpush.msra.mxu0 %v4536_v14  ;;  %4628 = vmatpush.msrb.mxu3 %v4472_v11  ;;  %v4420_v14 = vld [vmem:[%s9994_s16 + $0x50] sm:$0xff]  ;;  %v4361_v11 = vperm.slane %v4359_v9, 0  ;;  %v4541_v9 = vperm.slane %v4538_v8, 1 }
 0x826   :  { %4703 = vmatpush.msra.mxu2 %v4477_v45 }
 0x827   :  { %4649 = vmatpush.msra.mxu0 %v4532_v56  ;;  %4629 = vmatpush.msrb.mxu3 %v4468_v43  ;;  %v4413_v56 = vld [vmem:[%s9994_s16 + $0x18] sm:$0xff]  ;;  %v9720_v43 = vld [vmem:[%s9997_s19 + $0x68] sm:$0xff] }
 0x828   :  { %4683 = vmatpush.msrb.mxu1 %v4413_v56 }
 0x829   :  { %4650 = vmatpush.msra.mxu0 %v4528_v5  ;;  %4630 = vmatpush.msrb.mxu3 %v4464_v30  ;;  %v9732_v30 = vld [vmem:[%s9997_s19 + $0x58] sm:$0xff] }
 0x82b   :  { %4651 = vmatpush.msra.mxu0 %v4524_v22  ;;  %4631 = vmatpush.msrb.mxu3 %v4460_v15  ;;  %v9710_v22 = vld [vmem:[%s9997_s19 + $0x78] sm:$0xff]  ;;  %v9751_v15 = vld [vmem:[%s9997_s19 + $0x70] sm:$0xff] }
 0x82d   :  { %4652 = vmatpush.msra.mxu0 %v4520_v24  ;;  %4632 = vmatpush.msrb.mxu3 %v4456_v61  ;;  %v4736_v61 = vld [vmem:[%s9997_s19 + $0x60] sm:$0xff] }
 0x82f   :  { %4653 = vmatpush.msra.mxu0 %v4516_v36  ;;  %4633 = vmatpush.msrb.mxu3 %v4452_v13  ;;  %v9739_v36 = vld [vmem:[%s9996_s18 + $0x70] sm:$0xff] }
 0x830   :  { %v4734_v13 = vld [vmem:[%s9997_s19 + $0x50] sm:$0xff] }
 0x831   :  { %4654 = vmatpush.msra.mxu0 %v4512_v42  ;;  %4634 = vmatpush.msrb.mxu3 %v4448_v26  ;;  %v4720_v42 = vld [vmem:[%s9996_s18 + $0x60] sm:$0xff] }
 0x832   :  { %v4732_v26 = vld [vmem:[%s9997_s19 + $0x40] sm:$0xff] }
 0x833   :  { %4655 = vmatpush.msra.mxu0 %v4508_v38  ;;  %4635 = vmatpush.msrb.mxu3 %v4444_v51  ;;  %v4718_v38 = vld [vmem:[%s9996_s18 + $0x50] sm:$0xff] }
 0x834   :  { %v4730_v51 = vld [vmem:[%s9997_s19 + $0x30] sm:$0xff]  ;;  %s5831_s19 = smov [#allocation5]  }
 0x835   :  { %4656 = vmatpush.msra.mxu0 %v4504_v1  ;;  %4636 = vmatpush.msrb.mxu3 %v4440_v41  ;;  %v4716_v1 = vld [vmem:[%s9996_s18 + $0x40] sm:$0xff]  ;;  %v4710_v41 = vld [vmem:[%s9996_s18 + $0x10] sm:$0xff]  ;;  %s5288_s16 = sshll.u32 %s5831_s19, 4  ;;  %s5289_s16 = int_to_ptr.vmem [resolvable:$true] %s5288_s16 }
 0x837   :  { %4657 = vmatpush.msra.mxu0 %v4500_v34  ;;  %4637 = vmatpush.msrb.mxu3 %v4436_v35  ;;  %v4714_v34 = vld [vmem:[%s9996_s18 + $0x30] sm:$0xff] }
 0x839   :  { %4658 = vmatpush.msra.mxu0 %v4496_v33  ;;  %4638 = vmatpush.msrb.mxu3 %v4432_v27  ;;  %v4712_v33 = vld [vmem:[%s9996_s18 + $0x20] sm:$0xff]  ;;  %v4542_v27 = vperm.slane %v4538_v8, 2 }
 0x83b   :  { %4659 = vmatpush.msra.mxu0 %v4492_v60  ;;  %4639 = vmatpush.msrb.mxu3 %v4428_v62  ;;  %v4708_v60 = vld [vmem:[%s9996_s18] sm:$0xff] }
 0x83d   :  { %4660 = vmatpush.msra.mxu0 %v4488_v54  ;;  %4640 = vmatpush.msrb.mxu3 %v4424_v55 }
 0x83f   :  { %4661 = vmatpush.msra.mxu0 %v4484_v29  ;;  %4641 = vmatpush.msrb.mxu3 %v4420_v14  ;;  %v4540_v29 = vperm.slane %v4538_v8, 0 }
 0x841   :  { %4662 = vmatpush.msra.mxu0 %v4480_v32  ;;  %4642 = vmatpush.msrb.mxu3 %v4416_v49 }
 0x843   :  { %4663 = vmatpush.msra.mxu0 %v4476_v47  ;;  %4643 = vmatpush.msrb.mxu3 %v4412_v18 }
 0x8a1   :  { %v4405_v44 = vpop.f32.mrf.mxu0 }
 0x8a2   :  { %v4406_v5 = vadd.f32 %v4405_v44, %v4362_v48 }
 0x8a4   :  { %v4409_v20 = vmax.f32 %v4406_v5, 0.0 }
 0x8a6   :  { %4584 = vmatmul.f32.vlgmr.msrb.gmra.mxu0 %v4409_v20  ;;  %4624 = vmatmul.f32.vlgmr.msrb.gmra.mxu2 %v4409_v20 }
 0x8a7   :  { %v4385_v59 = vpop.f32.mrf.mxu3  ;;  %4771 = vmatpush.msrb.mxu0 %v9705_v28  ;;  %4813 = vmatpush.msrb.mxu2 %v9710_v22 }
 0x8a8   :  { %v4386_v24 = vadd.f32 %v4385_v59, %v4361_v11 }
 0x8a9   :  { %4772 = vmatpush.msrb.mxu0 %v9715_v53  ;;  %4814 = vmatpush.msrb.mxu2 %v9720_v43 }
 0x8aa   :  { %v4408_v23 = vmax.f32 %v4386_v24, 0.0 }
 0x8ab   :  { %4773 = vmatpush.msrb.mxu0 %v9727_v4  ;;  %4815 = vmatpush.msrb.mxu2 %v9732_v30 }
 0x8ac   :  { %4564 = vmatmul.f32.vlgmr.msra.gmra.mxu3 %v4408_v23  ;;  %4604 = vmatmul.f32.vlgmr.msra.gmra.mxu1 %v4408_v23 }
 0x8ad   :  { %4751 = vmatpush.msra.mxu3 %v9739_v36  ;;  %4774 = vmatpush.msrb.mxu0 %v9744_v46 }
 0x8ae   :  { %4793 = vmatpush.msra.mxu1 %v9751_v15  ;;  %4816 = vmatpush.msrb.mxu2 %v9756_v21 }
 0x8af   :  { %4664 = vmatmul.f32.vlgmr.msra.gmra.mxu0 %v4409_v20  ;;  %4704 = vmatmul.f32.vlgmr.msra.gmra.mxu2 %v4409_v20 }
 0x8b0   :  { %4752 = vmatpush.msra.mxu3 %v4720_v42  ;;  %4775 = vmatpush.msrb.mxu0 %v9766_v31 }
 0x8b1   :  { %4794 = vmatpush.msra.mxu1 %v4736_v61  ;;  %4817 = vmatpush.msrb.mxu2 %v9776_v7 }
 0x8b2   :  { %4753 = vmatpush.msra.mxu3 %v4718_v38  ;;  %4776 = vmatpush.msrb.mxu0 %v4713_v6 }
 0x8b3   :  { %4795 = vmatpush.msra.mxu1 %v4734_v13  ;;  %4818 = vmatpush.msrb.mxu2 %v4729_v50 }
 0x8b4   :  { %4754 = vmatpush.msra.mxu3 %v4716_v1  ;;  %4777 = vmatpush.msrb.mxu0 %v4711_v40 }
 0x8b5   :  { %4796 = vmatpush.msra.mxu1 %v4732_v26  ;;  %4819 = vmatpush.msrb.mxu2 %v4727_v63 }
 0x8b6   :  { %4644 = vmatmul.f32.vlgmr.msrb.gmra.mxu3 %v4408_v23  ;;  %4684 = vmatmul.f32.vlgmr.msrb.gmra.mxu1 %v4408_v23 }
 0x8b7   :  { %4755 = vmatpush.msra.mxu3 %v4714_v34  ;;  %4778 = vmatpush.msrb.mxu0 %v4709_v0 }
 0x8b8   :  { %4797 = vmatpush.msra.mxu1 %v4730_v51  ;;  %4820 = vmatpush.msrb.mxu2 %v4725_v3 }
 0x8b9   :  { %4779 = vmatmul.f32.vlgmr.msrb.gmra.mxu0 %v5829_v19  ;;  %4821 = vmatmul.f32.vlgmr.msrb.gmra.mxu2 %v5829_v19 }
 0x8ba   :  { %4756 = vmatpush.msra.mxu3 %v4712_v33  ;;  %4798 = vmatpush.msra.mxu1 %v4728_v25 }
 0x8bb   :  { %4962 = vmatpush.msra.mxu0 %v9705_v28  ;;  %5016 = vmatpush.msra.mxu2 %v9710_v22 }
 0x8bc   :  { %4757 = vmatpush.msra.mxu3 %v4710_v41  ;;  %4799 = vmatpush.msra.mxu1 %v4726_v17 }
 0x8bd   :  { %4963 = vmatpush.msra.mxu0 %v9715_v53  ;;  %5017 = vmatpush.msra.mxu2 %v9720_v43  ;;  %v4543_v43 = vperm.slane %v4538_v8, 3 }
 0x8be   :  { %4758 = vmatpush.msra.mxu3 %v4708_v60  ;;  %4800 = vmatpush.msra.mxu1 %v4724_v10 }
 0x8bf   :  { %4759 = vmatmul.f32.vlgmr.msra.gmra.mxu3 %v5829_v19  ;;  %4801 = vmatmul.f32.vlgmr.msra.gmra.mxu1 %v5829_v19 }
 0x8c0   :  { %4942 = vmatpush.msrb.mxu3 %v9739_v36  ;;  %4964 = vmatpush.msra.mxu0 %v9727_v4 }
 0x8c1   :  { %4996 = vmatpush.msrb.mxu1 %v9751_v15  ;;  %5018 = vmatpush.msra.mxu2 %v9732_v30 }
 0x8c2   :  { %4943 = vmatpush.msrb.mxu3 %v4720_v42  ;;  %4965 = vmatpush.msra.mxu0 %v9744_v46 }
 0x8c3   :  { %4997 = vmatpush.msrb.mxu1 %v4736_v61  ;;  %5019 = vmatpush.msra.mxu2 %v9756_v21 }
 0x8c4   :  { %4944 = vmatpush.msrb.mxu3 %v4718_v38  ;;  %4966 = vmatpush.msra.mxu0 %v9766_v31 }
 0x8c5   :  { %4998 = vmatpush.msrb.mxu1 %v4734_v13  ;;  %5020 = vmatpush.msra.mxu2 %v9776_v7 }
 0x8c6   :  { %4945 = vmatpush.msrb.mxu3 %v4716_v1  ;;  %4967 = vmatpush.msra.mxu0 %v4713_v6 }
 0x8c7   :  { %4999 = vmatpush.msrb.mxu1 %v4732_v26  ;;  %5021 = vmatpush.msra.mxu2 %v4729_v50 }
 0x8c8   :  { %4946 = vmatpush.msrb.mxu3 %v4714_v34  ;;  %4968 = vmatpush.msra.mxu0 %v4711_v40 }
 0x8c9   :  { %5000 = vmatpush.msrb.mxu1 %v4730_v51  ;;  %5022 = vmatpush.msra.mxu2 %v4727_v63 }
 0x8ca   :  { %4947 = vmatpush.msrb.mxu3 %v4712_v33  ;;  %4969 = vmatpush.msra.mxu0 %v4709_v0 }
 0x8cb   :  { %5001 = vmatpush.msrb.mxu1 %v4728_v25  ;;  %5023 = vmatpush.msra.mxu2 %v4725_v3 }
 0x8cc   :  { %4948 = vmatpush.msrb.mxu3 %v4710_v41 }
 0x8cd   :  { %5002 = vmatpush.msrb.mxu1 %v4726_v17 }
 0x8ce   :  { %4949 = vmatpush.msrb.mxu3 %v4708_v60 }
 0x8cf   :  { %5003 = vmatpush.msrb.mxu1 %v4724_v10 }
 0x923   :  { %v4585_v58 = vpop.f32.mrf.mxu0 }
 0x929   :  { %v4605_v19 = vpop.f32.mrf.mxu1  ;;  %v4625_v52 = vpop.f32.mrf.mxu2 }
 0x92a   :  { %v4606_v20 = vadd.f32 %v4605_v19, %v4541_v9 }
 0x92c   :  { %v4665_v62 = vpop.f32.mrf.mxu0  ;;  %v9859_v53 = vadd.f32 %v4625_v52, %v4606_v20 }
 0x92f   :  { %v4565_v35 = vpop.f32.mrf.mxu3 }
 0x930   :  { %v4566_v16 = vadd.f32 %v4565_v35, %v4540_v29 }
 0x932   :  { %v9856_v45 = vadd.f32 %v4585_v58, %v4566_v16  ;;  %v4705_v44 = vpop.f32.mrf.mxu2 }
 0x933   :  { %v4685_v54 = vpop.f32.mrf.mxu1 }
 0x934   :  { %v4686_v36 = vadd.f32 %v4685_v54, %v4543_v43 }
 0x936   :  { %v4780_v28 = vpop.f32.mrf.mxu0  ;;  %v9862_v7 = vadd.f32 %v4705_v44, %v4686_v36 }
 0x937   :  { %v4784_v24 = vadd.f32 %v4780_v28, %v9859_v53 }
 0x939   :  { %v4645_v57 = vpop.f32.mrf.mxu3  ;;  %v5700_v17 = vmul.f32 -1.442695, %v4784_v24 }
 0x93a   :  { %v4646_v2 = vadd.f32 %v4645_v57, %v4542_v27 }
 0x93c   :  { %v9853_v32 = vadd.f32 %v4665_v62, %v4646_v2  ;;  %v4802_v39 = vpop.f32.mrf.mxu1  ;;  %v4822_v4 = vpop.f32.mrf.mxu2 }
 0x93d   :  { %v4827_v55 = vrot.slane %v4802_v39, 6  ;;  %v4828_v15 = vrot.slane %v4822_v4, 6 }
 0x93f   :  { %v4831_v47 = vadd.f32 %v4827_v55, %v9853_v32  ;;  %v4832_v6 = vadd.f32 %v4828_v15, %v9862_v7 }
 0x941   :  { %v5701_v12 = vmul.f32 -1.442695, %v4831_v47  ;;  %v5702_v60 = vmul.f32 -1.442695, %v4832_v6 }
 0x942   :  { %v4760_v14 = vpop.f32.mrf.mxu3 }
 0x943   :  { %5726 = vpow2.f32 %v5701_v12  ;;  %v4783_v49 = vadd.f32 %v4760_v14, %v9856_v45 }
 0x945   :  { %v5699_v37 = vmul.f32 -1.442695, %v4783_v49 }
 0x947   :  { %5728 = vpow2.f32 %v5699_v37 }
 0x949   :  { %v5727_v18 = vpop.eup %5726 }
 0x94a   :  { %v4884_v56 = vadd.f32 1.0, %v5727_v18 }
 0x94c   :  { %5730 = vrcp.f32 %v4884_v56  ;;  %v4896_v63 = vand.u32 2147483648, %v4884_v56  ;;  %vm4890_vm7 = vweird.f32 %v4884_v56  ;;  %v4894_v0 = vand.u32 2147483647, %v4884_v56 }
 0x94d   :  { %v5729_v48 = vpop.eup %5728 }
 0x94e   :  { %v4836_v5 = vadd.f32 1.0, %v5729_v48  ;;  %v4897_v3 = vor.u32 1.1754944e-38, %v4896_v63  ;;  %vm4895_vm9 = vcmp.eq.f32.partialorder %v4894_v0, 8.507059e+37 }
 0x950   :  { %5732 = vrcp.f32 %v4836_v5  ;;  %v4848_v21 = vand.u32 2147483648, %v4836_v5  ;;  %v4846_v31 = vand.u32 2147483647, %v4836_v5  ;;  %vm4842_vm3 = vweird.f32 %v4836_v5 }
 0x951   :  { %5734 = vtanh.f32 %v4784_v24 }
 0x952   :  { %v5731_v11 = vpop.eup %5730  ;;  %v4849_v13 = vor.u32 1.1754944e-38, %v4848_v21  ;;  %vm4847_vm5 = vcmp.eq.f32.partialorder %v4846_v31, 8.507059e+37  ;;  %5736 = vtanh.f32 %v4832_v6  ;;  %v5141_v6 = vld [vmem:[%s9998_s20] sm:$0x7]  ;;  %s5290_s20 = sshll.u32 %s10004_s26, 4  ;;  %s5291_s20 = int_to_ptr.hbm [resolvable:$true] %s5290_s20 }
 0x953   :  { %v4886_v22 = vmul.f32 %v5731_v11, %v4884_v56  ;;  %vm4891_vm6 = vweird.f32 %v5731_v11  ;;  %5738 = vpow2.f32 %v5700_v17  ;;  %5711 = vmatpush.msk.msra.mxu3 %vm1161_vm10, %v5141_v6 }
 0x954   :  { %vm4892_vm8 = vmor %vm4890_vm7, %vm4891_vm6  ;;  %5740 = vpow2.f32 %v5702_v60 }
 0x955   :  { %v4887_v23 = vsub.f32 1.0, %v4886_v22 }
 0x956   :  { %v5733_v59 = vpop.eup %5732 }
 0x957   :  { %v4838_v30 = vmul.f32 %v5733_v59, %v4836_v5  ;;  %vm4843_vm2 = vweird.f32 %v5733_v59  ;;  %v4888_v61 = vmul.f32 %v5731_v11, %v4887_v23  ;;  %v5735_v40 = vpop.eup %5734 }
 0x958   :  { %vm4844_vm4 = vmor %vm4842_vm3, %vm4843_vm2  ;;  %v5737_v25 = vpop.eup %5736 }
 0x959   :  { %v4839_v46 = vsub.f32 1.0, %v4838_v30  ;;  %v4889_v1 = vadd.f32 %v5731_v11, %v4888_v61  ;;  %v5739_v10 = vpop.eup %5738 }
 0x95a   :  { %v4856_v19 = vadd.f32 1.0, %v5739_v10  ;;  %v5741_v35 = vpop.eup %5740 }
 0x95b   :  { %v4840_v42 = vmul.f32 %v5733_v59, %v4839_v46  ;;  %v4893_v51 = vsel %vm4892_vm8, %v5731_v11, %v4889_v1  ;;  %v4904_v58 = vadd.f32 1.0, %v5741_v35 }
 0x95c   :  { %v4898_v33 = vsel %vm4895_vm9, %v4897_v3, %v4893_v51  ;;  %5742 = vrcp.f32 %v4856_v19  ;;  %v4868_v12 = vand.u32 2147483648, %v4856_v19  ;;  %vm4862_vm11 = vweird.f32 %v4856_v19 }
 0x95d   :  { %v4841_v38 = vadd.f32 %v5733_v59, %v4840_v42  ;;  %v4921_v41 = vmul.f32 %v5737_v25, %v4898_v33  ;;  %5744 = vrcp.f32 %v4904_v58  ;;  %v4866_v14 = vand.u32 2147483647, %v4856_v19 }
 0x95e   :  { %v4920_v37 = vmul.f32 0.0, %v4898_v33  ;;  %v4869_v18 = vor.u32 1.1754944e-38, %v4868_v12  ;;  %v4916_v11 = vand.u32 2147483648, %v4904_v58  ;;  %vm4910_vm13 = vweird.f32 %v4904_v58 }
 0x95f   :  { %v4845_v50 = vsel %vm4844_vm4, %v5733_v59, %v4841_v38  ;;  %vm4867_vm15 = vcmp.eq.f32.partialorder %v4866_v14, 8.507059e+37  ;;  %v4914_v28 = vand.u32 2147483647, %v4904_v58 }
 0x960   :  { %v4850_v26 = vsel %vm4847_vm5, %v4849_v13, %v4845_v50  ;;  %v4917_v43 = vor.u32 1.1754944e-38, %v4916_v11 }
 0x961   :  { %v4873_v34 = vmul.f32 %v5735_v40, %v4850_v26  ;;  %v4872_v62 = vmul.f32 0.0, %v4850_v26  ;;  %vm4915_vm3 = vcmp.eq.f32.partialorder %v4914_v28, 8.507059e+37 }
 0x962   :  { %v5743_v54 = vpop.eup %5742 }
 0x963   :  { %4875 = vrot.lane.b32.xlu0 %v4873_v34, %s5830_s17  ;;  %v4858_v8 = vmul.f32 %v5743_v54, %v4856_v19  ;;  %v5745_v29 = vpop.eup %5744  ;;  %vm4863_vm1 = vweird.f32 %v5743_v54 }
 0x964   :  { %v4906_v2 = vmul.f32 %v5745_v29, %v4904_v58  ;;  %vm4864_vm14 = vmor %vm4862_vm11, %vm4863_vm1  ;;  %vm4911_vm0 = vweird.f32 %v5745_v29  ;;  %vm5146_vm11 = vcmask 23552  }
 0x965   :  { %v4859_v27 = vsub.f32 1.0, %v4858_v8  ;;  %vm4912_vm2 = vmor %vm4910_vm13, %vm4911_vm0 }
 0x966   :  { %v4907_v47 = vsub.f32 1.0, %v4906_v2 }
 0x967   :  { %v4860_v57 = vmul.f32 %v5743_v54, %v4859_v27 }
 0x968   :  { %v4908_v49 = vmul.f32 %v5745_v29, %v4907_v47 }
 0x969   :  { %v4861_v55 = vadd.f32 %v5743_v54, %v4860_v57 }
 0x96a   :  { %v4909_v20 = vadd.f32 %v5745_v29, %v4908_v49 }
 0x96b   :  { %4923 = vrot.lane.b32.xlu0 %v4921_v41, %s5830_s17  ;;  %v4865_v52 = vsel %vm4864_vm14, %v5743_v54, %v4861_v55 }
 0x96c   :  { %v4870_v44 = vsel %vm4867_vm15, %v4869_v18, %v4865_v52  ;;  %v4913_v22 = vsel %vm4912_vm2, %v5745_v29, %v4909_v20 }
 0x96d   :  { %v4918_v24 = vsel %vm4915_vm3, %v4917_v43, %v4913_v22  ;;  %v5181_v22 = vld [vmem:[%s10000_s22 + $0x38] sm:$0xff]  ;;  %v5180_v43 = vld [vmem:[%s10000_s22 + $0x30] sm:$0xff] }
 0x9d5   :  { %v4876_v39 = vpop.permute.xlu0 %4875 }
 0x9d6   :  { %v9867_v16 = vadd.f32 %v4876_v39, %v4872_v62 }
 0x9d8   :  { %5746 = vtanh.f32 %v9867_v16  ;;  %v5070_v54 = vrot.slane %v9867_v16, 6 }
 0x9dd   :  { %v4924_v56 = vpop.permute.xlu0 %4923 }
 0x9de   :  { %v5747_v9 = vpop.eup %5746  ;;  %v9870_v48 = vadd.f32 %v4924_v56, %v4920_v37  ;;  %v5140_v37 = vld [vmem:[%s10058_s7] sm:$0x3] }
 0x9df   :  { %v9872_v5 = vmul.f32 %v5747_v9, %v4870_v44 }
 0x9e0   :  { %5748 = vtanh.f32 %v9870_v48  ;;  %v5125_v2 = vrot.slane %v9870_v48, 2 }
 0x9e1   :  { %4930 = vrot.lane.b32.xlu1 %v9872_v5, %s5830_s17 }
 0x9e6   :  { %v5749_v59 = vpop.eup %5748 }
 0x9e7   :  { %v9877_v4 = vmul.f32 %v5749_v59, %v4918_v24  ;;  %v5189_v24 = vld [vmem:[%s10001_s23 + $0x38] sm:$0xff] }
 0x9e8   :  { %5204 = vmatpush.msrb.mxu0 %v5189_v24 }
 0x9e9   :  { %v4983_v30 = vrot.slane %v9877_v4, 2 }
 0x9eb   :  { %4984 = vrot.lane.b32.xlu1 %v4983_v30, %s5830_s17  ;;  %v5179_v30 = vld [vmem:[%s10000_s22 + $0x28] sm:$0xff] }
 0xa53   :  { %v4931_v23 = vpop.permute.xlu1 %4930 }
 0xa54   :  { %5703 = vmatmul.msk.f32.vlgmr.msrb.gmra.mxu3 %vm1920_vm12, %v4931_v23  ;;  %5704 = vmatmul.msk.f32.vlgmr.msra.gmra.mxu0 %vm1920_vm12, %v4931_v23  ;;  %v5188_v23 = vld [vmem:[%s10001_s23 + $0x30] sm:$0xff] }
 0xa55   :  { %5229 = vmatpush.msrb.mxu3 %v5181_v22  ;;  %5205 = vmatpush.msrb.mxu0 %v5188_v23 }
 0xa57   :  { %5230 = vmatpush.msrb.mxu3 %v5180_v43 }
 0xa59   :  { %5231 = vmatpush.msrb.mxu3 %v5179_v30 }
 0xa5c   :  { %5712 = vmatmul.msk.f32.vlgmr.msra.gmra.mxu3 %vm5146_vm11, %v5140_v37 }
 0xa5d   :  { %v4985_v36 = vpop.permute.xlu1 %4984 }
 0xa5e   :  { %5705 = vmatmul.msk.f32.vlgmr.msrb.gmra.mxu1 %vm1920_vm12, %v4985_v36  ;;  %5706 = vmatmul.msk.f32.vlgmr.msra.gmra.mxu2 %vm1920_vm12, %v4985_v36  ;;  %v5187_v36 = vld [vmem:[%s10001_s23 + $0x28] sm:$0xff] }
 0xa5f   :  { %5206 = vmatpush.msrb.mxu0 %v5187_v36 }
 0xad1   :  { %v4971_v40 = vpop.f32.mrf.mxu0 }
 0xad7   :  { %v4951_v46 = vpop.f32.mrf.mxu3 }
 0xad8   :  { %v4976_v15 = vrot.slane %v4951_v46, 6 }
 0xada   :  { %v4980_v21 = vadd.f32 %v4976_v15, %v9856_v45  ;;  %v4977_v45 = vrot.slane %v4971_v40, 6  ;;  %v5175_v40 = vld [vmem:[%s10000_s22 + $0x8] sm:$0xff] }
 0xadb   :  { %v5005_v42 = vpop.f32.mrf.mxu1 }
 0xadc   :  { %v5707_v31 = vmul.f32 -1.442695, %v4980_v21  ;;  %v5028_v61 = vadd.f32 %v5005_v42, %v9853_v32  ;;  %v4981_v32 = vadd.f32 %v4977_v45, %v9859_v53  ;;  %v5178_v21 = vld [vmem:[%s10000_s22 + $0x20] sm:$0xff] }
 0xadd   :  { %5232 = vmatpush.msrb.mxu3 %v5178_v21 }
 0xade   :  { %5750 = vpow2.f32 %v5707_v31  ;;  %v5709_v38 = vmul.f32 -1.442695, %v5028_v61  ;;  %v5708_v49 = vmul.f32 -1.442695, %v4981_v32  ;;  %v5177_v31 = vld [vmem:[%s10000_s22 + $0x18] sm:$0xff] }
 0xadf   :  { %5233 = vmatpush.msrb.mxu3 %v5177_v31 }
 0xae0   :  { %5752 = vpow2.f32 %v5709_v38 }
 0xae1   :  { %v5025_v25 = vpop.f32.mrf.mxu2 }
 0xae2   :  { %v5029_v53 = vadd.f32 %v5025_v25, %v9862_v7 }
 0xae4   :  { %v5751_v13 = vpop.eup %5750  ;;  %v5710_v18 = vmul.f32 -1.442695, %v5029_v53 }
 0xae5   :  { %v5033_v50 = vadd.f32 1.0, %v5751_v13  ;;  %v5176_v13 = vld [vmem:[%s10000_s22 + $0x10] sm:$0xff] }
 0xae6   :  { %v5753_v1 = vpop.eup %5752  ;;  %5234 = vmatpush.msrb.mxu3 %v5176_v13 }
 0xae7   :  { %5754 = vrcp.f32 %v5033_v50  ;;  %v5088_v26 = vadd.f32 1.0, %v5753_v1  ;;  %v5045_v33 = vand.u32 2147483648, %v5033_v50  ;;  %v5043_v17 = vand.u32 2147483647, %v5033_v50 }
 0xae8   :  { %vm5039_vm4 = vweird.f32 %v5033_v50  ;;  %5235 = vmatpush.msrb.mxu3 %v5175_v40 }
 0xae9   :  { %5756 = vrcp.f32 %v5088_v26  ;;  %v5100_v10 = vand.u32 2147483648, %v5088_v26  ;;  %v5098_v58 = vand.u32 2147483647, %v5088_v26  ;;  %v5046_v8 = vor.u32 1.1754944e-38, %v5045_v33 }
 0xaea   :  { %5758 = vtanh.f32 %v4981_v32  ;;  %vm5044_vm7 = vcmp.eq.f32.partialorder %v5043_v17, 8.507059e+37  ;;  %vm5094_vm8 = vweird.f32 %v5088_v26 }
 0xaeb   :  { %v5101_v39 = vor.u32 1.1754944e-38, %v5100_v10  ;;  %vm5099_vm1 = vcmp.eq.f32.partialorder %v5098_v58, 8.507059e+37  ;;  %5760 = vtanh.f32 %v5029_v53 }
 0xaec   :  { %5762 = vpow2.f32 %v5708_v49 }
 0xaed   :  { %v5755_v63 = vpop.eup %5754  ;;  %5764 = vpow2.f32 %v5710_v18 }
 0xaee   :  { %v5035_v34 = vmul.f32 %v5755_v63, %v5033_v50  ;;  %vm5040_vm10 = vweird.f32 %v5755_v63 }
 0xaef   :  { %v5757_v0 = vpop.eup %5756  ;;  %vm5041_vm6 = vmor %vm5039_vm4, %vm5040_vm10 }
 0xaf0   :  { %v5090_v51 = vmul.f32 %v5757_v0, %v5088_v26  ;;  %v5036_v3 = vsub.f32 1.0, %v5035_v34  ;;  %vm5095_vm5 = vweird.f32 %v5757_v0  ;;  %v5759_v57 = vpop.eup %5758 }
 0xaf1   :  { %vm5096_vm9 = vmor %vm5094_vm8, %vm5095_vm5  ;;  %v5761_v14 = vpop.eup %5760  ;;  %vm5245_vm5 = vcmask 261120  }
 0xaf2   :  { %v5037_v41 = vmul.f32 %v5755_v63, %v5036_v3  ;;  %v5091_v60 = vsub.f32 1.0, %v5090_v51  ;;  %v5763_v56 = vpop.eup %5762 }
 0xaf3   :  { %v5053_v9 = vadd.f32 1.0, %v5763_v56  ;;  %v5765_v48 = vpop.eup %5764 }
 0xaf4   :  { %v5038_v19 = vadd.f32 %v5755_v63, %v5037_v41  ;;  %v5092_v35 = vmul.f32 %v5757_v0, %v5091_v60  ;;  %v5108_v44 = vadd.f32 1.0, %v5765_v48 }
 0xaf5   :  { %5766 = vrcp.f32 %v5053_v9  ;;  %v5065_v50 = vand.u32 2147483648, %v5053_v9  ;;  %vm5059_vm15 = vweird.f32 %v5053_v9  ;;  %v5063_v1 = vand.u32 2147483647, %v5053_v9 }
 0xaf6   :  { %v5042_v27 = vsel %vm5041_vm6, %v5755_v63, %v5038_v19  ;;  %v5093_v29 = vadd.f32 %v5757_v0, %v5092_v35  ;;  %5768 = vrcp.f32 %v5108_v44  ;;  %v5174_v63 = vld [vmem:[%s10000_s22] sm:$0xff]  ;;  %v5120_v41 = vand.u32 2147483648, %v5108_v44  ;;  %s5833_s22 = smov [#allocation7]  }
 0xaf7   :  { %v5047_v62 = vsel %vm5044_vm7, %v5046_v8, %v5042_v27  ;;  %v5066_v32 = vor.u32 1.1754944e-38, %v5065_v50  ;;  %vm5064_vm13 = vcmp.eq.f32.partialorder %v5063_v1, 8.507059e+37  ;;  %5236 = vmatpush.msrb.mxu3 %v5174_v63  ;;  %vm5114_vm3 = vweird.f32 %v5108_v44  ;;  %s5299_s7 = sshll.u32 %s5833_s22, 4  ;;  %s5300_s7 = int_to_ptr.vmem [resolvable:$true] %s5299_s7 }
 0xaf8   :  { %v5073_v55 = vmul.f32 %v5759_v57, %v5047_v62  ;;  %v5097_v47 = vsel %vm5096_vm9, %v5757_v0, %v5093_v29  ;;  %v5072_v12 = vmul.f32 %v5070_v54, %v5047_v62  ;;  %v5118_v60 = vand.u32 2147483647, %v5108_v44  ;;  %v5186_v57 = vld [vmem:[%s10001_s23 + $0x20] sm:$0xff] }
 0xaf9   :  { %v5102_v16 = vsel %vm5099_vm1, %v5101_v39, %v5097_v47  ;;  %v5121_v35 = vor.u32 1.1754944e-38, %v5120_v41  ;;  %5207 = vmatpush.msrb.mxu0 %v5186_v57  ;;  %v5724_v62 = vld [vmem:[%s9999_s21] ss:$0 sm:$0xff]  ;;  %v5184_v39 = vld [vmem:[%s10001_s23 + $0x10] sm:$0xff]  ;;  %v5170_v47 = vpop.f32.mrf.mxu3  ;;  %vm5275_vm6 = vcmask 17408  }
 0xafa   :  { %5075 = vrot.lane.b32.xlu2 %v5073_v55, %s5830_s17  ;;  %v5127_v7 = vmul.f32 %v5125_v2, %v5102_v16  ;;  %v5128_v52 = vmul.f32 %v5761_v14, %v5102_v16  ;;  %vm5119_vm4 = vcmp.eq.f32.partialorder %v5118_v60, 8.507059e+37  ;;  %v5244_v2 = vld [vmem:[%s10002_s24 + $0x18] sm:$0xff]  ;;  %v5242_v55 = vld [vmem:[%s10002_s24 + $0x8] sm:$0xff]  ;;  %v5171_v16 = vadd.f32 %v5724_v62, %v5170_v47 }
 0xafb   :  { %v5767_v20 = vpop.eup %5766  ;;  %5261 = vmatpush.msra.mxu1 %v5244_v2 }
 0xafc   :  { %v5055_v11 = vmul.f32 %v5767_v20, %v5053_v9  ;;  %v5769_v59 = vpop.eup %5768  ;;  %vm5060_vm14 = vweird.f32 %v5767_v20  ;;  %v5173_v14 = vmax.f32 %v5171_v16, 0.0 }
 0xafd   :  { %v5110_v46 = vmul.f32 %v5769_v59, %v5108_v44  ;;  %vm5061_vm0 = vmor %vm5059_vm15, %vm5060_vm14  ;;  %vm5115_vm2 = vweird.f32 %v5769_v59  ;;  %v5725_v44 = vld [vmem:[%s10003_s25] ss:$0 sm:$0xff]  ;;  %s5301_s25 = sshll.u32 %s10005_s27, 4  ;;  %s5302_s25 = int_to_ptr.hbm [resolvable:$true] %s5301_s25 }
 0xafe   :  { %v5056_v28 = vsub.f32 1.0, %v5055_v11  ;;  %vm5116_vm10 = vmor %vm5114_vm3, %vm5115_vm2 }
 0xaff   :  { %v5111_v38 = vsub.f32 1.0, %v5110_v46 }
 0xb00   :  { %v5057_v15 = vmul.f32 %v5767_v20, %v5056_v28 }
 0xb01   :  { %v5112_v45 = vmul.f32 %v5769_v59, %v5111_v38 }
 0xb02   :  { %5130 = vrot.lane.b32.xlu2 %v5128_v52, %s5830_s17  ;;  %v5058_v6 = vadd.f32 %v5767_v20, %v5057_v15  ;;  %v5241_v52 = vld [vmem:[%s10002_s24] sm:$0xff] }
 0xb03   :  { %v5113_v25 = vadd.f32 %v5769_v59, %v5112_v45 }
 0xb04   :  { %v5062_v26 = vsel %vm5061_vm0, %v5767_v20, %v5058_v6 }
 0xb05   :  { %v5067_v3 = vsel %vm5064_vm13, %v5066_v32, %v5062_v26  ;;  %v5117_v19 = vsel %vm5116_vm10, %v5769_v59, %v5113_v25 }
 0xb06   :  { %v5122_v54 = vsel %vm5119_vm4, %v5121_v35, %v5117_v19 }
 0xb54   :  { %v5076_v42 = vpop.permute.xlu2 %5075 }
 0xb55   :  { %v5078_v61 = vadd.f32 %v5076_v42, %v5072_v12  ;;  %v5183_v12 = vld [vmem:[%s10001_s23 + $0x8] sm:$0xff] }
 0xb57   :  { %5770 = vtanh.f32 %v5078_v61 }
 0xb5c   :  { %v5131_v34 = vpop.permute.xlu2 %5130 }
 0xb5d   :  { %v5771_v0 = vpop.eup %5770  ;;  %v5133_v51 = vadd.f32 %v5131_v34, %v5127_v7  ;;  %v5182_v7 = vld [vmem:[%s10001_s23] sm:$0xff] }
 0xb5e   :  { %v5080_v33 = vmul.f32 %v5771_v0, %v5067_v3 }
 0xb5f   :  { %5772 = vtanh.f32 %v5133_v51 }
 0xb60   :  { %v5082_v17 = vrot.slane %v5080_v33, 2 }
 0xb62   :  { %v5084_v10 = vmax.f32 %v9872_v5, %v5082_v17  ;;  %v5185_v5 = vld [vmem:[%s10001_s23 + $0x18] sm:$0xff] }
 0xb63   :  { %5208 = vmatpush.msrb.mxu0 %v5185_v5 }
 0xb64   :  { %5217 = vrot.lane.b32.xlu0 %v5084_v10, %s5830_s17 }
 0xb65   :  { %v5773_v58 = vpop.eup %5772  ;;  %5209 = vmatpush.msrb.mxu0 %v5184_v39 }
 0xb66   :  { %v5135_v53 = vmul.f32 %v5773_v58, %v5122_v54 }
 0xb67   :  { %5210 = vmatpush.msrb.mxu0 %v5183_v12 }
 0xb68   :  { %v5137_v8 = vrot.slane %v5135_v53, 6 }
 0xb69   :  { %5211 = vmatpush.msrb.mxu0 %v5182_v7 }
 0xb6a   :  { %v5139_v27 = vmax.f32 %v9877_v4, %v5137_v8  ;;  %v5243_v4 = vld [vmem:[%s10002_s24 + $0x10] sm:$0xff] }
 0xb6b   :  { %5262 = vmatpush.msra.mxu1 %v5243_v4 }
 0xb6c   :  { %v5191_v29 = vrot.slane %v5139_v27, 2 }
 0xb6d   :  { %5263 = vmatpush.msra.mxu1 %v5242_v55 }
 0xb6e   :  { %5192 = vrot.lane.b32.xlu1 %v5191_v29, %s5830_s17 }
 0xb6f   :  { %5264 = vmatpush.msra.mxu1 %v5241_v52 }
 0xb70   :  { %5715 = vmatmul.msk.f32.vlgmr.msra.gmra.mxu1 %vm5245_vm5, %v5173_v14 }
 0xbd6   :  { %v5218_v49 = vpop.permute.xlu0 %5217 }
 0xbd7   :  { %5714 = vmatmul.msk.f32.vlgmr.msrb.gmra.mxu3 %vm1920_vm12, %v5218_v49 }
 0xbe0   :  { %v5193_v37 = vpop.permute.xlu1 %5192 }
 0xbe1   :  { %5713 = vmatmul.msk.f32.vlgmr.msrb.gmra.mxu0 %vm1920_vm12, %v5193_v37  ;;  %vm5281_vm12 = vcmask 25600  }
 0xbed   :  { %v5266_v18 = vpop.f32.mrf.mxu1 }
 0xc5a   :  { %v5238_v56 = vpop.f32.mrf.mxu3 }
 0xc5e   :  { %v5213_v9 = vpop.f32.mrf.mxu0 }
 0xc5f   :  { %v5239_v48 = vadd.f32 %v5238_v56, %v5213_v9 }
 0xc61   :  { %v5269_v20 = vadd.f32 %v5266_v18, %v5239_v48 }
 0xc63   :  { %v5274_v11 = vadd.f32 %v5725_v44, %v5269_v20 }
 0xc65   :  { %5278 = vrot.lane.b32.xlu2 %v5274_v11, %s5832_s15  ;;  %5276 = vst.msk [vmem:[#allocation5] sm:$0x3] %vm5275_vm6, %v5274_v11 }
 0xc66   :  { %5293 = dma.vmem_to_hbm [thread:$0]  %s5289_s16, 32, %s5291_s20, [#allocation6]  }
 0xcbf   :  { %v5279_v28 = vpop.permute.xlu2 %5278 }
 0xcc0   :  { %5282 = vst.msk [vmem:[#allocation7] sm:$0x3] %vm5281_vm12, %v5279_v28 }
 0xcc1   :  { %5304 = dma.vmem_to_hbm [thread:$0]  %s5300_s7, 32, %s5302_s25, [#allocation8]  }
 0xcc2   :  { %5825 = dma.done.wait [#allocation6], 32  }
 0xcc3   :  { %5826 = vsyncadd [#allocation6], 4294967264 }
 0xcc4   :  { %5827 = dma.done.wait [#allocation8], 32  }
 0xcc5   :  { %5828 = vsyncadd [#allocation8], 4294967264 }
 0xcc6   :  { %5313 = vsyncpa [#allocation6], 1 }
 0xcc7   :  { %5314 = vsyncpa [#allocation8], 1 }

</bundles_post_ra>
